<compile_context>
chip_gen: v7x
topology: tpu7x:2x2x1
jax: 0.10.0
libtpu: 0.0.40
codegen_flags: <defaults>
</compile_context>

<pallas_src>
import functools

import jax
import jax.numpy as jnp
from jax.experimental import pallas as pl
from jax.experimental.pallas import tpu as pltpu

NEG_SLOPE = 0.2          # LeakyReLU slope used throughout the network

# ----- module hyper-parameters (small, consistent with the module signature) -----
IN_CHANNELS = 4
CONV_CHANNELS = [16, 32, 64]
MLP_DEPTH = 2
EMBEDDING_SIZE = 128
NUM_CLASSES = 6
NUM_NEIGHBORS = 8
GRAD_REGULARIZER = 1e-3
GRAD_KERNEL_WIDTH = 1.0

F32 = jnp.float32


# =============================== small helpers ===============================

def _leaky(x):
    return jnp.where(x > 0, x, NEG_SLOPE * x)


def _dot(a, b):
    """f32 matmul with explicit f32 accumulation (safe on MXU and in interpret mode)."""
    return jnp.dot(a, b, preferred_element_type=F32)


def _full_spec(shape):
    nd = len(shape)
    return pl.BlockSpec(shape, lambda i, _nd=nd: (0,) * _nd)


def _vec_nonlin(y, b, n):
    """Rotation-equivariant nonlinearity on row-stacked [hu; hv] (EUP rsqrt form)."""
    hu, hv = y[:n], y[n:]
    norm2 = hu * hu + hv * hv + 1e-12
    inv = jax.lax.rsqrt(norm2)              # EUP
    g = norm2 * inv + b                     # ||v|| + b
    g = jnp.where(g > 0, g, NEG_SLOPE * g)  # LeakyReLU gate on the norm
    scale = g * inv
    return jnp.concatenate([hu * scale, hv * scale], axis=0)


# ======================= fused per-layer DeltaConv kernel =======================

def _delta_conv_kernel(*refs, n, depth, first_layer):
    it = iter(refs)
    g_ref = next(it)      # [2n, n]  f32  = [Gu ; Gv]
    gt_ref = next(it)     # [n, 2n]  f32  = [Gu^T | Gv^T]
    xin_ref = next(it)    # [n, c_in] (first layer) or [3n, c_in] packed [x; vu; vv]
    w_vec_v = next(it)    # [c_in, c_out]  (vec weight, rows for the vector part)
    w_vec_g = next(it)    # [c_in, c_out]  (vec weight, rows for the grad part)
    vec_w_rest = [next(it) for _ in range(depth - 1)]
    vec_b = [next(it) for _ in range(depth)]
    w_sc_x = next(it)     # scalar MLP first weight pre-split: x / div / curl rows
    w_sc_d = next(it)
    w_sc_c = next(it)
    sc_w_rest = [next(it) for _ in range(depth - 1)]
    sc_b = [next(it) for _ in range(depth)]
    out_ref = next(it)    # [3n, c_out] packed [s ; hu ; hv]

    xin = xin_ref[...]
    if first_layer:
        x = xin
    else:
        x = xin[:n]
        vu = xin[n:2 * n]
        vv = xin[2 * n:]

    g = g_ref[...]
    gt = gt_ref[...]

    # tangent gradient of x: one stacked matmul gives both Gu@x and Gv@x
    gx = _dot(g, x)                                          # [2n, c_in]
    if first_layer:
        sv = gx                                              # initial vector features = grad(x)
    else:
        sv = jnp.concatenate([vu, vv], axis=0)               # [2n, c_in]

    # ---- vector stream: shared weights applied to row-stacked [hu; hv] ----
    y = _dot(sv, w_vec_v[...]) + _dot(gx, w_vec_g[...])      # == [v | grad x] @ W, stacked
    y = _vec_nonlin(y, vec_b[0][...], n)
    for d in range(1, depth):
        y = _dot(y, vec_w_rest[d - 1][...])
        y = _vec_nonlin(y, vec_b[d][...], n)
    hu, hv = y[:n], y[n:]

    # ---- divergence / curl: two K=2n contractions against the stacked operator ----
    div_v = -_dot(gt, jnp.concatenate([hu, hv], axis=0))     # -(Gu^T hu + Gv^T hv)
    curl_v = -_dot(gt, jnp.concatenate([hv, -hu], axis=0))   # -(Gu^T hv - Gv^T hu)

    # ---- scalar stream: MLP([x, div v, curl v]) with the first weight pre-split ----
    s = (_dot(x, w_sc_x[...]) + _dot(div_v, w_sc_d[...]) + _dot(curl_v, w_sc_c[...])
         + sc_b[0][...])
    s = _leaky(s)
    for d in range(1, depth):
        s = _dot(s, sc_w_rest[d - 1][...]) + sc_b[d][...]
        s = _leaky(s)

    out_ref[...] = jnp.concatenate([s, hu, hv], axis=0)      # [3n, c_out]


def delta_conv_layer(g_f32, gt_f32, xin, layer_p, *, first_layer):
    n = g_f32.shape[1]
    c_in = xin.shape[1]
    vec_w, vec_b = layer_p['vec_w'], layer_p['vec_b']
    sc_w, sc_b = layer_p['sc_w'], layer_p['sc_b']
    depth = len(vec_w)
    c_out = vec_w[0].shape[1]

    # host-side weight splits -> no narrow lane-axis concat needed inside the kernel
    w_vec_v = vec_w[0][:c_in]
    w_vec_g = vec_w[0][c_in:]
    w_sc_x = sc_w[0][:c_in]
    w_sc_d = sc_w[0][c_in:c_in + c_out]
    w_sc_c = sc_w[0][c_in + c_out:]

    inputs = [g_f32, gt_f32, xin.astype(F32),
              w_vec_v, w_vec_g, *vec_w[1:],
              *[jnp.reshape(b, (1, c_out)) for b in vec_b],
              w_sc_x, w_sc_d, w_sc_c, *sc_w[1:],
              *[jnp.reshape(b, (1, c_out)) for b in sc_b]]
    in_specs = [_full_spec(a.shape) for a in inputs]

    kernel = functools.partial(_delta_conv_kernel, n=n, depth=depth,
                               first_layer=first_layer)
    return pl.pallas_call(
        kernel,
        out_shape=jax.ShapeDtypeStruct((3 * n, c_out), F32),
        grid=(1,),
        in_specs=in_specs,
        out_specs=_full_spec((3 * n, c_out)),
        compiler_params=pltpu.CompilerParams(dimension_semantics=("arbitrary",)),
    )(*inputs)


# ============ fused head: lin_global + global_max_pool + segmentation head ============

def _head_kernel(p1_ref, p2_ref, p3_ref, m_ref,
                 wg1, wg2, wg3, bg,
                 w1m, w1a, w1b, w1c, b1,
                 w2, b2, w3, b3, w4, b4,
                 out_ref, *, n, num_batches):
    c1 = p1_ref[...][:n]          # scalar outputs of the three conv layers
    c2 = p2_ref[...][:n]
    c3 = p3_ref[...][:n]
    m = m_ref[...]                # [n, B] one-hot batch membership (f32)

    # lin_global(cat(conv_out)) — weight pre-split per conv output (no lane concat)
    xg = _leaky(_dot(c1, wg1[...]) + _dot(c2, wg2[...]) + _dot(c3, wg3[...]) + bg[...])

    # x_max = global_max_pool(xg, batch)[batch]  (additive mask + one-hot scatter-back)
    x_max = jnp.zeros_like(xg)
    for b in range(num_batches):
        col = m[:, b:b + 1]                                              # [n, 1]
        seg_b = jnp.max(xg + (col - 1.0) * 1e30, axis=0, keepdims=True)  # [1, emb]
        x_max = x_max + col * seg_b

    # segmentation head (Dropout / BatchNorm are identity in eval mode)
    h = _leaky(_dot(x_max, w1m[...]) + _dot(c1, w1a[...]) + _dot(c2, w1b[...])
               + _dot(c3, w1c[...]) + b1[...])
    h = _leaky(_dot(h, w2[...]) + b2[...])
    h = _leaky(_dot(h, w3[...]) + b3[...])
    out_ref[...] = _dot(h, w4[...]) + b4[...]


def deltanet_head(params, packed_list, batch, num_batches):
    p1, p2, p3 = packed_list
    n = p1.shape[0] // 3
    c1, c2, c3 = p1.shape[1], p2.shape[1], p3.shape[1]
    emb = EMBEDDING_SIZE

    lg_w = params['lin_global_w']
    wg1, wg2, wg3 = lg_w[:c1], lg_w[c1:c1 + c2], lg_w[c1 + c2:]
    h1_w = params['head_w1']
    w1m = h1_w[:emb]
    w1a = h1_w[emb:emb + c1]
    w1b = h1_w[emb + c1:emb + c1 + c2]
    w1c = h1_w[emb + c1 + c2:]

    mask = (batch[:, None] == jnp.arange(num_batches, dtype=batch.dtype)[None, :]).astype(F32)

    inputs = [p1, p2, p3, mask,
              wg1, wg2, wg3, jnp.reshape(params['lin_global_b'], (1, -1)),
              w1m, w1a, w1b, w1c, jnp.reshape(params['head_b1'], (1, -1)),
              params['head_w2'], jnp.reshape(params['head_b2'], (1, -1)),
              params['head_w3'], jnp.reshape(params['head_b3'], (1, -1)),
              params['head_w4'], jnp.reshape(params['head_b4'], (1, -1))]
    in_specs = [_full_spec(a.shape) for a in inputs]

    kernel = functools.partial(_head_kernel, n=n, num_batches=num_batches)
    return pl.pallas_call(
        kernel,
        out_shape=jax.ShapeDtypeStruct((n, NUM_CLASSES), F32),
        grid=(1,),
        in_specs=in_specs,
        out_specs=_full_spec((n, NUM_CLASSES)),
        compiler_params=pltpu.CompilerParams(dimension_semantics=("arbitrary",)),
    )(*inputs)


# ============================ geometry glue (plain JAX) ============================

def build_grad_operators(pos, normal, batch, k, lam, width):
    """Dense per-point WLS tangent-gradient operators Gu, Gv of shape [N, N]."""
    N = pos.shape[0]
    d2 = jnp.sum((pos[:, None, :] - pos[None, :, :]) ** 2, axis=-1)
    big = jnp.float32(1e10)
    d2 = d2 + big * (batch[:, None] != batch[None, :]) + big * jnp.eye(N, dtype=jnp.float32)
    _, nbr = jax.lax.top_k(-d2, k)                       # [N, k] nearest neighbors

    n = normal / jnp.linalg.norm(normal, axis=-1, keepdims=True)
    a = jnp.where(jnp.abs(n[:, :1]) < 0.9,
                  jnp.array([1.0, 0.0, 0.0], jnp.float32),
                  jnp.array([0.0, 1.0, 0.0], jnp.float32))
    e1 = jnp.cross(n, a)
    e1 = e1 / jnp.linalg.norm(e1, axis=-1, keepdims=True)
    e2 = jnp.cross(n, e1)

    rel = pos[nbr] - pos[:, None, :]                     # [N, k, 3]
    du = jnp.einsum('nkd,nd->nk', rel, e1)
    dv = jnp.einsum('nkd,nd->nk', rel, e2)
    w = jnp.exp(-(du ** 2 + dv ** 2) / (width ** 2))     # gaussian kernel weights

    a11 = jnp.sum(w * du * du, -1) + lam
    a12 = jnp.sum(w * du * dv, -1)
    a22 = jnp.sum(w * dv * dv, -1) + lam
    det = a11 * a22 - a12 * a12
    i11, i12, i22 = a22 / det, -a12 / det, a11 / det
    cu = i11[:, None] * (w * du) + i12[:, None] * (w * dv)   # [N, k]
    cv = i12[:, None] * (w * du) + i22[:, None] * (w * dv)

    rows = jnp.arange(N)[:, None]
    diag = jnp.arange(N)
    Gu = jnp.zeros((N, N), jnp.float32).at[rows, nbr].add(cu)
    Gu = Gu.at[diag, diag].add(-jnp.sum(cu, -1))
    Gv = jnp.zeros((N, N), jnp.float32).at[rows, nbr].add(cv)
    Gv = Gv.at[diag, diag].add(-jnp.sum(cv, -1))
    return Gu, Gv


# ================================= model forward =================================

@functools.partial(jax.jit, static_argnums=(5,))
def deltanet_segmentation(params, x_in, pos, normal, batch, num_batches):
    Gu, Gv = build_grad_operators(pos, normal, batch,
                                  NUM_NEIGHBORS, GRAD_REGULARIZER, GRAD_KERNEL_WIDTH)
    g_stack = jnp.concatenate([Gu, Gv], axis=0)          # [2N, N] = [Gu ; Gv]
    gt_stack = g_stack.T                                 # [N, 2N] = [Gu^T | Gv^T]

    # DeltaNetBase: each conv layer is one fused pallas_call; output packs [s; hu; hv]
    packed = []
    xin = x_in.astype(F32)
    for li, conv_p in enumerate(params['base']['convs']):
        out = delta_conv_layer(g_stack, gt_stack, xin, conv_p, first_layer=(li == 0))
        packed.append(out)
        xin = out                                        # next layer reads [x; vu; vv] rows

    # lin_global + global_max_pool + segmentation head, fused
    return deltanet_head(params, packed, batch, num_batches)


# ============================== parameter init ==============================

def init_params(key):
    keys = iter(jax.random.split(key, 256))

    def lin(fan_in, fan_out):
        w = jax.random.normal(next(keys), (fan_in, fan_out), jnp.float32) * jnp.sqrt(2.0 / fan_in)
        b = jax.random.normal(next(keys), (fan_out,), jnp.float32) * 0.01
        return w, b

    convs = []
    c_in = IN_CHANNELS
    for c_out in CONV_CHANNELS:
        vec_w, vec_b, sc_w, sc_b = [], [], [], []
        vc = 2 * c_in
        for _ in range(MLP_DEPTH):
            w, _ = lin(vc, c_out)
            vec_w.append(w)
            vec_b.append(jax.random.normal(next(keys), (1, c_out), jnp.float32) * 0.01)
            vc = c_out
        sc = c_in + 2 * c_out
        for _ in range(MLP_DEPTH):
            w, b = lin(sc, c_out)
            sc_w.append(w)
            sc_b.append(b)
            sc = c_out
        convs.append(dict(vec_w=vec_w, vec_b=vec_b, sc_w=sc_w, sc_b=sc_b))
        c_in = c_out

    sum_conv = sum(CONV_CHANNELS)
    lg_w, lg_b = lin(sum_conv, EMBEDDING_SIZE)
    h1_w, h1_b = lin(EMBEDDING_SIZE + sum_conv, 256)
    h2_w, h2_b = lin(256, 256)
    h3_w, h3_b = lin(256, 128)
    h4_w, h4_b = lin(128, NUM_CLASSES)
    return dict(base=dict(convs=convs),
                lin_global_w=lg_w, lin_global_b=lg_b,
                head_w1=h1_w, head_b1=h1_b,
                head_w2=h2_w, head_b2=h2_b,
                head_w3=h3_w, head_b3=h3_b,
                head_w4=h4_w, head_b4=h4_b)


# ==================================== main ====================================

if __name__ == "__main__":
    key = jax.random.PRNGKey(0)
    k_pos, k_nrm, k_x, k_par = jax.random.split(key, 4)

    N = 128          # total points (2 clouds of 64)
    B = 2            # number of point clouds in the batch
    pos = jax.random.normal(k_pos, (N, 3), jnp.float32)
    normal = jax.random.normal(k_nrm, (N, 3), jnp.float32)
    x = jax.random.normal(k_x, (N, IN_CHANNELS), jnp.float32)
    batch = jnp.concatenate([jnp.zeros(N // 2, jnp.int32), jnp.ones(N // 2, jnp.int32)])

    params = init_params(k_par)

    out = deltanet_segmentation(params, x, pos, normal, batch, B)
    out = jax.block_until_ready(out)
    assert out.shape == (N, NUM_CLASSES)
    assert bool(jnp.all(jnp.isfinite(out)))
    print("KERNEL_OK")
</pallas_src>

<mosaic_0001>
module attributes {stable_mosaic.version = 11 : i64} {
  func.func private @main(%arg0: i32) attributes {dimension_semantics = [#tpu.dimension_semantics<core_parallel>], iteration_bounds = array<i64: 2>, tpu.core_type = #tpu.core_type<sc_scalar_subcore>, window_params = []} {
    return
  }
}

module attributes {stable_mosaic.version = 11 : i64} {
  func.func private @main(%arg0: i32) attributes {dimension_semantics = [#tpu.dimension_semantics<core_parallel>], iteration_bounds = array<i64: 2>, tpu.core_type = #tpu.core_type<sc_scalar_subcore>, window_params = []} {
    return
  }
}

module attributes {stable_mosaic.version = 11 : i64} {
  func.func @_delta_conv_kernel(%arg0: i32, %arg1: memref<256x128xf32, #tpu.memory_space<vmem>>, %arg2: memref<128x256xf32, #tpu.memory_space<vmem>>, %arg3: memref<384x32xf32, #tpu.memory_space<vmem>>, %arg4: memref<32x64xf32, #tpu.memory_space<vmem>>, %arg5: memref<32x64xf32, #tpu.memory_space<vmem>>, %arg6: memref<64x64xf32, #tpu.memory_space<vmem>>, %arg7: memref<1x64xf32, #tpu.memory_space<vmem>>, %arg8: memref<1x64xf32, #tpu.memory_space<vmem>>, %arg9: memref<32x64xf32, #tpu.memory_space<vmem>>, %arg10: memref<64x64xf32, #tpu.memory_space<vmem>>, %arg11: memref<64x64xf32, #tpu.memory_space<vmem>>, %arg12: memref<64x64xf32, #tpu.memory_space<vmem>>, %arg13: memref<1x64xf32, #tpu.memory_space<vmem>>, %arg14: memref<1x64xf32, #tpu.memory_space<vmem>>, %arg15: memref<384x64xf32, #tpu.memory_space<vmem>>) attributes {dimension_semantics = [#tpu.dimension_semantics<arbitrary>], iteration_bounds = array<i64: 1>, scalar_prefetch = 0 : i64, scratch_operands = 0 : i64, tpu.core_type = #tpu.core_type<tc>, window_params = [{pipeline_mode = #tpu.pipeline_mode<synchronous>, transform_indices = @transform_0, window_bounds = array<i64: 256, 128>}, {pipeline_mode = #tpu.pipeline_mode<synchronous>, transform_indices = @transform_1, window_bounds = array<i64: 128, 256>}, {pipeline_mode = #tpu.pipeline_mode<synchronous>, transform_indices = @transform_2, window_bounds = array<i64: 384, 32>}, {pipeline_mode = #tpu.pipeline_mode<synchronous>, transform_indices = @transform_3, window_bounds = array<i64: 32, 64>}, {pipeline_mode = #tpu.pipeline_mode<synchronous>, transform_indices = @transform_4, window_bounds = array<i64: 32, 64>}, {pipeline_mode = #tpu.pipeline_mode<synchronous>, transform_indices = @transform_5, window_bounds = array<i64: 64, 64>}, {pipeline_mode = #tpu.pipeline_mode<synchronous>, transform_indices = @transform_6, window_bounds = array<i64: 1, 64>}, {pipeline_mode = #tpu.pipeline_mode<synchronous>, transform_indices = @transform_7, window_bounds = array<i64: 1, 64>}, {pipeline_mode = #tpu.pipeline_mode<synchronous>, transform_indices = @transform_8, window_bounds = array<i64: 32, 64>}, {pipeline_mode = #tpu.pipeline_mode<synchronous>, transform_indices = @transform_9, window_bounds = array<i64: 64, 64>}, {pipeline_mode = #tpu.pipeline_mode<synchronous>, transform_indices = @transform_10, window_bounds = array<i64: 64, 64>}, {pipeline_mode = #tpu.pipeline_mode<synchronous>, transform_indices = @transform_11, window_bounds = array<i64: 64, 64>}, {pipeline_mode = #tpu.pipeline_mode<synchronous>, transform_indices = @transform_12, window_bounds = array<i64: 1, 64>}, {pipeline_mode = #tpu.pipeline_mode<synchronous>, transform_indices = @transform_13, window_bounds = array<i64: 1, 64>}, {pipeline_mode = #tpu.pipeline_mode<synchronous>, transform_indices = @transform_14, window_bounds = array<i64: 384, 64>}]} {
    %c0 = arith.constant 0 : index
    %c0_0 = arith.constant 0 : index
    %0 = vector.load %arg3[%c0, %c0_0] : memref<384x32xf32, #tpu.memory_space<vmem>>, vector<384x32xf32>
    %1 = vector.extract_strided_slice %0 {offsets = [0, 0], sizes = [128, 32], strides = [1, 1]} : vector<384x32xf32> to vector<128x32xf32>
    %2 = vector.extract_strided_slice %0 {offsets = [128, 0], sizes = [128, 32], strides = [1, 1]} : vector<384x32xf32> to vector<128x32xf32>
    %3 = vector.extract_strided_slice %0 {offsets = [256, 0], sizes = [128, 32], strides = [1, 1]} : vector<384x32xf32> to vector<128x32xf32>
    %c0_1 = arith.constant 0 : index
    %c0_2 = arith.constant 0 : index
    %4 = vector.load %arg1[%c0_1, %c0_2] : memref<256x128xf32, #tpu.memory_space<vmem>>, vector<256x128xf32>
    %c0_3 = arith.constant 0 : index
    %c0_4 = arith.constant 0 : index
    %5 = vector.load %arg2[%c0_3, %c0_4] : memref<128x256xf32, #tpu.memory_space<vmem>>, vector<128x256xf32>
    %cst = arith.constant dense<0.000000e+00> : vector<256x32xf32>
    %6 = tpu.matmul %4, %1, %cst {dimension_numbers = #tpu.dot_dimension_numbers<[1], [0], [0], [1], [0, 0, 1, 1], [], []>} : vector<256x128xf32>, vector<128x32xf32>, vector<256x32xf32> -> vector<256x32xf32>
    %7 = tpu.concatenate %2, %3 in 0 : vector<128x32xf32>, vector<128x32xf32> -> vector<256x32xf32>
    %c0_5 = arith.constant 0 : index
    %c0_6 = arith.constant 0 : index
    %8 = vector.load %arg4[%c0_5, %c0_6] : memref<32x64xf32, #tpu.memory_space<vmem>>, vector<32x64xf32>
    %cst_7 = arith.constant dense<0.000000e+00> : vector<256x64xf32>
    %9 = tpu.matmul %7, %8, %cst_7 {dimension_numbers = #tpu.dot_dimension_numbers<[1], [0], [0], [1], [0, 0, 1, 1], [], []>} : vector<256x32xf32>, vector<32x64xf32>, vector<256x64xf32> -> vector<256x64xf32>
    %c0_8 = arith.constant 0 : index
    %c0_9 = arith.constant 0 : index
    %10 = vector.load %arg5[%c0_8, %c0_9] : memref<32x64xf32, #tpu.memory_space<vmem>>, vector<32x64xf32>
    %cst_10 = arith.constant dense<0.000000e+00> : vector<256x64xf32>
    %11 = tpu.matmul %6, %10, %cst_10 {dimension_numbers = #tpu.dot_dimension_numbers<[1], [0], [0], [1], [0, 0, 1, 1], [], []>} : vector<256x32xf32>, vector<32x64xf32>, vector<256x64xf32> -> vector<256x64xf32>
    %12 = arith.addf %9, %11 : vector<256x64xf32>
    %c0_11 = arith.constant 0 : index
    %c0_12 = arith.constant 0 : index
    %13 = vector.load %arg7[%c0_11, %c0_12] : memref<1x64xf32, #tpu.memory_space<vmem>>, vector<1x64xf32>
    %14 = vector.extract_strided_slice %12 {offsets = [0, 0], sizes = [128, 64], strides = [1, 1]} : vector<256x64xf32> to vector<128x64xf32>
    %15 = vector.extract_strided_slice %12 {offsets = [128, 0], sizes = [128, 64], strides = [1, 1]} : vector<256x64xf32> to vector<128x64xf32>
    %16 = arith.mulf %14, %14 : vector<128x64xf32>
    %17 = arith.mulf %15, %15 : vector<128x64xf32>
    %18 = arith.addf %16, %17 : vector<128x64xf32>
    %cst_13 = arith.constant 9.99999996E-13 : f32
    %19 = vector.broadcast %cst_13 : f32 to vector<128x64xf32>
    %20 = arith.addf %18, %19 : vector<128x64xf32>
    %21 = math.rsqrt %20 : vector<128x64xf32>
    %22 = arith.mulf %20, %21 : vector<128x64xf32>
    %23 = vector.broadcast %13 : vector<1x64xf32> to vector<128x64xf32>
    %24 = arith.addf %22, %23 : vector<128x64xf32>
    %cst_14 = arith.constant 0.000000e+00 : f32
    %25 = vector.broadcast %cst_14 : f32 to vector<128x64xf32>
    %26 = arith.cmpf ogt, %24, %25 : vector<128x64xf32>
    %cst_15 = arith.constant 2.000000e-01 : f32
    %27 = vector.broadcast %cst_15 : f32 to vector<128x64xf32>
    %28 = arith.mulf %27, %24 : vector<128x64xf32>
    %29 = arith.select %26, %24, %28 : vector<128x64xi1>, vector<128x64xf32>
    %30 = arith.mulf %29, %21 : vector<128x64xf32>
    %31 = arith.mulf %14, %30 : vector<128x64xf32>
    %32 = arith.mulf %15, %30 : vector<128x64xf32>
    %33 = tpu.concatenate %31, %32 in 0 : vector<128x64xf32>, vector<128x64xf32> -> vector<256x64xf32>
    %c0_16 = arith.constant 0 : index
    %c0_17 = arith.constant 0 : index
    %34 = vector.load %arg6[%c0_16, %c0_17] : memref<64x64xf32, #tpu.memory_space<vmem>>, vector<64x64xf32>
    %cst_18 = arith.constant dense<0.000000e+00> : vector<256x64xf32>
    %35 = tpu.matmul %33, %34, %cst_18 {dimension_numbers = #tpu.dot_dimension_numbers<[1], [0], [0], [1], [0, 0, 1, 1], [], []>} : vector<256x64xf32>, vector<64x64xf32>, vector<256x64xf32> -> vector<256x64xf32>
    %c0_19 = arith.constant 0 : index
    %c0_20 = arith.constant 0 : index
    %36 = vector.load %arg8[%c0_19, %c0_20] : memref<1x64xf32, #tpu.memory_space<vmem>>, vector<1x64xf32>
    %37 = vector.extract_strided_slice %35 {offsets = [0, 0], sizes = [128, 64], strides = [1, 1]} : vector<256x64xf32> to vector<128x64xf32>
    %38 = vector.extract_strided_slice %35 {offsets = [128, 0], sizes = [128, 64], strides = [1, 1]} : vector<256x64xf32> to vector<128x64xf32>
    %39 = arith.mulf %37, %37 : vector<128x64xf32>
    %40 = arith.mulf %38, %38 : vector<128x64xf32>
    %41 = arith.addf %39, %40 : vector<128x64xf32>
    %cst_21 = arith.constant 9.99999996E-13 : f32
    %42 = vector.broadcast %cst_21 : f32 to vector<128x64xf32>
    %43 = arith.addf %41, %42 : vector<128x64xf32>
    %44 = math.rsqrt %43 : vector<128x64xf32>
    %45 = arith.mulf %43, %44 : vector<128x64xf32>
    %46 = vector.broadcast %36 : vector<1x64xf32> to vector<128x64xf32>
    %47 = arith.addf %45, %46 : vector<128x64xf32>
    %cst_22 = arith.constant 0.000000e+00 : f32
    %48 = vector.broadcast %cst_22 : f32 to vector<128x64xf32>
    %49 = arith.cmpf ogt, %47, %48 : vector<128x64xf32>
    %cst_23 = arith.constant 2.000000e-01 : f32
    %50 = vector.broadcast %cst_23 : f32 to vector<128x64xf32>
    %51 = arith.mulf %50, %47 : vector<128x64xf32>
    %52 = arith.select %49, %47, %51 : vector<128x64xi1>, vector<128x64xf32>
    %53 = arith.mulf %52, %44 : vector<128x64xf32>
    %54 = arith.mulf %37, %53 : vector<128x64xf32>
    %55 = arith.mulf %38, %53 : vector<128x64xf32>
    %56 = tpu.concatenate %54, %55 in 0 : vector<128x64xf32>, vector<128x64xf32> -> vector<256x64xf32>
    %57 = vector.extract_strided_slice %56 {offsets = [0, 0], sizes = [128, 64], strides = [1, 1]} : vector<256x64xf32> to vector<128x64xf32>
    %58 = vector.extract_strided_slice %56 {offsets = [128, 0], sizes = [128, 64], strides = [1, 1]} : vector<256x64xf32> to vector<128x64xf32>
    %59 = tpu.concatenate %57, %58 in 0 : vector<128x64xf32>, vector<128x64xf32> -> vector<256x64xf32>
    %cst_24 = arith.constant dense<0.000000e+00> : vector<128x64xf32>
    %60 = tpu.matmul %5, %59, %cst_24 {dimension_numbers = #tpu.dot_dimension_numbers<[1], [0], [0], [1], [0, 0, 1, 1], [], []>} : vector<128x256xf32>, vector<256x64xf32>, vector<128x64xf32> -> vector<128x64xf32>
    %cst_25 = arith.constant 0.000000e+00 : f32
    %61 = vector.broadcast %cst_25 : f32 to vector<128x64xf32>
    %62 = arith.subf %61, %60 : vector<128x64xf32>
    %cst_26 = arith.constant 0.000000e+00 : f32
    %63 = vector.broadcast %cst_26 : f32 to vector<128x64xf32>
    %64 = arith.subf %63, %57 : vector<128x64xf32>
    %65 = tpu.concatenate %58, %64 in 0 : vector<128x64xf32>, vector<128x64xf32> -> vector<256x64xf32>
    %cst_27 = arith.constant dense<0.000000e+00> : vector<128x64xf32>
    %66 = tpu.matmul %5, %65, %cst_27 {dimension_numbers = #tpu.dot_dimension_numbers<[1], [0], [0], [1], [0, 0, 1, 1], [], []>} : vector<128x256xf32>, vector<256x64xf32>, vector<128x64xf32> -> vector<128x64xf32>
    %cst_28 = arith.constant 0.000000e+00 : f32
    %67 = vector.broadcast %cst_28 : f32 to vector<128x64xf32>
    %68 = arith.subf %67, %66 : vector<128x64xf32>
    %c0_29 = arith.constant 0 : index
    %c0_30 = arith.constant 0 : index
    %69 = vector.load %arg9[%c0_29, %c0_30] : memref<32x64xf32, #tpu.memory_space<vmem>>, vector<32x64xf32>
    %cst_31 = arith.constant dense<0.000000e+00> : vector<128x64xf32>
    %70 = tpu.matmul %1, %69, %cst_31 {dimension_numbers = #tpu.dot_dimension_numbers<[1], [0], [0], [1], [0, 0, 1, 1], [], []>} : vector<128x32xf32>, vector<32x64xf32>, vector<128x64xf32> -> vector<128x64xf32>
    %c0_32 = arith.constant 0 : index
    %c0_33 = arith.constant 0 : index
    %71 = vector.load %arg10[%c0_32, %c0_33] : memref<64x64xf32, #tpu.memory_space<vmem>>, vector<64x64xf32>
    %cst_34 = arith.constant dense<0.000000e+00> : vector<128x64xf32>
    %72 = tpu.matmul %62, %71, %cst_34 {dimension_numbers = #tpu.dot_dimension_numbers<[1], [0], [0], [1], [0, 0, 1, 1], [], []>} : vector<128x64xf32>, vector<64x64xf32>, vector<128x64xf32> -> vector<128x64xf32>
    %73 = arith.addf %70, %72 : vector<128x64xf32>
    %c0_35 = arith.constant 0 : index
    %c0_36 = arith.constant 0 : index
    %74 = vector.load %arg11[%c0_35, %c0_36] : memref<64x64xf32, #tpu.memory_space<vmem>>, vector<64x64xf32>
    %cst_37 = arith.constant dense<0.000000e+00> : vector<128x64xf32>
    %75 = tpu.matmul %68, %74, %cst_37 {dimension_numbers = #tpu.dot_dimension_numbers<[1], [0], [0], [1], [0, 0, 1, 1], [], []>} : vector<128x64xf32>, vector<64x64xf32>, vector<128x64xf32> -> vector<128x64xf32>
    %76 = arith.addf %73, %75 : vector<128x64xf32>
    %c0_38 = arith.constant 0 : index
    %c0_39 = arith.constant 0 : index
    %77 = vector.load %arg13[%c0_38, %c0_39] : memref<1x64xf32, #tpu.memory_space<vmem>>, vector<1x64xf32>
    %78 = vector.broadcast %77 : vector<1x64xf32> to vector<128x64xf32>
    %79 = arith.addf %76, %78 : vector<128x64xf32>
    %cst_40 = arith.constant 0.000000e+00 : f32
    %80 = vector.broadcast %cst_40 : f32 to vector<128x64xf32>
    %81 = arith.cmpf ogt, %79, %80 : vector<128x64xf32>
    %cst_41 = arith.constant 2.000000e-01 : f32
    %82 = vector.broadcast %cst_41 : f32 to vector<128x64xf32>
    %83 = arith.mulf %82, %79 : vector<128x64xf32>
    %84 = arith.select %81, %79, %83 : vector<128x64xi1>, vector<128x64xf32>
    %c0_42 = arith.constant 0 : index
    %c0_43 = arith.constant 0 : index
    %85 = vector.load %arg12[%c0_42, %c0_43] : memref<64x64xf32, #tpu.memory_space<vmem>>, vector<64x64xf32>
    %cst_44 = arith.constant dense<0.000000e+00> : vector<128x64xf32>
    %86 = tpu.matmul %84, %85, %cst_44 {dimension_numbers = #tpu.dot_dimension_numbers<[1], [0], [0], [1], [0, 0, 1, 1], [], []>} : vector<128x64xf32>, vector<64x64xf32>, vector<128x64xf32> -> vector<128x64xf32>
    %c0_45 = arith.constant 0 : index
    %c0_46 = arith.constant 0 : index
    %87 = vector.load %arg14[%c0_45, %c0_46] : memref<1x64xf32, #tpu.memory_space<vmem>>, vector<1x64xf32>
    %88 = vector.broadcast %87 : vector<1x64xf32> to vector<128x64xf32>
    %89 = arith.addf %86, %88 : vector<128x64xf32>
    %cst_47 = arith.constant 0.000000e+00 : f32
    %90 = vector.broadcast %cst_47 : f32 to vector<128x64xf32>
    %91 = arith.cmpf ogt, %89, %90 : vector<128x64xf32>
    %cst_48 = arith.constant 2.000000e-01 : f32
    %92 = vector.broadcast %cst_48 : f32 to vector<128x64xf32>
    %93 = arith.mulf %92, %89 : vector<128x64xf32>
    %94 = arith.select %91, %89, %93 : vector<128x64xi1>, vector<128x64xf32>
    %95 = tpu.concatenate %94, %57, %58 in 0 : vector<128x64xf32>, vector<128x64xf32>, vector<128x64xf32> -> vector<384x64xf32>
    %c0_49 = arith.constant 0 : index
    %c0_50 = arith.constant 0 : index
    %96 = vector.load %arg15[%c0_49, %c0_50] : memref<384x64xf32, #tpu.memory_space<vmem>>, vector<384x64xf32>
    tpu.vector_store %arg15[%c0_49, %c0_50], %95 {strides = array<i32>} : memref<384x64xf32, #tpu.memory_space<vmem>>, vector<384x64xf32>,
    return
  }
  func.func @transform_0(%arg0: i32) -> (i32, i32) {
    %c0_i32 = arith.constant 0 : i32
    %c0_i32_0 = arith.constant 0 : i32
    %c0_i32_1 = arith.constant 0 : i32
    return %c0_i32, %c0_i32_0 : i32, i32
  }
  func.func @transform_1(%arg0: i32) -> (i32, i32) {
    %c0_i32 = arith.constant 0 : i32
    %c0_i32_0 = arith.constant 0 : i32
    %c0_i32_1 = arith.constant 0 : i32
    return %c0_i32, %c0_i32_0 : i32, i32
  }
  func.func @transform_2(%arg0: i32) -> (i32, i32) {
    %c0_i32 = arith.constant 0 : i32
    %c0_i32_0 = arith.constant 0 : i32
    %c0_i32_1 = arith.constant 0 : i32
    return %c0_i32, %c0_i32_0 : i32, i32
  }
  func.func @transform_3(%arg0: i32) -> (i32, i32) {
    %c0_i32 = arith.constant 0 : i32
    %c0_i32_0 = arith.constant 0 : i32
    %c0_i32_1 = arith.constant 0 : i32
    return %c0_i32, %c0_i32_0 : i32, i32
  }
  func.func @transform_4(%arg0: i32) -> (i32, i32) {
    %c0_i32 = arith.constant 0 : i32
    %c0_i32_0 = arith.constant 0 : i32
    %c0_i32_1 = arith.constant 0 : i32
    return %c0_i32, %c0_i32_0 : i32, i32
  }
  func.func @transform_5(%arg0: i32) -> (i32, i32) {
    %c0_i32 = arith.constant 0 : i32
    %c0_i32_0 = arith.constant 0 : i32
    %c0_i32_1 = arith.constant 0 : i32
    return %c0_i32, %c0_i32_0 : i32, i32
  }
  func.func @transform_6(%arg0: i32) -> (i32, i32) {
    %c0_i32 = arith.constant 0 : i32
    %c0_i32_0 = arith.constant 0 : i32
    %c0_i32_1 = arith.constant 0 : i32
    return %c0_i32, %c0_i32_0 : i32, i32
  }
  func.func @transform_7(%arg0: i32) -> (i32, i32) {
    %c0_i32 = arith.constant 0 : i32
    %c0_i32_0 = arith.constant 0 : i32
    %c0_i32_1 = arith.constant 0 : i32
    return %c0_i32, %c0_i32_0 : i32, i32
  }
  func.func @transform_8(%arg0: i32) -> (i32, i32) {
    %c0_i32 = arith.constant 0 : i32
    %c0_i32_0 = arith.constant 0 : i32
    %c0_i32_1 = arith.constant 0 : i32
    return %c0_i32, %c0_i32_0 : i32, i32
  }
  func.func @transform_9(%arg0: i32) -> (i32, i32) {
    %c0_i32 = arith.constant 0 : i32
    %c0_i32_0 = arith.constant 0 : i32
    %c0_i32_1 = arith.constant 0 : i32
    return %c0_i32, %c0_i32_0 : i32, i32
  }
  func.func @transform_10(%arg0: i32) -> (i32, i32) {
    %c0_i32 = arith.constant 0 : i32
    %c0_i32_0 = arith.constant 0 : i32
    %c0_i32_1 = arith.constant 0 : i32
    return %c0_i32, %c0_i32_0 : i32, i32
  }
  func.func @transform_11(%arg0: i32) -> (i32, i32) {
    %c0_i32 = arith.constant 0 : i32
    %c0_i32_0 = arith.constant 0 : i32
    %c0_i32_1 = arith.constant 0 : i32
    return %c0_i32, %c0_i32_0 : i32, i32
  }
  func.func @transform_12(%arg0: i32) -> (i32, i32) {
    %c0_i32 = arith.constant 0 : i32
    %c0_i32_0 = arith.constant 0 : i32
    %c0_i32_1 = arith.constant 0 : i32
    return %c0_i32, %c0_i32_0 : i32, i32
  }
  func.func @transform_13(%arg0: i32) -> (i32, i32) {
    %c0_i32 = arith.constant 0 : i32
    %c0_i32_0 = arith.constant 0 : i32
    %c0_i32_1 = arith.constant 0 : i32
    return %c0_i32, %c0_i32_0 : i32, i32
  }
  func.func @transform_14(%arg0: i32) -> (i32, i32) {
    %c0_i32 = arith.constant 0 : i32
    %c0_i32_0 = arith.constant 0 : i32
    %c0_i32_1 = arith.constant 0 : i32
    return %c0_i32, %c0_i32_0 : i32, i32
  }
}

module attributes {stable_mosaic.version = 11 : i64} {
  func.func @_delta_conv_kernel(%arg0: i32, %arg1: memref<256x128xf32, #tpu.memory_space<vmem>>, %arg2: memref<128x256xf32, #tpu.memory_space<vmem>>, %arg3: memref<384x16xf32, #tpu.memory_space<vmem>>, %arg4: memref<16x32xf32, #tpu.memory_space<vmem>>, %arg5: memref<16x32xf32, #tpu.memory_space<vmem>>, %arg6: memref<32x32xf32, #tpu.memory_space<vmem>>, %arg7: memref<1x32xf32, #tpu.memory_space<vmem>>, %arg8: memref<1x32xf32, #tpu.memory_space<vmem>>, %arg9: memref<16x32xf32, #tpu.memory_space<vmem>>, %arg10: memref<32x32xf32, #tpu.memory_space<vmem>>, %arg11: memref<32x32xf32, #tpu.memory_space<vmem>>, %arg12: memref<32x32xf32, #tpu.memory_space<vmem>>, %arg13: memref<1x32xf32, #tpu.memory_space<vmem>>, %arg14: memref<1x32xf32, #tpu.memory_space<vmem>>, %arg15: memref<384x32xf32, #tpu.memory_space<vmem>>) attributes {dimension_semantics = [#tpu.dimension_semantics<arbitrary>], iteration_bounds = array<i64: 1>, scalar_prefetch = 0 : i64, scratch_operands = 0 : i64, tpu.core_type = #tpu.core_type<tc>, window_params = [{pipeline_mode = #tpu.pipeline_mode<synchronous>, transform_indices = @transform_0, window_bounds = array<i64: 256, 128>}, {pipeline_mode = #tpu.pipeline_mode<synchronous>, transform_indices = @transform_1, window_bounds = array<i64: 128, 256>}, {pipeline_mode = #tpu.pipeline_mode<synchronous>, transform_indices = @transform_2, window_bounds = array<i64: 384, 16>}, {pipeline_mode = #tpu.pipeline_mode<synchronous>, transform_indices = @transform_3, window_bounds = array<i64: 16, 32>}, {pipeline_mode = #tpu.pipeline_mode<synchronous>, transform_indices = @transform_4, window_bounds = array<i64: 16, 32>}, {pipeline_mode = #tpu.pipeline_mode<synchronous>, transform_indices = @transform_5, window_bounds = array<i64: 32, 32>}, {pipeline_mode = #tpu.pipeline_mode<synchronous>, transform_indices = @transform_6, window_bounds = array<i64: 1, 32>}, {pipeline_mode = #tpu.pipeline_mode<synchronous>, transform_indices = @transform_7, window_bounds = array<i64: 1, 32>}, {pipeline_mode = #tpu.pipeline_mode<synchronous>, transform_indices = @transform_8, window_bounds = array<i64: 16, 32>}, {pipeline_mode = #tpu.pipeline_mode<synchronous>, transform_indices = @transform_9, window_bounds = array<i64: 32, 32>}, {pipeline_mode = #tpu.pipeline_mode<synchronous>, transform_indices = @transform_10, window_bounds = array<i64: 32, 32>}, {pipeline_mode = #tpu.pipeline_mode<synchronous>, transform_indices = @transform_11, window_bounds = array<i64: 32, 32>}, {pipeline_mode = #tpu.pipeline_mode<synchronous>, transform_indices = @transform_12, window_bounds = array<i64: 1, 32>}, {pipeline_mode = #tpu.pipeline_mode<synchronous>, transform_indices = @transform_13, window_bounds = array<i64: 1, 32>}, {pipeline_mode = #tpu.pipeline_mode<synchronous>, transform_indices = @transform_14, window_bounds = array<i64: 384, 32>}]} {
    %c0 = arith.constant 0 : index
    %c0_0 = arith.constant 0 : index
    %0 = vector.load %arg3[%c0, %c0_0] : memref<384x16xf32, #tpu.memory_space<vmem>>, vector<384x16xf32>
    %1 = vector.extract_strided_slice %0 {offsets = [0, 0], sizes = [128, 16], strides = [1, 1]} : vector<384x16xf32> to vector<128x16xf32>
    %2 = vector.extract_strided_slice %0 {offsets = [128, 0], sizes = [128, 16], strides = [1, 1]} : vector<384x16xf32> to vector<128x16xf32>
    %3 = vector.extract_strided_slice %0 {offsets = [256, 0], sizes = [128, 16], strides = [1, 1]} : vector<384x16xf32> to vector<128x16xf32>
    %c0_1 = arith.constant 0 : index
    %c0_2 = arith.constant 0 : index
    %4 = vector.load %arg1[%c0_1, %c0_2] : memref<256x128xf32, #tpu.memory_space<vmem>>, vector<256x128xf32>
    %c0_3 = arith.constant 0 : index
    %c0_4 = arith.constant 0 : index
    %5 = vector.load %arg2[%c0_3, %c0_4] : memref<128x256xf32, #tpu.memory_space<vmem>>, vector<128x256xf32>
    %cst = arith.constant dense<0.000000e+00> : vector<256x16xf32>
    %6 = tpu.matmul %4, %1, %cst {dimension_numbers = #tpu.dot_dimension_numbers<[1], [0], [0], [1], [0, 0, 1, 1], [], []>} : vector<256x128xf32>, vector<128x16xf32>, vector<256x16xf32> -> vector<256x16xf32>
    %7 = tpu.concatenate %2, %3 in 0 : vector<128x16xf32>, vector<128x16xf32> -> vector<256x16xf32>
    %c0_5 = arith.constant 0 : index
    %c0_6 = arith.constant 0 : index
    %8 = vector.load %arg4[%c0_5, %c0_6] : memref<16x32xf32, #tpu.memory_space<vmem>>, vector<16x32xf32>
    %cst_7 = arith.constant dense<0.000000e+00> : vector<256x32xf32>
    %9 = tpu.matmul %7, %8, %cst_7 {dimension_numbers = #tpu.dot_dimension_numbers<[1], [0], [0], [1], [0, 0, 1, 1], [], []>} : vector<256x16xf32>, vector<16x32xf32>, vector<256x32xf32> -> vector<256x32xf32>
    %c0_8 = arith.constant 0 : index
    %c0_9 = arith.constant 0 : index
    %10 = vector.load %arg5[%c0_8, %c0_9] : memref<16x32xf32, #tpu.memory_space<vmem>>, vector<16x32xf32>
    %cst_10 = arith.constant dense<0.000000e+00> : vector<256x32xf32>
    %11 = tpu.matmul %6, %10, %cst_10 {dimension_numbers = #tpu.dot_dimension_numbers<[1], [0], [0], [1], [0, 0, 1, 1], [], []>} : vector<256x16xf32>, vector<16x32xf32>, vector<256x32xf32> -> vector<256x32xf32>
    %12 = arith.addf %9, %11 : vector<256x32xf32>
    %c0_11 = arith.constant 0 : index
    %c0_12 = arith.constant 0 : index
    %13 = vector.load %arg7[%c0_11, %c0_12] : memref<1x32xf32, #tpu.memory_space<vmem>>, vector<1x32xf32>
    %14 = vector.extract_strided_slice %12 {offsets = [0, 0], sizes = [128, 32], strides = [1, 1]} : vector<256x32xf32> to vector<128x32xf32>
    %15 = vector.extract_strided_slice %12 {offsets = [128, 0], sizes = [128, 32], strides = [1, 1]} : vector<256x32xf32> to vector<128x32xf32>
    %16 = arith.mulf %14, %14 : vector<128x32xf32>
    %17 = arith.mulf %15, %15 : vector<128x32xf32>
    %18 = arith.addf %16, %17 : vector<128x32xf32>
    %cst_13 = arith.constant 9.99999996E-13 : f32
    %19 = vector.broadcast %cst_13 : f32 to vector<128x32xf32>
    %20 = arith.addf %18, %19 : vector<128x32xf32>
    %21 = math.rsqrt %20 : vector<128x32xf32>
    %22 = arith.mulf %20, %21 : vector<128x32xf32>
    %23 = vector.broadcast %13 : vector<1x32xf32> to vector<128x32xf32>
    %24 = arith.addf %22, %23 : vector<128x32xf32>
    %cst_14 = arith.constant 0.000000e+00 : f32
    %25 = vector.broadcast %cst_14 : f32 to vector<128x32xf32>
    %26 = arith.cmpf ogt, %24, %25 : vector<128x32xf32>
    %cst_15 = arith.constant 2.000000e-01 : f32
    %27 = vector.broadcast %cst_15 : f32 to vector<128x32xf32>
    %28 = arith.mulf %27, %24 : vector<128x32xf32>
    %29 = arith.select %26, %24, %28 : vector<128x32xi1>, vector<128x32xf32>
    %30 = arith.mulf %29, %21 : vector<128x32xf32>
    %31 = arith.mulf %14, %30 : vector<128x32xf32>
    %32 = arith.mulf %15, %30 : vector<128x32xf32>
    %33 = tpu.concatenate %31, %32 in 0 : vector<128x32xf32>, vector<128x32xf32> -> vector<256x32xf32>
    %c0_16 = arith.constant 0 : index
    %c0_17 = arith.constant 0 : index
    %34 = vector.load %arg6[%c0_16, %c0_17] : memref<32x32xf32, #tpu.memory_space<vmem>>, vector<32x32xf32>
    %cst_18 = arith.constant dense<0.000000e+00> : vector<256x32xf32>
    %35 = tpu.matmul %33, %34, %cst_18 {dimension_numbers = #tpu.dot_dimension_numbers<[1], [0], [0], [1], [0, 0, 1, 1], [], []>} : vector<256x32xf32>, vector<32x32xf32>, vector<256x32xf32> -> vector<256x32xf32>
    %c0_19 = arith.constant 0 : index
    %c0_20 = arith.constant 0 : index
    %36 = vector.load %arg8[%c0_19, %c0_20] : memref<1x32xf32, #tpu.memory_space<vmem>>, vector<1x32xf32>
    %37 = vector.extract_strided_slice %35 {offsets = [0, 0], sizes = [128, 32], strides = [1, 1]} : vector<256x32xf32> to vector<128x32xf32>
    %38 = vector.extract_strided_slice %35 {offsets = [128, 0], sizes = [128, 32], strides = [1, 1]} : vector<256x32xf32> to vector<128x32xf32>
    %39 = arith.mulf %37, %37 : vector<128x32xf32>
    %40 = arith.mulf %38, %38 : vector<128x32xf32>
    %41 = arith.addf %39, %40 : vector<128x32xf32>
    %cst_21 = arith.constant 9.99999996E-13 : f32
    %42 = vector.broadcast %cst_21 : f32 to vector<128x32xf32>
    %43 = arith.addf %41, %42 : vector<128x32xf32>
    %44 = math.rsqrt %43 : vector<128x32xf32>
    %45 = arith.mulf %43, %44 : vector<128x32xf32>
    %46 = vector.broadcast %36 : vector<1x32xf32> to vector<128x32xf32>
    %47 = arith.addf %45, %46 : vector<128x32xf32>
    %cst_22 = arith.constant 0.000000e+00 : f32
    %48 = vector.broadcast %cst_22 : f32 to vector<128x32xf32>
    %49 = arith.cmpf ogt, %47, %48 : vector<128x32xf32>
    %cst_23 = arith.constant 2.000000e-01 : f32
    %50 = vector.broadcast %cst_23 : f32 to vector<128x32xf32>
    %51 = arith.mulf %50, %47 : vector<128x32xf32>
    %52 = arith.select %49, %47, %51 : vector<128x32xi1>, vector<128x32xf32>
    %53 = arith.mulf %52, %44 : vector<128x32xf32>
    %54 = arith.mulf %37, %53 : vector<128x32xf32>
    %55 = arith.mulf %38, %53 : vector<128x32xf32>
    %56 = tpu.concatenate %54, %55 in 0 : vector<128x32xf32>, vector<128x32xf32> -> vector<256x32xf32>
    %57 = vector.extract_strided_slice %56 {offsets = [0, 0], sizes = [128, 32], strides = [1, 1]} : vector<256x32xf32> to vector<128x32xf32>
    %58 = vector.extract_strided_slice %56 {offsets = [128, 0], sizes = [128, 32], strides = [1, 1]} : vector<256x32xf32> to vector<128x32xf32>
    %59 = tpu.concatenate %57, %58 in 0 : vector<128x32xf32>, vector<128x32xf32> -> vector<256x32xf32>
    %cst_24 = arith.constant dense<0.000000e+00> : vector<128x32xf32>
    %60 = tpu.matmul %5, %59, %cst_24 {dimension_numbers = #tpu.dot_dimension_numbers<[1], [0], [0], [1], [0, 0, 1, 1], [], []>} : vector<128x256xf32>, vector<256x32xf32>, vector<128x32xf32> -> vector<128x32xf32>
    %cst_25 = arith.constant 0.000000e+00 : f32
    %61 = vector.broadcast %cst_25 : f32 to vector<128x32xf32>
    %62 = arith.subf %61, %60 : vector<128x32xf32>
    %cst_26 = arith.constant 0.000000e+00 : f32
    %63 = vector.broadcast %cst_26 : f32 to vector<128x32xf32>
    %64 = arith.subf %63, %57 : vector<128x32xf32>
    %65 = tpu.concatenate %58, %64 in 0 : vector<128x32xf32>, vector<128x32xf32> -> vector<256x32xf32>
    %cst_27 = arith.constant dense<0.000000e+00> : vector<128x32xf32>
    %66 = tpu.matmul %5, %65, %cst_27 {dimension_numbers = #tpu.dot_dimension_numbers<[1], [0], [0], [1], [0, 0, 1, 1], [], []>} : vector<128x256xf32>, vector<256x32xf32>, vector<128x32xf32> -> vector<128x32xf32>
    %cst_28 = arith.constant 0.000000e+00 : f32
    %67 = vector.broadcast %cst_28 : f32 to vector<128x32xf32>
    %68 = arith.subf %67, %66 : vector<128x32xf32>
    %c0_29 = arith.constant 0 : index
    %c0_30 = arith.constant 0 : index
    %69 = vector.load %arg9[%c0_29, %c0_30] : memref<16x32xf32, #tpu.memory_space<vmem>>, vector<16x32xf32>
    %cst_31 = arith.constant dense<0.000000e+00> : vector<128x32xf32>
    %70 = tpu.matmul %1, %69, %cst_31 {dimension_numbers = #tpu.dot_dimension_numbers<[1], [0], [0], [1], [0, 0, 1, 1], [], []>} : vector<128x16xf32>, vector<16x32xf32>, vector<128x32xf32> -> vector<128x32xf32>
    %c0_32 = arith.constant 0 : index
    %c0_33 = arith.constant 0 : index
    %71 = vector.load %arg10[%c0_32, %c0_33] : memref<32x32xf32, #tpu.memory_space<vmem>>, vector<32x32xf32>
    %cst_34 = arith.constant dense<0.000000e+00> : vector<128x32xf32>
    %72 = tpu.matmul %62, %71, %cst_34 {dimension_numbers = #tpu.dot_dimension_numbers<[1], [0], [0], [1], [0, 0, 1, 1], [], []>} : vector<128x32xf32>, vector<32x32xf32>, vector<128x32xf32> -> vector<128x32xf32>
    %73 = arith.addf %70, %72 : vector<128x32xf32>
    %c0_35 = arith.constant 0 : index
    %c0_36 = arith.constant 0 : index
    %74 = vector.load %arg11[%c0_35, %c0_36] : memref<32x32xf32, #tpu.memory_space<vmem>>, vector<32x32xf32>
    %cst_37 = arith.constant dense<0.000000e+00> : vector<128x32xf32>
    %75 = tpu.matmul %68, %74, %cst_37 {dimension_numbers = #tpu.dot_dimension_numbers<[1], [0], [0], [1], [0, 0, 1, 1], [], []>} : vector<128x32xf32>, vector<32x32xf32>, vector<128x32xf32> -> vector<128x32xf32>
    %76 = arith.addf %73, %75 : vector<128x32xf32>
    %c0_38 = arith.constant 0 : index
    %c0_39 = arith.constant 0 : index
    %77 = vector.load %arg13[%c0_38, %c0_39] : memref<1x32xf32, #tpu.memory_space<vmem>>, vector<1x32xf32>
    %78 = vector.broadcast %77 : vector<1x32xf32> to vector<128x32xf32>
    %79 = arith.addf %76, %78 : vector<128x32xf32>
    %cst_40 = arith.constant 0.000000e+00 : f32
    %80 = vector.broadcast %cst_40 : f32 to vector<128x32xf32>
    %81 = arith.cmpf ogt, %79, %80 : vector<128x32xf32>
    %cst_41 = arith.constant 2.000000e-01 : f32
    %82 = vector.broadcast %cst_41 : f32 to vector<128x32xf32>
    %83 = arith.mulf %82, %79 : vector<128x32xf32>
    %84 = arith.select %81, %79, %83 : vector<128x32xi1>, vector<128x32xf32>
    %c0_42 = arith.constant 0 : index
    %c0_43 = arith.constant 0 : index
    %85 = vector.load %arg12[%c0_42, %c0_43] : memref<32x32xf32, #tpu.memory_space<vmem>>, vector<32x32xf32>
    %cst_44 = arith.constant dense<0.000000e+00> : vector<128x32xf32>
    %86 = tpu.matmul %84, %85, %cst_44 {dimension_numbers = #tpu.dot_dimension_numbers<[1], [0], [0], [1], [0, 0, 1, 1], [], []>} : vector<128x32xf32>, vector<32x32xf32>, vector<128x32xf32> -> vector<128x32xf32>
    %c0_45 = arith.constant 0 : index
    %c0_46 = arith.constant 0 : index
    %87 = vector.load %arg14[%c0_45, %c0_46] : memref<1x32xf32, #tpu.memory_space<vmem>>, vector<1x32xf32>
    %88 = vector.broadcast %87 : vector<1x32xf32> to vector<128x32xf32>
    %89 = arith.addf %86, %88 : vector<128x32xf32>
    %cst_47 = arith.constant 0.000000e+00 : f32
    %90 = vector.broadcast %cst_47 : f32 to vector<128x32xf32>
    %91 = arith.cmpf ogt, %89, %90 : vector<128x32xf32>
    %cst_48 = arith.constant 2.000000e-01 : f32
    %92 = vector.broadcast %cst_48 : f32 to vector<128x32xf32>
    %93 = arith.mulf %92, %89 : vector<128x32xf32>
    %94 = arith.select %91, %89, %93 : vector<128x32xi1>, vector<128x32xf32>
    %95 = tpu.concatenate %94, %57, %58 in 0 : vector<128x32xf32>, vector<128x32xf32>, vector<128x32xf32> -> vector<384x32xf32>
    %c0_49 = arith.constant 0 : index
    %c0_50 = arith.constant 0 : index
    %96 = vector.load %arg15[%c0_49, %c0_50] : memref<384x32xf32, #tpu.memory_space<vmem>>, vector<384x32xf32>
    tpu.vector_store %arg15[%c0_49, %c0_50], %95 {strides = array<i32>} : memref<384x32xf32, #tpu.memory_space<vmem>>, vector<384x32xf32>,
    return
  }
  func.func @transform_0(%arg0: i32) -> (i32, i32) {
    %c0_i32 = arith.constant 0 : i32
    %c0_i32_0 = arith.constant 0 : i32
    %c0_i32_1 = arith.constant 0 : i32
    return %c0_i32, %c0_i32_0 : i32, i32
  }
  func.func @transform_1(%arg0: i32) -> (i32, i32) {
    %c0_i32 = arith.constant 0 : i32
    %c0_i32_0 = arith.constant 0 : i32
    %c0_i32_1 = arith.constant 0 : i32
    return %c0_i32, %c0_i32_0 : i32, i32
  }
  func.func @transform_2(%arg0: i32) -> (i32, i32) {
    %c0_i32 = arith.constant 0 : i32
    %c0_i32_0 = arith.constant 0 : i32
    %c0_i32_1 = arith.constant 0 : i32
    return %c0_i32, %c0_i32_0 : i32, i32
  }
  func.func @transform_3(%arg0: i32) -> (i32, i32) {
    %c0_i32 = arith.constant 0 : i32
    %c0_i32_0 = arith.constant 0 : i32
    %c0_i32_1 = arith.constant 0 : i32
    return %c0_i32, %c0_i32_0 : i32, i32
  }
  func.func @transform_4(%arg0: i32) -> (i32, i32) {
    %c0_i32 = arith.constant 0 : i32
    %c0_i32_0 = arith.constant 0 : i32
    %c0_i32_1 = arith.constant 0 : i32
    return %c0_i32, %c0_i32_0 : i32, i32
  }
  func.func @transform_5(%arg0: i32) -> (i32, i32) {
    %c0_i32 = arith.constant 0 : i32
    %c0_i32_0 = arith.constant 0 : i32
    %c0_i32_1 = arith.constant 0 : i32
    return %c0_i32, %c0_i32_0 : i32, i32
  }
  func.func @transform_6(%arg0: i32) -> (i32, i32) {
    %c0_i32 = arith.constant 0 : i32
    %c0_i32_0 = arith.constant 0 : i32
    %c0_i32_1 = arith.constant 0 : i32
    return %c0_i32, %c0_i32_0 : i32, i32
  }
  func.func @transform_7(%arg0: i32) -> (i32, i32) {
    %c0_i32 = arith.constant 0 : i32
    %c0_i32_0 = arith.constant 0 : i32
    %c0_i32_1 = arith.constant 0 : i32
    return %c0_i32, %c0_i32_0 : i32, i32
  }
  func.func @transform_8(%arg0: i32) -> (i32, i32) {
    %c0_i32 = arith.constant 0 : i32
    %c0_i32_0 = arith.constant 0 : i32
    %c0_i32_1 = arith.constant 0 : i32
    return %c0_i32, %c0_i32_0 : i32, i32
  }
  func.func @transform_9(%arg0: i32) -> (i32, i32) {
    %c0_i32 = arith.constant 0 : i32
    %c0_i32_0 = arith.constant 0 : i32
    %c0_i32_1 = arith.constant 0 : i32
    return %c0_i32, %c0_i32_0 : i32, i32
  }
  func.func @transform_10(%arg0: i32) -> (i32, i32) {
    %c0_i32 = arith.constant 0 : i32
    %c0_i32_0 = arith.constant 0 : i32
    %c0_i32_1 = arith.constant 0 : i32
    return %c0_i32, %c0_i32_0 : i32, i32
  }
  func.func @transform_11(%arg0: i32) -> (i32, i32) {
    %c0_i32 = arith.constant 0 : i32
    %c0_i32_0 = arith.constant 0 : i32
    %c0_i32_1 = arith.constant 0 : i32
    return %c0_i32, %c0_i32_0 : i32, i32
  }
  func.func @transform_12(%arg0: i32) -> (i32, i32) {
    %c0_i32 = arith.constant 0 : i32
    %c0_i32_0 = arith.constant 0 : i32
    %c0_i32_1 = arith.constant 0 : i32
    return %c0_i32, %c0_i32_0 : i32, i32
  }
  func.func @transform_13(%arg0: i32) -> (i32, i32) {
    %c0_i32 = arith.constant 0 : i32
    %c0_i32_0 = arith.constant 0 : i32
    %c0_i32_1 = arith.constant 0 : i32
    return %c0_i32, %c0_i32_0 : i32, i32
  }
  func.func @transform_14(%arg0: i32) -> (i32, i32) {
    %c0_i32 = arith.constant 0 : i32
    %c0_i32_0 = arith.constant 0 : i32
    %c0_i32_1 = arith.constant 0 : i32
    return %c0_i32, %c0_i32_0 : i32, i32
  }
}

module attributes {stable_mosaic.version = 11 : i64} {
  func.func @_delta_conv_kernel(%arg0: i32, %arg1: memref<256x128xf32, #tpu.memory_space<vmem>>, %arg2: memref<128x256xf32, #tpu.memory_space<vmem>>, %arg3: memref<128x4xf32, #tpu.memory_space<vmem>>, %arg4: memref<4x16xf32, #tpu.memory_space<vmem>>, %arg5: memref<4x16xf32, #tpu.memory_space<vmem>>, %arg6: memref<16x16xf32, #tpu.memory_space<vmem>>, %arg7: memref<1x16xf32, #tpu.memory_space<vmem>>, %arg8: memref<1x16xf32, #tpu.memory_space<vmem>>, %arg9: memref<4x16xf32, #tpu.memory_space<vmem>>, %arg10: memref<16x16xf32, #tpu.memory_space<vmem>>, %arg11: memref<16x16xf32, #tpu.memory_space<vmem>>, %arg12: memref<16x16xf32, #tpu.memory_space<vmem>>, %arg13: memref<1x16xf32, #tpu.memory_space<vmem>>, %arg14: memref<1x16xf32, #tpu.memory_space<vmem>>, %arg15: memref<384x16xf32, #tpu.memory_space<vmem>>) attributes {dimension_semantics = [#tpu.dimension_semantics<arbitrary>], iteration_bounds = array<i64: 1>, scalar_prefetch = 0 : i64, scratch_operands = 0 : i64, tpu.core_type = #tpu.core_type<tc>, window_params = [{pipeline_mode = #tpu.pipeline_mode<synchronous>, transform_indices = @transform_0, window_bounds = array<i64: 256, 128>}, {pipeline_mode = #tpu.pipeline_mode<synchronous>, transform_indices = @transform_1, window_bounds = array<i64: 128, 256>}, {pipeline_mode = #tpu.pipeline_mode<synchronous>, transform_indices = @transform_2, window_bounds = array<i64: 128, 4>}, {pipeline_mode = #tpu.pipeline_mode<synchronous>, transform_indices = @transform_3, window_bounds = array<i64: 4, 16>}, {pipeline_mode = #tpu.pipeline_mode<synchronous>, transform_indices = @transform_4, window_bounds = array<i64: 4, 16>}, {pipeline_mode = #tpu.pipeline_mode<synchronous>, transform_indices = @transform_5, window_bounds = array<i64: 16, 16>}, {pipeline_mode = #tpu.pipeline_mode<synchronous>, transform_indices = @transform_6, window_bounds = array<i64: 1, 16>}, {pipeline_mode = #tpu.pipeline_mode<synchronous>, transform_indices = @transform_7, window_bounds = array<i64: 1, 16>}, {pipeline_mode = #tpu.pipeline_mode<synchronous>, transform_indices = @transform_8, window_bounds = array<i64: 4, 16>}, {pipeline_mode = #tpu.pipeline_mode<synchronous>, transform_indices = @transform_9, window_bounds = array<i64: 16, 16>}, {pipeline_mode = #tpu.pipeline_mode<synchronous>, transform_indices = @transform_10, window_bounds = array<i64: 16, 16>}, {pipeline_mode = #tpu.pipeline_mode<synchronous>, transform_indices = @transform_11, window_bounds = array<i64: 16, 16>}, {pipeline_mode = #tpu.pipeline_mode<synchronous>, transform_indices = @transform_12, window_bounds = array<i64: 1, 16>}, {pipeline_mode = #tpu.pipeline_mode<synchronous>, transform_indices = @transform_13, window_bounds = array<i64: 1, 16>}, {pipeline_mode = #tpu.pipeline_mode<synchronous>, transform_indices = @transform_14, window_bounds = array<i64: 384, 16>}]} {
    %c0 = arith.constant 0 : index
    %c0_0 = arith.constant 0 : index
    %0 = vector.load %arg3[%c0, %c0_0] : memref<128x4xf32, #tpu.memory_space<vmem>>, vector<128x4xf32>
    %c0_1 = arith.constant 0 : index
    %c0_2 = arith.constant 0 : index
    %1 = vector.load %arg1[%c0_1, %c0_2] : memref<256x128xf32, #tpu.memory_space<vmem>>, vector<256x128xf32>
    %c0_3 = arith.constant 0 : index
    %c0_4 = arith.constant 0 : index
    %2 = vector.load %arg2[%c0_3, %c0_4] : memref<128x256xf32, #tpu.memory_space<vmem>>, vector<128x256xf32>
    %cst = arith.constant dense<0.000000e+00> : vector<256x4xf32>
    %3 = tpu.matmul %1, %0, %cst {dimension_numbers = #tpu.dot_dimension_numbers<[1], [0], [0], [1], [0, 0, 1, 1], [], []>} : vector<256x128xf32>, vector<128x4xf32>, vector<256x4xf32> -> vector<256x4xf32>
    %c0_5 = arith.constant 0 : index
    %c0_6 = arith.constant 0 : index
    %4 = vector.load %arg4[%c0_5, %c0_6] : memref<4x16xf32, #tpu.memory_space<vmem>>, vector<4x16xf32>
    %cst_7 = arith.constant dense<0.000000e+00> : vector<256x16xf32>
    %5 = tpu.matmul %3, %4, %cst_7 {dimension_numbers = #tpu.dot_dimension_numbers<[1], [0], [0], [1], [0, 0, 1, 1], [], []>} : vector<256x4xf32>, vector<4x16xf32>, vector<256x16xf32> -> vector<256x16xf32>
    %c0_8 = arith.constant 0 : index
    %c0_9 = arith.constant 0 : index
    %6 = vector.load %arg5[%c0_8, %c0_9] : memref<4x16xf32, #tpu.memory_space<vmem>>, vector<4x16xf32>
    %cst_10 = arith.constant dense<0.000000e+00> : vector<256x16xf32>
    %7 = tpu.matmul %3, %6, %cst_10 {dimension_numbers = #tpu.dot_dimension_numbers<[1], [0], [0], [1], [0, 0, 1, 1], [], []>} : vector<256x4xf32>, vector<4x16xf32>, vector<256x16xf32> -> vector<256x16xf32>
    %8 = arith.addf %5, %7 : vector<256x16xf32>
    %c0_11 = arith.constant 0 : index
    %c0_12 = arith.constant 0 : index
    %9 = vector.load %arg7[%c0_11, %c0_12] : memref<1x16xf32, #tpu.memory_space<vmem>>, vector<1x16xf32>
    %10 = vector.extract_strided_slice %8 {offsets = [0, 0], sizes = [128, 16], strides = [1, 1]} : vector<256x16xf32> to vector<128x16xf32>
    %11 = vector.extract_strided_slice %8 {offsets = [128, 0], sizes = [128, 16], strides = [1, 1]} : vector<256x16xf32> to vector<128x16xf32>
    %12 = arith.mulf %10, %10 : vector<128x16xf32>
    %13 = arith.mulf %11, %11 : vector<128x16xf32>
    %14 = arith.addf %12, %13 : vector<128x16xf32>
    %cst_13 = arith.constant 9.99999996E-13 : f32
    %15 = vector.broadcast %cst_13 : f32 to vector<128x16xf32>
    %16 = arith.addf %14, %15 : vector<128x16xf32>
    %17 = math.rsqrt %16 : vector<128x16xf32>
    %18 = arith.mulf %16, %17 : vector<128x16xf32>
    %19 = vector.broadcast %9 : vector<1x16xf32> to vector<128x16xf32>
    %20 = arith.addf %18, %19 : vector<128x16xf32>
    %cst_14 = arith.constant 0.000000e+00 : f32
    %21 = vector.broadcast %cst_14 : f32 to vector<128x16xf32>
    %22 = arith.cmpf ogt, %20, %21 : vector<128x16xf32>
    %cst_15 = arith.constant 2.000000e-01 : f32
    %23 = vector.broadcast %cst_15 : f32 to vector<128x16xf32>
    %24 = arith.mulf %23, %20 : vector<128x16xf32>
    %25 = arith.select %22, %20, %24 : vector<128x16xi1>, vector<128x16xf32>
    %26 = arith.mulf %25, %17 : vector<128x16xf32>
    %27 = arith.mulf %10, %26 : vector<128x16xf32>
    %28 = arith.mulf %11, %26 : vector<128x16xf32>
    %29 = tpu.concatenate %27, %28 in 0 : vector<128x16xf32>, vector<128x16xf32> -> vector<256x16xf32>
    %c0_16 = arith.constant 0 : index
    %c0_17 = arith.constant 0 : index
    %30 = vector.load %arg6[%c0_16, %c0_17] : memref<16x16xf32, #tpu.memory_space<vmem>>, vector<16x16xf32>
    %cst_18 = arith.constant dense<0.000000e+00> : vector<256x16xf32>
    %31 = tpu.matmul %29, %30, %cst_18 {dimension_numbers = #tpu.dot_dimension_numbers<[1], [0], [0], [1], [0, 0, 1, 1], [], []>} : vector<256x16xf32>, vector<16x16xf32>, vector<256x16xf32> -> vector<256x16xf32>
    %c0_19 = arith.constant 0 : index
    %c0_20 = arith.constant 0 : index
    %32 = vector.load %arg8[%c0_19, %c0_20] : memref<1x16xf32, #tpu.memory_space<vmem>>, vector<1x16xf32>
    %33 = vector.extract_strided_slice %31 {offsets = [0, 0], sizes = [128, 16], strides = [1, 1]} : vector<256x16xf32> to vector<128x16xf32>
    %34 = vector.extract_strided_slice %31 {offsets = [128, 0], sizes = [128, 16], strides = [1, 1]} : vector<256x16xf32> to vector<128x16xf32>
    %35 = arith.mulf %33, %33 : vector<128x16xf32>
    %36 = arith.mulf %34, %34 : vector<128x16xf32>
    %37 = arith.addf %35, %36 : vector<128x16xf32>
    %cst_21 = arith.constant 9.99999996E-13 : f32
    %38 = vector.broadcast %cst_21 : f32 to vector<128x16xf32>
    %39 = arith.addf %37, %38 : vector<128x16xf32>
    %40 = math.rsqrt %39 : vector<128x16xf32>
    %41 = arith.mulf %39, %40 : vector<128x16xf32>
    %42 = vector.broadcast %32 : vector<1x16xf32> to vector<128x16xf32>
    %43 = arith.addf %41, %42 : vector<128x16xf32>
    %cst_22 = arith.constant 0.000000e+00 : f32
    %44 = vector.broadcast %cst_22 : f32 to vector<128x16xf32>
    %45 = arith.cmpf ogt, %43, %44 : vector<128x16xf32>
    %cst_23 = arith.constant 2.000000e-01 : f32
    %46 = vector.broadcast %cst_23 : f32 to vector<128x16xf32>
    %47 = arith.mulf %46, %43 : vector<128x16xf32>
    %48 = arith.select %45, %43, %47 : vector<128x16xi1>, vector<128x16xf32>
    %49 = arith.mulf %48, %40 : vector<128x16xf32>
    %50 = arith.mulf %33, %49 : vector<128x16xf32>
    %51 = arith.mulf %34, %49 : vector<128x16xf32>
    %52 = tpu.concatenate %50, %51 in 0 : vector<128x16xf32>, vector<128x16xf32> -> vector<256x16xf32>
    %53 = vector.extract_strided_slice %52 {offsets = [0, 0], sizes = [128, 16], strides = [1, 1]} : vector<256x16xf32> to vector<128x16xf32>
    %54 = vector.extract_strided_slice %52 {offsets = [128, 0], sizes = [128, 16], strides = [1, 1]} : vector<256x16xf32> to vector<128x16xf32>
    %55 = tpu.concatenate %53, %54 in 0 : vector<128x16xf32>, vector<128x16xf32> -> vector<256x16xf32>
    %cst_24 = arith.constant dense<0.000000e+00> : vector<128x16xf32>
    %56 = tpu.matmul %2, %55, %cst_24 {dimension_numbers = #tpu.dot_dimension_numbers<[1], [0], [0], [1], [0, 0, 1, 1], [], []>} : vector<128x256xf32>, vector<256x16xf32>, vector<128x16xf32> -> vector<128x16xf32>
    %cst_25 = arith.constant 0.000000e+00 : f32
    %57 = vector.broadcast %cst_25 : f32 to vector<128x16xf32>
    %58 = arith.subf %57, %56 : vector<128x16xf32>
    %cst_26 = arith.constant 0.000000e+00 : f32
    %59 = vector.broadcast %cst_26 : f32 to vector<128x16xf32>
    %60 = arith.subf %59, %53 : vector<128x16xf32>
    %61 = tpu.concatenate %54, %60 in 0 : vector<128x16xf32>, vector<128x16xf32> -> vector<256x16xf32>
    %cst_27 = arith.constant dense<0.000000e+00> : vector<128x16xf32>
    %62 = tpu.matmul %2, %61, %cst_27 {dimension_numbers = #tpu.dot_dimension_numbers<[1], [0], [0], [1], [0, 0, 1, 1], [], []>} : vector<128x256xf32>, vector<256x16xf32>, vector<128x16xf32> -> vector<128x16xf32>
    %cst_28 = arith.constant 0.000000e+00 : f32
    %63 = vector.broadcast %cst_28 : f32 to vector<128x16xf32>
    %64 = arith.subf %63, %62 : vector<128x16xf32>
    %c0_29 = arith.constant 0 : index
    %c0_30 = arith.constant 0 : index
    %65 = vector.load %arg9[%c0_29, %c0_30] : memref<4x16xf32, #tpu.memory_space<vmem>>, vector<4x16xf32>
    %cst_31 = arith.constant dense<0.000000e+00> : vector<128x16xf32>
    %66 = tpu.matmul %0, %65, %cst_31 {dimension_numbers = #tpu.dot_dimension_numbers<[1], [0], [0], [1], [0, 0, 1, 1], [], []>} : vector<128x4xf32>, vector<4x16xf32>, vector<128x16xf32> -> vector<128x16xf32>
    %c0_32 = arith.constant 0 : index
    %c0_33 = arith.constant 0 : index
    %67 = vector.load %arg10[%c0_32, %c0_33] : memref<16x16xf32, #tpu.memory_space<vmem>>, vector<16x16xf32>
    %cst_34 = arith.constant dense<0.000000e+00> : vector<128x16xf32>
    %68 = tpu.matmul %58, %67, %cst_34 {dimension_numbers = #tpu.dot_dimension_numbers<[1], [0], [0], [1], [0, 0, 1, 1], [], []>} : vector<128x16xf32>, vector<16x16xf32>, vector<128x16xf32> -> vector<128x16xf32>
    %69 = arith.addf %66, %68 : vector<128x16xf32>
    %c0_35 = arith.constant 0 : index
    %c0_36 = arith.constant 0 : index
    %70 = vector.load %arg11[%c0_35, %c0_36] : memref<16x16xf32, #tpu.memory_space<vmem>>, vector<16x16xf32>
    %cst_37 = arith.constant dense<0.000000e+00> : vector<128x16xf32>
    %71 = tpu.matmul %64, %70, %cst_37 {dimension_numbers = #tpu.dot_dimension_numbers<[1], [0], [0], [1], [0, 0, 1, 1], [], []>} : vector<128x16xf32>, vector<16x16xf32>, vector<128x16xf32> -> vector<128x16xf32>
    %72 = arith.addf %69, %71 : vector<128x16xf32>
    %c0_38 = arith.constant 0 : index
    %c0_39 = arith.constant 0 : index
    %73 = vector.load %arg13[%c0_38, %c0_39] : memref<1x16xf32, #tpu.memory_space<vmem>>, vector<1x16xf32>
    %74 = vector.broadcast %73 : vector<1x16xf32> to vector<128x16xf32>
    %75 = arith.addf %72, %74 : vector<128x16xf32>
    %cst_40 = arith.constant 0.000000e+00 : f32
    %76 = vector.broadcast %cst_40 : f32 to vector<128x16xf32>
    %77 = arith.cmpf ogt, %75, %76 : vector<128x16xf32>
    %cst_41 = arith.constant 2.000000e-01 : f32
    %78 = vector.broadcast %cst_41 : f32 to vector<128x16xf32>
    %79 = arith.mulf %78, %75 : vector<128x16xf32>
    %80 = arith.select %77, %75, %79 : vector<128x16xi1>, vector<128x16xf32>
    %c0_42 = arith.constant 0 : index
    %c0_43 = arith.constant 0 : index
    %81 = vector.load %arg12[%c0_42, %c0_43] : memref<16x16xf32, #tpu.memory_space<vmem>>, vector<16x16xf32>
    %cst_44 = arith.constant dense<0.000000e+00> : vector<128x16xf32>
    %82 = tpu.matmul %80, %81, %cst_44 {dimension_numbers = #tpu.dot_dimension_numbers<[1], [0], [0], [1], [0, 0, 1, 1], [], []>} : vector<128x16xf32>, vector<16x16xf32>, vector<128x16xf32> -> vector<128x16xf32>
    %c0_45 = arith.constant 0 : index
    %c0_46 = arith.constant 0 : index
    %83 = vector.load %arg14[%c0_45, %c0_46] : memref<1x16xf32, #tpu.memory_space<vmem>>, vector<1x16xf32>
    %84 = vector.broadcast %83 : vector<1x16xf32> to vector<128x16xf32>
    %85 = arith.addf %82, %84 : vector<128x16xf32>
    %cst_47 = arith.constant 0.000000e+00 : f32
    %86 = vector.broadcast %cst_47 : f32 to vector<128x16xf32>
    %87 = arith.cmpf ogt, %85, %86 : vector<128x16xf32>
    %cst_48 = arith.constant 2.000000e-01 : f32
    %88 = vector.broadcast %cst_48 : f32 to vector<128x16xf32>
    %89 = arith.mulf %88, %85 : vector<128x16xf32>
    %90 = arith.select %87, %85, %89 : vector<128x16xi1>, vector<128x16xf32>
    %91 = tpu.concatenate %90, %53, %54 in 0 : vector<128x16xf32>, vector<128x16xf32>, vector<128x16xf32> -> vector<384x16xf32>
    %c0_49 = arith.constant 0 : index
    %c0_50 = arith.constant 0 : index
    %92 = vector.load %arg15[%c0_49, %c0_50] : memref<384x16xf32, #tpu.memory_space<vmem>>, vector<384x16xf32>
    tpu.vector_store %arg15[%c0_49, %c0_50], %91 {strides = array<i32>} : memref<384x16xf32, #tpu.memory_space<vmem>>, vector<384x16xf32>,
    return
  }
  func.func @transform_0(%arg0: i32) -> (i32, i32) {
    %c0_i32 = arith.constant 0 : i32
    %c0_i32_0 = arith.constant 0 : i32
    %c0_i32_1 = arith.constant 0 : i32
    return %c0_i32, %c0_i32_0 : i32, i32
  }
  func.func @transform_1(%arg0: i32) -> (i32, i32) {
    %c0_i32 = arith.constant 0 : i32
    %c0_i32_0 = arith.constant 0 : i32
    %c0_i32_1 = arith.constant 0 : i32
    return %c0_i32, %c0_i32_0 : i32, i32
  }
  func.func @transform_2(%arg0: i32) -> (i32, i32) {
    %c0_i32 = arith.constant 0 : i32
    %c0_i32_0 = arith.constant 0 : i32
    %c0_i32_1 = arith.constant 0 : i32
    return %c0_i32, %c0_i32_0 : i32, i32
  }
  func.func @transform_3(%arg0: i32) -> (i32, i32) {
    %c0_i32 = arith.constant 0 : i32
    %c0_i32_0 = arith.constant 0 : i32
    %c0_i32_1 = arith.constant 0 : i32
    return %c0_i32, %c0_i32_0 : i32, i32
  }
  func.func @transform_4(%arg0: i32) -> (i32, i32) {
    %c0_i32 = arith.constant 0 : i32
    %c0_i32_0 = arith.constant 0 : i32
    %c0_i32_1 = arith.constant 0 : i32
    return %c0_i32, %c0_i32_0 : i32, i32
  }
  func.func @transform_5(%arg0: i32) -> (i32, i32) {
    %c0_i32 = arith.constant 0 : i32
    %c0_i32_0 = arith.constant 0 : i32
    %c0_i32_1 = arith.constant 0 : i32
    return %c0_i32, %c0_i32_0 : i32, i32
  }
  func.func @transform_6(%arg0: i32) -> (i32, i32) {
    %c0_i32 = arith.constant 0 : i32
    %c0_i32_0 = arith.constant 0 : i32
    %c0_i32_1 = arith.constant 0 : i32
    return %c0_i32, %c0_i32_0 : i32, i32
  }
  func.func @transform_7(%arg0: i32) -> (i32, i32) {
    %c0_i32 = arith.constant 0 : i32
    %c0_i32_0 = arith.constant 0 : i32
    %c0_i32_1 = arith.constant 0 : i32
    return %c0_i32, %c0_i32_0 : i32, i32
  }
  func.func @transform_8(%arg0: i32) -> (i32, i32) {
    %c0_i32 = arith.constant 0 : i32
    %c0_i32_0 = arith.constant 0 : i32
    %c0_i32_1 = arith.constant 0 : i32
    return %c0_i32, %c0_i32_0 : i32, i32
  }
  func.func @transform_9(%arg0: i32) -> (i32, i32) {
    %c0_i32 = arith.constant 0 : i32
    %c0_i32_0 = arith.constant 0 : i32
    %c0_i32_1 = arith.constant 0 : i32
    return %c0_i32, %c0_i32_0 : i32, i32
  }
  func.func @transform_10(%arg0: i32) -> (i32, i32) {
    %c0_i32 = arith.constant 0 : i32
    %c0_i32_0 = arith.constant 0 : i32
    %c0_i32_1 = arith.constant 0 : i32
    return %c0_i32, %c0_i32_0 : i32, i32
  }
  func.func @transform_11(%arg0: i32) -> (i32, i32) {
    %c0_i32 = arith.constant 0 : i32
    %c0_i32_0 = arith.constant 0 : i32
    %c0_i32_1 = arith.constant 0 : i32
    return %c0_i32, %c0_i32_0 : i32, i32
  }
  func.func @transform_12(%arg0: i32) -> (i32, i32) {
    %c0_i32 = arith.constant 0 : i32
    %c0_i32_0 = arith.constant 0 : i32
    %c0_i32_1 = arith.constant 0 : i32
    return %c0_i32, %c0_i32_0 : i32, i32
  }
  func.func @transform_13(%arg0: i32) -> (i32, i32) {
    %c0_i32 = arith.constant 0 : i32
    %c0_i32_0 = arith.constant 0 : i32
    %c0_i32_1 = arith.constant 0 : i32
    return %c0_i32, %c0_i32_0 : i32, i32
  }
  func.func @transform_14(%arg0: i32) -> (i32, i32) {
    %c0_i32 = arith.constant 0 : i32
    %c0_i32_0 = arith.constant 0 : i32
    %c0_i32_1 = arith.constant 0 : i32
    return %c0_i32, %c0_i32_0 : i32, i32
  }
}

module attributes {stable_mosaic.version = 11 : i64} {
  func.func @_head_kernel(%arg0: i32, %arg1: memref<384x16xf32, #tpu.memory_space<vmem>>, %arg2: memref<384x32xf32, #tpu.memory_space<vmem>>, %arg3: memref<384x64xf32, #tpu.memory_space<vmem>>, %arg4: memref<128x2xf32, #tpu.memory_space<vmem>>, %arg5: memref<16x128xf32, #tpu.memory_space<vmem>>, %arg6: memref<32x128xf32, #tpu.memory_space<vmem>>, %arg7: memref<64x128xf32, #tpu.memory_space<vmem>>, %arg8: memref<1x128xf32, #tpu.memory_space<vmem>>, %arg9: memref<128x256xf32, #tpu.memory_space<vmem>>, %arg10: memref<16x256xf32, #tpu.memory_space<vmem>>, %arg11: memref<32x256xf32, #tpu.memory_space<vmem>>, %arg12: memref<64x256xf32, #tpu.memory_space<vmem>>, %arg13: memref<1x256xf32, #tpu.memory_space<vmem>>, %arg14: memref<256x256xf32, #tpu.memory_space<vmem>>, %arg15: memref<1x256xf32, #tpu.memory_space<vmem>>, %arg16: memref<256x128xf32, #tpu.memory_space<vmem>>, %arg17: memref<1x128xf32, #tpu.memory_space<vmem>>, %arg18: memref<128x6xf32, #tpu.memory_space<vmem>>, %arg19: memref<1x6xf32, #tpu.memory_space<vmem>>, %arg20: memref<128x6xf32, #tpu.memory_space<vmem>>) attributes {dimension_semantics = [#tpu.dimension_semantics<arbitrary>], iteration_bounds = array<i64: 1>, scalar_prefetch = 0 : i64, scratch_operands = 0 : i64, tpu.core_type = #tpu.core_type<tc>, window_params = [{pipeline_mode = #tpu.pipeline_mode<synchronous>, transform_indices = @transform_0, window_bounds = array<i64: 384, 16>}, {pipeline_mode = #tpu.pipeline_mode<synchronous>, transform_indices = @transform_1, window_bounds = array<i64: 384, 32>}, {pipeline_mode = #tpu.pipeline_mode<synchronous>, transform_indices = @transform_2, window_bounds = array<i64: 384, 64>}, {pipeline_mode = #tpu.pipeline_mode<synchronous>, transform_indices = @transform_3, window_bounds = array<i64: 128, 2>}, {pipeline_mode = #tpu.pipeline_mode<synchronous>, transform_indices = @transform_4, window_bounds = array<i64: 16, 128>}, {pipeline_mode = #tpu.pipeline_mode<synchronous>, transform_indices = @transform_5, window_bounds = array<i64: 32, 128>}, {pipeline_mode = #tpu.pipeline_mode<synchronous>, transform_indices = @transform_6, window_bounds = array<i64: 64, 128>}, {pipeline_mode = #tpu.pipeline_mode<synchronous>, transform_indices = @transform_7, window_bounds = array<i64: 1, 128>}, {pipeline_mode = #tpu.pipeline_mode<synchronous>, transform_indices = @transform_8, window_bounds = array<i64: 128, 256>}, {pipeline_mode = #tpu.pipeline_mode<synchronous>, transform_indices = @transform_9, window_bounds = array<i64: 16, 256>}, {pipeline_mode = #tpu.pipeline_mode<synchronous>, transform_indices = @transform_10, window_bounds = array<i64: 32, 256>}, {pipeline_mode = #tpu.pipeline_mode<synchronous>, transform_indices = @transform_11, window_bounds = array<i64: 64, 256>}, {pipeline_mode = #tpu.pipeline_mode<synchronous>, transform_indices = @transform_12, window_bounds = array<i64: 1, 256>}, {pipeline_mode = #tpu.pipeline_mode<synchronous>, transform_indices = @transform_13, window_bounds = array<i64: 256, 256>}, {pipeline_mode = #tpu.pipeline_mode<synchronous>, transform_indices = @transform_14, window_bounds = array<i64: 1, 256>}, {pipeline_mode = #tpu.pipeline_mode<synchronous>, transform_indices = @transform_15, window_bounds = array<i64: 256, 128>}, {pipeline_mode = #tpu.pipeline_mode<synchronous>, transform_indices = @transform_16, window_bounds = array<i64: 1, 128>}, {pipeline_mode = #tpu.pipeline_mode<synchronous>, transform_indices = @transform_17, window_bounds = array<i64: 128, 6>}, {pipeline_mode = #tpu.pipeline_mode<synchronous>, transform_indices = @transform_18, window_bounds = array<i64: 1, 6>}, {pipeline_mode = #tpu.pipeline_mode<synchronous>, transform_indices = @transform_19, window_bounds = array<i64: 128, 6>}]} {
    %c0 = arith.constant 0 : index
    %c0_0 = arith.constant 0 : index
    %0 = vector.load %arg1[%c0, %c0_0] : memref<384x16xf32, #tpu.memory_space<vmem>>, vector<384x16xf32>
    %1 = vector.extract_strided_slice %0 {offsets = [0, 0], sizes = [128, 16], strides = [1, 1]} : vector<384x16xf32> to vector<128x16xf32>
    %c0_1 = arith.constant 0 : index
    %c0_2 = arith.constant 0 : index
    %2 = vector.load %arg2[%c0_1, %c0_2] : memref<384x32xf32, #tpu.memory_space<vmem>>, vector<384x32xf32>
    %3 = vector.extract_strided_slice %2 {offsets = [0, 0], sizes = [128, 32], strides = [1, 1]} : vector<384x32xf32> to vector<128x32xf32>
    %c0_3 = arith.constant 0 : index
    %c0_4 = arith.constant 0 : index
    %4 = vector.load %arg3[%c0_3, %c0_4] : memref<384x64xf32, #tpu.memory_space<vmem>>, vector<384x64xf32>
    %5 = vector.extract_strided_slice %4 {offsets = [0, 0], sizes = [128, 64], strides = [1, 1]} : vector<384x64xf32> to vector<128x64xf32>
    %c0_5 = arith.constant 0 : index
    %c0_6 = arith.constant 0 : index
    %6 = vector.load %arg4[%c0_5, %c0_6] : memref<128x2xf32, #tpu.memory_space<vmem>>, vector<128x2xf32>
    %c0_7 = arith.constant 0 : index
    %c0_8 = arith.constant 0 : index
    %7 = vector.load %arg5[%c0_7, %c0_8] : memref<16x128xf32, #tpu.memory_space<vmem>>, vector<16x128xf32>
    %cst = arith.constant dense<0.000000e+00> : vector<128x128xf32>
    %8 = tpu.matmul %1, %7, %cst {dimension_numbers = #tpu.dot_dimension_numbers<[1], [0], [0], [1], [0, 0, 1, 1], [], []>} : vector<128x16xf32>, vector<16x128xf32>, vector<128x128xf32> -> vector<128x128xf32>
    %c0_9 = arith.constant 0 : index
    %c0_10 = arith.constant 0 : index
    %9 = vector.load %arg6[%c0_9, %c0_10] : memref<32x128xf32, #tpu.memory_space<vmem>>, vector<32x128xf32>
    %cst_11 = arith.constant dense<0.000000e+00> : vector<128x128xf32>
    %10 = tpu.matmul %3, %9, %cst_11 {dimension_numbers = #tpu.dot_dimension_numbers<[1], [0], [0], [1], [0, 0, 1, 1], [], []>} : vector<128x32xf32>, vector<32x128xf32>, vector<128x128xf32> -> vector<128x128xf32>
    %11 = arith.addf %8, %10 : vector<128x128xf32>
    %c0_12 = arith.constant 0 : index
    %c0_13 = arith.constant 0 : index
    %12 = vector.load %arg7[%c0_12, %c0_13] : memref<64x128xf32, #tpu.memory_space<vmem>>, vector<64x128xf32>
    %cst_14 = arith.constant dense<0.000000e+00> : vector<128x128xf32>
    %13 = tpu.matmul %5, %12, %cst_14 {dimension_numbers = #tpu.dot_dimension_numbers<[1], [0], [0], [1], [0, 0, 1, 1], [], []>} : vector<128x64xf32>, vector<64x128xf32>, vector<128x128xf32> -> vector<128x128xf32>
    %14 = arith.addf %11, %13 : vector<128x128xf32>
    %c0_15 = arith.constant 0 : index
    %c0_16 = arith.constant 0 : index
    %15 = vector.load %arg8[%c0_15, %c0_16] : memref<1x128xf32, #tpu.memory_space<vmem>>, vector<1x128xf32>
    %16 = vector.broadcast %15 : vector<1x128xf32> to vector<128x128xf32>
    %17 = arith.addf %14, %16 : vector<128x128xf32>
    %cst_17 = arith.constant 0.000000e+00 : f32
    %18 = vector.broadcast %cst_17 : f32 to vector<128x128xf32>
    %19 = arith.cmpf ogt, %17, %18 : vector<128x128xf32>
    %cst_18 = arith.constant 2.000000e-01 : f32
    %20 = vector.broadcast %cst_18 : f32 to vector<128x128xf32>
    %21 = arith.mulf %20, %17 : vector<128x128xf32>
    %22 = arith.select %19, %17, %21 : vector<128x128xi1>, vector<128x128xf32>
    %cst_19 = arith.constant 0.000000e+00 : f32
    %23 = vector.broadcast %cst_19 : f32 to vector<128x128xf32>
    %24 = vector.extract_strided_slice %6 {offsets = [0, 0], sizes = [128, 1], strides = [1, 1]} : vector<128x2xf32> to vector<128x1xf32>
    %cst_20 = arith.constant 1.000000e+00 : f32
    %25 = vector.broadcast %cst_20 : f32 to vector<128x1xf32>
    %26 = arith.subf %24, %25 : vector<128x1xf32>
    %cst_21 = arith.constant 1.000000e+30 : f32
    %27 = vector.broadcast %cst_21 : f32 to vector<128x1xf32>
    %28 = arith.mulf %26, %27 : vector<128x1xf32>
    %29 = vector.broadcast %28 : vector<128x1xf32> to vector<128x128xf32>
    %30 = arith.addf %22, %29 : vector<128x128xf32>
    %cst_22 = arith.constant dense<0xFF800000> : vector<128xf32>
    %31 = vector.multi_reduction <maximumf>, %30, %cst_22 [0] : vector<128x128xf32> to vector<128xf32>
    %32 = vector.shape_cast %31 : vector<128xf32> to vector<1x128xf32>
    %33 = vector.broadcast %24 : vector<128x1xf32> to vector<128x128xf32>
    %34 = vector.broadcast %32 : vector<1x128xf32> to vector<128x128xf32>
    %35 = arith.mulf %33, %34 : vector<128x128xf32>
    %36 = arith.addf %23, %35 : vector<128x128xf32>
    %37 = vector.extract_strided_slice %6 {offsets = [0, 1], sizes = [128, 1], strides = [1, 1]} : vector<128x2xf32> to vector<128x1xf32>
    %cst_23 = arith.constant 1.000000e+00 : f32
    %38 = vector.broadcast %cst_23 : f32 to vector<128x1xf32>
    %39 = arith.subf %37, %38 : vector<128x1xf32>
    %cst_24 = arith.constant 1.000000e+30 : f32
    %40 = vector.broadcast %cst_24 : f32 to vector<128x1xf32>
    %41 = arith.mulf %39, %40 : vector<128x1xf32>
    %42 = vector.broadcast %41 : vector<128x1xf32> to vector<128x128xf32>
    %43 = arith.addf %22, %42 : vector<128x128xf32>
    %cst_25 = arith.constant dense<0xFF800000> : vector<128xf32>
    %44 = vector.multi_reduction <maximumf>, %43, %cst_25 [0] : vector<128x128xf32> to vector<128xf32>
    %45 = vector.shape_cast %44 : vector<128xf32> to vector<1x128xf32>
    %46 = vector.broadcast %37 : vector<128x1xf32> to vector<128x128xf32>
    %47 = vector.broadcast %45 : vector<1x128xf32> to vector<128x128xf32>
    %48 = arith.mulf %46, %47 : vector<128x128xf32>
    %49 = arith.addf %36, %48 : vector<128x128xf32>
    %c0_26 = arith.constant 0 : index
    %c0_27 = arith.constant 0 : index
    %50 = vector.load %arg9[%c0_26, %c0_27] : memref<128x256xf32, #tpu.memory_space<vmem>>, vector<128x256xf32>
    %cst_28 = arith.constant dense<0.000000e+00> : vector<128x256xf32>
    %51 = tpu.matmul %49, %50, %cst_28 {dimension_numbers = #tpu.dot_dimension_numbers<[1], [0], [0], [1], [0, 0, 1, 1], [], []>} : vector<128x128xf32>, vector<128x256xf32>, vector<128x256xf32> -> vector<128x256xf32>
    %c0_29 = arith.constant 0 : index
    %c0_30 = arith.constant 0 : index
    %52 = vector.load %arg10[%c0_29, %c0_30] : memref<16x256xf32, #tpu.memory_space<vmem>>, vector<16x256xf32>
    %cst_31 = arith.constant dense<0.000000e+00> : vector<128x256xf32>
    %53 = tpu.matmul %1, %52, %cst_31 {dimension_numbers = #tpu.dot_dimension_numbers<[1], [0], [0], [1], [0, 0, 1, 1], [], []>} : vector<128x16xf32>, vector<16x256xf32>, vector<128x256xf32> -> vector<128x256xf32>
    %54 = arith.addf %51, %53 : vector<128x256xf32>
    %c0_32 = arith.constant 0 : index
    %c0_33 = arith.constant 0 : index
    %55 = vector.load %arg11[%c0_32, %c0_33] : memref<32x256xf32, #tpu.memory_space<vmem>>, vector<32x256xf32>
    %cst_34 = arith.constant dense<0.000000e+00> : vector<128x256xf32>
    %56 = tpu.matmul %3, %55, %cst_34 {dimension_numbers = #tpu.dot_dimension_numbers<[1], [0], [0], [1], [0, 0, 1, 1], [], []>} : vector<128x32xf32>, vector<32x256xf32>, vector<128x256xf32> -> vector<128x256xf32>
    %57 = arith.addf %54, %56 : vector<128x256xf32>
    %c0_35 = arith.constant 0 : index
    %c0_36 = arith.constant 0 : index
    %58 = vector.load %arg12[%c0_35, %c0_36] : memref<64x256xf32, #tpu.memory_space<vmem>>, vector<64x256xf32>
    %cst_37 = arith.constant dense<0.000000e+00> : vector<128x256xf32>
    %59 = tpu.matmul %5, %58, %cst_37 {dimension_numbers = #tpu.dot_dimension_numbers<[1], [0], [0], [1], [0, 0, 1, 1], [], []>} : vector<128x64xf32>, vector<64x256xf32>, vector<128x256xf32> -> vector<128x256xf32>
    %60 = arith.addf %57, %59 : vector<128x256xf32>
    %c0_38 = arith.constant 0 : index
    %c0_39 = arith.constant 0 : index
    %61 = vector.load %arg13[%c0_38, %c0_39] : memref<1x256xf32, #tpu.memory_space<vmem>>, vector<1x256xf32>
    %62 = vector.broadcast %61 : vector<1x256xf32> to vector<128x256xf32>
    %63 = arith.addf %60, %62 : vector<128x256xf32>
    %cst_40 = arith.constant 0.000000e+00 : f32
    %64 = vector.broadcast %cst_40 : f32 to vector<128x256xf32>
    %65 = arith.cmpf ogt, %63, %64 : vector<128x256xf32>
    %cst_41 = arith.constant 2.000000e-01 : f32
    %66 = vector.broadcast %cst_41 : f32 to vector<128x256xf32>
    %67 = arith.mulf %66, %63 : vector<128x256xf32>
    %68 = arith.select %65, %63, %67 : vector<128x256xi1>, vector<128x256xf32>
    %c0_42 = arith.constant 0 : index
    %c0_43 = arith.constant 0 : index
    %69 = vector.load %arg14[%c0_42, %c0_43] : memref<256x256xf32, #tpu.memory_space<vmem>>, vector<256x256xf32>
    %cst_44 = arith.constant dense<0.000000e+00> : vector<128x256xf32>
    %70 = tpu.matmul %68, %69, %cst_44 {dimension_numbers = #tpu.dot_dimension_numbers<[1], [0], [0], [1], [0, 0, 1, 1], [], []>} : vector<128x256xf32>, vector<256x256xf32>, vector<128x256xf32> -> vector<128x256xf32>
    %c0_45 = arith.constant 0 : index
    %c0_46 = arith.constant 0 : index
    %71 = vector.load %arg15[%c0_45, %c0_46] : memref<1x256xf32, #tpu.memory_space<vmem>>, vector<1x256xf32>
    %72 = vector.broadcast %71 : vector<1x256xf32> to vector<128x256xf32>
    %73 = arith.addf %70, %72 : vector<128x256xf32>
    %cst_47 = arith.constant 0.000000e+00 : f32
    %74 = vector.broadcast %cst_47 : f32 to vector<128x256xf32>
    %75 = arith.cmpf ogt, %73, %74 : vector<128x256xf32>
    %cst_48 = arith.constant 2.000000e-01 : f32
    %76 = vector.broadcast %cst_48 : f32 to vector<128x256xf32>
    %77 = arith.mulf %76, %73 : vector<128x256xf32>
    %78 = arith.select %75, %73, %77 : vector<128x256xi1>, vector<128x256xf32>
    %c0_49 = arith.constant 0 : index
    %c0_50 = arith.constant 0 : index
    %79 = vector.load %arg16[%c0_49, %c0_50] : memref<256x128xf32, #tpu.memory_space<vmem>>, vector<256x128xf32>
    %cst_51 = arith.constant dense<0.000000e+00> : vector<128x128xf32>
    %80 = tpu.matmul %78, %79, %cst_51 {dimension_numbers = #tpu.dot_dimension_numbers<[1], [0], [0], [1], [0, 0, 1, 1], [], []>} : vector<128x256xf32>, vector<256x128xf32>, vector<128x128xf32> -> vector<128x128xf32>
    %c0_52 = arith.constant 0 : index
    %c0_53 = arith.constant 0 : index
    %81 = vector.load %arg17[%c0_52, %c0_53] : memref<1x128xf32, #tpu.memory_space<vmem>>, vector<1x128xf32>
    %82 = vector.broadcast %81 : vector<1x128xf32> to vector<128x128xf32>
    %83 = arith.addf %80, %82 : vector<128x128xf32>
    %cst_54 = arith.constant 0.000000e+00 : f32
    %84 = vector.broadcast %cst_54 : f32 to vector<128x128xf32>
    %85 = arith.cmpf ogt, %83, %84 : vector<128x128xf32>
    %cst_55 = arith.constant 2.000000e-01 : f32
    %86 = vector.broadcast %cst_55 : f32 to vector<128x128xf32>
    %87 = arith.mulf %86, %83 : vector<128x128xf32>
    %88 = arith.select %85, %83, %87 : vector<128x128xi1>, vector<128x128xf32>
    %c0_56 = arith.constant 0 : index
    %c0_57 = arith.constant 0 : index
    %89 = vector.load %arg18[%c0_56, %c0_57] : memref<128x6xf32, #tpu.memory_space<vmem>>, vector<128x6xf32>
    %cst_58 = arith.constant dense<0.000000e+00> : vector<128x6xf32>
    %90 = tpu.matmul %88, %89, %cst_58 {dimension_numbers = #tpu.dot_dimension_numbers<[1], [0], [0], [1], [0, 0, 1, 1], [], []>} : vector<128x128xf32>, vector<128x6xf32>, vector<128x6xf32> -> vector<128x6xf32>
    %c0_59 = arith.constant 0 : index
    %c0_60 = arith.constant 0 : index
    %91 = vector.load %arg19[%c0_59, %c0_60] : memref<1x6xf32, #tpu.memory_space<vmem>>, vector<1x6xf32>
    %92 = vector.broadcast %91 : vector<1x6xf32> to vector<128x6xf32>
    %93 = arith.addf %90, %92 : vector<128x6xf32>
    %c0_61 = arith.constant 0 : index
    %c0_62 = arith.constant 0 : index
    %94 = vector.load %arg20[%c0_61, %c0_62] : memref<128x6xf32, #tpu.memory_space<vmem>>, vector<128x6xf32>
    tpu.vector_store %arg20[%c0_61, %c0_62], %93 {strides = array<i32>} : memref<128x6xf32, #tpu.memory_space<vmem>>, vector<128x6xf32>,
    return
  }
  func.func @transform_0(%arg0: i32) -> (i32, i32) {
    %c0_i32 = arith.constant 0 : i32
    %c0_i32_0 = arith.constant 0 : i32
    %c0_i32_1 = arith.constant 0 : i32
    return %c0_i32, %c0_i32_0 : i32, i32
  }
  func.func @transform_1(%arg0: i32) -> (i32, i32) {
    %c0_i32 = arith.constant 0 : i32
    %c0_i32_0 = arith.constant 0 : i32
    %c0_i32_1 = arith.constant 0 : i32
    return %c0_i32, %c0_i32_0 : i32, i32
  }
  func.func @transform_2(%arg0: i32) -> (i32, i32) {
    %c0_i32 = arith.constant 0 : i32
    %c0_i32_0 = arith.constant 0 : i32
    %c0_i32_1 = arith.constant 0 : i32
    return %c0_i32, %c0_i32_0 : i32, i32
  }
  func.func @transform_3(%arg0: i32) -> (i32, i32) {
    %c0_i32 = arith.constant 0 : i32
    %c0_i32_0 = arith.constant 0 : i32
    %c0_i32_1 = arith.constant 0 : i32
    return %c0_i32, %c0_i32_0 : i32, i32
  }
  func.func @transform_4(%arg0: i32) -> (i32, i32) {
    %c0_i32 = arith.constant 0 : i32
    %c0_i32_0 = arith.constant 0 : i32
    %c0_i32_1 = arith.constant 0 : i32
    return %c0_i32, %c0_i32_0 : i32, i32
  }
  func.func @transform_5(%arg0: i32) -> (i32, i32) {
    %c0_i32 = arith.constant 0 : i32
    %c0_i32_0 = arith.constant 0 : i32
    %c0_i32_1 = arith.constant 0 : i32
    return %c0_i32, %c0_i32_0 : i32, i32
  }
  func.func @transform_6(%arg0: i32) -> (i32, i32) {
    %c0_i32 = arith.constant 0 : i32
    %c0_i32_0 = arith.constant 0 : i32
    %c0_i32_1 = arith.constant 0 : i32
    return %c0_i32, %c0_i32_0 : i32, i32
  }
  func.func @transform_7(%arg0: i32) -> (i32, i32) {
    %c0_i32 = arith.constant 0 : i32
    %c0_i32_0 = arith.constant 0 : i32
    %c0_i32_1 = arith.constant 0 : i32
    return %c0_i32, %c0_i32_0 : i32, i32
  }
  func.func @transform_8(%arg0: i32) -> (i32, i32) {
    %c0_i32 = arith.constant 0 : i32
    %c0_i32_0 = arith.constant 0 : i32
    %c0_i32_1 = arith.constant 0 : i32
    return %c0_i32, %c0_i32_0 : i32, i32
  }
  func.func @transform_9(%arg0: i32) -> (i32, i32) {
    %c0_i32 = arith.constant 0 : i32
    %c0_i32_0 = arith.constant 0 : i32
    %c0_i32_1 = arith.constant 0 : i32
    return %c0_i32, %c0_i32_0 : i32, i32
  }
  func.func @transform_10(%arg0: i32) -> (i32, i32) {
    %c0_i32 = arith.constant 0 : i32
    %c0_i32_0 = arith.constant 0 : i32
    %c0_i32_1 = arith.constant 0 : i32
    return %c0_i32, %c0_i32_0 : i32, i32
  }
  func.func @transform_11(%arg0: i32) -> (i32, i32) {
    %c0_i32 = arith.constant 0 : i32
    %c0_i32_0 = arith.constant 0 : i32
    %c0_i32_1 = arith.constant 0 : i32
    return %c0_i32, %c0_i32_0 : i32, i32
  }
  func.func @transform_12(%arg0: i32) -> (i32, i32) {
    %c0_i32 = arith.constant 0 : i32
    %c0_i32_0 = arith.constant 0 : i32
    %c0_i32_1 = arith.constant 0 : i32
    return %c0_i32, %c0_i32_0 : i32, i32
  }
  func.func @transform_13(%arg0: i32) -> (i32, i32) {
    %c0_i32 = arith.constant 0 : i32
    %c0_i32_0 = arith.constant 0 : i32
    %c0_i32_1 = arith.constant 0 : i32
    return %c0_i32, %c0_i32_0 : i32, i32
  }
  func.func @transform_14(%arg0: i32) -> (i32, i32) {
    %c0_i32 = arith.constant 0 : i32
    %c0_i32_0 = arith.constant 0 : i32
    %c0_i32_1 = arith.constant 0 : i32
    return %c0_i32, %c0_i32_0 : i32, i32
  }
  func.func @transform_15(%arg0: i32) -> (i32, i32) {
    %c0_i32 = arith.constant 0 : i32
    %c0_i32_0 = arith.constant 0 : i32
    %c0_i32_1 = arith.constant 0 : i32
    return %c0_i32, %c0_i32_0 : i32, i32
  }
  func.func @transform_16(%arg0: i32) -> (i32, i32) {
    %c0_i32 = arith.constant 0 : i32
    %c0_i32_0 = arith.constant 0 : i32
    %c0_i32_1 = arith.constant 0 : i32
    return %c0_i32, %c0_i32_0 : i32, i32
  }
  func.func @transform_17(%arg0: i32) -> (i32, i32) {
    %c0_i32 = arith.constant 0 : i32
    %c0_i32_0 = arith.constant 0 : i32
    %c0_i32_1 = arith.constant 0 : i32
    return %c0_i32, %c0_i32_0 : i32, i32
  }
  func.func @transform_18(%arg0: i32) -> (i32, i32) {
    %c0_i32 = arith.constant 0 : i32
    %c0_i32_0 = arith.constant 0 : i32
    %c0_i32_1 = arith.constant 0 : i32
    return %c0_i32, %c0_i32_0 : i32, i32
  }
  func.func @transform_19(%arg0: i32) -> (i32, i32) {
    %c0_i32 = arith.constant 0 : i32
    %c0_i32_0 = arith.constant 0 : i32
    %c0_i32_1 = arith.constant 0 : i32
    return %c0_i32, %c0_i32_0 : i32, i32
  }
}

</mosaic_0001>

<bundles_post_ra>
// kernel: neg.8
= control target key start
LH: loop header
LB: loop body
LE: loop exit
PB: predicated region body
PF: predicated region fallthrough
CT: control target
= control target key end

     0   :  { %s24_s0 = inlined_call_operand.vmem [shape: f32[128], index: 0, kind: input, shape index: {}]   ;;  %s25_s1 = inlined_call_operand.vmem [shape: f32[128], index: 1, kind: output, shape index: {}]  }
   0x1   :  { %v2_v0 = vld [vmem:[%s24_s0] sm:$0x1] }
   0x2   :  { %v5_v1 = vxor.u32 2147483648, %v2_v0 }
   0x4   :  { %7 = vst [vmem:[%s25_s1] sm:$0x1] %v5_v1 }

// kernel: deltanet_segmentation.6
= control target key start
LH: loop header
LB: loop body
LE: loop exit
PB: predicated region body
PF: predicated region fallthrough
CT: control target
= control target key end

     0   :  { %vm392_vm0 = vcmask 261120   ;;  %vm1258_vm1 = vcmask 523264   ;;  %s6049_s2 = inlined_call_operand.vmem [shape: f32[384,32], index: 2, kind: input, shape index: {}]   ;;  %s6050_s0 = inlined_call_operand.vmem [shape: f32[256,128], index: 0, kind: input, shape index: {}]   ;;  %s6051_s4 = inlined_call_operand.vmem [shape: f32[32,64], index: 4, kind: input, shape index: {}]   ;;  %s6052_s3 = inlined_call_operand.vmem [shape: f32[32,64], index: 3, kind: input, shape index: {}]   ;;  %s6053_s5 = inlined_call_operand.vmem [shape: f32[64,64], index: 5, kind: input, shape index: {}]   ;;  %s6054_s6 = inlined_call_operand.vmem [shape: f32[1,64], index: 6, kind: input, shape index: {}]   ;;  %s6055_s1 = inlined_call_operand.vmem [shape: f32[128,256], index: 1, kind: input, shape index: {}]   ;;  %s6056_s7 = inlined_call_operand.vmem [shape: f32[1,64], index: 7, kind: input, shape index: {}]   ;;  %s6057_s14 = inlined_call_operand.vmem [shape: f32[384,64], index: 14, kind: output, shape index: {}]   ;;  %s6058_s9 = inlined_call_operand.vmem [shape: f32[64,64], index: 9, kind: input, shape index: {}]   ;;  %s6059_s8 = inlined_call_operand.vmem [shape: f32[32,64], index: 8, kind: input, shape index: {}]   ;;  %s6060_s11 = inlined_call_operand.vmem [shape: f32[64,64], index: 11, kind: input, shape index: {}]   ;;  %s6061_s10 = inlined_call_operand.vmem [shape: f32[64,64], index: 10, kind: input, shape index: {}]   ;;  %s6062_s12 = inlined_call_operand.vmem [shape: f32[1,64], index: 12, kind: input, shape index: {}]   ;;  %s6063_s13 = inlined_call_operand.vmem [shape: f32[1,64], index: 13, kind: input, shape index: {}]  }
   0x1   :  { %v47_v0 = vld [vmem:[%s6049_s2] sm:$0xff]  ;;  %v48_v1 = vld [vmem:[%s6049_s2 + $0x8] sm:$0xff]  ;;  %v49_v2 = vld [vmem:[%s6049_s2 + $0x10] sm:$0xff] }
   0x2   :  { %v4111_v3 = vpack.c.bf16 %v48_v1, %v47_v0  ;;  %v50_v4 = vld [vmem:[%s6049_s2 + $0x18] sm:$0xff]  ;;  %v51_v6 = vld [vmem:[%s6049_s2 + $0x20] sm:$0xff]  ;;  %v52_v7 = vld [vmem:[%s6049_s2 + $0x28] sm:$0xff] }
   0x3   :  { %v4115_v5 = vpack.c.bf16 %v50_v4, %v49_v2  ;;  %v4119_v8 = vpack.c.bf16 %v52_v7, %v51_v6  ;;  %v95_v9 = vld [vmem:[%s6050_s0] sm:$0xff]  ;;  %v53_v10 = vld [vmem:[%s6049_s2 + $0x30] sm:$0xff]  ;;  %v54_v11 = vld [vmem:[%s6049_s2 + $0x38] sm:$0xff] }
   0x4   :  { %4112 = vmatprep.subr.bf16.mxu0 %v4111_v3  ;;  %3735 = vmatprep.mubr.f32.mxu0 %v95_v9  ;;  %v4123_v12 = vpack.c.bf16 %v54_v11, %v53_v10  ;;  %v55_v13 = vld [vmem:[%s6049_s2 + $0x40] sm:$0xff]  ;;  %v56_v14 = vld [vmem:[%s6049_s2 + $0x48] sm:$0xff]  ;;  %v57_v16 = vld [vmem:[%s6049_s2 + $0x50] sm:$0xff] }
   0x5   :  { %4114 = vmatpush3.bf16.msra.mxu0 %v4111_v3  ;;  %v4127_v15 = vpack.c.bf16 %v56_v14, %v55_v13  ;;  %v58_v17 = vld [vmem:[%s6049_s2 + $0x58] sm:$0xff]  ;;  %v388_v18 = vld [vmem:[%s6051_s4] sm:$0xff]  ;;  %v389_v19 = vld [vmem:[%s6051_s4 + $0x8] sm:$0xff] }
   0x6   :  { %4116 = vmatprep.subr.bf16.mxu0 %v4115_v5  ;;  %v390_v20 = vld [vmem:[%s6051_s4 + $0x10] sm:$0xff]  ;;  %v4131_v21 = vpack.c.bf16 %v58_v17, %v57_v16  ;;  %v4143_v22 = vpack.c.bf16 %v389_v19, %v388_v18  ;;  %v391_v23 = vld [vmem:[%s6051_s4 + $0x18] sm:$0xff]  ;;  %v59_v24 = vld [vmem:[%s6049_s2 + $0x60] sm:$0xff] }
   0x7   :  { %v60_v25 = vld [vmem:[%s6049_s2 + $0x68] sm:$0xff]  ;;  %v4147_v26 = vpack.c.bf16 %v391_v23, %v390_v20  ;;  %v61_v28 = vld [vmem:[%s6049_s2 + $0x70] sm:$0xff]  ;;  %v62_v29 = vld [vmem:[%s6049_s2 + $0x78] sm:$0xff] }
   0x8   :  { %4295 = vmatprep.subr.bf16.mxu1 %v4143_v22  ;;  %v4135_v27 = vpack.c.bf16 %v60_v25, %v59_v24  ;;  %v4139_v30 = vpack.c.bf16 %v62_v29, %v61_v28  ;;  %v96_v31 = vld [vmem:[%s6050_s0 + $0x8] sm:$0xff]  ;;  %v97_v32 = vld [vmem:[%s6050_s0 + $0x10] sm:$0xff]  ;;  %v98_v33 = vld [vmem:[%s6050_s0 + $0x18] sm:$0xff] }
   0x9   :  { %4118 = vmatpush3.bf16.msra.mxu0 %v4115_v5  ;;  %4297 = vmatpush3.bf16.msra.mxu1 %v4143_v22  ;;  %v99_v34 = vld [vmem:[%s6050_s0 + $0x20] sm:$0xff]  ;;  %v100_v35 = vld [vmem:[%s6050_s0 + $0x28] sm:$0xff]  ;;  %v101_v36 = vld [vmem:[%s6050_s0 + $0x30] sm:$0xff] }
   0xa   :  { %4120 = vmatprep.subr.bf16.mxu0 %v4119_v8  ;;  %4296 = vmatprep.subr.bf16.mxu1 %v4147_v26  ;;  %v102_v37 = vld [vmem:[%s6050_s0 + $0x38] sm:$0xff]  ;;  %v103_v38 = vld [vmem:[%s6050_s0 + $0x40] sm:$0xff]  ;;  %v104_v39 = vld [vmem:[%s6050_s0 + $0x48] sm:$0xff] }
   0xb   :  { %v105_v40 = vld [vmem:[%s6050_s0 + $0x50] sm:$0xff]  ;;  %v106_v41 = vld [vmem:[%s6050_s0 + $0x58] sm:$0xff]  ;;  %v107_v42 = vld [vmem:[%s6050_s0 + $0x60] sm:$0xff] }
   0xc   :  { %v108_v43 = vld [vmem:[%s6050_s0 + $0x68] sm:$0xff]  ;;  %v109_v44 = vld [vmem:[%s6050_s0 + $0x70] sm:$0xff]  ;;  %v110_v45 = vld [vmem:[%s6050_s0 + $0x78] sm:$0xff] }
   0xd   :  { %4122 = vmatpush3.bf16.msra.mxu0 %v4119_v8  ;;  %4298 = vmatpush3.bf16.msra.mxu1 %v4147_v26  ;;  %v111_v46 = vld [vmem:[%s6050_s0 + $0x80] sm:$0xff]  ;;  %v112_v47 = vld [vmem:[%s6050_s0 + $0x88] sm:$0xff]  ;;  %v113_v48 = vld [vmem:[%s6050_s0 + $0x90] sm:$0xff] }
   0xe   :  { %4124 = vmatprep.subr.bf16.mxu0 %v4123_v12  ;;  %v114_v49 = vld [vmem:[%s6050_s0 + $0x98] sm:$0xff]  ;;  %v115_v50 = vld [vmem:[%s6050_s0 + $0xa0] sm:$0xff]  ;;  %v116_v51 = vld [vmem:[%s6050_s0 + $0xa8] sm:$0xff] }
   0xf   :  { %v117_v52 = vld [vmem:[%s6050_s0 + $0xb0] sm:$0xff]  ;;  %v118_v53 = vld [vmem:[%s6050_s0 + $0xb8] sm:$0xff]  ;;  %v119_v54 = vld [vmem:[%s6050_s0 + $0xc0] sm:$0xff] }
  0x10   :  { %v120_v55 = vld [vmem:[%s6050_s0 + $0xc8] sm:$0xff]  ;;  %v121_v56 = vld [vmem:[%s6050_s0 + $0xd0] sm:$0xff]  ;;  %v122_v57 = vld [vmem:[%s6050_s0 + $0xd8] sm:$0xff] }
  0x11   :  { %4126 = vmatpush3.bf16.msra.mxu0 %v4123_v12  ;;  %v123_v58 = vld [vmem:[%s6050_s0 + $0xe0] sm:$0xff]  ;;  %v124_v59 = vld [vmem:[%s6050_s0 + $0xe8] sm:$0xff]  ;;  %v125_v60 = vld [vmem:[%s6050_s0 + $0xf0] sm:$0xff] }
  0x12   :  { %4128 = vmatprep.subr.bf16.mxu0 %v4127_v15  ;;  %v126_v61 = vld [vmem:[%s6050_s0 + $0xf8] sm:$0xff]  ;;  %v384_v62 = vld [vmem:[%s6052_s3] sm:$0xff]  ;;  %v385_v63 = vld [vmem:[%s6052_s3 + $0x8] sm:$0xff] }
  0x13   :  { %v4151_v0 = vpack.c.bf16 %v385_v63, %v384_v62  ;;  %v386_v11 = vld [vmem:[%s6052_s3 + $0x10] sm:$0xff]  ;;  %v387_v12 = vld [vmem:[%s6052_s3 + $0x18] sm:$0xff] }
  0x14   :  { %v89_v62 = vld [vmem:[%s6049_s2 + $0x150] sm:$0xff]  ;;  %v90_v63 = vld [vmem:[%s6049_s2 + $0x158] sm:$0xff] }
  0x15   :  { %4130 = vmatpush3.bf16.msra.mxu0 %v4127_v15  ;;  %4152 = vmatprep.subr.bf16.mxu1 %v4151_v0  ;;  %v4155_v15 = vpack.c.bf16 %v387_v12, %v386_v11  ;;  %v1254_v12 = vld [vmem:[%s6053_s5 + $0x20] sm:$0xff] }
  0x16   :  { %4132 = vmatprep.subr.bf16.mxu0 %v4131_v21 }
  0x19   :  { %4134 = vmatpush3.bf16.msra.mxu0 %v4131_v21 }
  0x1a   :  { %4136 = vmatprep.subr.bf16.mxu0 %v4135_v27 }
  0x1d   :  { %4138 = vmatpush3.bf16.msra.mxu0 %v4135_v27 }
  0x1e   :  { %4140 = vmatprep.subr.bf16.mxu0 %v4139_v30 }
  0x21   :  { %4142 = vmatpush3.bf16.msra.mxu0 %v4139_v30 }
  0x22   :  { %4144 = vmatprep.subr.bf16.mxu0 %v4143_v22 }
  0x24   :  { %3736 = vmatmul.mubr.f32.vlgmr.msra.gmra.mrb[0].mxu0 %v96_v31 }
  0x25   :  { %3738 = vmatprep.mubr.f32.mxu0 %v97_v32  ;;  %4146 = vmatpush3.bf16.msra.mxu0 %v4143_v22 }
  0x26   :  { %4148 = vmatprep.subr.bf16.mxu0 %v4147_v26 }
  0x28   :  { %3739 = vmatmul.mubr.f32.gmra.mrb[2].mxu0 %v98_v33 }
  0x29   :  { %3741 = vmatprep.mubr.f32.mxu0 %v99_v34  ;;  %4150 = vmatpush3.bf16.msra.mxu0 %v4147_v26 }
  0x2c   :  { %3742 = vmatmul.mubr.f32.gmra.mrb[4].mxu0 %v100_v35 }
  0x2d   :  { %3744 = vmatprep.mubr.f32.mxu0 %v101_v36  ;;  %v63_v36 = vld [vmem:[%s6049_s2 + $0x80] sm:$0xff] }
  0x30   :  { %3745 = vmatmul.mubr.f32.gmra.mrb[6].mxu0 %v102_v37  ;;  %v64_v37 = vld [vmem:[%s6049_s2 + $0x88] sm:$0xff] }
  0x31   :  { %3747 = vmatprep.mubr.f32.mxu0 %v103_v38  ;;  %v65_v38 = vld [vmem:[%s6049_s2 + $0x90] sm:$0xff] }
  0x34   :  { %3748 = vmatmul.mubr.f32.gmra.mrb[8].mxu0 %v104_v39  ;;  %v66_v39 = vld [vmem:[%s6049_s2 + $0x98] sm:$0xff] }
  0x35   :  { %3750 = vmatprep.mubr.f32.mxu0 %v105_v40  ;;  %v67_v40 = vld [vmem:[%s6049_s2 + $0xa0] sm:$0xff] }
  0x38   :  { %3751 = vmatmul.mubr.f32.gmra.mrb[10].mxu0 %v106_v41  ;;  %v68_v41 = vld [vmem:[%s6049_s2 + $0xa8] sm:$0xff] }
  0x39   :  { %3753 = vmatprep.mubr.f32.mxu0 %v107_v42  ;;  %v69_v42 = vld [vmem:[%s6049_s2 + $0xb0] sm:$0xff] }
  0x3c   :  { %3754 = vmatmul.mubr.f32.gmra.mrb[12].mxu0 %v108_v43  ;;  %v70_v43 = vld [vmem:[%s6049_s2 + $0xb8] sm:$0xff] }
  0x3d   :  { %3756 = vmatprep.mubr.f32.mxu0 %v109_v44  ;;  %v71_v44 = vld [vmem:[%s6049_s2 + $0xc0] sm:$0xff] }
  0x40   :  { %3757 = vmatmul.mubr.f32.gmra.mrb[14].mxu0 %v110_v45  ;;  %v72_v45 = vld [vmem:[%s6049_s2 + $0xc8] sm:$0xff] }
  0x41   :  { %3759 = vmatprep.mubr.f32.mxu0 %v111_v46  ;;  %v73_v46 = vld [vmem:[%s6049_s2 + $0xd0] sm:$0xff] }
  0x44   :  { %3760 = vmatmul.mubr.f32.gmra.mrb[16].mxu0 %v112_v47  ;;  %v74_v47 = vld [vmem:[%s6049_s2 + $0xd8] sm:$0xff] }
  0x45   :  { %3762 = vmatprep.mubr.f32.mxu0 %v113_v48  ;;  %v75_v48 = vld [vmem:[%s6049_s2 + $0xe0] sm:$0xff] }
  0x48   :  { %3763 = vmatmul.mubr.f32.gmra.mrb[18].mxu0 %v114_v49  ;;  %v76_v49 = vld [vmem:[%s6049_s2 + $0xe8] sm:$0xff] }
  0x49   :  { %3765 = vmatprep.mubr.f32.mxu0 %v115_v50  ;;  %v77_v50 = vld [vmem:[%s6049_s2 + $0xf0] sm:$0xff] }
  0x4c   :  { %3766 = vmatmul.mubr.f32.gmra.mrb[20].mxu0 %v116_v51  ;;  %v78_v51 = vld [vmem:[%s6049_s2 + $0xf8] sm:$0xff] }
  0x4d   :  { %3768 = vmatprep.mubr.f32.mxu0 %v117_v52  ;;  %v79_v52 = vld [vmem:[%s6049_s2 + $0x100] sm:$0xff] }
  0x50   :  { %3769 = vmatmul.mubr.f32.gmra.mrb[22].mxu0 %v118_v53  ;;  %v80_v53 = vld [vmem:[%s6049_s2 + $0x108] sm:$0xff] }
  0x51   :  { %3771 = vmatprep.mubr.f32.mxu0 %v119_v54  ;;  %v81_v54 = vld [vmem:[%s6049_s2 + $0x110] sm:$0xff] }
  0x54   :  { %3772 = vmatmul.mubr.f32.gmra.mrb[24].mxu0 %v120_v55  ;;  %v82_v55 = vld [vmem:[%s6049_s2 + $0x118] sm:$0xff] }
  0x55   :  { %3774 = vmatprep.mubr.f32.mxu0 %v121_v56  ;;  %v83_v56 = vld [vmem:[%s6049_s2 + $0x120] sm:$0xff] }
  0x58   :  { %3775 = vmatmul.mubr.f32.gmra.mrb[26].mxu0 %v122_v57  ;;  %v84_v57 = vld [vmem:[%s6049_s2 + $0x128] sm:$0xff] }
  0x59   :  { %3777 = vmatprep.mubr.f32.mxu0 %v123_v58  ;;  %v85_v58 = vld [vmem:[%s6049_s2 + $0x130] sm:$0xff] }
  0x5c   :  { %3778 = vmatmul.mubr.f32.gmra.mrb[28].mxu0 %v124_v59  ;;  %v86_v59 = vld [vmem:[%s6049_s2 + $0x138] sm:$0xff] }
  0x5d   :  { %3780 = vmatprep.mubr.f32.mxu0 %v125_v60  ;;  %v87_v60 = vld [vmem:[%s6049_s2 + $0x140] sm:$0xff] }
  0x60   :  { %3781 = vmatmul.mubr.f32.gmra.mrb[30].mxu0 %v126_v61  ;;  %v88_v61 = vld [vmem:[%s6049_s2 + $0x148] sm:$0xff] }
  0xf7   :  { %v3737_v1 = vpop.f32.mrb[0].mxu0 }
  0xf8   :  { %v225_v2 = vpop.f32.mrb[1].mxu0 }
  0xf9   :  { %3791 = vmatprep.mubr.msk.f32.mxu0 %vm392_vm0, %v225_v2  ;;  %v93_v2 = vld [vmem:[%s6049_s2 + $0x170] sm:$0xff] }
  0xfa   :  { %3792 = vmatmul.mubr.msk.f32.vlgmr.msra.gmra.mrb[32].mxu0 %vm392_vm0, %v3737_v1  ;;  %v92_v1 = vld [vmem:[%s6049_s2 + $0x168] sm:$0xff] }
  0xfb   :  { %v3740_v3 = vpop.f32.mrb[2].mxu0 }
  0xfc   :  { %v235_v4 = vpop.f32.mrb[3].mxu0 }
  0xfd   :  { %3794 = vmatprep.mubr.msk.f32.mxu0 %vm392_vm0, %v235_v4  ;;  %v1250_v4 = vld [vmem:[%s6053_s5] sm:$0xff] }
  0xfe   :  { %3795 = vmatmul.mubr.msk.f32.gmra.mrb[34].mxu0 %vm392_vm0, %v3740_v3  ;;  %v94_v3 = vld [vmem:[%s6049_s2 + $0x178] sm:$0xff] }
  0xff   :  { %v3743_v5 = vpop.f32.mrb[4].mxu0 }
 0x100   :  { %v245_v6 = vpop.f32.mrb[5].mxu0 }
 0x101   :  { %3797 = vmatprep.mubr.msk.f32.mxu0 %vm392_vm0, %v245_v6 }
 0x102   :  { %3798 = vmatmul.mubr.msk.f32.gmra.mrb[36].mxu0 %vm392_vm0, %v3743_v5  ;;  %v1251_v5 = vld [vmem:[%s6053_s5 + $0x8] sm:$0xff] }
 0x103   :  { %v3746_v7 = vpop.f32.mrb[6].mxu0  ;;  %v4159_v6 = vpack.c.bf16 %v1251_v5, %v1250_v4 }
 0x104   :  { %v255_v8 = vpop.f32.mrb[7].mxu0 }
 0x105   :  { %3800 = vmatprep.mubr.msk.f32.mxu0 %vm392_vm0, %v255_v8  ;;  %4160 = vmatprep.subr.bf16.mxu0 %v4159_v6  ;;  %v1253_v8 = vld [vmem:[%s6053_s5 + $0x18] sm:$0xff] }
 0x106   :  { %3801 = vmatmul.mubr.msk.f32.gmra.mrb[38].mxu0 %vm392_vm0, %v3746_v7  ;;  %v1252_v7 = vld [vmem:[%s6053_s5 + $0x10] sm:$0xff] }
 0x107   :  { %v3749_v9 = vpop.f32.mrb[8].mxu0  ;;  %4162 = vmatpush3.bf16.msra.mxu0 %v4159_v6 }
 0x108   :  { %v265_v10 = vpop.f32.mrb[9].mxu0 }
 0x109   :  { %3803 = vmatprep.mubr.msk.f32.mxu0 %vm392_vm0, %v265_v10 }
 0x10a   :  { %3804 = vmatmul.mubr.msk.f32.gmra.mrb[40].mxu0 %vm392_vm0, %v3749_v9  ;;  %v4163_v9 = vpack.c.bf16 %v1253_v8, %v1252_v7 }
 0x10b   :  { %v3752_v13 = vpop.f32.mrb[10].mxu0 }
 0x10c   :  { %v275_v14 = vpop.f32.mrb[11].mxu0  ;;  %4164 = vmatprep.subr.bf16.mxu0 %v4163_v9 }
 0x10d   :  { %3806 = vmatprep.mubr.msk.f32.mxu1 %vm392_vm0, %v275_v14  ;;  %4166 = vmatpush3.bf16.msra.mxu0 %v4163_v9 }
 0x10e   :  { %3807 = vmatmul.mubr.msk.f32.vlgmr.msra.gmra.mrb[0].mxu1 %vm392_vm0, %v3752_v13  ;;  %v1255_v13 = vld [vmem:[%s6053_s5 + $0x28] sm:$0xff] }
 0x10f   :  { %v3755_v16 = vpop.f32.mrb[12].mxu0  ;;  %4154 = vmatpush3.bf16.msra.mxu1 %v4151_v0  ;;  %v91_v0 = vld [vmem:[%s6049_s2 + $0x160] sm:$0xff]  ;;  %v4167_v14 = vpack.c.bf16 %v1255_v13, %v1254_v12 }
 0x110   :  { %v285_v17 = vpop.f32.mrb[13].mxu0  ;;  %4156 = vmatprep.subr.bf16.mxu1 %v4155_v15 }
 0x111   :  { %3809 = vmatprep.mubr.msk.f32.mxu1 %vm392_vm0, %v285_v17  ;;  %4168 = vmatprep.subr.bf16.mxu0 %v4167_v14 }
 0x112   :  { %3810 = vmatmul.mubr.msk.f32.gmra.mrb[2].mxu1 %vm392_vm0, %v3755_v16  ;;  %4170 = vmatpush3.bf16.msra.mxu0 %v4167_v14 }
 0x113   :  { %v3758_v18 = vpop.f32.mrb[14].mxu0  ;;  %4158 = vmatpush3.bf16.msra.mxu1 %v4155_v15 }
 0x114   :  { %v295_v19 = vpop.f32.mrb[15].mxu0 }
 0x115   :  { %3812 = vmatprep.mubr.msk.f32.mxu1 %vm392_vm0, %v295_v19  ;;  %v1257_v19 = vld [vmem:[%s6053_s5 + $0x38] sm:$0xff] }
 0x116   :  { %3813 = vmatmul.mubr.msk.f32.gmra.mrb[4].mxu1 %vm392_vm0, %v3758_v18  ;;  %v1256_v18 = vld [vmem:[%s6053_s5 + $0x30] sm:$0xff] }
 0x117   :  { %v3761_v20 = vpop.f32.mrb[16].mxu0 }
 0x118   :  { %v305_v21 = vpop.f32.mrb[17].mxu0 }
 0x119   :  { %3815 = vmatprep.mubr.msk.f32.mxu1 %vm392_vm0, %v305_v21  ;;  %v4171_v21 = vpack.c.bf16 %v1257_v19, %v1256_v18 }
 0x11a   :  { %3816 = vmatmul.mubr.msk.f32.gmra.mrb[6].mxu1 %vm392_vm0, %v3761_v20 }
 0x11b   :  { %v3764_v22 = vpop.f32.mrb[18].mxu0  ;;  %4172 = vmatprep.subr.bf16.mxu0 %v4171_v21 }
 0x11c   :  { %v315_v23 = vpop.f32.mrb[19].mxu0  ;;  %4174 = vmatpush3.bf16.msra.mxu0 %v4171_v21 }
 0x11d   :  { %3818 = vmatprep.mubr.msk.f32.mxu1 %vm392_vm0, %v315_v23 }
 0x11e   :  { %3819 = vmatmul.mubr.msk.f32.gmra.mrb[8].mxu1 %vm392_vm0, %v3764_v22 }
 0x11f   :  { %v3767_v24 = vpop.f32.mrb[20].mxu0 }
 0x120   :  { %v325_v25 = vpop.f32.mrb[21].mxu0 }
 0x121   :  { %3821 = vmatprep.mubr.msk.f32.mxu1 %vm392_vm0, %v325_v25 }
 0x122   :  { %3822 = vmatmul.mubr.msk.f32.gmra.mrb[10].mxu1 %vm392_vm0, %v3767_v24 }
 0x123   :  { %v3770_v26 = vpop.f32.mrb[22].mxu0 }
 0x124   :  { %v335_v27 = vpop.f32.mrb[23].mxu0 }
 0x125   :  { %3824 = vmatprep.mubr.msk.f32.mxu1 %vm392_vm0, %v335_v27 }
 0x126   :  { %3825 = vmatmul.mubr.msk.f32.gmra.mrb[12].mxu1 %vm392_vm0, %v3770_v26 }
 0x127   :  { %v3773_v28 = vpop.f32.mrb[24].mxu0 }
 0x128   :  { %v345_v29 = vpop.f32.mrb[25].mxu0 }
 0x129   :  { %3827 = vmatprep.mubr.msk.f32.mxu1 %vm392_vm0, %v345_v29 }
 0x12a   :  { %3828 = vmatmul.mubr.msk.f32.gmra.mrb[14].mxu1 %vm392_vm0, %v3773_v28 }
 0x12b   :  { %v3776_v30 = vpop.f32.mrb[26].mxu0 }
 0x12c   :  { %v355_v31 = vpop.f32.mrb[27].mxu0 }
 0x12d   :  { %3830 = vmatprep.mubr.msk.f32.mxu1 %vm392_vm0, %v355_v31 }
 0x12e   :  { %3831 = vmatmul.mubr.msk.f32.gmra.mrb[16].mxu1 %vm392_vm0, %v3776_v30 }
 0x12f   :  { %v3779_v32 = vpop.f32.mrb[28].mxu0 }
 0x130   :  { %v365_v33 = vpop.f32.mrb[29].mxu0 }
 0x131   :  { %3833 = vmatprep.mubr.msk.f32.mxu1 %vm392_vm0, %v365_v33 }
 0x132   :  { %3834 = vmatmul.mubr.msk.f32.gmra.mrb[18].mxu1 %vm392_vm0, %v3779_v32 }
 0x133   :  { %v3782_v34 = vpop.f32.mrb[30].mxu0 }
 0x134   :  { %v375_v35 = vpop.f32.mrb[31].mxu0 }
 0x135   :  { %3836 = vmatprep.mubr.msk.f32.mxu1 %vm392_vm0, %v375_v35 }
 0x136   :  { %3837 = vmatmul.mubr.msk.f32.gmra.mrb[20].mxu1 %vm392_vm0, %v3782_v34 }
 0x137   :  { %3847 = vmatprep.mubr.msk.f32.mxu1 %vm392_vm0, %v63_v36 }
 0x13a   :  { %3848 = vmatmul.mubr.msk.f32.vlgmr.msra.gmra.mrb[22].mxu1 %vm392_vm0, %v64_v37 }
 0x13b   :  { %3850 = vmatprep.mubr.msk.f32.mxu1 %vm392_vm0, %v65_v38 }
 0x13e   :  { %3851 = vmatmul.mubr.msk.f32.gmra.mrb[24].mxu1 %vm392_vm0, %v66_v39 }
 0x13f   :  { %3853 = vmatprep.mubr.msk.f32.mxu1 %vm392_vm0, %v67_v40 }
 0x142   :  { %3854 = vmatmul.mubr.msk.f32.gmra.mrb[26].mxu1 %vm392_vm0, %v68_v41 }
 0x143   :  { %3856 = vmatprep.mubr.msk.f32.mxu1 %vm392_vm0, %v69_v42 }
 0x146   :  { %3857 = vmatmul.mubr.msk.f32.gmra.mrb[28].mxu1 %vm392_vm0, %v70_v43 }
 0x147   :  { %3859 = vmatprep.mubr.msk.f32.mxu1 %vm392_vm0, %v71_v44 }
 0x14a   :  { %3860 = vmatmul.mubr.msk.f32.gmra.mrb[30].mxu1 %vm392_vm0, %v72_v45 }
 0x14b   :  { %3862 = vmatprep.mubr.msk.f32.mxu1 %vm392_vm0, %v73_v46 }
 0x14e   :  { %3863 = vmatmul.mubr.msk.f32.gmra.mrb[0].mxu1 %vm392_vm0, %v74_v47 }
 0x14f   :  { %3865 = vmatprep.mubr.msk.f32.mxu1 %vm392_vm0, %v75_v48 }
 0x152   :  { %3866 = vmatmul.mubr.msk.f32.gmra.mrb[2].mxu1 %vm392_vm0, %v76_v49 }
 0x153   :  { %3868 = vmatprep.mubr.msk.f32.mxu1 %vm392_vm0, %v77_v50 }
 0x156   :  { %3869 = vmatmul.mubr.msk.f32.gmra.mrb[4].mxu1 %vm392_vm0, %v78_v51 }
 0x157   :  { %3871 = vmatprep.mubr.msk.f32.mxu1 %vm392_vm0, %v79_v52 }
 0x15a   :  { %3872 = vmatmul.mubr.msk.f32.gmra.mrb[6].mxu1 %vm392_vm0, %v80_v53 }
 0x15b   :  { %3874 = vmatprep.mubr.msk.f32.mxu1 %vm392_vm0, %v81_v54 }
 0x15e   :  { %3875 = vmatmul.mubr.msk.f32.gmra.mrb[8].mxu1 %vm392_vm0, %v82_v55 }
 0x15f   :  { %3877 = vmatprep.mubr.msk.f32.mxu1 %vm392_vm0, %v83_v56 }
 0x162   :  { %3878 = vmatmul.mubr.msk.f32.gmra.mrb[10].mxu1 %vm392_vm0, %v84_v57 }
 0x163   :  { %3880 = vmatprep.mubr.msk.f32.mxu1 %vm392_vm0, %v85_v58 }
 0x166   :  { %3881 = vmatmul.mubr.msk.f32.gmra.mrb[12].mxu1 %vm392_vm0, %v86_v59 }
 0x167   :  { %3883 = vmatprep.mubr.msk.f32.mxu1 %vm392_vm0, %v87_v60 }
 0x16a   :  { %3884 = vmatmul.mubr.msk.f32.gmra.mrb[14].mxu1 %vm392_vm0, %v88_v61 }
 0x16b   :  { %3886 = vmatprep.mubr.msk.f32.mxu1 %vm392_vm0, %v89_v62 }
 0x16e   :  { %3887 = vmatmul.mubr.msk.f32.gmra.mrb[16].mxu1 %vm392_vm0, %v90_v63 }
 0x16f   :  { %3889 = vmatprep.mubr.msk.f32.mxu1 %vm392_vm0, %v91_v0 }
 0x172   :  { %3890 = vmatmul.mubr.msk.f32.gmra.mrb[18].mxu1 %vm392_vm0, %v92_v1 }
 0x173   :  { %3892 = vmatprep.mubr.msk.f32.mxu1 %vm392_vm0, %v93_v2 }
 0x176   :  { %3893 = vmatmul.mubr.msk.f32.gmra.mrb[20].mxu1 %vm392_vm0, %v94_v3 }
 0x1cd   :  { %v3793_v10 = vpop.f32.mrb[32].mxu0 }
 0x1ce   :  { %v555_v11 = vpop.f32.mrb[33].mxu0 }
 0x1d1   :  { %v3796_v15 = vpop.f32.mrb[34].mxu0 }
 0x1d2   :  { %v565_v16 = vpop.f32.mrb[35].mxu0 }
 0x1d5   :  { %v3799_v17 = vpop.f32.mrb[36].mxu0 }
 0x1d6   :  { %v575_v20 = vpop.f32.mrb[37].mxu0 }
 0x1d9   :  { %v3802_v22 = vpop.f32.mrb[38].mxu0 }
 0x1da   :  { %v585_v23 = vpop.f32.mrb[39].mxu0 }
 0x1dd   :  { %v3805_v24 = vpop.f32.mrb[40].mxu0 }
 0x1de   :  { %v595_v25 = vpop.f32.mrb[41].mxu0 }
 0x20d   :  { %v3849_v26 = vpop.f32.mrb[22].mxu1 }
 0x20e   :  { %v4870_v27 = vadd.f32 %v3849_v26, %v3793_v10  ;;  %v876_v28 = vpop.f32.mrb[23].mxu1 }
 0x20f   :  { %v4872_v29 = vadd.f32 %v876_v28, %v555_v11 }
 0x210   :  { %v1037_v53 = vmul.f32 %v4870_v27, %v4870_v27 }
 0x211   :  { %v3852_v30 = vpop.f32.mrb[24].mxu1  ;;  %v1036_v56 = vmul.f32 %v4872_v29, %v4872_v29 }
 0x212   :  { %v4874_v31 = vadd.f32 %v3852_v30, %v3796_v15  ;;  %v886_v32 = vpop.f32.mrb[25].mxu1 }
 0x213   :  { %v4876_v33 = vadd.f32 %v886_v32, %v565_v16 }
 0x214   :  { %v1039_v61 = vmul.f32 %v4874_v31, %v4874_v31 }
 0x215   :  { %v3855_v34 = vpop.f32.mrb[26].mxu1  ;;  %v1038_v1 = vmul.f32 %v4876_v33, %v4876_v33 }
 0x216   :  { %v4878_v35 = vadd.f32 %v3855_v34, %v3799_v17  ;;  %v896_v36 = vpop.f32.mrb[27].mxu1 }
 0x217   :  { %v4880_v37 = vadd.f32 %v896_v36, %v575_v20  ;;  %v4967_v36 = vld [vmem:[%s6054_s6] ss:$0 sm:$0xff] }
 0x218   :  { %v1041_v7 = vmul.f32 %v4878_v35, %v4878_v35 }
 0x219   :  { %v3858_v38 = vpop.f32.mrb[28].mxu1  ;;  %v1040_v11 = vmul.f32 %v4880_v37, %v4880_v37 }
 0x21a   :  { %v4882_v39 = vadd.f32 %v3858_v38, %v3802_v22  ;;  %v906_v40 = vpop.f32.mrb[29].mxu1 }
 0x21b   :  { %v4884_v41 = vadd.f32 %v906_v40, %v585_v23 }
 0x21c   :  { %v1043_v17 = vmul.f32 %v4882_v39, %v4882_v39 }
 0x21d   :  { %v3861_v42 = vpop.f32.mrb[30].mxu1  ;;  %v1042_v21 = vmul.f32 %v4884_v41, %v4884_v41 }
 0x21e   :  { %v4886_v43 = vadd.f32 %v3861_v42, %v3805_v24  ;;  %v916_v44 = vpop.f32.mrb[31].mxu1 }
 0x21f   :  { %v4888_v45 = vadd.f32 %v916_v44, %v595_v25 }
 0x220   :  { %v1045_v25 = vmul.f32 %v4886_v43, %v4886_v43 }
 0x221   :  { %v4890_v46 = vpop.f32.mrb[0].mxu1  ;;  %v1044_v32 = vmul.f32 %v4888_v45, %v4888_v45 }
 0x222   :  { %v4892_v47 = vpop.f32.mrb[1].mxu1  ;;  %v1047_v34 = vmul.f32 %v4890_v46, %v4890_v46 }
 0x225   :  { %v4894_v48 = vpop.f32.mrb[2].mxu1 }
 0x226   :  { %v4896_v49 = vpop.f32.mrb[3].mxu1 }
 0x229   :  { %v4898_v50 = vpop.f32.mrb[4].mxu1 }
 0x22a   :  { %v4900_v51 = vpop.f32.mrb[5].mxu1 }
 0x22d   :  { %v4902_v52 = vpop.f32.mrb[6].mxu1 }
 0x22e   :  { %v1053_v54 = vmul.f32 %v4902_v52, %v4902_v52  ;;  %v4908_v55 = vpop.f32.mrb[7].mxu1 }
 0x22f   :  { %v1052_v57 = vmul.f32 %v4908_v55, %v4908_v55 }
 0x230   :  { %v1069_v58 = vadd.f32 %v1053_v54, %v1037_v53  ;;  %v4977_v53 = vmul.f32 %v4892_v47, %v4892_v47 }
 0x231   :  { %v1068_v59 = vadd.f32 %v1052_v57, %v1036_v56  ;;  %v4914_v60 = vpop.f32.mrb[8].mxu1 }
 0x232   :  { %v1085_v62 = vadd.f32 1e-12, %v1069_v58  ;;  %v1055_v63 = vmul.f32 %v4914_v60, %v4914_v60  ;;  %v4920_v0 = vpop.f32.mrb[9].mxu1  ;;  %v4985_v58 = vmul.f32 %v4894_v48, %v4894_v48 }
 0x233   :  { %v1084_v2 = vadd.f32 1e-12, %v1068_v59  ;;  %v1054_v3 = vmul.f32 %v4920_v0, %v4920_v0 }
 0x234   :  { %4363 = vrsqrt.f32 %v1085_v62  ;;  %v1071_v4 = vadd.f32 %v1055_v63, %v1039_v61  ;;  %v4990_v63 = vmul.f32 %v4896_v49, %v4896_v49 }
 0x235   :  { %4365 = vrsqrt.f32 %v1084_v2  ;;  %v1070_v5 = vadd.f32 %v1054_v3, %v1038_v1  ;;  %v4926_v6 = vpop.f32.mrb[10].mxu1 }
 0x236   :  { %v1087_v8 = vadd.f32 1e-12, %v1071_v4  ;;  %v1057_v9 = vmul.f32 %v4926_v6, %v4926_v6  ;;  %v4932_v10 = vpop.f32.mrb[11].mxu1 }
 0x237   :  { %v1086_v12 = vadd.f32 1e-12, %v1070_v5  ;;  %v1056_v13 = vmul.f32 %v4932_v10, %v4932_v10  ;;  %v4998_v5 = vmul.f32 %v4898_v50, %v4898_v50 }
 0x238   :  { %4367 = vrsqrt.f32 %v1087_v8  ;;  %v1073_v14 = vadd.f32 %v1057_v9, %v1041_v7 }
 0x239   :  { %4369 = vrsqrt.f32 %v1086_v12  ;;  %v1072_v15 = vadd.f32 %v1056_v13, %v1040_v11  ;;  %v4938_v16 = vpop.f32.mrb[12].mxu1 }
 0x23a   :  { %v4942_v18 = vadd.f32 1e-12, %v1073_v14  ;;  %v1059_v19 = vmul.f32 %v4938_v16, %v4938_v16  ;;  %v4946_v20 = vpop.f32.mrb[13].mxu1 }
 0x23b   :  { %v4950_v22 = vadd.f32 1e-12, %v1072_v15  ;;  %v1058_v23 = vmul.f32 %v4946_v20, %v4946_v20 }
 0x23c   :  { %4371 = vrsqrt.f32 %v4942_v18  ;;  %v1075_v24 = vadd.f32 %v1059_v19, %v1043_v17 }
 0x23d   :  { %4373 = vrsqrt.f32 %v4950_v22  ;;  %v1074_v26 = vadd.f32 %v1058_v23, %v1042_v21  ;;  %v4958_v28 = vpop.f32.mrb[14].mxu1 }
 0x23e   :  { %v4364_v30 = vpop.eup %4363  ;;  %v4969_v38 = vadd.f32 1e-12, %v1075_v24  ;;  %v1061_v40 = vmul.f32 %v4958_v28, %v4958_v28  ;;  %v4973_v42 = vpop.f32.mrb[15].mxu1 }
 0x23f   :  { %v4366_v44 = vpop.eup %4365  ;;  %v1117_v54 = vmul.f32 %v4364_v30, %v1085_v62  ;;  %v4979_v56 = vadd.f32 1e-12, %v1074_v26  ;;  %v1060_v57 = vmul.f32 %v4973_v42, %v4973_v42 }
 0x240   :  { %v1116_v59 = vmul.f32 %v4366_v44, %v1084_v2  ;;  %4375 = vrsqrt.f32 %v4969_v38  ;;  %v1077_v61 = vadd.f32 %v1061_v40, %v1045_v25 }
 0x241   :  { %v1139_v62 = vadd.f32 %v4967_v36, %v1117_v54  ;;  %4377 = vrsqrt.f32 %v4979_v56  ;;  %v1076_v1 = vadd.f32 %v1060_v57, %v1044_v32  ;;  %v4994_v3 = vpop.f32.mrb[16].mxu1 }
 0x242   :  { %v4368_v4 = vpop.eup %4367  ;;  %v1138_v2 = vadd.f32 %v4967_v36, %v1116_v59  ;;  %v5001_v7 = vadd.f32 1e-12, %v1077_v61  ;;  %v1063_v9 = vmul.f32 %v4994_v3, %v4994_v3  ;;  %v5005_v11 = vpop.f32.mrb[17].mxu1 }
 0x243   :  { %v4370_v13 = vpop.eup %4369  ;;  %vm1155_vm2 = vcmp.gt.f32.partialorder %v1139_v62, 0.0  ;;  %v1171_v14 = vmul.f32 0.2, %v1139_v62  ;;  %v1119_v15 = vmul.f32 %v4368_v4, %v1087_v8  ;;  %v5007_v17 = vadd.f32 1e-12, %v1076_v1 }
 0x244   :  { %vm1154_vm3 = vcmp.gt.f32.partialorder %v1138_v2, 0.0  ;;  %v1170_v19 = vmul.f32 0.2, %v1138_v2  ;;  %v1118_v21 = vmul.f32 %v4370_v13, %v1086_v12  ;;  %4379 = vrsqrt.f32 %v5001_v7 }
 0x245   :  { %v1187_v23 = vsel %vm1155_vm2, %v1139_v62, %v1171_v14  ;;  %v1141_v24 = vadd.f32 %v4967_v36, %v1119_v15  ;;  %4381 = vrsqrt.f32 %v5007_v17  ;;  %v1079_v25 = vadd.f32 %v1063_v9, %v1047_v34  ;;  %v5012_v26 = vpop.f32.mrb[18].mxu1 }
 0x246   :  { %v4372_v32 = vpop.eup %4371  ;;  %v1203_v40 = vmul.f32 %v4364_v30, %v1187_v23  ;;  %v1186_v54 = vsel %vm1154_vm3, %v1138_v2, %v1170_v19  ;;  %v1140_v8 = vadd.f32 %v4967_v36, %v1118_v21  ;;  %v1062_v57 = vmul.f32 %v5005_v11, %v5005_v11  ;;  %v5017_v59 = vpop.f32.mrb[19].mxu1 }
 0x247   :  { %v4374_v12 = vpop.eup %4373  ;;  %v1202_v61 = vmul.f32 %v4366_v44, %v1186_v54  ;;  %vm1157_vm4 = vcmp.gt.f32.partialorder %v1141_v24, 0.0  ;;  %v1173_v62 = vmul.f32 0.2, %v1141_v24  ;;  %v1121_v1 = vmul.f32 %v4372_v32, %v4942_v18 }
 0x248   :  { %v1219_v34 = vmul.f32 %v1203_v40, %v4870_v27  ;;  %v5022_v9 = vmul.f32 %v4902_v52, %v1203_v40  ;;  %vm1156_vm5 = vcmp.gt.f32.partialorder %v1140_v8, 0.0  ;;  %v1172_v30 = vmul.f32 0.2, %v1140_v8 }
 0x249   :  { %v1218_v2 = vmul.f32 %v1202_v61, %v4872_v29  ;;  %v5026_v14 = vmul.f32 %v1202_v61, %v4908_v55  ;;  %v1189_v15 = vsel %vm1157_vm4, %v1141_v24, %v1173_v62  ;;  %v1143_v19 = vadd.f32 %v4967_v36, %v1121_v1  ;;  %v5029_v44 = vpop.f32.mrb[20].mxu1 }
 0x24a   :  { %6064 = vst [vmem:[#allocation2_spill] sm:$0xff] %v5022_v9  ;;  %v4376_v21 = vpop.eup %4375  ;;  %v1205_v23 = vmul.f32 %v4368_v4, %v1189_v15  ;;  %v1188_v18 = vsel %vm1156_vm5, %v1140_v8, %v1172_v30  ;;  %v1120_v27 = vmul.f32 %v4374_v12, %v4950_v22  ;;  %v5032_v54 = vadd.f32 1e-12, %v1079_v25  ;;  %v5034_v52 = vpop.f32.mrb[21].mxu1 }
 0x24b   :  { %v4378_v40 = vpop.eup %4377  ;;  %v1204_v9 = vmul.f32 %v4370_v13, %v1188_v18  ;;  %vm1159_vm6 = vcmp.gt.f32.partialorder %v1143_v19, 0.0  ;;  %v1175_v29 = vmul.f32 0.2, %v1143_v19  ;;  %v1123_v55 = vmul.f32 %v4376_v21, %v4969_v38  ;;  %3911 = vmatprep.mubr.msk.f32.mxu0 %vm1258_vm1, %v1218_v2 }
 0x24c   :  { %v1221_v24 = vmul.f32 %v1205_v23, %v4874_v31  ;;  %v5040_v61 = vmul.f32 %v4914_v60, %v1205_v23  ;;  %v1142_v4 = vadd.f32 %v4967_v36, %v1120_v27  ;;  %v1122_v22 = vmul.f32 %v4378_v40, %v4979_v56  ;;  %3912 = vmatmul.mubr.msk.f32.vlgmr.msra.gmra.mrb[42].mxu0 %vm1258_vm1, %v1219_v34 }
 0x24d   :  { %v1220_v25 = vmul.f32 %v1204_v9, %v4876_v33  ;;  %v5047_v13 = vmul.f32 %v1204_v9, %v4920_v0  ;;  %v1191_v8 = vsel %vm1159_vm6, %v1143_v19, %v1175_v29  ;;  %v1145_v38 = vadd.f32 %v4967_v36, %v1123_v55 }
 0x24e   :  { %v4380_v62 = vpop.eup %4379  ;;  %v1207_v1 = vmul.f32 %v4372_v32, %v1191_v8  ;;  %vm1158_vm7 = vcmp.gt.f32.partialorder %v1142_v4, 0.0  ;;  %v1174_v31 = vmul.f32 0.2, %v1142_v4  ;;  %v1144_v60 = vadd.f32 %v4967_v36, %v1122_v22 }
 0x24f   :  { %v4382_v30 = vpop.eup %4381  ;;  %vm1161_vm8 = vcmp.gt.f32.partialorder %v1145_v38, 0.0  ;;  %v1177_v2 = vmul.f32 0.2, %v1145_v38  ;;  %v1125_v56 = vmul.f32 %v4380_v62, %v5001_v7  ;;  %4383 = vrsqrt.f32 %v5032_v54  ;;  %3914 = vmatprep.mubr.msk.f32.mxu0 %vm1258_vm1, %v1220_v25 }
 0x250   :  { %v1223_v33 = vmul.f32 %v1207_v1, %v4878_v35  ;;  %v5056_v0 = vmul.f32 %v4926_v6, %v1207_v1  ;;  %v1190_v34 = vsel %vm1158_vm7, %v1142_v4, %v1174_v31  ;;  %vm1160_vm9 = vcmp.gt.f32.partialorder %v1144_v60, 0.0  ;;  %3915 = vmatmul.mubr.msk.f32.gmra.mrb[44].mxu0 %vm1258_vm1, %v1221_v24 }
 0x251   :  { %v1206_v32 = vmul.f32 %v4374_v12, %v1190_v34  ;;  %v1193_v9 = vsel %vm1161_vm8, %v1145_v38, %v1177_v2  ;;  %v1176_v15 = vmul.f32 0.2, %v1144_v60  ;;  %v1147_v19 = vadd.f32 %v4967_v36, %v1125_v56 }
 0x252   :  { %v1209_v23 = vmul.f32 %v4376_v21, %v1193_v9  ;;  %v1124_v7 = vmul.f32 %v4382_v30, %v5007_v17  ;;  %v1078_v18 = vadd.f32 %v1062_v57, %v4977_v53  ;;  %v1065_v35 = vmul.f32 %v5012_v26, %v5012_v26 }
 0x253   :  { %v1222_v6 = vmul.f32 %v1206_v32, %v4880_v37  ;;  %v5066_v27 = vmul.f32 %v1206_v32, %v4932_v10  ;;  %v1192_v29 = vsel %vm1160_vm9, %v1144_v60, %v1176_v15  ;;  %vm1163_vm10 = vcmp.gt.f32.partialorder %v1147_v19, 0.0 }
 0x254   :  { %v1225_v12 = vmul.f32 %v1209_v23, %v4882_v39  ;;  %v5070_v55 = vmul.f32 %v4938_v16, %v1209_v23  ;;  %v1208_v21 = vmul.f32 %v4378_v40, %v1192_v29  ;;  %v1179_v24 = vmul.f32 0.2, %v1147_v19 }
 0x255   :  { %v1146_v17 = vadd.f32 %v4967_v36, %v1124_v7  ;;  %v1094_v53 = vadd.f32 1e-12, %v1078_v18  ;;  %v1081_v57 = vadd.f32 %v1065_v35, %v4985_v58  ;;  %v1064_v37 = vmul.f32 %v5017_v59, %v5017_v59  ;;  %3917 = vmatprep.mubr.msk.f32.mxu0 %vm1258_vm1, %v1222_v6 }
 0x256   :  { %v1224_v10 = vmul.f32 %v1208_v21, %v4884_v41  ;;  %v5079_v4 = vmul.f32 %v1208_v21, %v4946_v20  ;;  %v1195_v39 = vsel %vm1163_vm10, %v1147_v19, %v1179_v24  ;;  %v1067_v16 = vmul.f32 %v5029_v44, %v5029_v44  ;;  %3918 = vmatmul.mubr.msk.f32.gmra.mrb[46].mxu0 %vm1258_vm1, %v1223_v33 }
 0x257   :  { %v1211_v40 = vmul.f32 %v4380_v62, %v1195_v39  ;;  %vm1162_vm11 = vcmp.gt.f32.partialorder %v1146_v17, 0.0  ;;  %v1178_v22 = vmul.f32 0.2, %v1146_v17  ;;  %4385 = vrsqrt.f32 %v1094_v53 }
 0x258   :  { %v1097_v58 = vadd.f32 1e-12, %v1081_v57  ;;  %v1080_v25 = vadd.f32 %v1064_v37, %v4990_v63  ;;  %v1083_v8 = vadd.f32 %v1067_v16, %v4998_v5  ;;  %v1066_v41 = vmul.f32 %v5034_v52, %v5034_v52  ;;  %3920 = vmatprep.mubr.msk.f32.mxu0 %vm1258_vm1, %v1224_v10 }
 0x259   :  { %v4384_v20 = vpop.eup %4383  ;;  %v1050_v38 = vmul.f32 %v4900_v51, %v4900_v51  ;;  %v1227_v1 = vmul.f32 %v1211_v40, %v4886_v43  ;;  %v5093_v62 = vmul.f32 %v4958_v28, %v1211_v40  ;;  %v1194_v31 = vsel %vm1162_vm11, %v1146_v17, %v1178_v22 }
 0x25a   :  { %v1210_v60 = vmul.f32 %v4382_v30, %v1194_v31  ;;  %v1127_v63 = vmul.f32 %v4384_v20, %v5032_v54  ;;  %4387 = vrsqrt.f32 %v1097_v58  ;;  %v1096_v5 = vadd.f32 1e-12, %v1080_v25  ;;  %3921 = vmatmul.mubr.msk.f32.gmra.mrb[48].mxu0 %vm1258_vm1, %v1225_v12 }
 0x25b   :  { %v1099_v2 = vadd.f32 1e-12, %v1083_v8  ;;  %v1082_v56 = vadd.f32 %v1066_v41, %v1050_v38 }
 0x25c   :  { %v1226_v33 = vmul.f32 %v1210_v60, %v4888_v45  ;;  %v5099_v34 = vmul.f32 %v1210_v60, %v4973_v42  ;;  %v1149_v43 = vadd.f32 %v4967_v36, %v1127_v63  ;;  %4389 = vrsqrt.f32 %v1096_v5 }
 0x25d   :  { %4391 = vrsqrt.f32 %v1099_v2  ;;  %v1098_v28 = vadd.f32 1e-12, %v1082_v56 }
 0x25e   :  { %vm1165_vm12 = vcmp.gt.f32.partialorder %v1149_v43, 0.0  ;;  %v1181_v30 = vmul.f32 0.2, %v1149_v43  ;;  %3923 = vmatprep.mubr.msk.f32.mxu0 %vm1258_vm1, %v1226_v33 }
 0x25f   :  { %4393 = vrsqrt.f32 %v1098_v28  ;;  %3924 = vmatmul.mubr.msk.f32.gmra.mrb[50].mxu0 %vm1258_vm1, %v1227_v1 }
 0x260   :  { %v1197_v54 = vsel %vm1165_vm12, %v1149_v43, %v1181_v30 }
 0x261   :  { %v4386_v32 = vpop.eup %4385  ;;  %v1213_v9 = vmul.f32 %v4384_v20, %v1197_v54 }
 0x262   :  { %v1126_v15 = vmul.f32 %v4386_v32, %v1094_v53 }
 0x263   :  { %v1229_v45 = vmul.f32 %v4890_v46, %v1213_v9  ;;  %v1245_v42 = vmul.f32 %v4994_v3, %v1213_v9 }
 0x264   :  { %v4388_v19 = vpop.eup %4387  ;;  %v1148_v23 = vadd.f32 %v4967_v36, %v1126_v15 }
 0x265   :  { %v1129_v7 = vmul.f32 %v4388_v19, %v1097_v58 }
 0x266   :  { %v4390_v18 = vpop.eup %4389  ;;  %vm1164_vm13 = vcmp.gt.f32.partialorder %v1148_v23, 0.0  ;;  %v1180_v35 = vmul.f32 0.2, %v1148_v23 }
 0x267   :  { %v4392_v6 = vpop.eup %4391  ;;  %v1151_v29 = vadd.f32 %v4967_v36, %v1129_v7  ;;  %v1128_v12 = vmul.f32 %v4390_v18, %v1096_v5 }
 0x268   :  { %v1196_v21 = vsel %vm1164_vm13, %v1148_v23, %v1180_v35  ;;  %v1131_v24 = vmul.f32 %v4392_v6, %v1099_v2 }
 0x269   :  { %v4394_v17 = vpop.eup %4393  ;;  %v1212_v57 = vmul.f32 %v4386_v32, %v1196_v21  ;;  %vm1167_vm14 = vcmp.gt.f32.partialorder %v1151_v29, 0.0  ;;  %v1183_v53 = vmul.f32 0.2, %v1151_v29  ;;  %v1150_v46 = vadd.f32 %v4967_v36, %v1128_v12 }
 0x26a   :  { %v1153_v3 = vadd.f32 %v4967_v36, %v1131_v24  ;;  %v1130_v37 = vmul.f32 %v4394_v17, %v1098_v28 }
 0x26b   :  { %v1228_v10 = vmul.f32 %v1212_v57, %v4892_v47  ;;  %v1244_v39 = vmul.f32 %v1212_v57, %v5005_v11  ;;  %v1199_v16 = vsel %vm1167_vm14, %v1151_v29, %v1183_v53  ;;  %vm1166_vm15 = vcmp.gt.f32.partialorder %v1150_v46, 0.0 }
 0x26c   :  { %v1215_v40 = vmul.f32 %v4388_v19, %v1199_v16  ;;  %v1182_v22 = vmul.f32 0.2, %v1150_v46  ;;  %vm1169_vm2 = vcmp.gt.f32.partialorder %v1153_v3, 0.0  ;;  %v1185_v58 = vmul.f32 0.2, %v1153_v3 }
 0x26d   :  { %v1152_v25 = vadd.f32 %v4967_v36, %v1130_v37  ;;  %3926 = vmatprep.mubr.msk.f32.mxu0 %vm1258_vm1, %v1228_v10 }
 0x26e   :  { %v1231_v8 = vmul.f32 %v4894_v48, %v1215_v40  ;;  %v1247_v41 = vmul.f32 %v5012_v26, %v1215_v40  ;;  %v1198_v20 = vsel %vm1166_vm15, %v1150_v46, %v1182_v22  ;;  %v1201_v38 = vsel %vm1169_vm2, %v1153_v3, %v1185_v58  ;;  %3927 = vmatmul.mubr.msk.f32.gmra.mrb[52].mxu0 %vm1258_vm1, %v1229_v45 }
 0x26f   :  { %v1214_v47 = vmul.f32 %v4390_v18, %v1198_v20  ;;  %v1217_v11 = vmul.f32 %v4392_v6, %v1201_v38  ;;  %vm1168_vm3 = vcmp.gt.f32.partialorder %v1152_v25, 0.0  ;;  %v1184_v1 = vmul.f32 0.2, %v1152_v25 }
 0x271   :  { %v1230_v31 = vmul.f32 %v1214_v47, %v4896_v49  ;;  %v1246_v60 = vmul.f32 %v1214_v47, %v5017_v59  ;;  %v1233_v36 = vmul.f32 %v4898_v50, %v1217_v11  ;;  %v1249_v63 = vmul.f32 %v5029_v44, %v1217_v11  ;;  %v6065_v49 = vld [vmem:[#allocation2_spill] sm:$0xff] }
 0x272   :  { %v1200_v5 = vsel %vm1168_vm3, %v1152_v25, %v1184_v1 }
 0x273   :  { %v1216_v48 = vmul.f32 %v4394_v17, %v1200_v5  ;;  %3929 = vmatprep.mubr.msk.f32.mxu0 %vm1258_vm1, %v1230_v31 }
 0x274   :  { %3930 = vmatmul.mubr.msk.f32.gmra.mrb[54].mxu0 %vm1258_vm1, %v1231_v8 }
 0x275   :  { %v1232_v26 = vmul.f32 %v1216_v48, %v4900_v51  ;;  %v1248_v2 = vmul.f32 %v1216_v48, %v5034_v52  ;;  %v128_v51 = vld [vmem:[%s6055_s1 + $0x8] sm:$0xff] }
 0x276   :  { %1859 = vmatprep.mubr.f32.mxu1 %v128_v51 }
 0x277   :  { %3932 = vmatprep.mubr.msk.f32.mxu0 %vm1258_vm1, %v1232_v26  ;;  %v5257_v26 = vld [vmem:[%s6056_s7] ss:$0 sm:$0xff] }
 0x278   :  { %3933 = vmatmul.mubr.msk.f32.gmra.mrb[56].mxu0 %vm1258_vm1, %v1233_v36 }
 0x279   :  { %3935 = vmatprep.mubr.msk.f32.mxu0 %vm1258_vm1, %v5026_v14 }
 0x27c   :  { %3936 = vmatmul.mubr.msk.f32.gmra.mrb[58].mxu0 %vm1258_vm1, %v6065_v49 }
 0x27d   :  { %3938 = vmatprep.mubr.msk.f32.mxu0 %vm1258_vm1, %v5047_v13 }
 0x280   :  { %3939 = vmatmul.mubr.msk.f32.gmra.mrb[60].mxu0 %vm1258_vm1, %v5040_v61 }
 0x281   :  { %3941 = vmatprep.mubr.msk.f32.mxu0 %vm1258_vm1, %v5066_v27 }
 0x284   :  { %3942 = vmatmul.mubr.msk.f32.gmra.mrb[62].mxu0 %vm1258_vm1, %v5056_v0 }
 0x285   :  { %3944 = vmatprep.mubr.msk.f32.mxu0 %vm1258_vm1, %v5079_v4 }
 0x288   :  { %3945 = vmatmul.mubr.msk.f32.gmra.mrb[64].mxu0 %vm1258_vm1, %v5070_v55 }
 0x289   :  { %3947 = vmatprep.mubr.msk.f32.mxu0 %vm1258_vm1, %v5099_v34 }
 0x28c   :  { %3948 = vmatmul.mubr.msk.f32.gmra.mrb[66].mxu0 %vm1258_vm1, %v5093_v62 }
 0x28d   :  { %3950 = vmatprep.mubr.msk.f32.mxu0 %vm1258_vm1, %v1244_v39 }
 0x290   :  { %3951 = vmatmul.mubr.msk.f32.gmra.mrb[68].mxu0 %vm1258_vm1, %v1245_v42 }
 0x291   :  { %3953 = vmatprep.mubr.msk.f32.mxu0 %vm1258_vm1, %v1246_v60 }
 0x294   :  { %3954 = vmatmul.mubr.msk.f32.gmra.mrb[70].mxu0 %vm1258_vm1, %v1247_v41 }
 0x295   :  { %3956 = vmatprep.mubr.msk.f32.mxu0 %vm1258_vm1, %v1248_v2 }
 0x298   :  { %3957 = vmatmul.mubr.msk.f32.gmra.mrb[72].mxu0 %vm1258_vm1, %v1249_v63 }
 0x299   :  { %2036 = vmatprep.mubr.f32.mxu0 %v128_v51 }
 0x31f   :  { %v5153_v50 = vpop.f32.mrb[42].mxu0 }
 0x320   :  { %v5158_v59 = vpop.f32.mrb[43].mxu0  ;;  %v1582_v30 = vmul.f32 %v5153_v50, %v5153_v50 }
 0x321   :  { %v1581_v9 = vmul.f32 %v5158_v59, %v5158_v59 }
 0x323   :  { %v5160_v14 = vpop.f32.mrb[44].mxu0 }
 0x324   :  { %v5162_v44 = vpop.f32.mrb[45].mxu0  ;;  %v1584_v23 = vmul.f32 %v5160_v14, %v5160_v14 }
 0x325   :  { %v1583_v6 = vmul.f32 %v5162_v44, %v5162_v44 }
 0x329   :  { %v5164_v52 = vpop.f32.mrb[46].mxu0 }
 0x32a   :  { %v5166_v61 = vpop.f32.mrb[47].mxu0  ;;  %v1586_v57 = vmul.f32 %v5164_v52, %v5164_v52 }
 0x32b   :  { %v1585_v37 = vmul.f32 %v5166_v61, %v5166_v61 }
 0x32d   :  { %v5168_v13 = vpop.f32.mrb[48].mxu0 }
 0x32e   :  { %v5170_v0 = vpop.f32.mrb[49].mxu0  ;;  %v1588_v58 = vmul.f32 %v5168_v13, %v5168_v13 }
 0x32f   :  { %v1587_v20 = vmul.f32 %v5170_v0, %v5170_v0 }
 0x332   :  { %v5172_v27 = vpop.f32.mrb[50].mxu0 }
 0x333   :  { %v5174_v55 = vpop.f32.mrb[51].mxu0  ;;  %v1590_v1 = vmul.f32 %v5172_v27, %v5172_v27 }
 0x334   :  { %v1589_v31 = vmul.f32 %v5174_v55, %v5174_v55 }
 0x341   :  { %v5176_v4 = vpop.f32.mrb[52].mxu0 }
 0x342   :  { %v5178_v62 = vpop.f32.mrb[53].mxu0  ;;  %v1592_v5 = vmul.f32 %v5176_v4, %v5176_v4 }
 0x343   :  { %v5252_v48 = vmul.f32 %v5178_v62, %v5178_v62 }
 0x347   :  { %v5180_v56 = vpop.f32.mrb[54].mxu0 }
 0x348   :  { %v5182_v33 = vpop.f32.mrb[55].mxu0 }
 0x34b   :  { %v5184_v34 = vpop.f32.mrb[56].mxu0 }
 0x34c   :  { %v5186_v43 = vpop.f32.mrb[57].mxu0 }
 0x34f   :  { %v5188_v28 = vpop.f32.mrb[58].mxu0 }
 0x350   :  { %v1598_v54 = vmul.f32 %v5188_v28, %v5188_v28  ;;  %v5194_v32 = vpop.f32.mrb[59].mxu0 }
 0x351   :  { %v1597_v15 = vmul.f32 %v5194_v32, %v5194_v32 }
 0x352   :  { %v1614_v45 = vadd.f32 %v1598_v54, %v1582_v30  ;;  %v5267_v54 = vmul.f32 %v5180_v56, %v5180_v56 }
 0x353   :  { %v1613_v42 = vadd.f32 %v1597_v15, %v1581_v9  ;;  %v5200_v19 = vpop.f32.mrb[60].mxu0 }
 0x354   :  { %v1630_v7 = vadd.f32 1e-12, %v1614_v45  ;;  %v1600_v18 = vmul.f32 %v5200_v19, %v5200_v19  ;;  %v5206_v35 = vpop.f32.mrb[61].mxu0 }
 0x355   :  { %v1629_v29 = vadd.f32 1e-12, %v1613_v42  ;;  %v1599_v12 = vmul.f32 %v5206_v35, %v5206_v35  ;;  %v5275_v42 = vmul.f32 %v5182_v33, %v5182_v33 }
 0x356   :  { %4395 = vrsqrt.f32 %v1630_v7  ;;  %v1616_v21 = vadd.f32 %v1600_v18, %v1584_v23 }
 0x357   :  { %4397 = vrsqrt.f32 %v1629_v29  ;;  %v1615_v24 = vadd.f32 %v1599_v12, %v1583_v6  ;;  %v5212_v17 = vpop.f32.mrb[62].mxu0  ;;  %v5280_v6 = vmul.f32 %v5184_v34, %v5184_v34 }
 0x358   :  { %v1632_v53 = vadd.f32 1e-12, %v1616_v21  ;;  %v1602_v46 = vmul.f32 %v5212_v17, %v5212_v17  ;;  %v5218_v3 = vpop.f32.mrb[63].mxu0 }
 0x359   :  { %v1631_v10 = vadd.f32 1e-12, %v1615_v24  ;;  %v1601_v39 = vmul.f32 %v5218_v3, %v5218_v3 }
 0x35a   :  { %4399 = vrsqrt.f32 %v1632_v53  ;;  %v1618_v16 = vadd.f32 %v1602_v46, %v1586_v57  ;;  %v5288_v57 = vmul.f32 %v5186_v43, %v5186_v43 }
 0x35b   :  { %4401 = vrsqrt.f32 %v1631_v10  ;;  %v1617_v40 = vadd.f32 %v1601_v39, %v1585_v37  ;;  %v5224_v22 = vpop.f32.mrb[64].mxu0 }
 0x35c   :  { %v5228_v25 = vadd.f32 1e-12, %v1618_v16  ;;  %v1604_v8 = vmul.f32 %v5224_v22, %v5224_v22  ;;  %v5232_v41 = vpop.f32.mrb[65].mxu0 }
 0x35d   :  { %v5236_v38 = vadd.f32 1e-12, %v1617_v40  ;;  %v1603_v47 = vmul.f32 %v5232_v41, %v5232_v41 }
 0x35e   :  { %4403 = vrsqrt.f32 %v5228_v25  ;;  %v1620_v11 = vadd.f32 %v1604_v8, %v1588_v58 }
 0x35f   :  { %4405 = vrsqrt.f32 %v5236_v38  ;;  %v1619_v60 = vadd.f32 %v1603_v47, %v1587_v20  ;;  %v5246_v36 = vpop.f32.mrb[66].mxu0 }
 0x360   :  { %v4396_v63 = vpop.eup %4395  ;;  %v5259_v2 = vadd.f32 1e-12, %v1620_v11  ;;  %v1606_v49 = vmul.f32 %v5246_v36, %v5246_v36  ;;  %v5263_v51 = vpop.f32.mrb[67].mxu0 }
 0x361   :  { %v4398_v30 = vpop.eup %4397  ;;  %v1662_v9 = vmul.f32 %v4396_v63, %v1630_v7  ;;  %v5269_v15 = vadd.f32 1e-12, %v1619_v60  ;;  %v1605_v45 = vmul.f32 %v5263_v51, %v5263_v51 }
 0x362   :  { %v1661_v23 = vmul.f32 %v4398_v30, %v1629_v29  ;;  %4407 = vrsqrt.f32 %v5259_v2  ;;  %v1622_v18 = vadd.f32 %v1606_v49, %v1590_v1 }
 0x363   :  { %v1684_v12 = vadd.f32 %v5257_v26, %v1662_v9  ;;  %4409 = vrsqrt.f32 %v5269_v15  ;;  %v1621_v7 = vadd.f32 %v1605_v45, %v1589_v31  ;;  %v5284_v21 = vpop.f32.mrb[68].mxu0 }
 0x364   :  { %v4400_v24 = vpop.eup %4399  ;;  %v1683_v29 = vadd.f32 %v5257_v26, %v1661_v23  ;;  %v5291_v46 = vadd.f32 1e-12, %v1622_v18  ;;  %v1608_v37 = vmul.f32 %v5284_v21, %v5284_v21  ;;  %v5295_v39 = vpop.f32.mrb[69].mxu0 }
 0x365   :  { %v4402_v16 = vpop.eup %4401  ;;  %vm1700_vm4 = vcmp.gt.f32.partialorder %v1684_v12, 0.0  ;;  %v1716_v40 = vmul.f32 0.2, %v1684_v12  ;;  %v1664_v58 = vmul.f32 %v4400_v24, %v1632_v53  ;;  %v5297_v8 = vadd.f32 1e-12, %v1621_v7 }
 0x366   :  { %vm1699_vm5 = vcmp.gt.f32.partialorder %v1683_v29, 0.0  ;;  %v1715_v20 = vmul.f32 0.2, %v1683_v29  ;;  %v1663_v47 = vmul.f32 %v4402_v16, %v1631_v10  ;;  %4411 = vrsqrt.f32 %v5291_v46 }
 0x367   :  { %v1732_v11 = vsel %vm1700_vm4, %v1684_v12, %v1716_v40  ;;  %v1686_v1 = vadd.f32 %v5257_v26, %v1664_v58  ;;  %4413 = vrsqrt.f32 %v5297_v8  ;;  %v1624_v31 = vadd.f32 %v1608_v37, %v1592_v5  ;;  %v5302_v60 = vpop.f32.mrb[70].mxu0 }
 0x368   :  { %v4404_v49 = vpop.eup %4403  ;;  %v1748_v9 = vmul.f32 %v4396_v63, %v1732_v11  ;;  %v1731_v45 = vsel %vm1699_vm5, %v1683_v29, %v1715_v20  ;;  %v1685_v53 = vadd.f32 %v5257_v26, %v1663_v47  ;;  %v5307_v23 = vmul.f32 %v5295_v39, %v5295_v39  ;;  %v5309_v10 = vpop.f32.mrb[71].mxu0 }
 0x369   :  { %v4406_v18 = vpop.eup %4405  ;;  %v1747_v12 = vmul.f32 %v4398_v30, %v1731_v45  ;;  %vm1702_vm6 = vcmp.gt.f32.partialorder %v1686_v1, 0.0  ;;  %v1718_v7 = vmul.f32 0.2, %v1686_v1  ;;  %v1666_v40 = vmul.f32 %v4404_v49, %v5228_v25 }
 0x36a   :  { %v5313_v5 = vmul.f32 %v5153_v50, %v1748_v9  ;;  %v1780_v63 = vmul.f32 %v5188_v28, %v1748_v9  ;;  %vm1701_vm7 = vcmp.gt.f32.partialorder %v1685_v53, 0.0  ;;  %v1717_v29 = vmul.f32 0.2, %v1685_v53 }
 0x36b   :  { %v5317_v37 = vmul.f32 %v1747_v12, %v5158_v59  ;;  %v1779_v58 = vmul.f32 %v1747_v12, %v5194_v32  ;;  %v1734_v20 = vsel %vm1702_vm6, %v1686_v1, %v1718_v7  ;;  %v1688_v47 = vadd.f32 %v5257_v26, %v1666_v40  ;;  %v5321_v30 = vpop.f32.mrb[72].mxu0 }
 0x36c   :  { %v4408_v11 = vpop.eup %4407  ;;  %3092 = vst.msk [vmem:[%s6057_s14 + $0x88] sm:$0xff] %vm1258_vm1, %v5313_v5  ;;  %3108 = vst.msk [vmem:[%s6057_s14 + $0x108] sm:$0xff] %vm1258_vm1, %v1780_v63  ;;  %v1750_v50 = vmul.f32 %v4400_v24, %v1734_v20  ;;  %v1733_v59 = vsel %vm1701_vm7, %v1685_v53, %v1717_v29  ;;  %v1665_v28 = vmul.f32 %v4406_v18, %v5236_v38  ;;  %v5333_v32 = vadd.f32 1e-12, %v1624_v31  ;;  %v5335_v25 = vpop.f32.mrb[73].mxu0 }
 0x36d   :  { %v4410_v1 = vpop.eup %4409  ;;  %v5337_v9 = vpack.c.bf16 %v1780_v63, %v1779_v58  ;;  %3091 = vst.msk [vmem:[%s6057_s14 + $0x80] sm:$0xff] %vm1258_vm1, %v5317_v37  ;;  %3107 = vst.msk [vmem:[%s6057_s14 + $0x100] sm:$0xff] %vm1258_vm1, %v1779_v58  ;;  %v1749_v24 = vmul.f32 %v4402_v16, %v1733_v59  ;;  %vm1704_vm8 = vcmp.gt.f32.partialorder %v1688_v47, 0.0  ;;  %v1720_v38 = vmul.f32 0.2, %v1688_v47 }
 0x36e   :  { %v5349_v31 = vmul.f32 %v5160_v14, %v1750_v50  ;;  %v1782_v45 = vmul.f32 %v5200_v19, %v1750_v50  ;;  %v1687_v53 = vadd.f32 %v5257_v26, %v1665_v28  ;;  %v1668_v12 = vmul.f32 %v4408_v11, %v5259_v2 }
 0x36f   :  { %v5355_v7 = vmul.f32 %v1749_v24, %v5162_v44  ;;  %v1781_v40 = vmul.f32 %v1749_v24, %v5206_v35  ;;  %v1736_v63 = vsel %vm1704_vm8, %v1688_v47, %v1720_v38  ;;  %v1667_v29 = vmul.f32 %v4410_v1, %v5269_v15  ;;  %4176 = vmatprep.subr.bf16.mxu1 %v5337_v9 }
 0x370   :  { %v4412_v16 = vpop.eup %4411  ;;  %3094 = vst.msk [vmem:[%s6057_s14 + $0x98] sm:$0xff] %vm1258_vm1, %v5349_v31  ;;  %3110 = vst.msk [vmem:[%s6057_s14 + $0x118] sm:$0xff] %vm1258_vm1, %v1782_v45  ;;  %v1752_v14 = vmul.f32 %v4404_v49, %v1736_v63  ;;  %vm1703_vm9 = vcmp.gt.f32.partialorder %v1687_v53, 0.0  ;;  %v1719_v44 = vmul.f32 0.2, %v1687_v53  ;;  %v1690_v19 = vadd.f32 %v5257_v26, %v1668_v12 }
 0x371   :  { %v4414_v35 = vpop.eup %4413  ;;  %v5370_v2 = vpack.c.bf16 %v1782_v45, %v1781_v40  ;;  %3093 = vst.msk [vmem:[%s6057_s14 + $0x90] sm:$0xff] %vm1258_vm1, %v5355_v7  ;;  %3109 = vst.msk [vmem:[%s6057_s14 + $0x110] sm:$0xff] %vm1258_vm1, %v1781_v40  ;;  %v1689_v15 = vadd.f32 %v5257_v26, %v1667_v29  ;;  %v1670_v49 = vmul.f32 %v4412_v16, %v5291_v46  ;;  %4415 = vrsqrt.f32 %v5333_v32 }
 0x372   :  { %v5385_v58 = vmul.f32 %v5164_v52, %v1752_v14  ;;  %v1784_v20 = vmul.f32 %v5212_v17, %v1752_v14  ;;  %v1735_v47 = vsel %vm1703_vm9, %v1687_v53, %v1719_v44  ;;  %vm1706_vm10 = vcmp.gt.f32.partialorder %v1690_v19, 0.0 }
 0x373   :  { %v1751_v50 = vmul.f32 %v4406_v18, %v1735_v47  ;;  %v1722_v59 = vmul.f32 0.2, %v1690_v19  ;;  %vm1705_vm11 = vcmp.gt.f32.partialorder %v1689_v15, 0.0  ;;  %v1721_v28 = vmul.f32 0.2, %v1689_v15 }
 0x374   :  { %3096 = vst.msk [vmem:[%s6057_s14 + $0xa8] sm:$0xff] %vm1258_vm1, %v5385_v58  ;;  %3112 = vst.msk [vmem:[%s6057_s14 + $0x128] sm:$0xff] %vm1258_vm1, %v1784_v20  ;;  %v1692_v52 = vadd.f32 %v5257_v26, %v1670_v49  ;;  %v1669_v17 = vmul.f32 %v4414_v35, %v5297_v8  ;;  %v1623_v46 = vadd.f32 %v5307_v23, %v5252_v48 }
 0x375   :  { %v1610_v18 = vmul.f32 %v5302_v60, %v5302_v60  ;;  %v5404_v24 = vmul.f32 %v1751_v50, %v5166_v61  ;;  %v1783_v38 = vmul.f32 %v1751_v50, %v5218_v3  ;;  %v1738_v45 = vsel %vm1706_vm10, %v1690_v19, %v1722_v59 }
 0x376   :  { %v1737_v53 = vsel %vm1705_vm11, %v1689_v15, %v1721_v28  ;;  %v1754_v12 = vmul.f32 %v4408_v11, %v1738_v45  ;;  %vm1708_vm12 = vcmp.gt.f32.partialorder %v1692_v52, 0.0  ;;  %v1724_v63 = vmul.f32 0.2, %v1692_v52 }
 0x377   :  { %v1753_v40 = vmul.f32 %v4410_v1, %v1737_v53  ;;  %v5407_v29 = vpack.c.bf16 %v1784_v20, %v1783_v38  ;;  %3095 = vst.msk [vmem:[%s6057_s14 + $0xa0] sm:$0xff] %vm1258_vm1, %v5404_v24  ;;  %3111 = vst.msk [vmem:[%s6057_s14 + $0x120] sm:$0xff] %vm1258_vm1, %v1783_v38  ;;  %v1691_v61 = vadd.f32 %v5257_v26, %v1669_v17  ;;  %v5419_v3 = vadd.f32 1e-12, %v1623_v46 }
 0x378   :  { %v1626_v48 = vadd.f32 %v1610_v18, %v5267_v54  ;;  %v5423_v8 = vmul.f32 %v5168_v13, %v1754_v12  ;;  %v1786_v23 = vmul.f32 %v5224_v22, %v1754_v12  ;;  %v1740_v14 = vsel %vm1708_vm12, %v1692_v52, %v1724_v63 }
 0x379   :  { %v5427_v11 = vmul.f32 %v1753_v40, %v5170_v0  ;;  %v1785_v1 = vmul.f32 %v1753_v40, %v5232_v41  ;;  %vm1707_vm13 = vcmp.gt.f32.partialorder %v1691_v61, 0.0  ;;  %v1723_v44 = vmul.f32 0.2, %v1691_v61 }
 0x37a   :  { %4417 = vrsqrt.f32 %v5419_v3  ;;  %3098 = vst.msk [vmem:[%s6057_s14 + $0xb8] sm:$0xff] %vm1258_vm1, %v5423_v8  ;;  %3114 = vst.msk [vmem:[%s6057_s14 + $0x138] sm:$0xff] %vm1258_vm1, %v1786_v23  ;;  %v1756_v0 = vmul.f32 %v4412_v16, %v1740_v14  ;;  %v5451_v22 = vadd.f32 1e-12, %v1626_v48  ;;  %v1609_v41 = vmul.f32 %v5309_v10, %v5309_v10 }
 0x37b   :  { %v5440_v13 = vpack.c.bf16 %v1786_v23, %v1785_v1  ;;  %3097 = vst.msk [vmem:[%s6057_s14 + $0xb0] sm:$0xff] %vm1258_vm1, %v5427_v11  ;;  %3113 = vst.msk [vmem:[%s6057_s14 + $0x130] sm:$0xff] %vm1258_vm1, %v1785_v1  ;;  %v4416_v54 = vpop.eup %4415  ;;  %v1739_v19 = vsel %vm1707_vm13, %v1691_v61, %v1723_v44  ;;  %v1612_v15 = vmul.f32 %v5321_v30, %v5321_v30  ;;  %v1959_v38 = vsub.f32 0.0, %v5349_v31 }
 0x37c   :  { %v1611_v49 = vmul.f32 %v5335_v25, %v5335_v25  ;;  %v4177_v20 = vpack.c.bf16 %v5313_v5, %v5317_v37  ;;  %v5462_v47 = vmul.f32 %v5172_v27, %v1756_v0  ;;  %v1788_v16 = vmul.f32 %v5246_v36, %v1756_v0 }
 0x37d   :  { %v1755_v50 = vmul.f32 %v4414_v35, %v1739_v19  ;;  %v1672_v59 = vmul.f32 %v4416_v54, %v5333_v32  ;;  %4419 = vrsqrt.f32 %v5451_v22  ;;  %v1625_v28 = vadd.f32 %v1609_v41, %v5275_v42 }
 0x37e   :  { %v1628_v52 = vadd.f32 %v1612_v15, %v5280_v6  ;;  %v1627_v17 = vadd.f32 %v1611_v49, %v5288_v57  ;;  %4178 = vmatpush3.bf16.msra.mxu1 %v4177_v20  ;;  %3100 = vst.msk [vmem:[%s6057_s14 + $0xc8] sm:$0xff] %vm1258_vm1, %v5462_v47  ;;  %3116 = vst.msk [vmem:[%s6057_s14 + $0x148] sm:$0xff] %vm1258_vm1, %v1788_v16  ;;  %v1956_v6 = vsub.f32 0.0, %v5317_v37  ;;  %v1958_v37 = vsub.f32 0.0, %v5355_v7 }
 0x37f   :  { %v5480_v27 = vmul.f32 %v1755_v50, %v5174_v55  ;;  %v1787_v36 = vmul.f32 %v1755_v50, %v5263_v51  ;;  %v1694_v42 = vadd.f32 %v5257_v26, %v1672_v59  ;;  %4180 = vmatprep.subr.bf16.mxu1 %v5370_v2  ;;  %v1641_v57 = vadd.f32 1e-12, %v1625_v28 }
 0x380   :  { %v5486_v32 = vadd.f32 1e-12, %v1628_v52  ;;  %v5488_v35 = vadd.f32 1e-12, %v1627_v17  ;;  %v4181_v46 = vpack.c.bf16 %v5349_v31, %v5355_v7  ;;  %v1957_v51 = vsub.f32 0.0, %v5313_v5 }
 0x381   :  { %v5492_v18 = vpack.c.bf16 %v1788_v16, %v1787_v36  ;;  %3099 = vst.msk [vmem:[%s6057_s14 + $0xc0] sm:$0xff] %vm1258_vm1, %v5480_v27  ;;  %3115 = vst.msk [vmem:[%s6057_s14 + $0x140] sm:$0xff] %vm1258_vm1, %v1787_v36  ;;  %vm1710_vm14 = vcmp.gt.f32.partialorder %v1694_v42, 0.0  ;;  %v1726_v55 = vmul.f32 0.2, %v1694_v42  ;;  %4421 = vrsqrt.f32 %v1641_v57 }
 0x382   :  { %4182 = vmatpush3.bf16.msra.mxu1 %v4181_v46  ;;  %v4185_v45 = vpack.c.bf16 %v5385_v58, %v5404_v24  ;;  %4423 = vrsqrt.f32 %v5486_v32  ;;  %v4207_v12 = vpack.c.bf16 %v1957_v51, %v1956_v6  ;;  %v1960_v40 = vsub.f32 0.0, %v5404_v24 }
 0x383   :  { %v1742_v53 = vsel %vm1710_vm14, %v1694_v42, %v1726_v55  ;;  %4184 = vmatprep.subr.bf16.mxu1 %v5407_v29  ;;  %4425 = vrsqrt.f32 %v5488_v35  ;;  %v4211_v5 = vpack.c.bf16 %v1959_v38, %v1958_v37  ;;  %v1961_v7 = vsub.f32 0.0, %v5385_v58 }
 0x384   :  { %v4418_v63 = vpop.eup %4417  ;;  %v1758_v61 = vmul.f32 %v4416_v54, %v1742_v53  ;;  %4208 = vmatprep.subr.bf16.mxu0 %v4207_v12  ;;  %v4189_v48 = vpack.c.bf16 %v5423_v8, %v5427_v11  ;;  %v1962_v23 = vsub.f32 0.0, %v5427_v11  ;;  %v1963_v1 = vsub.f32 0.0, %v5423_v8 }
 0x385   :  { %v1671_v31 = vmul.f32 %v4418_v63, %v5419_v3  ;;  %4210 = vmatpush3.bf16.msra.mxu0 %v5337_v9  ;;  %v4215_v44 = vpack.c.bf16 %v1961_v7, %v1960_v40  ;;  %v1964_v58 = vsub.f32 0.0, %v5480_v27  ;;  %v4193_v8 = vpack.c.bf16 %v5462_v47, %v5480_v27 }
 0x386   :  { %v5519_v14 = vmul.f32 %v5176_v4, %v1758_v61  ;;  %v1790_v24 = vmul.f32 %v5284_v21, %v1758_v61  ;;  %4186 = vmatpush3.bf16.msra.mxu1 %v4185_v45  ;;  %4212 = vmatprep.subr.bf16.mxu0 %v4211_v5  ;;  %v4219_v0 = vpack.c.bf16 %v1963_v1, %v1962_v23  ;;  %v1965_v4 = vsub.f32 0.0, %v5462_v47  ;;  %v2137_v5 = vld [vmem:[%s6058_s9] sm:$0xff] }
 0x387   :  { %v1693_v3 = vadd.f32 %v5257_v26, %v1671_v31  ;;  %4188 = vmatprep.subr.bf16.mxu1 %v5440_v13  ;;  %v4420_v11 = vpop.eup %4419 }
 0x388   :  { %3102 = vst.msk [vmem:[%s6057_s14 + $0xd8] sm:$0xff] %vm1258_vm1, %v5519_v14  ;;  %3118 = vst.msk [vmem:[%s6057_s14 + $0x158] sm:$0xff] %vm1258_vm1, %v1790_v24  ;;  %v1674_v9 = vmul.f32 %v4420_v11, %v5451_v22  ;;  %v4223_v41 = vpack.c.bf16 %v1965_v4, %v1964_v58  ;;  %v1967_v27 = vsub.f32 0.0, %v5519_v14  ;;  %v130_v58 = vld [vmem:[%s6055_s1 + $0x18] sm:$0xff]  ;;  %v131_v4 = vld [vmem:[%s6055_s1 + $0x20] sm:$0xff] }
 0x389   :  { %vm1709_vm15 = vcmp.gt.f32.partialorder %v1693_v3, 0.0  ;;  %v1725_v21 = vmul.f32 0.2, %v1693_v3  ;;  %4214 = vmatpush3.bf16.msra.mxu0 %v5370_v2 }
 0x38a   :  { %4190 = vmatpush3.bf16.msra.mxu1 %v4189_v48  ;;  %v1696_v19 = vadd.f32 %v5257_v26, %v1674_v9  ;;  %4216 = vmatprep.subr.bf16.mxu0 %v4215_v44  ;;  %v127_v44 = vld [vmem:[%s6055_s1] sm:$0xff]  ;;  %v136_v9 = vld [vmem:[%s6055_s1 + $0x48] sm:$0xff] }
 0x38b   :  { %v1741_v54 = vsel %vm1709_vm15, %v1693_v3, %v1725_v21  ;;  %4192 = vmatprep.subr.bf16.mxu1 %v5492_v18  ;;  %v4422_v15 = vpop.eup %4421  ;;  %v133_v21 = vld [vmem:[%s6055_s1 + $0x30] sm:$0xff] }
 0x38c   :  { %v1757_v49 = vmul.f32 %v4418_v63, %v1741_v54  ;;  %v4424_v20 = vpop.eup %4423  ;;  %vm1712_vm2 = vcmp.gt.f32.partialorder %v1696_v19, 0.0  ;;  %v1728_v47 = vmul.f32 0.2, %v1696_v19  ;;  %v1673_v16 = vmul.f32 %v4422_v15, %v1641_v57  ;;  %v138_v54 = vld [vmem:[%s6055_s1 + $0x58] sm:$0xff] }
 0x38d   :  { %v4426_v50 = vpop.eup %4425  ;;  %v1676_v2 = vmul.f32 %v4424_v20, %v5486_v32  ;;  %4218 = vmatpush3.bf16.msra.mxu0 %v5407_v29 }
 0x38e   :  { %v1773_v59 = vmul.f32 %v1757_v49, %v5178_v62  ;;  %v1789_v22 = vmul.f32 %v1757_v49, %v5295_v39  ;;  %4194 = vmatpush3.bf16.msra.mxu1 %v4193_v8  ;;  %v1744_v28 = vsel %vm1712_vm2, %v1696_v19, %v1728_v47  ;;  %v1695_v52 = vadd.f32 %v5257_v26, %v1673_v16  ;;  %v132_v8 = vld [vmem:[%s6055_s1 + $0x28] sm:$0xff]  ;;  %v137_v19 = vld [vmem:[%s6055_s1 + $0x50] sm:$0xff]  ;;  %v139_v49 = vld [vmem:[%s6055_s1 + $0x60] sm:$0xff] }
 0x38f   :  { %v1675_v17 = vmul.f32 %v4426_v50, %v5488_v35  ;;  %4220 = vmatprep.subr.bf16.mxu0 %v4219_v0  ;;  %v1760_v62 = vmul.f32 %v4420_v11, %v1744_v28  ;;  %v1698_v39 = vadd.f32 %v5257_v26, %v1676_v2  ;;  %v129_v0 = vld [vmem:[%s6055_s1 + $0x10] sm:$0xff]  ;;  %v134_v11 = vld [vmem:[%s6055_s1 + $0x38] sm:$0xff]  ;;  %v144_v16 = vld [vmem:[%s6055_s1 + $0x88] sm:$0xff] }
 0x390   :  { %v4195_v36 = vpack.c.bf16 %v1790_v24, %v1789_v22  ;;  %3101 = vst.msk [vmem:[%s6057_s14 + $0xd0] sm:$0xff] %vm1258_vm1, %v1773_v59  ;;  %3117 = vst.msk [vmem:[%s6057_s14 + $0x150] sm:$0xff] %vm1258_vm1, %v1789_v22  ;;  %v4197_v29 = vpack.c.bf16 %v5519_v14, %v1773_v59  ;;  %vm1711_vm3 = vcmp.gt.f32.partialorder %v1695_v52, 0.0  ;;  %v1727_v42 = vmul.f32 0.2, %v1695_v52  ;;  %v2139_v14 = vld [vmem:[%s6058_s9 + $0x10] sm:$0xff] }
 0x391   :  { %v1697_v6 = vadd.f32 %v5257_v26, %v1675_v17  ;;  %v1966_v57 = vsub.f32 0.0, %v1773_v59  ;;  %v1776_v32 = vmul.f32 %v5180_v56, %v1760_v62  ;;  %v1792_v35 = vmul.f32 %v5302_v60, %v1760_v62  ;;  %4222 = vmatpush3.bf16.msra.mxu0 %v5440_v13  ;;  %v2140_v24 = vld [vmem:[%s6058_s9 + $0x18] sm:$0xff]  ;;  %v141_v47 = vld [vmem:[%s6055_s1 + $0x70] sm:$0xff]  ;;  %v148_v2 = vld [vmem:[%s6055_s1 + $0xa8] sm:$0xff] }
 0x392   :  { %vm1714_vm4 = vcmp.gt.f32.partialorder %v1698_v39, 0.0  ;;  %v1730_v46 = vmul.f32 0.2, %v1698_v39  ;;  %4196 = vmatprep.subr.bf16.mxu1 %v4195_v36  ;;  %v1743_v55 = vsel %vm1711_vm3, %v1695_v52, %v1727_v42  ;;  %4224 = vmatprep.subr.bf16.mxu0 %v4223_v41  ;;  %v4243_v3 = vpack.c.bf16 %v2140_v24, %v2139_v14  ;;  %v135_v41 = vld [vmem:[%s6055_s1 + $0x40] sm:$0xff]  ;;  %v146_v59 = vld [vmem:[%s6055_s1 + $0x98] sm:$0xff]  ;;  %v145_v22 = vld [vmem:[%s6055_s1 + $0x90] sm:$0xff] }
 0x393   :  { %vm1713_vm5 = vcmp.gt.f32.partialorder %v1697_v6, 0.0  ;;  %v1729_v51 = vmul.f32 0.2, %v1697_v6  ;;  %4198 = vmatpush3.bf16.msra.mxu1 %v4197_v29  ;;  %v4227_v37 = vpack.c.bf16 %v1967_v27, %v1966_v57  ;;  %3104 = vst.msk [vmem:[%s6057_s14 + $0xe8] sm:$0xff] %vm1258_vm1, %v1776_v32  ;;  %3120 = vst.msk [vmem:[%s6057_s14 + $0x168] sm:$0xff] %vm1258_vm1, %v1792_v35  ;;  %v1759_v56 = vmul.f32 %v4422_v15, %v1743_v55  ;;  %v140_v15 = vld [vmem:[%s6055_s1 + $0x68] sm:$0xff] }
 0x394   :  { %v1746_v26 = vsel %vm1714_vm4, %v1698_v39, %v1730_v46  ;;  %v1969_v63 = vsub.f32 0.0, %v1776_v32  ;;  %v147_v28 = vld [vmem:[%s6055_s1 + $0xa0] sm:$0xff]  ;;  %v150_v52 = vld [vmem:[%s6055_s1 + $0xb8] sm:$0xff]  ;;  %v149_v17 = vld [vmem:[%s6055_s1 + $0xb0] sm:$0xff] }
 0x395   :  { %v1762_v60 = vmul.f32 %v4424_v20, %v1746_v26  ;;  %v1745_v13 = vsel %vm1713_vm5, %v1697_v6, %v1729_v51  ;;  %v1775_v38 = vmul.f32 %v1759_v56, %v5182_v33  ;;  %v1791_v45 = vmul.f32 %v1759_v56, %v5309_v10  ;;  %4226 = vmatpush3.bf16.msra.mxu0 %v5492_v18  ;;  %v142_v20 = vld [vmem:[%s6055_s1 + $0x78] sm:$0xff]  ;;  %v152_v27 = vld [vmem:[%s6055_s1 + $0xc8] sm:$0xff]  ;;  %v153_v39 = vld [vmem:[%s6055_s1 + $0xd0] sm:$0xff] }
 0x396   :  { %v1761_v53 = vmul.f32 %v4426_v50, %v1745_v13  ;;  %4228 = vmatprep.subr.bf16.mxu0 %v4227_v37  ;;  %v143_v50 = vld [vmem:[%s6055_s1 + $0x80] sm:$0xff]  ;;  %v154_v62 = vld [vmem:[%s6055_s1 + $0xd8] sm:$0xff]  ;;  %v156_v29 = vld [vmem:[%s6055_s1 + $0xe8] sm:$0xff] }
 0x397   :  { %v1778_v12 = vmul.f32 %v5184_v34, %v1762_v60  ;;  %v1794_v40 = vmul.f32 %v5321_v30, %v1762_v60  ;;  %v4199_v61 = vpack.c.bf16 %v1792_v35, %v1791_v45  ;;  %3103 = vst.msk [vmem:[%s6057_s14 + $0xe0] sm:$0xff] %vm1258_vm1, %v1775_v38  ;;  %3119 = vst.msk [vmem:[%s6057_s14 + $0x160] sm:$0xff] %vm1258_vm1, %v1791_v45  ;;  %v1968_v30 = vsub.f32 0.0, %v1775_v38  ;;  %v155_v42 = vld [vmem:[%s6055_s1 + $0xe0] sm:$0xff]  ;;  %v158_v6 = vld [vmem:[%s6055_s1 + $0xf8] sm:$0xff] }
 0x398   :  { %v1777_v33 = vmul.f32 %v1761_v53, %v5186_v43  ;;  %v1793_v10 = vmul.f32 %v1761_v53, %v5335_v25  ;;  %v4201_v34 = vpack.c.bf16 %v1776_v32, %v1775_v38  ;;  %v2138_v43 = vld [vmem:[%s6058_s9 + $0x8] sm:$0xff]  ;;  %v157_v57 = vld [vmem:[%s6055_s1 + $0xf0] sm:$0xff]  ;;  %v2141_v32 = vld [vmem:[%s6058_s9 + $0x20] sm:$0xff] }
 0x399   :  { %3106 = vst.msk [vmem:[%s6057_s14 + $0xf8] sm:$0xff] %vm1258_vm1, %v1778_v12  ;;  %3122 = vst.msk [vmem:[%s6057_s14 + $0x178] sm:$0xff] %vm1258_vm1, %v1794_v40  ;;  %v1971_v18 = vsub.f32 0.0, %v1778_v12  ;;  %4230 = vmatpush3.bf16.msra.mxu0 %v4195_v36  ;;  %4200 = vmatprep.subr.bf16.mxu1 %v4199_v61  ;;  %v4231_v48 = vpack.c.bf16 %v1969_v63, %v1968_v30  ;;  %v4239_v1 = vpack.c.bf16 %v2138_v43, %v2137_v5  ;;  %v151_v36 = vld [vmem:[%s6055_s1 + $0xc0] sm:$0xff]  ;;  %v2142_v35 = vld [vmem:[%s6058_s9 + $0x28] sm:$0xff] }
 0x39a   :  { %v4203_v25 = vpack.c.bf16 %v1794_v40, %v1793_v10  ;;  %3105 = vst.msk [vmem:[%s6057_s14 + $0xf0] sm:$0xff] %vm1258_vm1, %v1777_v33  ;;  %3121 = vst.msk [vmem:[%s6057_s14 + $0x170] sm:$0xff] %vm1258_vm1, %v1793_v10  ;;  %v4205_v7 = vpack.c.bf16 %v1778_v12, %v1777_v33  ;;  %v1970_v31 = vsub.f32 0.0, %v1777_v33  ;;  %4202 = vmatpush3.bf16.msra.mxu1 %v4201_v34  ;;  %v2143_v55 = vld [vmem:[%s6058_s9 + $0x30] sm:$0xff]  ;;  %v2144_v51 = vld [vmem:[%s6058_s9 + $0x38] sm:$0xff] }
 0x39b   :  { %4232 = vmatprep.subr.bf16.mxu0 %v4231_v48  ;;  %v4247_v46 = vpack.c.bf16 %v2142_v35, %v2141_v32  ;;  %v4251_v37 = vpack.c.bf16 %v2144_v51, %v2143_v55  ;;  %v2133_v56 = vld [vmem:[%s6059_s8] sm:$0xff]  ;;  %v2134_v26 = vld [vmem:[%s6059_s8 + $0x8] sm:$0xff]  ;;  %v2821_v63 = vld [vmem:[%s6060_s11 + $0x10] sm:$0xff] }
 0x39c   :  { %4204 = vmatprep.subr.bf16.mxu1 %v4203_v25  ;;  %v4235_v23 = vpack.c.bf16 %v1971_v18, %v1970_v31  ;;  %v4255_v60 = vpack.c.bf16 %v2134_v26, %v2133_v56  ;;  %v2819_v12 = vld [vmem:[%s6060_s11] sm:$0xff]  ;;  %v2820_v40 = vld [vmem:[%s6060_s11 + $0x8] sm:$0xff]  ;;  %v2822_v30 = vld [vmem:[%s6060_s11 + $0x18] sm:$0xff] }
 0x39d   :  { %4234 = vmatpush3.bf16.msra.mxu0 %v4199_v61  ;;  %v4279_v34 = vpack.c.bf16 %v2820_v40, %v2819_v12  ;;  %v2135_v5 = vld [vmem:[%s6059_s8 + $0x10] sm:$0xff]  ;;  %v2136_v43 = vld [vmem:[%s6059_s8 + $0x18] sm:$0xff] }
 0x39e   :  { %4206 = vmatpush3.bf16.msra.mxu1 %v4205_v7  ;;  %4236 = vmatprep.subr.bf16.mxu0 %v4235_v23  ;;  %v4283_v7 = vpack.c.bf16 %v2822_v30, %v2821_v63  ;;  %v4259_v14 = vpack.c.bf16 %v2136_v43, %v2135_v5 }
 0x39f   :  { %4240 = vmatprep.subr.bf16.mxu1 %v4239_v1 }
 0x3a1   :  { %4238 = vmatpush3.bf16.msra.mxu0 %v4203_v25  ;;  %1860 = vmatmul.mubr.f32.vlgmr.msra.gmra.mrb[32].mxu1 %v127_v44 }
 0x3a2   :  { %1864 = vmatprep.mubr.f32.mxu1 %v130_v58  ;;  %4242 = vmatpush3.bf16.msra.mxu1 %v4239_v1 }
 0x3a3   :  { %4244 = vmatprep.subr.bf16.mxu1 %v4243_v3  ;;  %4280 = vmatprep.subr.bf16.mxu0 %v4279_v34 }
 0x3a4   :  { %2037 = vmatmul.mubr.f32.vlgmr.msra.gmra.mrb[74].mxu0 %v127_v44 }
 0x3a5   :  { %1865 = vmatmul.mubr.f32.gmra.mrb[34].mxu1 %v129_v0  ;;  %2041 = vmatprep.mubr.f32.mxu0 %v130_v58  ;;  %v2531_v58 = vld [vmem:[%s6061_s10] sm:$0xff] }
 0x3a6   :  { %1869 = vmatprep.mubr.f32.mxu1 %v132_v8  ;;  %4246 = vmatpush3.bf16.msra.mxu1 %v4243_v3  ;;  %v2532_v3 = vld [vmem:[%s6061_s10 + $0x8] sm:$0xff] }
 0x3a7   :  { %4248 = vmatprep.subr.bf16.mxu1 %v4247_v46  ;;  %4282 = vmatpush3.bf16.msra.mxu0 %v4279_v34 }
 0x3a8   :  { %2042 = vmatmul.mubr.f32.gmra.mrb[76].mxu0 %v129_v0  ;;  %4284 = vmatprep.subr.bf16.mxu0 %v4283_v7 }
 0x3a9   :  { %1870 = vmatmul.mubr.f32.gmra.mrb[36].mxu1 %v131_v4  ;;  %2046 = vmatprep.mubr.f32.mxu0 %v132_v8 }
 0x3aa   :  { %1874 = vmatprep.mubr.f32.mxu1 %v134_v11  ;;  %4250 = vmatpush3.bf16.msra.mxu1 %v4247_v46 }
 0x3ab   :  { %4252 = vmatprep.subr.bf16.mxu1 %v4251_v37  ;;  %4286 = vmatpush3.bf16.msra.mxu0 %v4283_v7 }
 0x3ac   :  { %2047 = vmatmul.mubr.f32.gmra.mrb[78].mxu0 %v131_v4 }
 0x3ad   :  { %1875 = vmatmul.mubr.f32.gmra.mrb[38].mxu1 %v133_v21  ;;  %2051 = vmatprep.mubr.f32.mxu0 %v134_v11 }
 0x3ae   :  { %1879 = vmatprep.mubr.f32.mxu1 %v136_v9  ;;  %4254 = vmatpush3.bf16.msra.mxu1 %v4251_v37 }
 0x3af   :  { %4256 = vmatprep.subr.bf16.mxu1 %v4255_v60 }
 0x3b0   :  { %2052 = vmatmul.mubr.f32.gmra.mrb[80].mxu0 %v133_v21 }
 0x3b1   :  { %1880 = vmatmul.mubr.f32.gmra.mrb[40].mxu1 %v135_v41  ;;  %2056 = vmatprep.mubr.f32.mxu0 %v136_v9  ;;  %v5755_v9 = vpack.c.bf16 %v2532_v3, %v2531_v58 }
 0x3b2   :  { %1884 = vmatprep.mubr.f32.mxu1 %v138_v54 }
 0x3b4   :  { %2057 = vmatmul.mubr.f32.gmra.mrb[82].mxu0 %v135_v41 }
 0x3b5   :  { %1885 = vmatmul.mubr.f32.gmra.mrb[42].mxu1 %v137_v19  ;;  %2061 = vmatprep.mubr.f32.mxu0 %v138_v54 }
 0x3b6   :  { %1889 = vmatprep.mubr.f32.mxu1 %v140_v15 }
 0x3b8   :  { %2062 = vmatmul.mubr.f32.gmra.mrb[84].mxu0 %v137_v19 }
 0x3b9   :  { %1890 = vmatmul.mubr.f32.gmra.mrb[44].mxu1 %v139_v49  ;;  %2066 = vmatprep.mubr.f32.mxu0 %v140_v15 }
 0x3ba   :  { %1894 = vmatprep.mubr.f32.mxu1 %v142_v20 }
 0x3bc   :  { %2067 = vmatmul.mubr.f32.gmra.mrb[86].mxu0 %v139_v49 }
 0x3bd   :  { %1895 = vmatmul.mubr.f32.gmra.mrb[46].mxu1 %v141_v47  ;;  %2071 = vmatprep.mubr.f32.mxu0 %v142_v20 }
 0x3be   :  { %1899 = vmatprep.mubr.f32.mxu1 %v144_v16 }
 0x3c0   :  { %2072 = vmatmul.mubr.f32.gmra.mrb[88].mxu0 %v141_v47 }
 0x3c1   :  { %1900 = vmatmul.mubr.f32.gmra.mrb[48].mxu1 %v143_v50  ;;  %2076 = vmatprep.mubr.f32.mxu0 %v144_v16 }
 0x3c2   :  { %1904 = vmatprep.mubr.f32.mxu1 %v146_v59 }
 0x3c4   :  { %2077 = vmatmul.mubr.f32.gmra.mrb[90].mxu0 %v143_v50 }
 0x3c5   :  { %1905 = vmatmul.mubr.f32.gmra.mrb[50].mxu1 %v145_v22  ;;  %2081 = vmatprep.mubr.f32.mxu0 %v146_v59 }
 0x3c6   :  { %1909 = vmatprep.mubr.f32.mxu1 %v148_v2 }
 0x3c8   :  { %2082 = vmatmul.mubr.f32.gmra.mrb[92].mxu0 %v145_v22 }
 0x3c9   :  { %1910 = vmatmul.mubr.f32.gmra.mrb[52].mxu1 %v147_v28  ;;  %2086 = vmatprep.mubr.f32.mxu0 %v148_v2 }
 0x3ca   :  { %1914 = vmatprep.mubr.f32.mxu1 %v150_v52 }
 0x3cc   :  { %2087 = vmatmul.mubr.f32.gmra.mrb[94].mxu0 %v147_v28 }
 0x3cd   :  { %1915 = vmatmul.mubr.f32.gmra.mrb[54].mxu1 %v149_v17  ;;  %2091 = vmatprep.mubr.f32.mxu0 %v150_v52 }
 0x3ce   :  { %1919 = vmatprep.mubr.f32.mxu1 %v152_v27 }
 0x3d0   :  { %2092 = vmatmul.mubr.f32.gmra.mrb[96].mxu0 %v149_v17 }
 0x3d1   :  { %1920 = vmatmul.mubr.f32.gmra.mrb[56].mxu1 %v151_v36  ;;  %2096 = vmatprep.mubr.f32.mxu0 %v152_v27 }
 0x3d2   :  { %1924 = vmatprep.mubr.f32.mxu1 %v154_v62 }
 0x3d4   :  { %2097 = vmatmul.mubr.f32.gmra.mrb[98].mxu0 %v151_v36 }
 0x3d5   :  { %1925 = vmatmul.mubr.f32.gmra.mrb[58].mxu1 %v153_v39  ;;  %2101 = vmatprep.mubr.f32.mxu0 %v154_v62 }
 0x3d6   :  { %1929 = vmatprep.mubr.f32.mxu1 %v156_v29 }
 0x3d8   :  { %2102 = vmatmul.mubr.f32.gmra.mrb[100].mxu0 %v153_v39 }
 0x3d9   :  { %1930 = vmatmul.mubr.f32.gmra.mrb[60].mxu1 %v155_v42  ;;  %2106 = vmatprep.mubr.f32.mxu0 %v156_v29 }
 0x3da   :  { %1934 = vmatprep.mubr.f32.mxu1 %v158_v6 }
 0x3dc   :  { %2107 = vmatmul.mubr.f32.gmra.mrb[102].mxu0 %v155_v42 }
 0x3dd   :  { %1935 = vmatmul.mubr.f32.gmra.mrb[62].mxu1 %v157_v57  ;;  %2111 = vmatprep.mubr.f32.mxu0 %v158_v6 }
 0x3e0   :  { %2112 = vmatmul.mubr.f32.gmra.mrb[104].mxu0 %v157_v57 }
 0x474   :  { %v3483_v13 = vpop.f32.mrb[32].mxu1 }
 0x475   :  { %v3484_v38 = vpop.f32.mrb[33].mxu1 }
 0x476   :  { %v3485_v45 = vadd.f32 %v3484_v38, %v3483_v13 }
 0x477   :  { %v3563_v53 = vpop.f32.mrb[74].mxu0 }
 0x478   :  { %v1940_v61 = vsub.f32 0.0, %v3485_v45  ;;  %v3486_v33 = vpop.f32.mrb[34].mxu1  ;;  %v3564_v10 = vpop.f32.mrb[75].mxu0 }
 0x479   :  { %v3487_v18 = vpop.f32.mrb[35].mxu1  ;;  %v5743_v25 = vadd.f32 %v3564_v10, %v3563_v53 }
 0x47a   :  { %v3488_v31 = vadd.f32 %v3487_v18, %v3486_v33  ;;  %3975 = vmatprep.mubr.msk.f32.mxu1 %vm1258_vm1, %v1940_v61 }
 0x47b   :  { %v3566_v48 = vpop.f32.mrb[76].mxu0 }
 0x47c   :  { %v1941_v23 = vsub.f32 0.0, %v3488_v31  ;;  %v3489_v1 = vpop.f32.mrb[36].mxu1  ;;  %v3567_v24 = vpop.f32.mrb[77].mxu0 }
 0x47d   :  { %v3490_v44 = vpop.f32.mrb[37].mxu1  ;;  %v5752_v0 = vadd.f32 %v3567_v24, %v3566_v48 }
 0x47e   :  { %v3491_v8 = vadd.f32 %v3490_v44, %v3489_v1  ;;  %3976 = vmatmul.mubr.msk.f32.vlgmr.msra.gmra.mrb[64].mxu1 %vm1258_vm1, %v1941_v23 }
 0x47f   :  { %4258 = vmatpush3.bf16.msra.mxu1 %v4255_v60  ;;  %v3569_v4 = vpop.f32.mrb[78].mxu0 }
 0x480   :  { %v1942_v11 = vsub.f32 0.0, %v3491_v8  ;;  %v3492_v21 = vpop.f32.mrb[38].mxu1  ;;  %4260 = vmatprep.subr.bf16.mxu1 %v4259_v14  ;;  %v3570_v41 = vpop.f32.mrb[79].mxu0 }
 0x481   :  { %v3493_v54 = vpop.f32.mrb[39].mxu1  ;;  %v5757_v19 = vadd.f32 %v3570_v41, %v3569_v4 }
 0x482   :  { %v3494_v15 = vadd.f32 %v3493_v54, %v3492_v21  ;;  %3978 = vmatprep.mubr.msk.f32.mxu1 %vm1258_vm1, %v1942_v11 }
 0x483   :  { %4262 = vmatpush3.bf16.msra.mxu1 %v4259_v14  ;;  %v3572_v49 = vpop.f32.mrb[80].mxu0 }
 0x484   :  { %v1943_v20 = vsub.f32 0.0, %v3494_v15  ;;  %v3495_v47 = vpop.f32.mrb[40].mxu1  ;;  %4264 = vmatprep.subr.bf16.mxu1 %v5755_v9  ;;  %v3573_v16 = vpop.f32.mrb[81].mxu0 }
 0x485   :  { %v3496_v50 = vpop.f32.mrb[41].mxu1  ;;  %v5761_v59 = vadd.f32 %v3573_v16, %v3572_v49 }
 0x486   :  { %v3497_v22 = vadd.f32 %v3496_v50, %v3495_v47  ;;  %3979 = vmatmul.mubr.msk.f32.gmra.mrb[66].mxu1 %vm1258_vm1, %v1943_v20 }
 0x487   :  { %v3575_v2 = vpop.f32.mrb[82].mxu0 }
 0x488   :  { %v1944_v28 = vsub.f32 0.0, %v3497_v22  ;;  %v3498_v52 = vpop.f32.mrb[42].mxu1  ;;  %v3576_v17 = vpop.f32.mrb[83].mxu0 }
 0x489   :  { %v3499_v27 = vpop.f32.mrb[43].mxu1  ;;  %v5764_v36 = vadd.f32 %v3576_v17, %v3575_v2 }
 0x48a   :  { %v3500_v62 = vadd.f32 %v3499_v27, %v3498_v52  ;;  %3981 = vmatprep.mubr.msk.f32.mxu1 %vm1258_vm1, %v1944_v28 }
 0x48b   :  { %v3578_v39 = vpop.f32.mrb[84].mxu0 }
 0x48c   :  { %v1945_v29 = vsub.f32 0.0, %v3500_v62  ;;  %v3501_v42 = vpop.f32.mrb[44].mxu1  ;;  %v3579_v6 = vpop.f32.mrb[85].mxu0 }
 0x48d   :  { %v3502_v57 = vpop.f32.mrb[45].mxu1  ;;  %v5767_v32 = vadd.f32 %v3579_v6, %v3578_v39 }
 0x48e   :  { %v3503_v35 = vadd.f32 %v3502_v57, %v3501_v42  ;;  %3982 = vmatmul.mubr.msk.f32.gmra.mrb[68].mxu1 %vm1258_vm1, %v1945_v29 }
 0x48f   :  { %v3581_v46 = vpop.f32.mrb[86].mxu0 }
 0x490   :  { %v1946_v55 = vsub.f32 0.0, %v3503_v35  ;;  %v3504_v51 = vpop.f32.mrb[46].mxu1  ;;  %v3582_v37 = vpop.f32.mrb[87].mxu0 }
 0x491   :  { %v3505_v56 = vpop.f32.mrb[47].mxu1  ;;  %v5770_v26 = vadd.f32 %v3582_v37, %v3581_v46 }
 0x492   :  { %v3506_v60 = vadd.f32 %v3505_v56, %v3504_v51  ;;  %3984 = vmatprep.mubr.msk.f32.mxu1 %vm1258_vm1, %v1946_v55 }
 0x493   :  { %v3584_v13 = vpop.f32.mrb[88].mxu0 }
 0x494   :  { %v1947_v38 = vsub.f32 0.0, %v3506_v60  ;;  %v3507_v45 = vpop.f32.mrb[48].mxu1  ;;  %v3585_v53 = vpop.f32.mrb[89].mxu0 }
 0x495   :  { %v3508_v12 = vpop.f32.mrb[49].mxu1  ;;  %v5773_v40 = vadd.f32 %v3585_v53, %v3584_v13  ;;  %v2533_v53 = vld [vmem:[%s6061_s10 + $0x10] sm:$0xff] }
 0x496   :  { %v3509_v63 = vadd.f32 %v3508_v12, %v3507_v45  ;;  %3985 = vmatmul.mubr.msk.f32.gmra.mrb[70].mxu1 %vm1258_vm1, %v1947_v38  ;;  %v2534_v12 = vld [vmem:[%s6061_s10 + $0x18] sm:$0xff] }
 0x497   :  { %v3587_v61 = vpop.f32.mrb[90].mxu0 }
 0x498   :  { %v1948_v33 = vsub.f32 0.0, %v3509_v63  ;;  %v3510_v10 = vpop.f32.mrb[50].mxu1  ;;  %v3588_v34 = vpop.f32.mrb[91].mxu0 }
 0x499   :  { %v3511_v30 = vpop.f32.mrb[51].mxu1  ;;  %v5776_v18 = vadd.f32 %v3588_v34, %v3587_v61  ;;  %v4427_v61 = vld [vmem:[%s6049_s2] sm:$0xff]  ;;  %v2536_v34 = vld [vmem:[%s6061_s10 + $0x28] sm:$0xff] }
 0x49a   :  { %v3512_v5 = vadd.f32 %v3511_v30, %v3510_v10  ;;  %3987 = vmatprep.mubr.msk.f32.mxu1 %vm1258_vm1, %v1948_v33  ;;  %v4267_v33 = vpack.c.bf16 %v2534_v12, %v2533_v53  ;;  %v2535_v10 = vld [vmem:[%s6061_s10 + $0x20] sm:$0xff]  ;;  %v4428_v30 = vld [vmem:[%s6049_s2 + $0x8] sm:$0xff] }
 0x49b   :  { %v3590_v43 = vpop.f32.mrb[92].mxu0 }
 0x49c   :  { %v1949_v7 = vsub.f32 0.0, %v3512_v5  ;;  %v3513_v31 = vpop.f32.mrb[52].mxu1  ;;  %v3591_v48 = vpop.f32.mrb[93].mxu0  ;;  %v4429_v5 = vld [vmem:[%s6049_s2 + $0x10] sm:$0xff] }
 0x49d   :  { %v3514_v23 = vpop.f32.mrb[53].mxu1  ;;  %v5779_v1 = vadd.f32 %v3591_v48, %v3590_v43  ;;  %v4271_v43 = vpack.c.bf16 %v2536_v34, %v2535_v10  ;;  %v4430_v48 = vld [vmem:[%s6049_s2 + $0x18] sm:$0xff] }
 0x49e   :  { %v3515_v14 = vadd.f32 %v3514_v23, %v3513_v31  ;;  %3988 = vmatmul.mubr.msk.f32.gmra.mrb[72].mxu1 %vm1258_vm1, %v1949_v7  ;;  %v2537_v7 = vld [vmem:[%s6061_s10 + $0x30] sm:$0xff]  ;;  %v2538_v31 = vld [vmem:[%s6061_s10 + $0x38] sm:$0xff] }
 0x49f   :  { %v3593_v24 = vpop.f32.mrb[94].mxu0  ;;  %v4275_v23 = vpack.c.bf16 %v2538_v31, %v2537_v7 }
 0x4a0   :  { %v1950_v44 = vsub.f32 0.0, %v3515_v14  ;;  %v3516_v58 = vpop.f32.mrb[54].mxu1  ;;  %v3594_v3 = vpop.f32.mrb[95].mxu0  ;;  %v4432_v14 = vld [vmem:[%s6049_s2 + $0x28] sm:$0xff] }
 0x4a1   :  { %v3517_v8 = vpop.f32.mrb[55].mxu1  ;;  %v5782_v4 = vadd.f32 %v3594_v3, %v3593_v24  ;;  %v4433_v24 = vld [vmem:[%s6049_s2 + $0x30] sm:$0xff]  ;;  %v4436_v3 = vld [vmem:[%s6049_s2 + $0x48] sm:$0xff] }
 0x4a2   :  { %v3518_v11 = vadd.f32 %v3517_v8, %v3516_v58  ;;  %3990 = vmatprep.mubr.msk.f32.mxu1 %vm1258_vm1, %v1950_v44  ;;  %v4434_v44 = vld [vmem:[%s6049_s2 + $0x38] sm:$0xff]  ;;  %v4435_v58 = vld [vmem:[%s6049_s2 + $0x40] sm:$0xff]  ;;  %v4437_v8 = vld [vmem:[%s6049_s2 + $0x50] sm:$0xff] }
 0x4a3   :  { %v3596_v21 = vpop.f32.mrb[96].mxu0 }
 0x4a4   :  { %v1951_v41 = vsub.f32 0.0, %v3518_v11  ;;  %v3519_v54 = vpop.f32.mrb[56].mxu1  ;;  %v3597_v15 = vpop.f32.mrb[97].mxu0  ;;  %v4438_v11 = vld [vmem:[%s6049_s2 + $0x58] sm:$0xff] }
 0x4a5   :  { %v3520_v49 = vpop.f32.mrb[57].mxu1  ;;  %v5785_v20 = vadd.f32 %v3597_v15, %v3596_v21  ;;  %v4439_v21 = vld [vmem:[%s6049_s2 + $0x60] sm:$0xff]  ;;  %v2117_v15 = vsub.f32 0.0, %v5743_v25  ;;  %v2121_v25 = vsub.f32 0.0, %v5764_v36  ;;  %v2127_v36 = vsub.f32 0.0, %v5782_v4 }
 0x4a6   :  { %v3521_v47 = vadd.f32 %v3520_v49, %v3519_v54  ;;  %3991 = vmatmul.mubr.msk.f32.gmra.mrb[74].mxu1 %vm1258_vm1, %v1951_v41  ;;  %v4440_v41 = vld [vmem:[%s6049_s2 + $0x68] sm:$0xff]  ;;  %v4441_v54 = vld [vmem:[%s6049_s2 + $0x70] sm:$0xff]  ;;  %v4442_v49 = vld [vmem:[%s6049_s2 + $0x78] sm:$0xff] }
 0x4a7   :  { %v3599_v16 = vpop.f32.mrb[98].mxu0  ;;  %v2823_v4 = vld [vmem:[%s6060_s11 + $0x20] sm:$0xff] }
 0x4a8   :  { %v1952_v50 = vsub.f32 0.0, %v3521_v47  ;;  %v3522_v22 = vpop.f32.mrb[58].mxu1  ;;  %v3600_v2 = vpop.f32.mrb[99].mxu0  ;;  %v2118_v47 = vsub.f32 0.0, %v5752_v0  ;;  %v2124_v0 = vsub.f32 0.0, %v5773_v40 }
 0x4a9   :  { %v3523_v28 = vpop.f32.mrb[59].mxu1  ;;  %v5788_v52 = vadd.f32 %v3600_v2, %v3599_v16  ;;  %v2119_v16 = vsub.f32 0.0, %v5757_v19  ;;  %v2123_v2 = vsub.f32 0.0, %v5770_v26  ;;  %v2125_v19 = vsub.f32 0.0, %v5776_v18 }
 0x4aa   :  { %v3524_v17 = vadd.f32 %v3523_v28, %v3522_v22  ;;  %3993 = vmatprep.mubr.msk.f32.mxu1 %vm1258_vm1, %v1952_v50  ;;  %v2120_v50 = vsub.f32 0.0, %v5761_v59  ;;  %v2122_v22 = vsub.f32 0.0, %v5767_v32  ;;  %v2126_v59 = vsub.f32 0.0, %v5779_v1 }
 0x4ab   :  { %v3602_v27 = vpop.f32.mrb[100].mxu0  ;;  %v2128_v32 = vsub.f32 0.0, %v5785_v20  ;;  %v2129_v26 = vsub.f32 0.0, %v5788_v52  ;;  %v2824_v20 = vld [vmem:[%s6060_s11 + $0x28] sm:$0xff]  ;;  %v2825_v52 = vld [vmem:[%s6060_s11 + $0x30] sm:$0xff] }
 0x4ac   :  { %v1953_v62 = vsub.f32 0.0, %v3524_v17  ;;  %v3525_v39 = vpop.f32.mrb[60].mxu1  ;;  %v3603_v29 = vpop.f32.mrb[101].mxu0  ;;  %v4287_v28 = vpack.c.bf16 %v2824_v20, %v2823_v4  ;;  %v2826_v17 = vld [vmem:[%s6060_s11 + $0x38] sm:$0xff] }
 0x4ad   :  { %v3526_v42 = vpop.f32.mrb[61].mxu1  ;;  %v5791_v6 = vadd.f32 %v3603_v29, %v3602_v27  ;;  %v4291_v27 = vpack.c.bf16 %v2826_v17, %v2825_v52 }
 0x4ae   :  { %v3527_v57 = vadd.f32 %v3526_v42, %v3525_v39  ;;  %3994 = vmatmul.mubr.msk.f32.gmra.mrb[76].mxu1 %vm1258_vm1, %v1953_v62  ;;  %4288 = vmatprep.subr.bf16.mxu0 %v4287_v28  ;;  %v5930_v62 = vld [vmem:[%s6062_s12] ss:$0 sm:$0xff] }
 0x4af   :  { %v3605_v35 = vpop.f32.mrb[102].mxu0  ;;  %v2130_v40 = vsub.f32 0.0, %v5791_v6  ;;  %4290 = vmatpush3.bf16.msra.mxu0 %v4287_v28 }
 0x4b0   :  { %v1954_v46 = vsub.f32 0.0, %v3527_v57  ;;  %v3528_v55 = vpop.f32.mrb[62].mxu1  ;;  %v3606_v51 = vpop.f32.mrb[103].mxu0  ;;  %4292 = vmatprep.subr.bf16.mxu0 %v4291_v27 }
 0x4b1   :  { %v3529_v37 = vpop.f32.mrb[63].mxu1  ;;  %v5794_v56 = vadd.f32 %v3606_v51, %v3605_v35 }
 0x4b2   :  { %v3530_v60 = vadd.f32 %v3529_v37, %v3528_v55  ;;  %3996 = vmatprep.mubr.msk.f32.mxu1 %vm1258_vm1, %v1954_v46 }
 0x4b3   :  { %v3608_v13 = vpop.f32.mrb[104].mxu0  ;;  %v2131_v18 = vsub.f32 0.0, %v5794_v56  ;;  %4294 = vmatpush3.bf16.msra.mxu0 %v4291_v27 }
 0x4b4   :  { %v1955_v38 = vsub.f32 0.0, %v3530_v60  ;;  %v3609_v45 = vpop.f32.mrb[105].mxu0 }
 0x4b5   :  { %v5803_v63 = vadd.f32 %v3609_v45, %v3608_v13 }
 0x4b6   :  { %3997 = vmatmul.mubr.msk.f32.gmra.mrb[78].mxu1 %vm1258_vm1, %v1955_v38 }
 0x4b7   :  { %4007 = vmatprep.mubr.msk.f32.mxu1 %vm392_vm0, %v4427_v61  ;;  %v2132_v1 = vsub.f32 0.0, %v5803_v63 }
 0x4ba   :  { %4008 = vmatmul.mubr.msk.f32.vlgmr.msra.gmra.mrb[64].mxu1 %vm392_vm0, %v4428_v30 }
 0x4bb   :  { %4010 = vmatprep.mubr.msk.f32.mxu1 %vm392_vm0, %v4429_v5  ;;  %4266 = vmatpush3.bf16.msra.mxu1 %v5755_v9  ;;  %v4431_v9 = vld [vmem:[%s6049_s2 + $0x20] sm:$0xff] }
 0x4bc   :  { %4268 = vmatprep.subr.bf16.mxu1 %v4267_v33 }
 0x4be   :  { %4011 = vmatmul.mubr.msk.f32.gmra.mrb[66].mxu1 %vm392_vm0, %v4430_v48 }
 0x4bf   :  { %4013 = vmatprep.mubr.msk.f32.mxu1 %vm392_vm0, %v4431_v9  ;;  %4270 = vmatpush3.bf16.msra.mxu1 %v4267_v33 }
 0x4c0   :  { %4272 = vmatprep.subr.bf16.mxu1 %v4271_v43 }
 0x4c2   :  { %4014 = vmatmul.mubr.msk.f32.gmra.mrb[68].mxu1 %vm392_vm0, %v4432_v14 }
 0x4c3   :  { %4016 = vmatprep.mubr.msk.f32.mxu1 %vm392_vm0, %v4433_v24  ;;  %4274 = vmatpush3.bf16.msra.mxu1 %v4271_v43 }
 0x4c4   :  { %4276 = vmatprep.subr.bf16.mxu1 %v4275_v23 }
 0x4c6   :  { %4017 = vmatmul.mubr.msk.f32.gmra.mrb[70].mxu1 %vm392_vm0, %v4434_v44 }
 0x4c7   :  { %4019 = vmatprep.mubr.msk.f32.mxu1 %vm392_vm0, %v4435_v58  ;;  %4278 = vmatpush3.bf16.msra.mxu1 %v4275_v23 }
 0x4ca   :  { %4020 = vmatmul.mubr.msk.f32.gmra.mrb[72].mxu1 %vm392_vm0, %v4436_v3 }
 0x4cb   :  { %4022 = vmatprep.mubr.msk.f32.mxu1 %vm392_vm0, %v4437_v8 }
 0x4ce   :  { %4023 = vmatmul.mubr.msk.f32.gmra.mrb[74].mxu1 %vm392_vm0, %v4438_v11 }
 0x4cf   :  { %4025 = vmatprep.mubr.msk.f32.mxu1 %vm392_vm0, %v4439_v21 }
 0x4d2   :  { %4026 = vmatmul.mubr.msk.f32.gmra.mrb[76].mxu1 %vm392_vm0, %v4440_v41 }
 0x4d3   :  { %4028 = vmatprep.mubr.msk.f32.mxu1 %vm392_vm0, %v4441_v54 }
 0x4d6   :  { %4029 = vmatmul.mubr.msk.f32.gmra.mrb[78].mxu1 %vm392_vm0, %v4442_v49 }
 0x4d7   :  { %4047 = vmatprep.mubr.msk.f32.mxu1 %vm1258_vm1, %v2117_v15 }
 0x4da   :  { %4048 = vmatmul.mubr.msk.f32.vlgmr.msra.gmra.mrb[64].mxu1 %vm1258_vm1, %v2118_v47 }
 0x4db   :  { %4050 = vmatprep.mubr.msk.f32.mxu1 %vm1258_vm1, %v2119_v16 }
 0x4de   :  { %4051 = vmatmul.mubr.msk.f32.gmra.mrb[66].mxu1 %vm1258_vm1, %v2120_v50 }
 0x4df   :  { %4053 = vmatprep.mubr.msk.f32.mxu1 %vm1258_vm1, %v2121_v25 }
 0x4e2   :  { %4054 = vmatmul.mubr.msk.f32.gmra.mrb[68].mxu1 %vm1258_vm1, %v2122_v22 }
 0x4e3   :  { %4056 = vmatprep.mubr.msk.f32.mxu1 %vm1258_vm1, %v2123_v2 }
 0x4e6   :  { %4057 = vmatmul.mubr.msk.f32.gmra.mrb[70].mxu1 %vm1258_vm1, %v2124_v0 }
 0x4e7   :  { %4059 = vmatprep.mubr.msk.f32.mxu1 %vm1258_vm1, %v2125_v19 }
 0x4ea   :  { %4060 = vmatmul.mubr.msk.f32.gmra.mrb[72].mxu1 %vm1258_vm1, %v2126_v59 }
 0x4eb   :  { %4062 = vmatprep.mubr.msk.f32.mxu1 %vm1258_vm1, %v2127_v36 }
 0x4ee   :  { %4063 = vmatmul.mubr.msk.f32.gmra.mrb[74].mxu1 %vm1258_vm1, %v2128_v32 }
 0x4ef   :  { %4065 = vmatprep.mubr.msk.f32.mxu1 %vm1258_vm1, %v2129_v26 }
 0x4f2   :  { %4066 = vmatmul.mubr.msk.f32.gmra.mrb[76].mxu1 %vm1258_vm1, %v2130_v40 }
 0x4f3   :  { %4068 = vmatprep.mubr.msk.f32.mxu1 %vm1258_vm1, %v2131_v18 }
 0x4f6   :  { %4069 = vmatmul.mubr.msk.f32.gmra.mrb[78].mxu1 %vm1258_vm1, %v2132_v1 }
 0x5ad   :  { %v4049_v39 = vpop.f32.mrb[64].mxu1 }
 0x5ae   :  { %v2756_v29 = vadd.f32 %v4049_v39, %v5930_v62  ;;  %v2653_v42 = vpop.f32.mrb[65].mxu1 }
 0x5af   :  { %v2755_v6 = vadd.f32 %v5930_v62, %v2653_v42 }
 0x5b0   :  { %v2788_v57 = vmul.f32 0.2, %v2756_v29  ;;  %vm2772_vm0 = vcmp.gt.f32.partialorder %v2756_v29, 0.0 }
 0x5b1   :  { %vm2771_vm6 = vcmp.gt.f32.partialorder %v2755_v6, 0.0  ;;  %v2787_v35 = vmul.f32 0.2, %v2755_v6  ;;  %v4052_v46 = vpop.f32.mrb[66].mxu1 }
 0x5b2   :  { %v2758_v55 = vadd.f32 %v4052_v46, %v5930_v62  ;;  %v2663_v51 = vpop.f32.mrb[67].mxu1  ;;  %v2804_v60 = vsel %vm2772_vm0, %v2756_v29, %v2788_v57 }
 0x5b3   :  { %v2757_v37 = vadd.f32 %v5930_v62, %v2663_v51  ;;  %v2803_v56 = vsel %vm2771_vm6, %v2755_v6, %v2787_v35 }
 0x5b4   :  { %v2790_v13 = vmul.f32 0.2, %v2758_v55  ;;  %4087 = vmatprep.mubr.msk.f32.mxu0 %vm1258_vm1, %v2803_v56  ;;  %vm2774_vm7 = vcmp.gt.f32.partialorder %v2758_v55, 0.0 }
 0x5b5   :  { %vm2773_vm8 = vcmp.gt.f32.partialorder %v2757_v37, 0.0  ;;  %v2789_v38 = vmul.f32 0.2, %v2757_v37  ;;  %v4055_v45 = vpop.f32.mrb[68].mxu1  ;;  %4088 = vmatmul.mubr.msk.f32.vlgmr.msra.gmra.mrb[106].mxu0 %vm1258_vm1, %v2804_v60 }
 0x5b6   :  { %v2760_v53 = vadd.f32 %v4055_v45, %v5930_v62  ;;  %v2673_v12 = vpop.f32.mrb[69].mxu1  ;;  %v2806_v10 = vsel %vm2774_vm7, %v2758_v55, %v2790_v13 }
 0x5b7   :  { %v2759_v63 = vadd.f32 %v5930_v62, %v2673_v12  ;;  %v2805_v61 = vsel %vm2773_vm8, %v2757_v37, %v2789_v38 }
 0x5b8   :  { %v2792_v33 = vmul.f32 0.2, %v2760_v53  ;;  %4090 = vmatprep.mubr.msk.f32.mxu0 %vm1258_vm1, %v2805_v61  ;;  %vm2776_vm9 = vcmp.gt.f32.partialorder %v2760_v53, 0.0 }
 0x5b9   :  { %vm2775_vm10 = vcmp.gt.f32.partialorder %v2759_v63, 0.0  ;;  %v2791_v34 = vmul.f32 0.2, %v2759_v63  ;;  %v4058_v30 = vpop.f32.mrb[70].mxu1  ;;  %4091 = vmatmul.mubr.msk.f32.gmra.mrb[108].mxu0 %vm1258_vm1, %v2806_v10 }
 0x5ba   :  { %v2762_v5 = vadd.f32 %v4058_v30, %v5930_v62  ;;  %v2683_v43 = vpop.f32.mrb[71].mxu1  ;;  %v2808_v9 = vsel %vm2776_vm9, %v2760_v53, %v2792_v33 }
 0x5bb   :  { %v2761_v7 = vadd.f32 %v5930_v62, %v2683_v43  ;;  %v2807_v31 = vsel %vm2775_vm10, %v2759_v63, %v2791_v34 }
 0x5bc   :  { %v2794_v48 = vmul.f32 0.2, %v2762_v5  ;;  %4093 = vmatprep.mubr.msk.f32.mxu0 %vm1258_vm1, %v2807_v31  ;;  %vm2778_vm11 = vcmp.gt.f32.partialorder %v2762_v5, 0.0 }
 0x5bd   :  { %vm2777_vm12 = vcmp.gt.f32.partialorder %v2761_v7, 0.0  ;;  %v2793_v23 = vmul.f32 0.2, %v2761_v7  ;;  %v4061_v14 = vpop.f32.mrb[72].mxu1  ;;  %4094 = vmatmul.mubr.msk.f32.gmra.mrb[110].mxu0 %vm1258_vm1, %v2808_v9 }
 0x5be   :  { %v2764_v24 = vadd.f32 %v4061_v14, %v5930_v62  ;;  %v2693_v44 = vpop.f32.mrb[73].mxu1  ;;  %v2810_v11 = vsel %vm2778_vm11, %v2762_v5, %v2794_v48 }
 0x5bf   :  { %v2763_v58 = vadd.f32 %v5930_v62, %v2693_v44  ;;  %v2809_v3 = vsel %vm2777_vm12, %v2761_v7, %v2793_v23 }
 0x5c0   :  { %v2796_v8 = vmul.f32 0.2, %v2764_v24  ;;  %4096 = vmatprep.mubr.msk.f32.mxu0 %vm1258_vm1, %v2809_v3  ;;  %vm2780_vm13 = vcmp.gt.f32.partialorder %v2764_v24, 0.0 }
 0x5c1   :  { %vm2779_vm14 = vcmp.gt.f32.partialorder %v2763_v58, 0.0  ;;  %v2795_v21 = vmul.f32 0.2, %v2763_v58  ;;  %v4064_v41 = vpop.f32.mrb[74].mxu1  ;;  %4097 = vmatmul.mubr.msk.f32.gmra.mrb[112].mxu0 %vm1258_vm1, %v2810_v11 }
 0x5c2   :  { %v2766_v54 = vadd.f32 %v4064_v41, %v5930_v62  ;;  %v2703_v15 = vpop.f32.mrb[75].mxu1  ;;  %v2812_v50 = vsel %vm2780_vm13, %v2764_v24, %v2796_v8 }
 0x5c3   :  { %v2765_v49 = vadd.f32 %v5930_v62, %v2703_v15  ;;  %v2811_v47 = vsel %vm2779_vm14, %v2763_v58, %v2795_v21 }
 0x5c4   :  { %v2798_v16 = vmul.f32 0.2, %v2766_v54  ;;  %4099 = vmatprep.mubr.msk.f32.mxu0 %vm1258_vm1, %v2811_v47  ;;  %vm2782_vm15 = vcmp.gt.f32.partialorder %v2766_v54, 0.0 }
 0x5c5   :  { %vm2781_vm2 = vcmp.gt.f32.partialorder %v2765_v49, 0.0  ;;  %v2797_v25 = vmul.f32 0.2, %v2765_v49  ;;  %v4067_v22 = vpop.f32.mrb[76].mxu1  ;;  %4100 = vmatmul.mubr.msk.f32.gmra.mrb[114].mxu0 %vm1258_vm1, %v2812_v50 }
 0x5c6   :  { %v2768_v2 = vadd.f32 %v4067_v22, %v5930_v62  ;;  %v2713_v0 = vpop.f32.mrb[77].mxu1  ;;  %v2814_v32 = vsel %vm2782_vm15, %v2766_v54, %v2798_v16 }
 0x5c7   :  { %v2767_v19 = vadd.f32 %v5930_v62, %v2713_v0  ;;  %v2813_v59 = vsel %vm2781_vm2, %v2765_v49, %v2797_v25 }
 0x5c8   :  { %v2800_v36 = vmul.f32 0.2, %v2768_v2  ;;  %4102 = vmatprep.mubr.msk.f32.mxu0 %vm1258_vm1, %v2813_v59  ;;  %vm2784_vm3 = vcmp.gt.f32.partialorder %v2768_v2, 0.0 }
 0x5c9   :  { %vm2783_vm4 = vcmp.gt.f32.partialorder %v2767_v19, 0.0  ;;  %v2799_v26 = vmul.f32 0.2, %v2767_v19  ;;  %v4070_v40 = vpop.f32.mrb[78].mxu1  ;;  %4103 = vmatmul.mubr.msk.f32.gmra.mrb[116].mxu0 %vm1258_vm1, %v2814_v32 }
 0x5ca   :  { %v2770_v18 = vadd.f32 %v4070_v40, %v5930_v62  ;;  %v2723_v1 = vpop.f32.mrb[79].mxu1  ;;  %v2816_v52 = vsel %vm2784_vm3, %v2768_v2, %v2800_v36 }
 0x5cb   :  { %v2769_v4 = vadd.f32 %v5930_v62, %v2723_v1  ;;  %v2815_v20 = vsel %vm2783_vm4, %v2767_v19, %v2799_v26  ;;  %v5967_v62 = vld [vmem:[%s6063_s13] ss:$0 sm:$0xff] }
 0x5cc   :  { %v2802_v28 = vmul.f32 0.2, %v2770_v18  ;;  %4105 = vmatprep.mubr.msk.f32.mxu0 %vm1258_vm1, %v2815_v20  ;;  %vm2786_vm5 = vcmp.gt.f32.partialorder %v2770_v18, 0.0 }
 0x5cd   :  { %vm2785_vm0 = vcmp.gt.f32.partialorder %v2769_v4, 0.0  ;;  %v2801_v17 = vmul.f32 0.2, %v2769_v4  ;;  %4106 = vmatmul.mubr.msk.f32.gmra.mrb[118].mxu0 %vm1258_vm1, %v2816_v52 }
 0x5ce   :  { %v2818_v39 = vsel %vm2786_vm5, %v2770_v18, %v2802_v28 }
 0x5cf   :  { %v2817_v27 = vsel %vm2785_vm0, %v2769_v4, %v2801_v17 }
 0x5d0   :  { %4108 = vmatprep.mubr.msk.f32.mxu0 %vm1258_vm1, %v2817_v27 }
 0x5d1   :  { %4109 = vmatmul.mubr.msk.f32.gmra.mrb[120].mxu0 %vm1258_vm1, %v2818_v39 }
 0x688   :  { %v4089_v29 = vpop.f32.mrb[106].mxu0 }
 0x689   :  { %v2954_v42 = vadd.f32 %v4089_v29, %v5967_v62  ;;  %v2948_v6 = vpop.f32.mrb[107].mxu0 }
 0x68a   :  { %v2949_v57 = vadd.f32 %v5967_v62, %v2948_v6 }
 0x68b   :  { %vm3028_vm6 = vcmp.gt.f32.partialorder %v2954_v42, 0.0  ;;  %v3044_v35 = vmul.f32 0.2, %v2954_v42 }
 0x68c   :  { %vm3027_vm7 = vcmp.gt.f32.partialorder %v2949_v57, 0.0  ;;  %v3043_v46 = vmul.f32 0.2, %v2949_v57  ;;  %v4092_v55 = vpop.f32.mrb[108].mxu0 }
 0x68d   :  { %v3060_v51 = vsel %vm3028_vm6, %v2954_v42, %v3044_v35  ;;  %v2964_v37 = vadd.f32 %v4092_v55, %v5967_v62  ;;  %v2958_v56 = vpop.f32.mrb[109].mxu0 }
 0x68e   :  { %3076 = vst.msk [vmem:[%s6057_s14 + $0x8] sm:$0xff] %vm1258_vm1, %v3060_v51  ;;  %v3059_v60 = vsel %vm3027_vm7, %v2949_v57, %v3043_v46  ;;  %v2959_v13 = vadd.f32 %v5967_v62, %v2958_v56 }
 0x68f   :  { %3075 = vst.msk [vmem:[%s6057_s14] sm:$0xff] %vm1258_vm1, %v3059_v60  ;;  %vm3030_vm8 = vcmp.gt.f32.partialorder %v2964_v37, 0.0  ;;  %v3046_v38 = vmul.f32 0.2, %v2964_v37 }
 0x690   :  { %vm3029_vm9 = vcmp.gt.f32.partialorder %v2959_v13, 0.0  ;;  %v3045_v45 = vmul.f32 0.2, %v2959_v13  ;;  %v4095_v53 = vpop.f32.mrb[110].mxu0 }
 0x691   :  { %v3062_v12 = vsel %vm3030_vm8, %v2964_v37, %v3046_v38  ;;  %v2974_v63 = vadd.f32 %v4095_v53, %v5967_v62  ;;  %v2968_v61 = vpop.f32.mrb[111].mxu0 }
 0x692   :  { %3078 = vst.msk [vmem:[%s6057_s14 + $0x18] sm:$0xff] %vm1258_vm1, %v3062_v12  ;;  %v3061_v33 = vsel %vm3029_vm9, %v2959_v13, %v3045_v45  ;;  %v2969_v10 = vadd.f32 %v5967_v62, %v2968_v61 }
 0x693   :  { %3077 = vst.msk [vmem:[%s6057_s14 + $0x10] sm:$0xff] %vm1258_vm1, %v3061_v33  ;;  %vm3032_vm10 = vcmp.gt.f32.partialorder %v2974_v63, 0.0  ;;  %v3048_v34 = vmul.f32 0.2, %v2974_v63 }
 0x694   :  { %vm3031_vm11 = vcmp.gt.f32.partialorder %v2969_v10, 0.0  ;;  %v3047_v30 = vmul.f32 0.2, %v2969_v10  ;;  %v4098_v5 = vpop.f32.mrb[112].mxu0 }
 0x695   :  { %v3064_v43 = vsel %vm3032_vm10, %v2974_v63, %v3048_v34  ;;  %v2984_v7 = vadd.f32 %v4098_v5, %v5967_v62  ;;  %v2978_v31 = vpop.f32.mrb[113].mxu0 }
 0x696   :  { %3080 = vst.msk [vmem:[%s6057_s14 + $0x28] sm:$0xff] %vm1258_vm1, %v3064_v43  ;;  %v3063_v48 = vsel %vm3031_vm11, %v2969_v10, %v3047_v30  ;;  %v2979_v9 = vadd.f32 %v5967_v62, %v2978_v31 }
 0x697   :  { %3079 = vst.msk [vmem:[%s6057_s14 + $0x20] sm:$0xff] %vm1258_vm1, %v3063_v48  ;;  %vm3034_vm12 = vcmp.gt.f32.partialorder %v2984_v7, 0.0  ;;  %v3050_v23 = vmul.f32 0.2, %v2984_v7 }
 0x698   :  { %vm3033_vm13 = vcmp.gt.f32.partialorder %v2979_v9, 0.0  ;;  %v3049_v14 = vmul.f32 0.2, %v2979_v9  ;;  %v4101_v24 = vpop.f32.mrb[114].mxu0 }
 0x699   :  { %v3066_v44 = vsel %vm3034_vm12, %v2984_v7, %v3050_v23  ;;  %v2994_v58 = vadd.f32 %v4101_v24, %v5967_v62  ;;  %v2988_v3 = vpop.f32.mrb[115].mxu0 }
 0x69a   :  { %3082 = vst.msk [vmem:[%s6057_s14 + $0x38] sm:$0xff] %vm1258_vm1, %v3066_v44  ;;  %v3065_v8 = vsel %vm3033_vm13, %v2979_v9, %v3049_v14  ;;  %v2989_v11 = vadd.f32 %v5967_v62, %v2988_v3 }
 0x69b   :  { %3081 = vst.msk [vmem:[%s6057_s14 + $0x30] sm:$0xff] %vm1258_vm1, %v3065_v8  ;;  %vm3036_vm14 = vcmp.gt.f32.partialorder %v2994_v58, 0.0  ;;  %v3052_v21 = vmul.f32 0.2, %v2994_v58 }
 0x69c   :  { %vm3035_vm15 = vcmp.gt.f32.partialorder %v2989_v11, 0.0  ;;  %v3051_v41 = vmul.f32 0.2, %v2989_v11  ;;  %v4104_v54 = vpop.f32.mrb[116].mxu0 }
 0x69d   :  { %v3068_v15 = vsel %vm3036_vm14, %v2994_v58, %v3052_v21  ;;  %v3004_v49 = vadd.f32 %v4104_v54, %v5967_v62  ;;  %v2998_v47 = vpop.f32.mrb[117].mxu0 }
 0x69e   :  { %3084 = vst.msk [vmem:[%s6057_s14 + $0x48] sm:$0xff] %vm1258_vm1, %v3068_v15  ;;  %v3067_v16 = vsel %vm3035_vm15, %v2989_v11, %v3051_v41  ;;  %v2999_v50 = vadd.f32 %v5967_v62, %v2998_v47 }
 0x69f   :  { %3083 = vst.msk [vmem:[%s6057_s14 + $0x40] sm:$0xff] %vm1258_vm1, %v3067_v16  ;;  %vm3038_vm2 = vcmp.gt.f32.partialorder %v3004_v49, 0.0  ;;  %v3054_v25 = vmul.f32 0.2, %v3004_v49 }
 0x6a0   :  { %vm3037_vm3 = vcmp.gt.f32.partialorder %v2999_v50, 0.0  ;;  %v3053_v22 = vmul.f32 0.2, %v2999_v50  ;;  %v4107_v2 = vpop.f32.mrb[118].mxu0 }
 0x6a1   :  { %v3070_v0 = vsel %vm3038_vm2, %v3004_v49, %v3054_v25  ;;  %v3014_v19 = vadd.f32 %v4107_v2, %v5967_v62  ;;  %v3008_v59 = vpop.f32.mrb[119].mxu0 }
 0x6a2   :  { %3086 = vst.msk [vmem:[%s6057_s14 + $0x58] sm:$0xff] %vm1258_vm1, %v3070_v0  ;;  %v3069_v36 = vsel %vm3037_vm3, %v2999_v50, %v3053_v22  ;;  %v3009_v32 = vadd.f32 %v5967_v62, %v3008_v59 }
 0x6a3   :  { %3085 = vst.msk [vmem:[%s6057_s14 + $0x50] sm:$0xff] %vm1258_vm1, %v3069_v36  ;;  %vm3040_vm4 = vcmp.gt.f32.partialorder %v3014_v19, 0.0  ;;  %v3056_v26 = vmul.f32 0.2, %v3014_v19 }
 0x6a4   :  { %vm3039_vm5 = vcmp.gt.f32.partialorder %v3009_v32, 0.0  ;;  %v3055_v40 = vmul.f32 0.2, %v3009_v32  ;;  %v4110_v18 = vpop.f32.mrb[120].mxu0 }
 0x6a5   :  { %v3072_v1 = vsel %vm3040_vm4, %v3014_v19, %v3056_v26  ;;  %v3024_v4 = vadd.f32 %v4110_v18, %v5967_v62  ;;  %v3018_v20 = vpop.f32.mrb[121].mxu0 }
 0x6a6   :  { %3088 = vst.msk [vmem:[%s6057_s14 + $0x68] sm:$0xff] %vm1258_vm1, %v3072_v1  ;;  %v3071_v28 = vsel %vm3039_vm5, %v3009_v32, %v3055_v40  ;;  %v3019_v52 = vadd.f32 %v5967_v62, %v3018_v20 }
 0x6a7   :  { %3087 = vst.msk [vmem:[%s6057_s14 + $0x60] sm:$0xff] %vm1258_vm1, %v3071_v28  ;;  %vm3042_vm0 = vcmp.gt.f32.partialorder %v3024_v4, 0.0  ;;  %v3058_v17 = vmul.f32 0.2, %v3024_v4 }
 0x6a8   :  { %vm3041_vm6 = vcmp.gt.f32.partialorder %v3019_v52, 0.0  ;;  %v3057_v27 = vmul.f32 0.2, %v3019_v52 }
 0x6a9   :  { %v3074_v39 = vsel %vm3042_vm0, %v3024_v4, %v3058_v17 }
 0x6aa   :  { %3090 = vst.msk [vmem:[%s6057_s14 + $0x78] sm:$0xff] %vm1258_vm1, %v3074_v39  ;;  %v3073_v29 = vsel %vm3041_vm6, %v3019_v52, %v3057_v27 }
 0x6ab   :  { %3089 = vst.msk [vmem:[%s6057_s14 + $0x70] sm:$0xff] %vm1258_vm1, %v3073_v29 }

// kernel: deltanet_segmentation.4
= control target key start
LH: loop header
LB: loop body
LE: loop exit
PB: predicated region body
PF: predicated region fallthrough
CT: control target
= control target key end

     0   :  { %vm451_vm0 = vcmask 1043456   ;;  %vm354_vm1 = vcmask 31744   ;;  %vm1125_vm2 = vcmask 130048   ;;  %s5553_s2 = inlined_call_operand.vmem [shape: f32[128,4], index: 2, kind: input, shape index: {}]   ;;  %s5554_s0 = inlined_call_operand.vmem [shape: f32[256,128], index: 0, kind: input, shape index: {}]   ;;  %s5555_s4 = inlined_call_operand.vmem [shape: f32[4,16], index: 4, kind: input, shape index: {}]   ;;  %s5556_s3 = inlined_call_operand.vmem [shape: f32[4,16], index: 3, kind: input, shape index: {}]   ;;  %s5557_s5 = inlined_call_operand.vmem [shape: f32[16,16], index: 5, kind: input, shape index: {}]   ;;  %s5558_s6 = inlined_call_operand.vmem [shape: f32[1,16], index: 6, kind: input, shape index: {}]   ;;  %s5559_s1 = inlined_call_operand.vmem [shape: f32[128,256], index: 1, kind: input, shape index: {}]   ;;  %s5560_s7 = inlined_call_operand.vmem [shape: f32[1,16], index: 7, kind: input, shape index: {}]   ;;  %s5561_s14 = inlined_call_operand.vmem [shape: f32[384,16], index: 14, kind: output, shape index: {}]   ;;  %s5562_s9 = inlined_call_operand.vmem [shape: f32[16,16], index: 9, kind: input, shape index: {}]   ;;  %s5563_s8 = inlined_call_operand.vmem [shape: f32[4,16], index: 8, kind: input, shape index: {}]   ;;  %s5564_s10 = inlined_call_operand.vmem [shape: f32[16,16], index: 10, kind: input, shape index: {}]   ;;  %s5565_s11 = inlined_call_operand.vmem [shape: f32[16,16], index: 11, kind: input, shape index: {}]   ;;  %s5566_s12 = inlined_call_operand.vmem [shape: f32[1,16], index: 12, kind: input, shape index: {}]   ;;  %s5567_s13 = inlined_call_operand.vmem [shape: f32[1,16], index: 13, kind: input, shape index: {}]  }
   0x1   :  { %v47_v0 = vld [vmem:[%s5553_s2] sm:$0xff]  ;;  %v48_v1 = vld [vmem:[%s5553_s2 + $0x8] sm:$0xff]  ;;  %v49_v2 = vld [vmem:[%s5553_s2 + $0x10] sm:$0xff] }
   0x2   :  { %v3864_v3 = vpack.c.bf16 %v48_v1, %v47_v0  ;;  %v50_v4 = vld [vmem:[%s5553_s2 + $0x18] sm:$0xff]  ;;  %v51_v6 = vld [vmem:[%s5553_s2 + $0x20] sm:$0xff]  ;;  %v52_v7 = vld [vmem:[%s5553_s2 + $0x28] sm:$0xff] }
   0x3   :  { %v3868_v5 = vpack.c.bf16 %v50_v4, %v49_v2  ;;  %v3872_v8 = vpack.c.bf16 %v52_v7, %v51_v6  ;;  %v63_v9 = vld [vmem:[%s5554_s0] sm:$0xff]  ;;  %v53_v10 = vld [vmem:[%s5553_s2 + $0x30] sm:$0xff]  ;;  %v54_v11 = vld [vmem:[%s5553_s2 + $0x38] sm:$0xff] }
   0x4   :  { %3865 = vmatprep.subr.bf16.mxu0 %v3864_v3  ;;  %3554 = vmatprep.mubr.f32.mxu0 %v63_v9  ;;  %v3876_v12 = vpack.c.bf16 %v54_v11, %v53_v10  ;;  %v55_v13 = vld [vmem:[%s5553_s2 + $0x40] sm:$0xff]  ;;  %v56_v14 = vld [vmem:[%s5553_s2 + $0x48] sm:$0xff]  ;;  %v57_v16 = vld [vmem:[%s5553_s2 + $0x50] sm:$0xff] }
   0x5   :  { %3867 = vmatpush3.bf16.msra.mxu0 %v3864_v3  ;;  %v3880_v15 = vpack.c.bf16 %v56_v14, %v55_v13  ;;  %v58_v17 = vld [vmem:[%s5553_s2 + $0x58] sm:$0xff]  ;;  %v59_v19 = vld [vmem:[%s5553_s2 + $0x60] sm:$0xff]  ;;  %v60_v20 = vld [vmem:[%s5553_s2 + $0x68] sm:$0xff] }
   0x6   :  { %3869 = vmatprep.subr.bf16.mxu0 %v3868_v5  ;;  %v3884_v18 = vpack.c.bf16 %v58_v17, %v57_v16  ;;  %v3888_v21 = vpack.c.bf16 %v60_v20, %v59_v19  ;;  %v61_v22 = vld [vmem:[%s5553_s2 + $0x70] sm:$0xff]  ;;  %v62_v23 = vld [vmem:[%s5553_s2 + $0x78] sm:$0xff]  ;;  %v64_v25 = vld [vmem:[%s5554_s0 + $0x8] sm:$0xff] }
   0x7   :  { %v3892_v24 = vpack.c.bf16 %v62_v23, %v61_v22  ;;  %v65_v26 = vld [vmem:[%s5554_s0 + $0x10] sm:$0xff]  ;;  %v66_v27 = vld [vmem:[%s5554_s0 + $0x18] sm:$0xff]  ;;  %v67_v28 = vld [vmem:[%s5554_s0 + $0x20] sm:$0xff] }
   0x8   :  { %v68_v29 = vld [vmem:[%s5554_s0 + $0x28] sm:$0xff]  ;;  %v69_v30 = vld [vmem:[%s5554_s0 + $0x30] sm:$0xff]  ;;  %v70_v31 = vld [vmem:[%s5554_s0 + $0x38] sm:$0xff] }
   0x9   :  { %3871 = vmatpush3.bf16.msra.mxu0 %v3868_v5  ;;  %v71_v32 = vld [vmem:[%s5554_s0 + $0x40] sm:$0xff]  ;;  %v72_v33 = vld [vmem:[%s5554_s0 + $0x48] sm:$0xff]  ;;  %v73_v34 = vld [vmem:[%s5554_s0 + $0x50] sm:$0xff] }
   0xa   :  { %3873 = vmatprep.subr.bf16.mxu0 %v3872_v8  ;;  %v74_v35 = vld [vmem:[%s5554_s0 + $0x58] sm:$0xff]  ;;  %v75_v36 = vld [vmem:[%s5554_s0 + $0x60] sm:$0xff]  ;;  %v76_v37 = vld [vmem:[%s5554_s0 + $0x68] sm:$0xff] }
   0xb   :  { %v77_v38 = vld [vmem:[%s5554_s0 + $0x70] sm:$0xff]  ;;  %v78_v39 = vld [vmem:[%s5554_s0 + $0x78] sm:$0xff]  ;;  %v79_v40 = vld [vmem:[%s5554_s0 + $0x80] sm:$0xff] }
   0xc   :  { %v80_v41 = vld [vmem:[%s5554_s0 + $0x88] sm:$0xff]  ;;  %v81_v42 = vld [vmem:[%s5554_s0 + $0x90] sm:$0xff]  ;;  %v82_v43 = vld [vmem:[%s5554_s0 + $0x98] sm:$0xff] }
   0xd   :  { %3875 = vmatpush3.bf16.msra.mxu0 %v3872_v8  ;;  %v83_v44 = vld [vmem:[%s5554_s0 + $0xa0] sm:$0xff]  ;;  %v84_v45 = vld [vmem:[%s5554_s0 + $0xa8] sm:$0xff]  ;;  %v85_v46 = vld [vmem:[%s5554_s0 + $0xb0] sm:$0xff] }
   0xe   :  { %3877 = vmatprep.subr.bf16.mxu0 %v3876_v12  ;;  %v86_v47 = vld [vmem:[%s5554_s0 + $0xb8] sm:$0xff]  ;;  %v87_v48 = vld [vmem:[%s5554_s0 + $0xc0] sm:$0xff]  ;;  %v88_v49 = vld [vmem:[%s5554_s0 + $0xc8] sm:$0xff] }
   0xf   :  { %v89_v50 = vld [vmem:[%s5554_s0 + $0xd0] sm:$0xff]  ;;  %v90_v51 = vld [vmem:[%s5554_s0 + $0xd8] sm:$0xff]  ;;  %v91_v52 = vld [vmem:[%s5554_s0 + $0xe0] sm:$0xff] }
  0x10   :  { %v92_v53 = vld [vmem:[%s5554_s0 + $0xe8] sm:$0xff]  ;;  %v93_v54 = vld [vmem:[%s5554_s0 + $0xf0] sm:$0xff]  ;;  %v94_v55 = vld [vmem:[%s5554_s0 + $0xf8] sm:$0xff] }
  0x11   :  { %3879 = vmatpush3.bf16.msra.mxu0 %v3876_v12  ;;  %v353_v56 = vld [vmem:[%s5555_s4] sm:$0xf] }
  0x12   :  { %3881 = vmatprep.subr.bf16.mxu0 %v3880_v15  ;;  %3976 = vmatprep.subr.msk.mxu1 %vm451_vm0, %v353_v56  ;;  %v352_v57 = vld [vmem:[%s5556_s3] sm:$0xf] }
  0x13   :  { %3977 = vmatpush3.msk.msra.mxu1 %vm451_vm0, %v353_v56 }
  0x14   :  { %3652 = vmatprep.subr.msk.mxu1 %vm451_vm0, %v352_v57 }
  0x15   :  { %3883 = vmatpush3.bf16.msra.mxu0 %v3880_v15 }
  0x16   :  { %3885 = vmatprep.subr.bf16.mxu0 %v3884_v18 }
  0x19   :  { %3887 = vmatpush3.bf16.msra.mxu0 %v3884_v18 }
  0x1a   :  { %3889 = vmatprep.subr.bf16.mxu0 %v3888_v21 }
  0x1d   :  { %3891 = vmatpush3.bf16.msra.mxu0 %v3888_v21 }
  0x1e   :  { %3893 = vmatprep.subr.bf16.mxu0 %v3892_v24 }
  0x21   :  { %3895 = vmatpush3.bf16.msra.mxu0 %v3892_v24 }
  0x22   :  { %3602 = vmatprep.subr.msk.mxu0 %vm451_vm0, %v353_v56 }
  0x24   :  { %3555 = vmatmul.mubr.f32.vlgmr.msra.gmra.mrb[0].mxu0 %v64_v25 }
  0x25   :  { %3557 = vmatprep.mubr.f32.mxu0 %v65_v26  ;;  %3603 = vmatpush3.msk.msra.mxu0 %vm451_vm0, %v353_v56 }
  0x28   :  { %3558 = vmatmul.mubr.f32.gmra.mrb[2].mxu0 %v66_v27 }
  0x29   :  { %3560 = vmatprep.mubr.f32.mxu0 %v67_v28 }
  0x2c   :  { %3561 = vmatmul.mubr.f32.gmra.mrb[4].mxu0 %v68_v29 }
  0x2d   :  { %3563 = vmatprep.mubr.f32.mxu0 %v69_v30 }
  0x30   :  { %3564 = vmatmul.mubr.f32.gmra.mrb[6].mxu0 %v70_v31  ;;  %v1123_v31 = vld [vmem:[%s5557_s5] sm:$0xff] }
  0x31   :  { %3566 = vmatprep.mubr.f32.mxu0 %v71_v32  ;;  %v1124_v32 = vld [vmem:[%s5557_s5 + $0x8] sm:$0xff] }
  0x34   :  { %3567 = vmatmul.mubr.f32.gmra.mrb[8].mxu0 %v72_v33 }
  0x35   :  { %3569 = vmatprep.mubr.f32.mxu0 %v73_v34  ;;  %v3896_v34 = vpack.c.bf16 %v1124_v32, %v1123_v31 }
  0x37   :  { %3897 = vmatprep.subr.bf16.mxu0 %v3896_v34 }
  0x38   :  { %3570 = vmatmul.mubr.f32.gmra.mrb[10].mxu0 %v74_v35 }
  0x39   :  { %3572 = vmatprep.mubr.f32.mxu0 %v75_v36 }
  0x3c   :  { %3573 = vmatmul.mubr.f32.gmra.mrb[12].mxu0 %v76_v37 }
  0x3d   :  { %3575 = vmatprep.mubr.f32.mxu0 %v77_v38 }
  0x40   :  { %3576 = vmatmul.mubr.f32.gmra.mrb[14].mxu0 %v78_v39 }
  0x41   :  { %3578 = vmatprep.mubr.f32.mxu0 %v79_v40 }
  0x44   :  { %3579 = vmatmul.mubr.f32.gmra.mrb[16].mxu0 %v80_v41 }
  0x45   :  { %3581 = vmatprep.mubr.f32.mxu0 %v81_v42 }
  0x48   :  { %3582 = vmatmul.mubr.f32.gmra.mrb[18].mxu0 %v82_v43 }
  0x49   :  { %3584 = vmatprep.mubr.f32.mxu0 %v83_v44 }
  0x4c   :  { %3585 = vmatmul.mubr.f32.gmra.mrb[20].mxu0 %v84_v45 }
  0x4d   :  { %3587 = vmatprep.mubr.f32.mxu0 %v85_v46 }
  0x50   :  { %3588 = vmatmul.mubr.f32.gmra.mrb[22].mxu0 %v86_v47 }
  0x51   :  { %3590 = vmatprep.mubr.f32.mxu0 %v87_v48 }
  0x54   :  { %3591 = vmatmul.mubr.f32.gmra.mrb[24].mxu0 %v88_v49 }
  0x55   :  { %3593 = vmatprep.mubr.f32.mxu0 %v89_v50 }
  0x58   :  { %3594 = vmatmul.mubr.f32.gmra.mrb[26].mxu0 %v90_v51 }
  0x59   :  { %3596 = vmatprep.mubr.f32.mxu0 %v91_v52 }
  0x5c   :  { %3597 = vmatmul.mubr.f32.gmra.mrb[28].mxu0 %v92_v53 }
  0x5d   :  { %3599 = vmatprep.mubr.f32.mxu0 %v93_v54 }
  0x60   :  { %3600 = vmatmul.mubr.f32.gmra.mrb[30].mxu0 %v94_v55 }
  0xf7   :  { %v4352_v58 = vpop.f32.mrb[0].mxu0 }
  0xf8   :  { %v4354_v59 = vpop.f32.mrb[1].mxu0 }
  0xf9   :  { %3604 = vmatprep.mubr.msk.f32.mxu0 %vm354_vm1, %v4354_v59 }
  0xfa   :  { %3605 = vmatmul.mubr.msk.f32.vlgmr.msra.gmra.mrb[32].mxu0 %vm354_vm1, %v4352_v58 }
  0xfb   :  { %v4360_v60 = vpop.f32.mrb[2].mxu0  ;;  %3899 = vmatpush3.bf16.msra.mxu0 %v3896_v34 }
  0xfc   :  { %v203_v61 = vpop.f32.mrb[3].mxu0 }
  0xfd   :  { %3607 = vmatprep.mubr.msk.f32.mxu0 %vm354_vm1, %v203_v61 }
  0xfe   :  { %3608 = vmatmul.mubr.msk.f32.gmra.mrb[34].mxu0 %vm354_vm1, %v4360_v60 }
  0xff   :  { %v3562_v62 = vpop.f32.mrb[4].mxu0 }
 0x100   :  { %v213_v63 = vpop.f32.mrb[5].mxu0 }
 0x101   :  { %3610 = vmatprep.mubr.msk.f32.mxu0 %vm354_vm1, %v213_v63 }
 0x102   :  { %3611 = vmatmul.mubr.msk.f32.gmra.mrb[36].mxu0 %vm354_vm1, %v3562_v62 }
 0x103   :  { %v3565_v0 = vpop.f32.mrb[6].mxu0 }
 0x104   :  { %v223_v1 = vpop.f32.mrb[7].mxu0 }
 0x105   :  { %3613 = vmatprep.mubr.msk.f32.mxu0 %vm354_vm1, %v223_v1 }
 0x106   :  { %3614 = vmatmul.mubr.msk.f32.gmra.mrb[38].mxu0 %vm354_vm1, %v3565_v0 }
 0x107   :  { %v3568_v2 = vpop.f32.mrb[8].mxu0 }
 0x108   :  { %v233_v3 = vpop.f32.mrb[9].mxu0 }
 0x109   :  { %3616 = vmatprep.mubr.msk.f32.mxu1 %vm354_vm1, %v233_v3 }
 0x10a   :  { %3617 = vmatmul.mubr.msk.f32.vlgmr.msra.gmra.mrb[0].mxu1 %vm354_vm1, %v3568_v2 }
 0x10b   :  { %v3571_v4 = vpop.f32.mrb[10].mxu0  ;;  %3653 = vmatpush3.msk.msra.mxu1 %vm451_vm0, %v352_v57 }
 0x10c   :  { %v243_v5 = vpop.f32.mrb[11].mxu0 }
 0x10d   :  { %3619 = vmatprep.mubr.msk.f32.mxu1 %vm354_vm1, %v243_v5 }
 0x10e   :  { %3620 = vmatmul.mubr.msk.f32.gmra.mrb[2].mxu1 %vm354_vm1, %v3571_v4 }
 0x10f   :  { %v3574_v6 = vpop.f32.mrb[12].mxu0 }
 0x110   :  { %v253_v7 = vpop.f32.mrb[13].mxu0 }
 0x111   :  { %3622 = vmatprep.mubr.msk.f32.mxu1 %vm354_vm1, %v253_v7 }
 0x112   :  { %3623 = vmatmul.mubr.msk.f32.gmra.mrb[4].mxu1 %vm354_vm1, %v3574_v6 }
 0x113   :  { %v3577_v8 = vpop.f32.mrb[14].mxu0 }
 0x114   :  { %v263_v9 = vpop.f32.mrb[15].mxu0 }
 0x115   :  { %3625 = vmatprep.mubr.msk.f32.mxu1 %vm354_vm1, %v263_v9 }
 0x116   :  { %3626 = vmatmul.mubr.msk.f32.gmra.mrb[6].mxu1 %vm354_vm1, %v3577_v8 }
 0x117   :  { %v3580_v10 = vpop.f32.mrb[16].mxu0 }
 0x118   :  { %v273_v11 = vpop.f32.mrb[17].mxu0 }
 0x119   :  { %3628 = vmatprep.mubr.msk.f32.mxu1 %vm354_vm1, %v273_v11 }
 0x11a   :  { %3629 = vmatmul.mubr.msk.f32.gmra.mrb[8].mxu1 %vm354_vm1, %v3580_v10 }
 0x11b   :  { %v3583_v12 = vpop.f32.mrb[18].mxu0 }
 0x11c   :  { %v283_v13 = vpop.f32.mrb[19].mxu0 }
 0x11d   :  { %3631 = vmatprep.mubr.msk.f32.mxu1 %vm354_vm1, %v283_v13 }
 0x11e   :  { %3632 = vmatmul.mubr.msk.f32.gmra.mrb[10].mxu1 %vm354_vm1, %v3583_v12 }
 0x11f   :  { %v3586_v14 = vpop.f32.mrb[20].mxu0 }
 0x120   :  { %v293_v15 = vpop.f32.mrb[21].mxu0 }
 0x121   :  { %3634 = vmatprep.mubr.msk.f32.mxu1 %vm354_vm1, %v293_v15 }
 0x122   :  { %3635 = vmatmul.mubr.msk.f32.gmra.mrb[12].mxu1 %vm354_vm1, %v3586_v14 }
 0x123   :  { %v3589_v16 = vpop.f32.mrb[22].mxu0 }
 0x124   :  { %v303_v17 = vpop.f32.mrb[23].mxu0 }
 0x125   :  { %3637 = vmatprep.mubr.msk.f32.mxu1 %vm354_vm1, %v303_v17 }
 0x126   :  { %3638 = vmatmul.mubr.msk.f32.gmra.mrb[14].mxu1 %vm354_vm1, %v3589_v16 }
 0x127   :  { %v3592_v18 = vpop.f32.mrb[24].mxu0 }
 0x128   :  { %v313_v19 = vpop.f32.mrb[25].mxu0 }
 0x129   :  { %3640 = vmatprep.mubr.msk.f32.mxu1 %vm354_vm1, %v313_v19 }
 0x12a   :  { %3641 = vmatmul.mubr.msk.f32.gmra.mrb[16].mxu1 %vm354_vm1, %v3592_v18 }
 0x12b   :  { %v3595_v20 = vpop.f32.mrb[26].mxu0 }
 0x12c   :  { %v323_v21 = vpop.f32.mrb[27].mxu0 }
 0x12d   :  { %3643 = vmatprep.mubr.msk.f32.mxu1 %vm354_vm1, %v323_v21 }
 0x12e   :  { %3644 = vmatmul.mubr.msk.f32.gmra.mrb[18].mxu1 %vm354_vm1, %v3595_v20 }
 0x12f   :  { %v3598_v22 = vpop.f32.mrb[28].mxu0 }
 0x130   :  { %v333_v23 = vpop.f32.mrb[29].mxu0 }
 0x131   :  { %3646 = vmatprep.mubr.msk.f32.mxu1 %vm354_vm1, %v333_v23 }
 0x132   :  { %3647 = vmatmul.mubr.msk.f32.gmra.mrb[20].mxu1 %vm354_vm1, %v3598_v22 }
 0x133   :  { %v3601_v24 = vpop.f32.mrb[30].mxu0 }
 0x134   :  { %v343_v25 = vpop.f32.mrb[31].mxu0 }
 0x135   :  { %3649 = vmatprep.mubr.msk.f32.mxu1 %vm354_vm1, %v343_v25 }
 0x136   :  { %3650 = vmatmul.mubr.msk.f32.gmra.mrb[22].mxu1 %vm354_vm1, %v3601_v24 }
 0x137   :  { %3654 = vmatprep.mubr.msk.f32.mxu1 %vm354_vm1, %v4354_v59 }
 0x13a   :  { %3655 = vmatmul.mubr.msk.f32.vlgmr.msra.gmra.mrb[24].mxu1 %vm354_vm1, %v4352_v58 }
 0x13b   :  { %3657 = vmatprep.mubr.msk.f32.mxu1 %vm354_vm1, %v203_v61 }
 0x13e   :  { %3658 = vmatmul.mubr.msk.f32.gmra.mrb[26].mxu1 %vm354_vm1, %v4360_v60 }
 0x13f   :  { %3660 = vmatprep.mubr.msk.f32.mxu1 %vm354_vm1, %v213_v63 }
 0x142   :  { %3661 = vmatmul.mubr.msk.f32.gmra.mrb[28].mxu1 %vm354_vm1, %v3562_v62 }
 0x143   :  { %3663 = vmatprep.mubr.msk.f32.mxu1 %vm354_vm1, %v223_v1 }
 0x146   :  { %3664 = vmatmul.mubr.msk.f32.gmra.mrb[30].mxu1 %vm354_vm1, %v3565_v0 }
 0x147   :  { %3666 = vmatprep.mubr.msk.f32.mxu1 %vm354_vm1, %v233_v3 }
 0x14a   :  { %3667 = vmatmul.mubr.msk.f32.gmra.mrb[0].mxu1 %vm354_vm1, %v3568_v2 }
 0x14b   :  { %3669 = vmatprep.mubr.msk.f32.mxu1 %vm354_vm1, %v243_v5 }
 0x14e   :  { %3670 = vmatmul.mubr.msk.f32.gmra.mrb[2].mxu1 %vm354_vm1, %v3571_v4 }
 0x14f   :  { %3672 = vmatprep.mubr.msk.f32.mxu1 %vm354_vm1, %v253_v7 }
 0x152   :  { %3673 = vmatmul.mubr.msk.f32.gmra.mrb[4].mxu1 %vm354_vm1, %v3574_v6 }
 0x153   :  { %3675 = vmatprep.mubr.msk.f32.mxu1 %vm354_vm1, %v263_v9 }
 0x156   :  { %3676 = vmatmul.mubr.msk.f32.gmra.mrb[6].mxu1 %vm354_vm1, %v3577_v8 }
 0x157   :  { %3678 = vmatprep.mubr.msk.f32.mxu1 %vm354_vm1, %v273_v11 }
 0x15a   :  { %3679 = vmatmul.mubr.msk.f32.gmra.mrb[8].mxu1 %vm354_vm1, %v3580_v10 }
 0x15b   :  { %3681 = vmatprep.mubr.msk.f32.mxu1 %vm354_vm1, %v283_v13 }
 0x15e   :  { %3682 = vmatmul.mubr.msk.f32.gmra.mrb[10].mxu1 %vm354_vm1, %v3583_v12 }
 0x15f   :  { %3684 = vmatprep.mubr.msk.f32.mxu1 %vm354_vm1, %v293_v15 }
 0x162   :  { %3685 = vmatmul.mubr.msk.f32.gmra.mrb[12].mxu1 %vm354_vm1, %v3586_v14 }
 0x163   :  { %3687 = vmatprep.mubr.msk.f32.mxu1 %vm354_vm1, %v303_v17 }
 0x166   :  { %3688 = vmatmul.mubr.msk.f32.gmra.mrb[14].mxu1 %vm354_vm1, %v3589_v16 }
 0x167   :  { %3690 = vmatprep.mubr.msk.f32.mxu1 %vm354_vm1, %v313_v19 }
 0x16a   :  { %3691 = vmatmul.mubr.msk.f32.gmra.mrb[16].mxu1 %vm354_vm1, %v3592_v18 }
 0x16b   :  { %3693 = vmatprep.mubr.msk.f32.mxu1 %vm354_vm1, %v323_v21 }
 0x16e   :  { %3694 = vmatmul.mubr.msk.f32.gmra.mrb[18].mxu1 %vm354_vm1, %v3595_v20 }
 0x16f   :  { %3696 = vmatprep.mubr.msk.f32.mxu1 %vm354_vm1, %v333_v23 }
 0x172   :  { %3697 = vmatmul.mubr.msk.f32.gmra.mrb[20].mxu1 %vm354_vm1, %v3598_v22 }
 0x173   :  { %3699 = vmatprep.mubr.msk.f32.mxu1 %vm354_vm1, %v343_v25 }
 0x176   :  { %3700 = vmatmul.mubr.msk.f32.gmra.mrb[22].mxu1 %vm354_vm1, %v3601_v24 }
 0x1cd   :  { %v3606_v26 = vpop.f32.mrb[32].mxu0 }
 0x1ce   :  { %v521_v27 = vpop.f32.mrb[33].mxu0 }
 0x1d1   :  { %v3609_v28 = vpop.f32.mrb[34].mxu0 }
 0x1d2   :  { %v531_v29 = vpop.f32.mrb[35].mxu0 }
 0x1d5   :  { %v3612_v30 = vpop.f32.mrb[36].mxu0 }
 0x1d6   :  { %v541_v33 = vpop.f32.mrb[37].mxu0 }
 0x1d9   :  { %v3615_v35 = vpop.f32.mrb[38].mxu0 }
 0x1da   :  { %v551_v36 = vpop.f32.mrb[39].mxu0 }
 0x20d   :  { %v3656_v37 = vpop.f32.mrb[24].mxu1 }
 0x20e   :  { %v4435_v38 = vadd.f32 %v3656_v37, %v3606_v26  ;;  %v749_v39 = vpop.f32.mrb[25].mxu1 }
 0x20f   :  { %v4437_v40 = vadd.f32 %v749_v39, %v521_v27 }
 0x210   :  { %v910_v62 = vmul.f32 %v4435_v38, %v4435_v38 }
 0x211   :  { %v3659_v41 = vpop.f32.mrb[26].mxu1  ;;  %v909_v1 = vmul.f32 %v4437_v40, %v4437_v40 }
 0x212   :  { %v4439_v42 = vadd.f32 %v3659_v41, %v3609_v28  ;;  %v759_v43 = vpop.f32.mrb[27].mxu1 }
 0x213   :  { %v4441_v44 = vadd.f32 %v759_v43, %v531_v29  ;;  %v4532_v43 = vld [vmem:[%s5558_s6] ss:$0 sm:$0xff] }
 0x214   :  { %v912_v6 = vmul.f32 %v4439_v42, %v4439_v42 }
 0x215   :  { %v3662_v45 = vpop.f32.mrb[28].mxu1  ;;  %v911_v10 = vmul.f32 %v4441_v44, %v4441_v44 }
 0x216   :  { %v4443_v46 = vadd.f32 %v3662_v45, %v3612_v30  ;;  %v769_v47 = vpop.f32.mrb[29].mxu1 }
 0x217   :  { %v4445_v48 = vadd.f32 %v769_v47, %v541_v33 }
 0x218   :  { %v914_v16 = vmul.f32 %v4443_v46, %v4443_v46 }
 0x219   :  { %v3665_v49 = vpop.f32.mrb[30].mxu1  ;;  %v913_v20 = vmul.f32 %v4445_v48, %v4445_v48 }
 0x21a   :  { %v4447_v50 = vadd.f32 %v3665_v49, %v3615_v35  ;;  %v779_v51 = vpop.f32.mrb[31].mxu1 }
 0x21b   :  { %v4449_v52 = vadd.f32 %v779_v51, %v551_v36 }
 0x21c   :  { %v916_v26 = vmul.f32 %v4447_v50, %v4447_v50 }
 0x21d   :  { %v4451_v53 = vpop.f32.mrb[0].mxu1  ;;  %v915_v30 = vmul.f32 %v4449_v52, %v4449_v52 }
 0x21e   :  { %v4453_v54 = vpop.f32.mrb[1].mxu1  ;;  %v918_v34 = vmul.f32 %v4451_v53, %v4451_v53 }
 0x21f   :  { %v917_v39 = vmul.f32 %v4453_v54, %v4453_v54 }
 0x221   :  { %v4455_v55 = vpop.f32.mrb[2].mxu1 }
 0x222   :  { %v4457_v56 = vpop.f32.mrb[3].mxu1  ;;  %v920_v41 = vmul.f32 %v4455_v55, %v4455_v55 }
 0x225   :  { %v4459_v57 = vpop.f32.mrb[4].mxu1 }
 0x226   :  { %v4461_v58 = vpop.f32.mrb[5].mxu1 }
 0x229   :  { %v4463_v59 = vpop.f32.mrb[6].mxu1 }
 0x22a   :  { %v4465_v60 = vpop.f32.mrb[7].mxu1 }
 0x22d   :  { %v4467_v61 = vpop.f32.mrb[8].mxu1 }
 0x22e   :  { %v926_v63 = vmul.f32 %v4467_v61, %v4467_v61  ;;  %v4473_v0 = vpop.f32.mrb[9].mxu1 }
 0x22f   :  { %v925_v2 = vmul.f32 %v4473_v0, %v4473_v0 }
 0x230   :  { %v942_v3 = vadd.f32 %v926_v63, %v910_v62  ;;  %v4542_v62 = vmul.f32 %v4457_v56, %v4457_v56 }
 0x231   :  { %v941_v4 = vadd.f32 %v925_v2, %v909_v1  ;;  %v4479_v5 = vpop.f32.mrb[10].mxu1 }
 0x232   :  { %v958_v7 = vadd.f32 1e-12, %v942_v3  ;;  %v928_v8 = vmul.f32 %v4479_v5, %v4479_v5  ;;  %v4485_v9 = vpop.f32.mrb[11].mxu1  ;;  %v4550_v3 = vmul.f32 %v4459_v57, %v4459_v57 }
 0x233   :  { %v957_v11 = vadd.f32 1e-12, %v941_v4  ;;  %v927_v12 = vmul.f32 %v4485_v9, %v4485_v9 }
 0x234   :  { %4042 = vrsqrt.f32 %v958_v7  ;;  %v944_v13 = vadd.f32 %v928_v8, %v912_v6  ;;  %v4555_v8 = vmul.f32 %v4461_v58, %v4461_v58 }
 0x235   :  { %4044 = vrsqrt.f32 %v957_v11  ;;  %v943_v14 = vadd.f32 %v927_v12, %v911_v10  ;;  %v4491_v15 = vpop.f32.mrb[12].mxu1 }
 0x236   :  { %v960_v17 = vadd.f32 1e-12, %v944_v13  ;;  %v930_v18 = vmul.f32 %v4491_v15, %v4491_v15  ;;  %v4497_v19 = vpop.f32.mrb[13].mxu1 }
 0x237   :  { %v959_v21 = vadd.f32 1e-12, %v943_v14  ;;  %v929_v22 = vmul.f32 %v4497_v19, %v4497_v19  ;;  %v4563_v14 = vmul.f32 %v4463_v59, %v4463_v59 }
 0x238   :  { %4046 = vrsqrt.f32 %v960_v17  ;;  %v946_v23 = vadd.f32 %v930_v18, %v914_v16 }
 0x239   :  { %4048 = vrsqrt.f32 %v959_v21  ;;  %v945_v24 = vadd.f32 %v929_v22, %v913_v20  ;;  %v4503_v25 = vpop.f32.mrb[14].mxu1 }
 0x23a   :  { %v4507_v27 = vadd.f32 1e-12, %v946_v23  ;;  %v932_v28 = vmul.f32 %v4503_v25, %v4503_v25  ;;  %v4511_v29 = vpop.f32.mrb[15].mxu1 }
 0x23b   :  { %v4515_v31 = vadd.f32 1e-12, %v945_v24  ;;  %v931_v32 = vmul.f32 %v4511_v29, %v4511_v29 }
 0x23c   :  { %4050 = vrsqrt.f32 %v4507_v27  ;;  %v948_v33 = vadd.f32 %v932_v28, %v916_v26 }
 0x23d   :  { %4052 = vrsqrt.f32 %v4515_v31  ;;  %v947_v35 = vadd.f32 %v931_v32, %v915_v30  ;;  %v4523_v36 = vpop.f32.mrb[16].mxu1 }
 0x23e   :  { %v4043_v37 = vpop.eup %4042  ;;  %v4534_v45 = vadd.f32 1e-12, %v948_v33  ;;  %v934_v47 = vmul.f32 %v4523_v36, %v4523_v36  ;;  %v4538_v49 = vpop.f32.mrb[17].mxu1 }
 0x23f   :  { %v4045_v51 = vpop.eup %4044  ;;  %v990_v63 = vmul.f32 %v4043_v37, %v958_v7  ;;  %v4544_v1 = vadd.f32 1e-12, %v947_v35  ;;  %v933_v2 = vmul.f32 %v4538_v49, %v4538_v49 }
 0x240   :  { %v989_v4 = vmul.f32 %v4045_v51, %v957_v11  ;;  %4054 = vrsqrt.f32 %v4534_v45  ;;  %v950_v6 = vadd.f32 %v934_v47, %v918_v34 }
 0x241   :  { %v1012_v7 = vadd.f32 %v4532_v43, %v990_v63  ;;  %4056 = vrsqrt.f32 %v4544_v1  ;;  %v949_v10 = vadd.f32 %v933_v2, %v917_v39  ;;  %v4559_v12 = vpop.f32.mrb[18].mxu1 }
 0x242   :  { %v4047_v13 = vpop.eup %4046  ;;  %v1011_v11 = vadd.f32 %v4532_v43, %v989_v4  ;;  %v4566_v16 = vadd.f32 1e-12, %v950_v6  ;;  %v936_v18 = vmul.f32 %v4559_v12, %v4559_v12  ;;  %v4570_v20 = vpop.f32.mrb[19].mxu1 }
 0x243   :  { %v4049_v22 = vpop.eup %4048  ;;  %vm1028_vm3 = vcmp.gt.f32.partialorder %v1012_v7, 0.0  ;;  %v1044_v23 = vmul.f32 0.2, %v1012_v7  ;;  %v992_v24 = vmul.f32 %v4047_v13, %v960_v17  ;;  %v4572_v26 = vadd.f32 1e-12, %v949_v10 }
 0x244   :  { %vm1027_vm4 = vcmp.gt.f32.partialorder %v1011_v11, 0.0  ;;  %v1043_v28 = vmul.f32 0.2, %v1011_v11  ;;  %v991_v30 = vmul.f32 %v4049_v22, %v959_v21  ;;  %4058 = vrsqrt.f32 %v4566_v16 }
 0x245   :  { %v1060_v32 = vsel %vm1028_vm3, %v1012_v7, %v1044_v23  ;;  %v1014_v33 = vadd.f32 %v4532_v43, %v992_v24  ;;  %4060 = vrsqrt.f32 %v4572_v26  ;;  %v952_v34 = vadd.f32 %v936_v18, %v920_v41  ;;  %v4577_v35 = vpop.f32.mrb[20].mxu1 }
 0x246   :  { %v4051_v39 = vpop.eup %4050  ;;  %v1076_v47 = vmul.f32 %v4043_v37, %v1060_v32  ;;  %v1059_v63 = vsel %vm1027_vm4, %v1011_v11, %v1043_v28  ;;  %v1013_v17 = vadd.f32 %v4532_v43, %v991_v30  ;;  %v935_v2 = vmul.f32 %v4570_v20, %v4570_v20  ;;  %v4582_v4 = vpop.f32.mrb[21].mxu1 }
 0x247   :  { %v4053_v21 = vpop.eup %4052  ;;  %v1075_v6 = vmul.f32 %v4045_v51, %v1059_v63  ;;  %vm1030_vm5 = vcmp.gt.f32.partialorder %v1014_v33, 0.0  ;;  %v1046_v7 = vmul.f32 0.2, %v1014_v33  ;;  %v994_v10 = vmul.f32 %v4051_v39, %v4507_v27 }
 0x248   :  { %v1092_v41 = vmul.f32 %v1076_v47, %v4435_v38  ;;  %v4587_v18 = vmul.f32 %v4467_v61, %v1076_v47  ;;  %vm1029_vm6 = vcmp.gt.f32.partialorder %v1013_v17, 0.0  ;;  %v1045_v37 = vmul.f32 0.2, %v1013_v17 }
 0x249   :  { %v1091_v11 = vmul.f32 %v1075_v6, %v4437_v40  ;;  %v4591_v23 = vmul.f32 %v1075_v6, %v4473_v0  ;;  %v1062_v24 = vsel %vm1030_vm5, %v1014_v33, %v1046_v7  ;;  %v1016_v28 = vadd.f32 %v4532_v43, %v994_v10  ;;  %v4594_v51 = vpop.f32.mrb[22].mxu1 }
 0x24a   :  { %5568 = vst [vmem:[#allocation2_spill] sm:$0xff] %v4587_v18  ;;  %v4055_v30 = vpop.eup %4054  ;;  %v1078_v32 = vmul.f32 %v4047_v13, %v1062_v24  ;;  %v1061_v27 = vsel %vm1029_vm6, %v1013_v17, %v1045_v37  ;;  %v993_v38 = vmul.f32 %v4053_v21, %v4515_v31  ;;  %v4597_v63 = vadd.f32 1e-12, %v952_v34  ;;  %v4599_v61 = vpop.f32.mrb[23].mxu1 }
 0x24b   :  { %v4057_v47 = vpop.eup %4056  ;;  %v1077_v18 = vmul.f32 %v4049_v22, %v1061_v27  ;;  %vm1032_vm7 = vcmp.gt.f32.partialorder %v1016_v28, 0.0  ;;  %v1048_v40 = vmul.f32 0.2, %v1016_v28  ;;  %v996_v0 = vmul.f32 %v4055_v30, %v4534_v45  ;;  %3706 = vmatprep.mubr.msk.f32.mxu0 %vm1125_vm2, %v1091_v11 }
 0x24c   :  { %v1094_v33 = vmul.f32 %v1078_v32, %v4439_v42  ;;  %v4605_v6 = vmul.f32 %v4479_v5, %v1078_v32  ;;  %v1015_v13 = vadd.f32 %v4532_v43, %v993_v38  ;;  %v995_v31 = vmul.f32 %v4057_v47, %v4544_v1  ;;  %3707 = vmatmul.mubr.msk.f32.vlgmr.msra.gmra.mrb[40].mxu0 %vm1125_vm2, %v1092_v41 }
 0x24d   :  { %v1093_v34 = vmul.f32 %v1077_v18, %v4441_v44  ;;  %v4612_v22 = vmul.f32 %v1077_v18, %v4485_v9  ;;  %v1064_v17 = vsel %vm1032_vm7, %v1016_v28, %v1048_v40  ;;  %v1018_v45 = vadd.f32 %v4532_v43, %v996_v0 }
 0x24e   :  { %v4059_v7 = vpop.eup %4058  ;;  %v1080_v10 = vmul.f32 %v4051_v39, %v1064_v17  ;;  %vm1031_vm8 = vcmp.gt.f32.partialorder %v1015_v13, 0.0  ;;  %v1047_v42 = vmul.f32 0.2, %v1015_v13  ;;  %v1017_v5 = vadd.f32 %v4532_v43, %v995_v31 }
 0x24f   :  { %v4061_v37 = vpop.eup %4060  ;;  %vm1034_vm9 = vcmp.gt.f32.partialorder %v1018_v45, 0.0  ;;  %v1050_v11 = vmul.f32 0.2, %v1018_v45  ;;  %v998_v1 = vmul.f32 %v4059_v7, %v4566_v16  ;;  %4062 = vrsqrt.f32 %v4597_v63  ;;  %3709 = vmatprep.mubr.msk.f32.mxu0 %vm1125_vm2, %v1093_v34 }
 0x250   :  { %v1096_v44 = vmul.f32 %v1080_v10, %v4443_v46  ;;  %v4621_v9 = vmul.f32 %v4491_v15, %v1080_v10  ;;  %v1063_v41 = vsel %vm1031_vm8, %v1015_v13, %v1047_v42  ;;  %vm1033_vm10 = vcmp.gt.f32.partialorder %v1017_v5, 0.0  ;;  %3710 = vmatmul.mubr.msk.f32.gmra.mrb[42].mxu0 %vm1125_vm2, %v1094_v33 }
 0x251   :  { %v1079_v39 = vmul.f32 %v4053_v21, %v1063_v41  ;;  %v1066_v18 = vsel %vm1034_vm9, %v1018_v45, %v1050_v11  ;;  %v1049_v24 = vmul.f32 0.2, %v1017_v5  ;;  %v1020_v28 = vadd.f32 %v4532_v43, %v998_v1 }
 0x252   :  { %v1082_v32 = vmul.f32 %v4055_v30, %v1066_v18  ;;  %v997_v16 = vmul.f32 %v4061_v37, %v4572_v26  ;;  %v951_v27 = vadd.f32 %v935_v2, %v4542_v62  ;;  %v938_v46 = vmul.f32 %v4577_v35, %v4577_v35 }
 0x253   :  { %v1095_v15 = vmul.f32 %v1079_v39, %v4445_v48  ;;  %v4631_v38 = vmul.f32 %v1079_v39, %v4497_v19  ;;  %v1065_v40 = vsel %vm1033_vm10, %v1017_v5, %v1049_v24  ;;  %vm1036_vm11 = vcmp.gt.f32.partialorder %v1020_v28, 0.0 }
 0x254   :  { %v1098_v21 = vmul.f32 %v1082_v32, %v4447_v50  ;;  %v4635_v0 = vmul.f32 %v4503_v25, %v1082_v32  ;;  %v1081_v30 = vmul.f32 %v4057_v47, %v1065_v40  ;;  %v1052_v33 = vmul.f32 0.2, %v1020_v28 }
 0x255   :  { %v1019_v26 = vadd.f32 %v4532_v43, %v997_v16  ;;  %v967_v62 = vadd.f32 1e-12, %v951_v27  ;;  %v954_v2 = vadd.f32 %v938_v46, %v4550_v3  ;;  %v937_v48 = vmul.f32 %v4582_v4, %v4582_v4  ;;  %3712 = vmatprep.mubr.msk.f32.mxu0 %vm1125_vm2, %v1095_v15 }
 0x256   :  { %v1097_v19 = vmul.f32 %v1081_v30, %v4449_v52  ;;  %v4644_v13 = vmul.f32 %v1081_v30, %v4511_v29  ;;  %v1068_v50 = vsel %vm1036_vm11, %v1020_v28, %v1052_v33  ;;  %v940_v25 = vmul.f32 %v4594_v51, %v4594_v51  ;;  %3713 = vmatmul.mubr.msk.f32.gmra.mrb[44].mxu0 %vm1125_vm2, %v1096_v44 }
 0x257   :  { %v1084_v47 = vmul.f32 %v4059_v7, %v1068_v50  ;;  %vm1035_vm12 = vcmp.gt.f32.partialorder %v1019_v26, 0.0  ;;  %v1051_v31 = vmul.f32 0.2, %v1019_v26  ;;  %4064 = vrsqrt.f32 %v967_v62 }
 0x258   :  { %v970_v3 = vadd.f32 1e-12, %v954_v2  ;;  %v953_v34 = vadd.f32 %v937_v48, %v4555_v8  ;;  %v956_v17 = vadd.f32 %v940_v25, %v4563_v14  ;;  %v939_v52 = vmul.f32 %v4599_v61, %v4599_v61  ;;  %3715 = vmatprep.mubr.msk.f32.mxu0 %vm1125_vm2, %v1097_v19 }
 0x259   :  { %v4063_v29 = vpop.eup %4062  ;;  %v923_v45 = vmul.f32 %v4465_v60, %v4465_v60  ;;  %v1100_v10 = vmul.f32 %v4451_v53, %v1084_v47  ;;  %v4658_v7 = vmul.f32 %v4523_v36, %v1084_v47  ;;  %v1067_v42 = vsel %vm1035_vm12, %v1019_v26, %v1051_v31 }
 0x25a   :  { %v1083_v5 = vmul.f32 %v4061_v37, %v1067_v42  ;;  %v1000_v8 = vmul.f32 %v4063_v29, %v4597_v63  ;;  %4066 = vrsqrt.f32 %v970_v3  ;;  %v969_v14 = vadd.f32 1e-12, %v953_v34  ;;  %3716 = vmatmul.mubr.msk.f32.gmra.mrb[46].mxu0 %vm1125_vm2, %v1098_v21 }
 0x25b   :  { %v972_v11 = vadd.f32 1e-12, %v956_v17  ;;  %v955_v1 = vadd.f32 %v939_v52, %v923_v45 }
 0x25c   :  { %v1099_v44 = vmul.f32 %v1083_v5, %v4453_v54  ;;  %v4664_v41 = vmul.f32 %v1083_v5, %v4538_v49  ;;  %v1022_v53 = vadd.f32 %v4532_v43, %v1000_v8  ;;  %4068 = vrsqrt.f32 %v969_v14 }
 0x25d   :  { %4070 = vrsqrt.f32 %v972_v11  ;;  %v971_v36 = vadd.f32 1e-12, %v955_v1 }
 0x25e   :  { %vm1038_vm13 = vcmp.gt.f32.partialorder %v1022_v53, 0.0  ;;  %v1054_v37 = vmul.f32 0.2, %v1022_v53  ;;  %3718 = vmatprep.mubr.msk.f32.mxu0 %vm1125_vm2, %v1099_v44 }
 0x25f   :  { %4072 = vrsqrt.f32 %v971_v36  ;;  %3719 = vmatmul.mubr.msk.f32.gmra.mrb[48].mxu0 %vm1125_vm2, %v1100_v10 }
 0x260   :  { %v1070_v63 = vsel %vm1038_vm13, %v1022_v53, %v1054_v37 }
 0x261   :  { %v4065_v39 = vpop.eup %4064  ;;  %v1086_v18 = vmul.f32 %v4063_v29, %v1070_v63 }
 0x262   :  { %v999_v24 = vmul.f32 %v4065_v39, %v967_v62 }
 0x263   :  { %v1102_v54 = vmul.f32 %v4455_v55, %v1086_v18  ;;  %v1118_v49 = vmul.f32 %v4559_v12, %v1086_v18 }
 0x264   :  { %v4067_v28 = vpop.eup %4066  ;;  %v1021_v32 = vadd.f32 %v4532_v43, %v999_v24 }
 0x265   :  { %v1002_v16 = vmul.f32 %v4067_v28, %v970_v3 }
 0x266   :  { %v4069_v27 = vpop.eup %4068  ;;  %vm1037_vm14 = vcmp.gt.f32.partialorder %v1021_v32, 0.0  ;;  %v1053_v46 = vmul.f32 0.2, %v1021_v32 }
 0x267   :  { %v4071_v15 = vpop.eup %4070  ;;  %v1024_v40 = vadd.f32 %v4532_v43, %v1002_v16  ;;  %v1001_v21 = vmul.f32 %v4069_v27, %v969_v14 }
 0x268   :  { %v1069_v30 = vsel %vm1037_vm14, %v1021_v32, %v1053_v46  ;;  %v1004_v33 = vmul.f32 %v4071_v15, %v972_v11 }
 0x269   :  { %v4073_v26 = vpop.eup %4072  ;;  %v1085_v2 = vmul.f32 %v4065_v39, %v1069_v30  ;;  %vm1040_vm15 = vcmp.gt.f32.partialorder %v1024_v40, 0.0  ;;  %v1056_v62 = vmul.f32 0.2, %v1024_v40  ;;  %v1023_v55 = vadd.f32 %v4532_v43, %v1001_v21 }
 0x26a   :  { %v1026_v12 = vadd.f32 %v4532_v43, %v1004_v33  ;;  %v1003_v48 = vmul.f32 %v4073_v26, %v971_v36 }
 0x26b   :  { %v1101_v19 = vmul.f32 %v1085_v2, %v4457_v56  ;;  %v1117_v50 = vmul.f32 %v1085_v2, %v4570_v20  ;;  %v1072_v25 = vsel %vm1040_vm15, %v1024_v40, %v1056_v62  ;;  %vm1039_vm3 = vcmp.gt.f32.partialorder %v1023_v55, 0.0 }
 0x26c   :  { %v1088_v47 = vmul.f32 %v4067_v28, %v1072_v25  ;;  %v1055_v31 = vmul.f32 0.2, %v1023_v55  ;;  %vm1042_vm4 = vcmp.gt.f32.partialorder %v1026_v12, 0.0  ;;  %v1058_v3 = vmul.f32 0.2, %v1026_v12 }
 0x26d   :  { %v1025_v34 = vadd.f32 %v4532_v43, %v1003_v48  ;;  %3721 = vmatprep.mubr.msk.f32.mxu0 %vm1125_vm2, %v1101_v19 }
 0x26e   :  { %v1104_v17 = vmul.f32 %v4459_v57, %v1088_v47  ;;  %v1120_v52 = vmul.f32 %v4577_v35, %v1088_v47  ;;  %v1071_v29 = vsel %vm1039_vm3, %v1023_v55, %v1055_v31  ;;  %v1074_v45 = vsel %vm1042_vm4, %v1026_v12, %v1058_v3  ;;  %3722 = vmatmul.mubr.msk.f32.gmra.mrb[50].mxu0 %vm1125_vm2, %v1102_v54 }
 0x26f   :  { %v1087_v56 = vmul.f32 %v4069_v27, %v1071_v29  ;;  %v1090_v20 = vmul.f32 %v4071_v15, %v1074_v45  ;;  %vm1041_vm5 = vcmp.gt.f32.partialorder %v1025_v34, 0.0  ;;  %v1057_v10 = vmul.f32 0.2, %v1025_v34 }
 0x271   :  { %v1103_v42 = vmul.f32 %v1087_v56, %v4461_v58  ;;  %v1119_v5 = vmul.f32 %v1087_v56, %v4582_v4  ;;  %v1106_v43 = vmul.f32 %v4463_v59, %v1090_v20  ;;  %v1122_v8 = vmul.f32 %v4594_v51, %v1090_v20  ;;  %v5569_v58 = vld [vmem:[#allocation2_spill] sm:$0xff] }
 0x272   :  { %v1073_v14 = vsel %vm1041_vm5, %v1025_v34, %v1057_v10 }
 0x273   :  { %v1089_v57 = vmul.f32 %v4073_v26, %v1073_v14  ;;  %3724 = vmatprep.mubr.msk.f32.mxu0 %vm1125_vm2, %v1103_v42 }
 0x274   :  { %3725 = vmatmul.mubr.msk.f32.gmra.mrb[52].mxu0 %vm1125_vm2, %v1104_v17 }
 0x275   :  { %v1105_v35 = vmul.f32 %v1089_v57, %v4465_v60  ;;  %v1121_v11 = vmul.f32 %v1089_v57, %v4599_v61  ;;  %v96_v60 = vld [vmem:[%s5559_s1 + $0x8] sm:$0xff] }
 0x276   :  { %1726 = vmatprep.mubr.f32.mxu1 %v96_v60 }
 0x277   :  { %3727 = vmatprep.mubr.msk.f32.mxu0 %vm1125_vm2, %v1105_v35  ;;  %v4822_v35 = vld [vmem:[%s5560_s7] ss:$0 sm:$0xff] }
 0x278   :  { %3728 = vmatmul.mubr.msk.f32.gmra.mrb[54].mxu0 %vm1125_vm2, %v1106_v43 }
 0x279   :  { %3730 = vmatprep.mubr.msk.f32.mxu0 %vm1125_vm2, %v4591_v23 }
 0x27c   :  { %3731 = vmatmul.mubr.msk.f32.gmra.mrb[56].mxu0 %vm1125_vm2, %v5569_v58 }
 0x27d   :  { %3733 = vmatprep.mubr.msk.f32.mxu0 %vm1125_vm2, %v4612_v22 }
 0x280   :  { %3734 = vmatmul.mubr.msk.f32.gmra.mrb[58].mxu0 %vm1125_vm2, %v4605_v6 }
 0x281   :  { %3736 = vmatprep.mubr.msk.f32.mxu0 %vm1125_vm2, %v4631_v38 }
 0x284   :  { %3737 = vmatmul.mubr.msk.f32.gmra.mrb[60].mxu0 %vm1125_vm2, %v4621_v9 }
 0x285   :  { %3739 = vmatprep.mubr.msk.f32.mxu0 %vm1125_vm2, %v4644_v13 }
 0x288   :  { %3740 = vmatmul.mubr.msk.f32.gmra.mrb[62].mxu0 %vm1125_vm2, %v4635_v0 }
 0x289   :  { %3742 = vmatprep.mubr.msk.f32.mxu0 %vm1125_vm2, %v4664_v41 }
 0x28c   :  { %3743 = vmatmul.mubr.msk.f32.gmra.mrb[64].mxu0 %vm1125_vm2, %v4658_v7 }
 0x28d   :  { %3745 = vmatprep.mubr.msk.f32.mxu0 %vm1125_vm2, %v1117_v50 }
 0x290   :  { %3746 = vmatmul.mubr.msk.f32.gmra.mrb[66].mxu0 %vm1125_vm2, %v1118_v49 }
 0x291   :  { %3748 = vmatprep.mubr.msk.f32.mxu0 %vm1125_vm2, %v1119_v5 }
 0x294   :  { %3749 = vmatmul.mubr.msk.f32.gmra.mrb[68].mxu0 %vm1125_vm2, %v1120_v52 }
 0x295   :  { %3751 = vmatprep.mubr.msk.f32.mxu0 %vm1125_vm2, %v1121_v11 }
 0x298   :  { %3752 = vmatmul.mubr.msk.f32.gmra.mrb[70].mxu0 %vm1125_vm2, %v1122_v8 }
 0x299   :  { %1903 = vmatprep.mubr.f32.mxu0 %v96_v60 }
 0x31f   :  { %v4718_v59 = vpop.f32.mrb[40].mxu0 }
 0x320   :  { %v4723_v4 = vpop.f32.mrb[41].mxu0  ;;  %v1449_v37 = vmul.f32 %v4718_v59, %v4718_v59 }
 0x321   :  { %v1448_v18 = vmul.f32 %v4723_v4, %v4723_v4 }
 0x323   :  { %v4725_v23 = vpop.f32.mrb[42].mxu0 }
 0x324   :  { %v4727_v51 = vpop.f32.mrb[43].mxu0  ;;  %v1451_v32 = vmul.f32 %v4725_v23, %v4725_v23 }
 0x325   :  { %v1450_v15 = vmul.f32 %v4727_v51, %v4727_v51 }
 0x329   :  { %v4729_v61 = vpop.f32.mrb[44].mxu0 }
 0x32a   :  { %v4731_v6 = vpop.f32.mrb[45].mxu0  ;;  %v1453_v2 = vmul.f32 %v4729_v61, %v4729_v61 }
 0x32b   :  { %v1452_v48 = vmul.f32 %v4731_v6, %v4731_v6 }
 0x32d   :  { %v4733_v22 = vpop.f32.mrb[46].mxu0 }
 0x32e   :  { %v4735_v9 = vpop.f32.mrb[47].mxu0  ;;  %v1455_v3 = vmul.f32 %v4733_v22, %v4733_v22 }
 0x32f   :  { %v1454_v29 = vmul.f32 %v4735_v9, %v4735_v9 }
 0x332   :  { %v4737_v38 = vpop.f32.mrb[48].mxu0 }
 0x333   :  { %v4739_v0 = vpop.f32.mrb[49].mxu0  ;;  %v1457_v10 = vmul.f32 %v4737_v38, %v4737_v38 }
 0x334   :  { %v1456_v42 = vmul.f32 %v4739_v0, %v4739_v0 }
 0x341   :  { %v4741_v13 = vpop.f32.mrb[50].mxu0 }
 0x342   :  { %v4743_v7 = vpop.f32.mrb[51].mxu0  ;;  %v1459_v14 = vmul.f32 %v4741_v13, %v4741_v13 }
 0x343   :  { %v4817_v57 = vmul.f32 %v4743_v7, %v4743_v7 }
 0x347   :  { %v4745_v1 = vpop.f32.mrb[52].mxu0 }
 0x348   :  { %v4747_v44 = vpop.f32.mrb[53].mxu0 }
 0x34b   :  { %v4749_v41 = vpop.f32.mrb[54].mxu0 }
 0x34c   :  { %v4751_v53 = vpop.f32.mrb[55].mxu0 }
 0x34f   :  { %v4753_v36 = vpop.f32.mrb[56].mxu0 }
 0x350   :  { %v1465_v63 = vmul.f32 %v4753_v36, %v4753_v36  ;;  %v4759_v39 = vpop.f32.mrb[57].mxu0 }
 0x351   :  { %v1464_v24 = vmul.f32 %v4759_v39, %v4759_v39 }
 0x352   :  { %v1481_v54 = vadd.f32 %v1465_v63, %v1449_v37  ;;  %v4832_v63 = vmul.f32 %v4745_v1, %v4745_v1 }
 0x353   :  { %v1480_v49 = vadd.f32 %v1464_v24, %v1448_v18  ;;  %v4765_v28 = vpop.f32.mrb[58].mxu0 }
 0x354   :  { %v1497_v16 = vadd.f32 1e-12, %v1481_v54  ;;  %v1467_v27 = vmul.f32 %v4765_v28, %v4765_v28  ;;  %v4771_v46 = vpop.f32.mrb[59].mxu0 }
 0x355   :  { %v1496_v40 = vadd.f32 1e-12, %v1480_v49  ;;  %v1466_v21 = vmul.f32 %v4771_v46, %v4771_v46  ;;  %v4840_v49 = vmul.f32 %v4747_v44, %v4747_v44 }
 0x356   :  { %4074 = vrsqrt.f32 %v1497_v16  ;;  %v1483_v30 = vadd.f32 %v1467_v27, %v1451_v32 }
 0x357   :  { %4076 = vrsqrt.f32 %v1496_v40  ;;  %v1482_v33 = vadd.f32 %v1466_v21, %v1450_v15  ;;  %v4777_v26 = vpop.f32.mrb[60].mxu0  ;;  %v4845_v15 = vmul.f32 %v4749_v41, %v4749_v41 }
 0x358   :  { %v1499_v62 = vadd.f32 1e-12, %v1483_v30  ;;  %v1469_v55 = vmul.f32 %v4777_v26, %v4777_v26  ;;  %v4783_v12 = vpop.f32.mrb[61].mxu0 }
 0x359   :  { %v1498_v19 = vadd.f32 1e-12, %v1482_v33  ;;  %v1468_v50 = vmul.f32 %v4783_v12, %v4783_v12 }
 0x35a   :  { %4078 = vrsqrt.f32 %v1499_v62  ;;  %v1485_v25 = vadd.f32 %v1469_v55, %v1453_v2  ;;  %v4853_v2 = vmul.f32 %v4751_v53, %v4751_v53 }
 0x35b   :  { %4080 = vrsqrt.f32 %v1498_v19  ;;  %v1484_v47 = vadd.f32 %v1468_v50, %v1452_v48  ;;  %v4789_v31 = vpop.f32.mrb[62].mxu0 }
 0x35c   :  { %v4793_v34 = vadd.f32 1e-12, %v1485_v25  ;;  %v1471_v17 = vmul.f32 %v4789_v31, %v4789_v31  ;;  %v4797_v52 = vpop.f32.mrb[63].mxu0 }
 0x35d   :  { %v4801_v45 = vadd.f32 1e-12, %v1484_v47  ;;  %v1470_v56 = vmul.f32 %v4797_v52, %v4797_v52 }
 0x35e   :  { %4082 = vrsqrt.f32 %v4793_v34  ;;  %v1487_v20 = vadd.f32 %v1471_v17, %v1455_v3 }
 0x35f   :  { %4084 = vrsqrt.f32 %v4801_v45  ;;  %v1486_v5 = vadd.f32 %v1470_v56, %v1454_v29  ;;  %v4811_v43 = vpop.f32.mrb[64].mxu0 }
 0x360   :  { %v4075_v8 = vpop.eup %4074  ;;  %v4824_v11 = vadd.f32 1e-12, %v1487_v20  ;;  %v1473_v58 = vmul.f32 %v4811_v43, %v4811_v43  ;;  %v4828_v60 = vpop.f32.mrb[65].mxu0 }
 0x361   :  { %v4077_v37 = vpop.eup %4076  ;;  %v1529_v18 = vmul.f32 %v4075_v8, %v1497_v16  ;;  %v4834_v24 = vadd.f32 1e-12, %v1486_v5  ;;  %v1472_v54 = vmul.f32 %v4828_v60, %v4828_v60 }
 0x362   :  { %v1528_v32 = vmul.f32 %v4077_v37, %v1496_v40  ;;  %4086 = vrsqrt.f32 %v4824_v11  ;;  %v1489_v27 = vadd.f32 %v1473_v58, %v1457_v10 }
 0x363   :  { %v1551_v21 = vadd.f32 %v4822_v35, %v1529_v18  ;;  %4088 = vrsqrt.f32 %v4834_v24  ;;  %v1488_v16 = vadd.f32 %v1472_v54, %v1456_v42  ;;  %v4849_v30 = vpop.f32.mrb[66].mxu0 }
 0x364   :  { %v4079_v33 = vpop.eup %4078  ;;  %v1550_v40 = vadd.f32 %v4822_v35, %v1528_v32  ;;  %v4856_v55 = vadd.f32 1e-12, %v1489_v27  ;;  %v1475_v48 = vmul.f32 %v4849_v30, %v4849_v30  ;;  %v4860_v50 = vpop.f32.mrb[67].mxu0 }
 0x365   :  { %v4081_v25 = vpop.eup %4080  ;;  %vm1567_vm6 = vcmp.gt.f32.partialorder %v1551_v21, 0.0  ;;  %v1583_v47 = vmul.f32 0.2, %v1551_v21  ;;  %v1531_v3 = vmul.f32 %v4079_v33, %v1499_v62  ;;  %v4862_v17 = vadd.f32 1e-12, %v1488_v16 }
 0x366   :  { %vm1566_vm7 = vcmp.gt.f32.partialorder %v1550_v40, 0.0  ;;  %v1582_v29 = vmul.f32 0.2, %v1550_v40  ;;  %v1530_v56 = vmul.f32 %v4081_v25, %v1498_v19  ;;  %4090 = vrsqrt.f32 %v4856_v55 }
 0x367   :  { %v1599_v20 = vsel %vm1567_vm6, %v1551_v21, %v1583_v47  ;;  %v1553_v10 = vadd.f32 %v4822_v35, %v1531_v3  ;;  %4092 = vrsqrt.f32 %v4862_v17  ;;  %v1491_v42 = vadd.f32 %v1475_v48, %v1459_v14  ;;  %v4867_v5 = vpop.f32.mrb[68].mxu0 }
 0x368   :  { %v4083_v58 = vpop.eup %4082  ;;  %v1615_v18 = vmul.f32 %v4075_v8, %v1599_v20  ;;  %v1598_v54 = vsel %vm1566_vm7, %v1550_v40, %v1582_v29  ;;  %v1552_v62 = vadd.f32 %v4822_v35, %v1530_v56  ;;  %v4872_v32 = vmul.f32 %v4860_v50, %v4860_v50  ;;  %v4874_v19 = vpop.f32.mrb[69].mxu0 }
 0x369   :  { %v4085_v27 = vpop.eup %4084  ;;  %v1614_v21 = vmul.f32 %v4077_v37, %v1598_v54  ;;  %vm1569_vm8 = vcmp.gt.f32.partialorder %v1553_v10, 0.0  ;;  %v1585_v16 = vmul.f32 0.2, %v1553_v10  ;;  %v1533_v47 = vmul.f32 %v4083_v58, %v4793_v34 }
 0x36a   :  { %v4878_v14 = vmul.f32 %v4718_v59, %v1615_v18  ;;  %v1647_v8 = vmul.f32 %v4753_v36, %v1615_v18  ;;  %vm1568_vm9 = vcmp.gt.f32.partialorder %v1552_v62, 0.0  ;;  %v1584_v40 = vmul.f32 0.2, %v1552_v62 }
 0x36b   :  { %v4882_v48 = vmul.f32 %v1614_v21, %v4723_v4  ;;  %v1646_v3 = vmul.f32 %v1614_v21, %v4759_v39  ;;  %v1601_v29 = vsel %vm1569_vm8, %v1553_v10, %v1585_v16  ;;  %v1555_v56 = vadd.f32 %v4822_v35, %v1533_v47  ;;  %v4886_v37 = vpop.f32.mrb[70].mxu0 }
 0x36c   :  { %v4087_v20 = vpop.eup %4086  ;;  %2941 = vst.msk [vmem:[%s5561_s14 + $0x88] sm:$0xff] %vm1125_vm2, %v4878_v14  ;;  %2957 = vst.msk [vmem:[%s5561_s14 + $0x108] sm:$0xff] %vm1125_vm2, %v1647_v8  ;;  %v1617_v59 = vmul.f32 %v4079_v33, %v1601_v29  ;;  %v1600_v4 = vsel %vm1568_vm9, %v1552_v62, %v1584_v40  ;;  %v1532_v36 = vmul.f32 %v4085_v27, %v4801_v45  ;;  %v4898_v39 = vadd.f32 1e-12, %v1491_v42  ;;  %v4900_v34 = vpop.f32.mrb[71].mxu0 }
 0x36d   :  { %v4089_v10 = vpop.eup %4088  ;;  %v4902_v18 = vpack.c.bf16 %v1647_v8, %v1646_v3  ;;  %2940 = vst.msk [vmem:[%s5561_s14 + $0x80] sm:$0xff] %vm1125_vm2, %v4882_v48  ;;  %2956 = vst.msk [vmem:[%s5561_s14 + $0x100] sm:$0xff] %vm1125_vm2, %v1646_v3  ;;  %v1616_v33 = vmul.f32 %v4081_v25, %v1600_v4  ;;  %vm1571_vm10 = vcmp.gt.f32.partialorder %v1555_v56, 0.0  ;;  %v1587_v45 = vmul.f32 0.2, %v1555_v56 }
 0x36e   :  { %v4914_v42 = vmul.f32 %v4725_v23, %v1617_v59  ;;  %v1649_v54 = vmul.f32 %v4765_v28, %v1617_v59  ;;  %v1554_v62 = vadd.f32 %v4822_v35, %v1532_v36  ;;  %v1535_v21 = vmul.f32 %v4087_v20, %v4824_v11 }
 0x36f   :  { %v4920_v16 = vmul.f32 %v1616_v33, %v4727_v51  ;;  %v1648_v47 = vmul.f32 %v1616_v33, %v4771_v46  ;;  %v1603_v8 = vsel %vm1571_vm10, %v1555_v56, %v1587_v45  ;;  %v1534_v40 = vmul.f32 %v4089_v10, %v4834_v24  ;;  %3901 = vmatprep.subr.bf16.mxu1 %v4902_v18 }
 0x370   :  { %v4091_v25 = vpop.eup %4090  ;;  %2943 = vst.msk [vmem:[%s5561_s14 + $0x98] sm:$0xff] %vm1125_vm2, %v4914_v42  ;;  %2959 = vst.msk [vmem:[%s5561_s14 + $0x118] sm:$0xff] %vm1125_vm2, %v1649_v54  ;;  %v1619_v23 = vmul.f32 %v4083_v58, %v1603_v8  ;;  %vm1570_vm11 = vcmp.gt.f32.partialorder %v1554_v62, 0.0  ;;  %v1586_v51 = vmul.f32 0.2, %v1554_v62  ;;  %v1557_v28 = vadd.f32 %v4822_v35, %v1535_v21 }
 0x371   :  { %v4093_v46 = vpop.eup %4092  ;;  %v4935_v11 = vpack.c.bf16 %v1649_v54, %v1648_v47  ;;  %2942 = vst.msk [vmem:[%s5561_s14 + $0x90] sm:$0xff] %vm1125_vm2, %v4920_v16  ;;  %2958 = vst.msk [vmem:[%s5561_s14 + $0x110] sm:$0xff] %vm1125_vm2, %v1648_v47  ;;  %v1556_v24 = vadd.f32 %v4822_v35, %v1534_v40  ;;  %v1537_v58 = vmul.f32 %v4091_v25, %v4856_v55  ;;  %4094 = vrsqrt.f32 %v4898_v39 }
 0x372   :  { %v4950_v3 = vmul.f32 %v4729_v61, %v1619_v23  ;;  %v1651_v29 = vmul.f32 %v4777_v26, %v1619_v23  ;;  %v1602_v56 = vsel %vm1570_vm11, %v1554_v62, %v1586_v51  ;;  %vm1573_vm12 = vcmp.gt.f32.partialorder %v1557_v28, 0.0 }
 0x373   :  { %v1618_v59 = vmul.f32 %v4085_v27, %v1602_v56  ;;  %v1589_v4 = vmul.f32 0.2, %v1557_v28  ;;  %vm1572_vm13 = vcmp.gt.f32.partialorder %v1556_v24, 0.0  ;;  %v1588_v36 = vmul.f32 0.2, %v1556_v24 }
 0x374   :  { %2945 = vst.msk [vmem:[%s5561_s14 + $0xa8] sm:$0xff] %vm1125_vm2, %v4950_v3  ;;  %2961 = vst.msk [vmem:[%s5561_s14 + $0x128] sm:$0xff] %vm1125_vm2, %v1651_v29  ;;  %v1559_v61 = vadd.f32 %v4822_v35, %v1537_v58  ;;  %v1536_v26 = vmul.f32 %v4093_v46, %v4862_v17  ;;  %v1490_v55 = vadd.f32 %v4872_v32, %v4817_v57 }
 0x375   :  { %v1477_v27 = vmul.f32 %v4867_v5, %v4867_v5  ;;  %v4969_v33 = vmul.f32 %v1618_v59, %v4731_v6  ;;  %v1650_v45 = vmul.f32 %v1618_v59, %v4783_v12  ;;  %v1605_v54 = vsel %vm1573_vm12, %v1557_v28, %v1589_v4 }
 0x376   :  { %v1604_v62 = vsel %vm1572_vm13, %v1556_v24, %v1588_v36  ;;  %v1621_v21 = vmul.f32 %v4087_v20, %v1605_v54  ;;  %vm1575_vm14 = vcmp.gt.f32.partialorder %v1559_v61, 0.0  ;;  %v1591_v8 = vmul.f32 0.2, %v1559_v61 }
 0x377   :  { %v1620_v47 = vmul.f32 %v4089_v10, %v1604_v62  ;;  %v4972_v40 = vpack.c.bf16 %v1651_v29, %v1650_v45  ;;  %2944 = vst.msk [vmem:[%s5561_s14 + $0xa0] sm:$0xff] %vm1125_vm2, %v4969_v33  ;;  %2960 = vst.msk [vmem:[%s5561_s14 + $0x120] sm:$0xff] %vm1125_vm2, %v1650_v45  ;;  %v1558_v6 = vadd.f32 %v4822_v35, %v1536_v26  ;;  %v4984_v12 = vadd.f32 1e-12, %v1490_v55 }
 0x378   :  { %v1493_v57 = vadd.f32 %v1477_v27, %v4832_v63  ;;  %v4988_v17 = vmul.f32 %v4733_v22, %v1621_v21  ;;  %v1653_v32 = vmul.f32 %v4789_v31, %v1621_v21  ;;  %v1607_v23 = vsel %vm1575_vm14, %v1559_v61, %v1591_v8 }
 0x379   :  { %v4992_v20 = vmul.f32 %v1620_v47, %v4735_v9  ;;  %v1652_v10 = vmul.f32 %v1620_v47, %v4797_v52  ;;  %vm1574_vm15 = vcmp.gt.f32.partialorder %v1558_v6, 0.0  ;;  %v1590_v51 = vmul.f32 0.2, %v1558_v6 }
 0x37a   :  { %4096 = vrsqrt.f32 %v4984_v12  ;;  %2947 = vst.msk [vmem:[%s5561_s14 + $0xb8] sm:$0xff] %vm1125_vm2, %v4988_v17  ;;  %2963 = vst.msk [vmem:[%s5561_s14 + $0x138] sm:$0xff] %vm1125_vm2, %v1653_v32  ;;  %v1623_v9 = vmul.f32 %v4091_v25, %v1607_v23  ;;  %v5016_v31 = vadd.f32 1e-12, %v1493_v57  ;;  %v1476_v52 = vmul.f32 %v4874_v19, %v4874_v19 }
 0x37b   :  { %v5005_v22 = vpack.c.bf16 %v1653_v32, %v1652_v10  ;;  %2946 = vst.msk [vmem:[%s5561_s14 + $0xb0] sm:$0xff] %vm1125_vm2, %v4992_v20  ;;  %2962 = vst.msk [vmem:[%s5561_s14 + $0x130] sm:$0xff] %vm1125_vm2, %v1652_v10  ;;  %v4095_v63 = vpop.eup %4094  ;;  %v1606_v28 = vsel %vm1574_vm15, %v1558_v6, %v1590_v51  ;;  %v1479_v24 = vmul.f32 %v4886_v37, %v4886_v37  ;;  %v1826_v45 = vsub.f32 0.0, %v4914_v42 }
 0x37c   :  { %v1478_v58 = vmul.f32 %v4900_v34, %v4900_v34  ;;  %v3902_v29 = vpack.c.bf16 %v4878_v14, %v4882_v48  ;;  %v5027_v56 = vmul.f32 %v4737_v38, %v1623_v9  ;;  %v1655_v25 = vmul.f32 %v4811_v43, %v1623_v9 }
 0x37d   :  { %v1622_v59 = vmul.f32 %v4093_v46, %v1606_v28  ;;  %v1539_v4 = vmul.f32 %v4095_v63, %v4898_v39  ;;  %4098 = vrsqrt.f32 %v5016_v31  ;;  %v1492_v36 = vadd.f32 %v1476_v52, %v4840_v49 }
 0x37e   :  { %v1495_v61 = vadd.f32 %v1479_v24, %v4845_v15  ;;  %v1494_v26 = vadd.f32 %v1478_v58, %v4853_v2  ;;  %3903 = vmatpush3.bf16.msra.mxu1 %v3902_v29  ;;  %2949 = vst.msk [vmem:[%s5561_s14 + $0xc8] sm:$0xff] %vm1125_vm2, %v5027_v56  ;;  %2965 = vst.msk [vmem:[%s5561_s14 + $0x148] sm:$0xff] %vm1125_vm2, %v1655_v25  ;;  %v1823_v15 = vsub.f32 0.0, %v4882_v48  ;;  %v1825_v48 = vsub.f32 0.0, %v4920_v16 }
 0x37f   :  { %v5045_v38 = vmul.f32 %v1622_v59, %v4739_v0  ;;  %v1654_v43 = vmul.f32 %v1622_v59, %v4828_v60  ;;  %v1561_v49 = vadd.f32 %v4822_v35, %v1539_v4  ;;  %3905 = vmatprep.subr.bf16.mxu1 %v4935_v11  ;;  %v1508_v2 = vadd.f32 1e-12, %v1492_v36 }
 0x380   :  { %v5051_v39 = vadd.f32 1e-12, %v1495_v61  ;;  %v5053_v46 = vadd.f32 1e-12, %v1494_v26  ;;  %v3906_v55 = vpack.c.bf16 %v4914_v42, %v4920_v16  ;;  %v1824_v60 = vsub.f32 0.0, %v4878_v14 }
 0x381   :  { %v5057_v27 = vpack.c.bf16 %v1655_v25, %v1654_v43  ;;  %2948 = vst.msk [vmem:[%s5561_s14 + $0xc0] sm:$0xff] %vm1125_vm2, %v5045_v38  ;;  %2964 = vst.msk [vmem:[%s5561_s14 + $0x140] sm:$0xff] %vm1125_vm2, %v1654_v43  ;;  %vm1577_vm3 = vcmp.gt.f32.partialorder %v1561_v49, 0.0  ;;  %v1593_v0 = vmul.f32 0.2, %v1561_v49  ;;  %4100 = vrsqrt.f32 %v1508_v2 }
 0x382   :  { %3907 = vmatpush3.bf16.msra.mxu1 %v3906_v55  ;;  %v3910_v54 = vpack.c.bf16 %v4950_v3, %v4969_v33  ;;  %4102 = vrsqrt.f32 %v5051_v39  ;;  %v3932_v21 = vpack.c.bf16 %v1824_v60, %v1823_v15  ;;  %v1827_v47 = vsub.f32 0.0, %v4969_v33 }
 0x383   :  { %v1609_v62 = vsel %vm1577_vm3, %v1561_v49, %v1593_v0  ;;  %3909 = vmatprep.subr.bf16.mxu1 %v4972_v40  ;;  %4104 = vrsqrt.f32 %v5053_v46  ;;  %v3936_v14 = vpack.c.bf16 %v1826_v45, %v1825_v48  ;;  %v1828_v16 = vsub.f32 0.0, %v4950_v3 }
 0x384   :  { %v4097_v8 = vpop.eup %4096  ;;  %v1625_v6 = vmul.f32 %v4095_v63, %v1609_v62  ;;  %3933 = vmatprep.subr.bf16.mxu0 %v3932_v21  ;;  %v3914_v57 = vpack.c.bf16 %v4988_v17, %v4992_v20  ;;  %v1829_v32 = vsub.f32 0.0, %v4992_v20  ;;  %v1830_v10 = vsub.f32 0.0, %v4988_v17 }
 0x385   :  { %v1538_v42 = vmul.f32 %v4097_v8, %v4984_v12  ;;  %3935 = vmatpush3.bf16.msra.mxu0 %v4902_v18  ;;  %v3940_v51 = vpack.c.bf16 %v1828_v16, %v1827_v47  ;;  %v1831_v3 = vsub.f32 0.0, %v5045_v38  ;;  %v3918_v17 = vpack.c.bf16 %v5027_v56, %v5045_v38 }
 0x386   :  { %v5084_v23 = vmul.f32 %v4741_v13, %v1625_v6  ;;  %v1657_v33 = vmul.f32 %v4849_v30, %v1625_v6  ;;  %3911 = vmatpush3.bf16.msra.mxu1 %v3910_v54  ;;  %3937 = vmatprep.subr.bf16.mxu0 %v3936_v14  ;;  %v3944_v9 = vpack.c.bf16 %v1830_v10, %v1829_v32  ;;  %v1832_v13 = vsub.f32 0.0, %v5027_v56  ;;  %v2001_v14 = vld [vmem:[%s5562_s9] sm:$0xff] }
 0x387   :  { %v1560_v12 = vadd.f32 %v4822_v35, %v1538_v42  ;;  %3913 = vmatprep.subr.bf16.mxu1 %v5005_v22  ;;  %v4099_v20 = vpop.eup %4098 }
 0x388   :  { %2951 = vst.msk [vmem:[%s5561_s14 + $0xd8] sm:$0xff] %vm1125_vm2, %v5084_v23  ;;  %2967 = vst.msk [vmem:[%s5561_s14 + $0x158] sm:$0xff] %vm1125_vm2, %v1657_v33  ;;  %v1541_v18 = vmul.f32 %v4099_v20, %v5016_v31  ;;  %v3948_v52 = vpack.c.bf16 %v1832_v13, %v1831_v3  ;;  %v1834_v38 = vsub.f32 0.0, %v5084_v23  ;;  %v100_v3 = vld [vmem:[%s5559_s1 + $0x28] sm:$0xff] }
 0x389   :  { %vm1576_vm4 = vcmp.gt.f32.partialorder %v1560_v12, 0.0  ;;  %v1592_v30 = vmul.f32 0.2, %v1560_v12  ;;  %3939 = vmatpush3.bf16.msra.mxu0 %v4935_v11  ;;  %v104_v13 = vld [vmem:[%s5559_s1 + $0x48] sm:$0xff] }
 0x38a   :  { %3915 = vmatpush3.bf16.msra.mxu1 %v3914_v57  ;;  %v1563_v28 = vadd.f32 %v4822_v35, %v1541_v18  ;;  %3941 = vmatprep.subr.bf16.mxu0 %v3940_v51  ;;  %v97_v51 = vld [vmem:[%s5559_s1 + $0x10] sm:$0xff] }
 0x38b   :  { %v1608_v63 = vsel %vm1576_vm4, %v1560_v12, %v1592_v30  ;;  %3917 = vmatprep.subr.bf16.mxu1 %v5057_v27  ;;  %v4101_v24 = vpop.eup %4100  ;;  %v99_v12 = vld [vmem:[%s5559_s1 + $0x20] sm:$0xff]  ;;  %v106_v30 = vld [vmem:[%s5559_s1 + $0x58] sm:$0xff]  ;;  %v105_v18 = vld [vmem:[%s5559_s1 + $0x50] sm:$0xff] }
 0x38c   :  { %v1624_v58 = vmul.f32 %v4097_v8, %v1608_v63  ;;  %v4103_v29 = vpop.eup %4102  ;;  %vm1579_vm5 = vcmp.gt.f32.partialorder %v1563_v28, 0.0  ;;  %v1595_v56 = vmul.f32 0.2, %v1563_v28  ;;  %v1540_v25 = vmul.f32 %v4101_v24, %v1508_v2  ;;  %v107_v63 = vld [vmem:[%s5559_s1 + $0x60] sm:$0xff] }
 0x38d   :  { %v4105_v59 = vpop.eup %4104  ;;  %v1543_v11 = vmul.f32 %v4103_v29, %v5051_v39  ;;  %3943 = vmatpush3.bf16.msra.mxu0 %v4972_v40 }
 0x38e   :  { %v1640_v4 = vmul.f32 %v1624_v58, %v4743_v7  ;;  %v1656_v31 = vmul.f32 %v1624_v58, %v4860_v50  ;;  %3919 = vmatpush3.bf16.msra.mxu1 %v3918_v17  ;;  %v1611_v36 = vsel %vm1579_vm5, %v1563_v28, %v1595_v56  ;;  %v1562_v61 = vadd.f32 %v4822_v35, %v1540_v25  ;;  %v101_v17 = vld [vmem:[%s5559_s1 + $0x30] sm:$0xff]  ;;  %v110_v28 = vld [vmem:[%s5559_s1 + $0x78] sm:$0xff]  ;;  %v112_v58 = vld [vmem:[%s5559_s1 + $0x88] sm:$0xff] }
 0x38f   :  { %v1542_v26 = vmul.f32 %v4105_v59, %v5053_v46  ;;  %3945 = vmatprep.subr.bf16.mxu0 %v3944_v9  ;;  %v1627_v7 = vmul.f32 %v4099_v20, %v1611_v36  ;;  %v1565_v50 = vadd.f32 %v4822_v35, %v1543_v11  ;;  %v102_v9 = vld [vmem:[%s5559_s1 + $0x38] sm:$0xff]  ;;  %v103_v20 = vld [vmem:[%s5559_s1 + $0x40] sm:$0xff]  ;;  %v113_v25 = vld [vmem:[%s5559_s1 + $0x90] sm:$0xff] }
 0x390   :  { %v3920_v43 = vpack.c.bf16 %v1657_v33, %v1656_v31  ;;  %2950 = vst.msk [vmem:[%s5561_s14 + $0xd0] sm:$0xff] %vm1125_vm2, %v1640_v4  ;;  %2966 = vst.msk [vmem:[%s5561_s14 + $0x150] sm:$0xff] %vm1125_vm2, %v1656_v31  ;;  %v3922_v40 = vpack.c.bf16 %v5084_v23, %v1640_v4  ;;  %vm1578_vm6 = vcmp.gt.f32.partialorder %v1562_v61, 0.0  ;;  %v1594_v49 = vmul.f32 0.2, %v1562_v61  ;;  %v95_v23 = vld [vmem:[%s5559_s1] sm:$0xff] }
 0x391   :  { %v1564_v15 = vadd.f32 %v4822_v35, %v1542_v26  ;;  %v1833_v2 = vsub.f32 0.0, %v1640_v4  ;;  %v1643_v39 = vmul.f32 %v4745_v1, %v1627_v7  ;;  %v1659_v46 = vmul.f32 %v4867_v5, %v1627_v7  ;;  %3947 = vmatpush3.bf16.msra.mxu0 %v5005_v22  ;;  %v98_v33 = vld [vmem:[%s5559_s1 + $0x18] sm:$0xff]  ;;  %v115_v4 = vld [vmem:[%s5559_s1 + $0xa0] sm:$0xff]  ;;  %v117_v11 = vld [vmem:[%s5559_s1 + $0xb0] sm:$0xff] }
 0x392   :  { %vm1581_vm7 = vcmp.gt.f32.partialorder %v1565_v50, 0.0  ;;  %v1597_v55 = vmul.f32 0.2, %v1565_v50  ;;  %3921 = vmatprep.subr.bf16.mxu1 %v3920_v43  ;;  %v1610_v0 = vsel %vm1578_vm6, %v1562_v61, %v1594_v49  ;;  %3949 = vmatprep.subr.bf16.mxu0 %v3948_v52  ;;  %v108_v52 = vld [vmem:[%s5559_s1 + $0x68] sm:$0xff]  ;;  %v114_v56 = vld [vmem:[%s5559_s1 + $0x98] sm:$0xff]  ;;  %v119_v61 = vld [vmem:[%s5559_s1 + $0xc0] sm:$0xff] }
 0x393   :  { %vm1580_vm8 = vcmp.gt.f32.partialorder %v1564_v15, 0.0  ;;  %v1596_v60 = vmul.f32 0.2, %v1564_v15  ;;  %3923 = vmatpush3.bf16.msra.mxu1 %v3922_v40  ;;  %v3952_v48 = vpack.c.bf16 %v1834_v38, %v1833_v2  ;;  %2953 = vst.msk [vmem:[%s5561_s14 + $0xe8] sm:$0xff] %vm1125_vm2, %v1643_v39  ;;  %2969 = vst.msk [vmem:[%s5561_s14 + $0x168] sm:$0xff] %vm1125_vm2, %v1659_v46  ;;  %v1626_v1 = vmul.f32 %v4101_v24, %v1610_v0  ;;  %v109_v24 = vld [vmem:[%s5559_s1 + $0x70] sm:$0xff] }
 0x394   :  { %v1613_v35 = vsel %vm1581_vm7, %v1565_v50, %v1597_v55  ;;  %v1836_v8 = vsub.f32 0.0, %v1643_v39  ;;  %v118_v31 = vld [vmem:[%s5559_s1 + $0xb8] sm:$0xff]  ;;  %v120_v36 = vld [vmem:[%s5559_s1 + $0xc8] sm:$0xff]  ;;  %v121_v38 = vld [vmem:[%s5559_s1 + $0xd0] sm:$0xff] }
 0x395   :  { %v1629_v5 = vmul.f32 %v4103_v29, %v1613_v35  ;;  %v1612_v22 = vsel %vm1580_vm8, %v1564_v15, %v1596_v60  ;;  %v1642_v45 = vmul.f32 %v1626_v1, %v4747_v44  ;;  %v1658_v54 = vmul.f32 %v1626_v1, %v4874_v19  ;;  %3951 = vmatpush3.bf16.msra.mxu0 %v5057_v27  ;;  %v111_v29 = vld [vmem:[%s5559_s1 + $0x80] sm:$0xff]  ;;  %v122_v26 = vld [vmem:[%s5559_s1 + $0xd8] sm:$0xff]  ;;  %v125_v40 = vld [vmem:[%s5559_s1 + $0xf0] sm:$0xff] }
 0x396   :  { %v1628_v62 = vmul.f32 %v4105_v59, %v1612_v22  ;;  %3953 = vmatprep.subr.bf16.mxu0 %v3952_v48  ;;  %v116_v59 = vld [vmem:[%s5559_s1 + $0xa8] sm:$0xff]  ;;  %v123_v7 = vld [vmem:[%s5559_s1 + $0xe0] sm:$0xff]  ;;  %v126_v50 = vld [vmem:[%s5559_s1 + $0xf8] sm:$0xff] }
 0x397   :  { %v1645_v21 = vmul.f32 %v4749_v41, %v1629_v5  ;;  %v1661_v47 = vmul.f32 %v4886_v37, %v1629_v5  ;;  %v3924_v6 = vpack.c.bf16 %v1659_v46, %v1658_v54  ;;  %2952 = vst.msk [vmem:[%s5561_s14 + $0xe0] sm:$0xff] %vm1125_vm2, %v1642_v45  ;;  %2968 = vst.msk [vmem:[%s5561_s14 + $0x160] sm:$0xff] %vm1125_vm2, %v1658_v54  ;;  %v1835_v37 = vsub.f32 0.0, %v1642_v45  ;;  %v2000_v49 = vld [vmem:[%s5563_s8] sm:$0xf]  ;;  %v2675_v0 = vld [vmem:[%s5565_s11 + $0x8] sm:$0xff] }
 0x398   :  { %v1644_v44 = vmul.f32 %v1628_v62, %v4751_v53  ;;  %v1660_v19 = vmul.f32 %v1628_v62, %v4900_v34  ;;  %v3926_v41 = vpack.c.bf16 %v1643_v39, %v1642_v45  ;;  %v2002_v53 = vld [vmem:[%s5562_s9 + $0x8] sm:$0xff]  ;;  %v2674_v55 = vld [vmem:[%s5565_s11] sm:$0xff] }
 0x399   :  { %2955 = vst.msk [vmem:[%s5561_s14 + $0xf8] sm:$0xff] %vm1125_vm2, %v1645_v21  ;;  %2971 = vst.msk [vmem:[%s5561_s14 + $0x178] sm:$0xff] %vm1125_vm2, %v1661_v47  ;;  %v1838_v27 = vsub.f32 0.0, %v1645_v21  ;;  %3955 = vmatpush3.bf16.msra.mxu0 %v3920_v43  ;;  %3925 = vmatprep.subr.bf16.mxu1 %v3924_v6  ;;  %v3956_v57 = vpack.c.bf16 %v1836_v8, %v1835_v37  ;;  %v3964_v10 = vpack.c.bf16 %v2002_v53, %v2001_v14  ;;  %v124_v43 = vld [vmem:[%s5559_s1 + $0xe8] sm:$0xff]  ;;  %v2392_v45 = vld [vmem:[%s5564_s10] sm:$0xff] }
 0x39a   :  { %v3928_v34 = vpack.c.bf16 %v1661_v47, %v1660_v19  ;;  %2954 = vst.msk [vmem:[%s5561_s14 + $0xf0] sm:$0xff] %vm1125_vm2, %v1644_v44  ;;  %2970 = vst.msk [vmem:[%s5561_s14 + $0x170] sm:$0xff] %vm1125_vm2, %v1660_v19  ;;  %v3930_v16 = vpack.c.bf16 %v1645_v21, %v1644_v44  ;;  %v1837_v42 = vsub.f32 0.0, %v1644_v44  ;;  %3927 = vmatpush3.bf16.msra.mxu1 %v3926_v41  ;;  %v2393_v54 = vld [vmem:[%s5564_s10 + $0x8] sm:$0xff] }
 0x39b   :  { %3957 = vmatprep.subr.bf16.mxu0 %v3956_v57  ;;  %v3972_v35 = vpack.c.bf16 %v2675_v0, %v2674_v55  ;;  %v5285_v44 = vpack.c.bf16 %v2393_v54, %v2392_v45 }
 0x39c   :  { %3929 = vmatprep.subr.bf16.mxu1 %v3928_v34  ;;  %v3960_v32 = vpack.c.bf16 %v1838_v27, %v1837_v42 }
 0x39d   :  { %3959 = vmatpush3.bf16.msra.mxu0 %v3924_v6 }
 0x39e   :  { %3931 = vmatpush3.bf16.msra.mxu1 %v3930_v16  ;;  %3961 = vmatprep.subr.bf16.mxu0 %v3960_v32 }
 0x39f   :  { %3965 = vmatprep.subr.bf16.mxu1 %v3964_v10 }
 0x3a1   :  { %3963 = vmatpush3.bf16.msra.mxu0 %v3928_v34  ;;  %1727 = vmatmul.mubr.f32.vlgmr.msra.gmra.mrb[32].mxu1 %v95_v23 }
 0x3a2   :  { %1731 = vmatprep.mubr.f32.mxu1 %v98_v33  ;;  %3967 = vmatpush3.bf16.msra.mxu1 %v3964_v10 }
 0x3a3   :  { %3782 = vmatprep.subr.msk.mxu1 %vm451_vm0, %v2000_v49  ;;  %3973 = vmatprep.subr.bf16.mxu0 %v3972_v35 }
 0x3a4   :  { %1904 = vmatmul.mubr.f32.vlgmr.msra.gmra.mrb[72].mxu0 %v95_v23 }
 0x3a5   :  { %1732 = vmatmul.mubr.f32.gmra.mrb[34].mxu1 %v97_v51  ;;  %1908 = vmatprep.mubr.f32.mxu0 %v98_v33 }
 0x3a6   :  { %1736 = vmatprep.mubr.f32.mxu1 %v100_v3  ;;  %3975 = vmatpush3.bf16.msra.mxu0 %v3972_v35 }
 0x3a8   :  { %1909 = vmatmul.mubr.f32.gmra.mrb[74].mxu0 %v97_v51 }
 0x3a9   :  { %1737 = vmatmul.mubr.f32.gmra.mrb[36].mxu1 %v99_v12  ;;  %1913 = vmatprep.mubr.f32.mxu0 %v100_v3 }
 0x3aa   :  { %1741 = vmatprep.mubr.f32.mxu1 %v102_v9 }
 0x3ac   :  { %1914 = vmatmul.mubr.f32.gmra.mrb[76].mxu0 %v99_v12 }
 0x3ad   :  { %1742 = vmatmul.mubr.f32.gmra.mrb[38].mxu1 %v101_v17  ;;  %1918 = vmatprep.mubr.f32.mxu0 %v102_v9 }
 0x3ae   :  { %1746 = vmatprep.mubr.f32.mxu1 %v104_v13 }
 0x3b0   :  { %1919 = vmatmul.mubr.f32.gmra.mrb[78].mxu0 %v101_v17 }
 0x3b1   :  { %1747 = vmatmul.mubr.f32.gmra.mrb[40].mxu1 %v103_v20  ;;  %1923 = vmatprep.mubr.f32.mxu0 %v104_v13 }
 0x3b2   :  { %1751 = vmatprep.mubr.f32.mxu1 %v106_v30 }
 0x3b4   :  { %1924 = vmatmul.mubr.f32.gmra.mrb[80].mxu0 %v103_v20 }
 0x3b5   :  { %1752 = vmatmul.mubr.f32.gmra.mrb[42].mxu1 %v105_v18  ;;  %1928 = vmatprep.mubr.f32.mxu0 %v106_v30 }
 0x3b6   :  { %1756 = vmatprep.mubr.f32.mxu1 %v108_v52 }
 0x3b8   :  { %1929 = vmatmul.mubr.f32.gmra.mrb[82].mxu0 %v105_v18 }
 0x3b9   :  { %1757 = vmatmul.mubr.f32.gmra.mrb[44].mxu1 %v107_v63  ;;  %1933 = vmatprep.mubr.f32.mxu0 %v108_v52 }
 0x3ba   :  { %1761 = vmatprep.mubr.f32.mxu1 %v110_v28 }
 0x3bc   :  { %1934 = vmatmul.mubr.f32.gmra.mrb[84].mxu0 %v107_v63 }
 0x3bd   :  { %1762 = vmatmul.mubr.f32.gmra.mrb[46].mxu1 %v109_v24  ;;  %1938 = vmatprep.mubr.f32.mxu0 %v110_v28 }
 0x3be   :  { %1766 = vmatprep.mubr.f32.mxu1 %v112_v58 }
 0x3c0   :  { %1939 = vmatmul.mubr.f32.gmra.mrb[86].mxu0 %v109_v24 }
 0x3c1   :  { %1767 = vmatmul.mubr.f32.gmra.mrb[48].mxu1 %v111_v29  ;;  %1943 = vmatprep.mubr.f32.mxu0 %v112_v58 }
 0x3c2   :  { %1771 = vmatprep.mubr.f32.mxu1 %v114_v56 }
 0x3c4   :  { %1944 = vmatmul.mubr.f32.gmra.mrb[88].mxu0 %v111_v29 }
 0x3c5   :  { %1772 = vmatmul.mubr.f32.gmra.mrb[50].mxu1 %v113_v25  ;;  %1948 = vmatprep.mubr.f32.mxu0 %v114_v56 }
 0x3c6   :  { %1776 = vmatprep.mubr.f32.mxu1 %v116_v59 }
 0x3c8   :  { %1949 = vmatmul.mubr.f32.gmra.mrb[90].mxu0 %v113_v25 }
 0x3c9   :  { %1777 = vmatmul.mubr.f32.gmra.mrb[52].mxu1 %v115_v4  ;;  %1953 = vmatprep.mubr.f32.mxu0 %v116_v59 }
 0x3ca   :  { %1781 = vmatprep.mubr.f32.mxu1 %v118_v31 }
 0x3cc   :  { %1954 = vmatmul.mubr.f32.gmra.mrb[92].mxu0 %v115_v4 }
 0x3cd   :  { %1782 = vmatmul.mubr.f32.gmra.mrb[54].mxu1 %v117_v11  ;;  %1958 = vmatprep.mubr.f32.mxu0 %v118_v31 }
 0x3ce   :  { %1786 = vmatprep.mubr.f32.mxu1 %v120_v36 }
 0x3d0   :  { %1959 = vmatmul.mubr.f32.gmra.mrb[94].mxu0 %v117_v11 }
 0x3d1   :  { %1787 = vmatmul.mubr.f32.gmra.mrb[56].mxu1 %v119_v61  ;;  %1963 = vmatprep.mubr.f32.mxu0 %v120_v36 }
 0x3d2   :  { %1791 = vmatprep.mubr.f32.mxu1 %v122_v26 }
 0x3d4   :  { %1964 = vmatmul.mubr.f32.gmra.mrb[96].mxu0 %v119_v61 }
 0x3d5   :  { %1792 = vmatmul.mubr.f32.gmra.mrb[58].mxu1 %v121_v38  ;;  %1968 = vmatprep.mubr.f32.mxu0 %v122_v26 }
 0x3d6   :  { %1796 = vmatprep.mubr.f32.mxu1 %v124_v43 }
 0x3d8   :  { %1969 = vmatmul.mubr.f32.gmra.mrb[98].mxu0 %v121_v38 }
 0x3d9   :  { %1797 = vmatmul.mubr.f32.gmra.mrb[60].mxu1 %v123_v7  ;;  %1973 = vmatprep.mubr.f32.mxu0 %v124_v43 }
 0x3da   :  { %1801 = vmatprep.mubr.f32.mxu1 %v126_v50 }
 0x3dc   :  { %1974 = vmatmul.mubr.f32.gmra.mrb[100].mxu0 %v123_v7 }
 0x3dd   :  { %1802 = vmatmul.mubr.f32.gmra.mrb[62].mxu1 %v125_v40  ;;  %1978 = vmatprep.mubr.f32.mxu0 %v126_v50 }
 0x3e0   :  { %1979 = vmatmul.mubr.f32.gmra.mrb[102].mxu0 %v125_v40 }
 0x474   :  { %v3323_v15 = vpop.f32.mrb[32].mxu1 }
 0x475   :  { %v3324_v2 = vpop.f32.mrb[33].mxu1 }
 0x476   :  { %v3325_v39 = vadd.f32 %v3324_v2, %v3323_v15 }
 0x477   :  { %v3403_v46 = vpop.f32.mrb[72].mxu0 }
 0x478   :  { %v1807_v60 = vsub.f32 0.0, %v3325_v39  ;;  %v3326_v48 = vpop.f32.mrb[34].mxu1  ;;  %v3404_v1 = vpop.f32.mrb[73].mxu0 }
 0x479   :  { %v3327_v5 = vpop.f32.mrb[35].mxu1  ;;  %v5276_v22 = vadd.f32 %v3404_v1, %v3403_v46 }
 0x47a   :  { %v3328_v62 = vadd.f32 %v3327_v5, %v3326_v48  ;;  %3758 = vmatprep.mubr.msk.f32.mxu1 %vm1125_vm2, %v1807_v60 }
 0x47b   :  { %v3406_v21 = vpop.f32.mrb[74].mxu0 }
 0x47c   :  { %v1808_v47 = vsub.f32 0.0, %v3328_v62  ;;  %v3329_v8 = vpop.f32.mrb[36].mxu1  ;;  %v3407_v6 = vpop.f32.mrb[75].mxu0 }
 0x47d   :  { %v3330_v19 = vpop.f32.mrb[37].mxu1  ;;  %v5287_v41 = vadd.f32 %v3407_v6, %v3406_v21 }
 0x47e   :  { %v3331_v37 = vadd.f32 %v3330_v19, %v3329_v8  ;;  %3759 = vmatmul.mubr.msk.f32.vlgmr.msra.gmra.mrb[64].mxu1 %vm1125_vm2, %v1808_v47 }
 0x47f   :  { %3783 = vmatpush3.msk.msra.mxu1 %vm451_vm0, %v2000_v49  ;;  %v3409_v27 = vpop.f32.mrb[76].mxu0 }
 0x480   :  { %v1809_v14 = vsub.f32 0.0, %v3331_v37  ;;  %v3332_v53 = vpop.f32.mrb[38].mxu1  ;;  %3969 = vmatprep.subr.bf16.mxu1 %v5285_v44  ;;  %v3410_v34 = vpop.f32.mrb[77].mxu0 }
 0x481   :  { %v3333_v16 = vpop.f32.mrb[39].mxu1  ;;  %v5292_v42 = vadd.f32 %v3410_v34, %v3409_v27 }
 0x482   :  { %v3334_v57 = vadd.f32 %v3333_v16, %v3332_v53  ;;  %3761 = vmatprep.mubr.msk.f32.mxu1 %vm1125_vm2, %v1809_v14 }
 0x483   :  { %v3412_v32 = vpop.f32.mrb[78].mxu0 }
 0x484   :  { %v1810_v10 = vsub.f32 0.0, %v3334_v57  ;;  %v3335_v23 = vpop.f32.mrb[40].mxu1  ;;  %v3413_v33 = vpop.f32.mrb[79].mxu0 }
 0x485   :  { %v3336_v51 = vpop.f32.mrb[41].mxu1  ;;  %v5295_v3 = vadd.f32 %v3413_v33, %v3412_v32 }
 0x486   :  { %v3337_v12 = vadd.f32 %v3336_v51, %v3335_v23  ;;  %3762 = vmatmul.mubr.msk.f32.gmra.mrb[66].mxu1 %vm1125_vm2, %v1810_v10 }
 0x487   :  { %v3415_v9 = vpop.f32.mrb[80].mxu0 }
 0x488   :  { %v1811_v17 = vsub.f32 0.0, %v3337_v12  ;;  %v3338_v13 = vpop.f32.mrb[42].mxu1  ;;  %v3416_v20 = vpop.f32.mrb[81].mxu0 }
 0x489   :  { %v3339_v30 = vpop.f32.mrb[43].mxu1  ;;  %v5298_v18 = vadd.f32 %v3416_v20, %v3415_v9 }
 0x48a   :  { %v3340_v52 = vadd.f32 %v3339_v30, %v3338_v13  ;;  %3764 = vmatprep.mubr.msk.f32.mxu1 %vm1125_vm2, %v1811_v17 }
 0x48b   :  { %v3418_v63 = vpop.f32.mrb[82].mxu0 }
 0x48c   :  { %v1812_v28 = vsub.f32 0.0, %v3340_v52  ;;  %v3341_v24 = vpop.f32.mrb[44].mxu1  ;;  %v3419_v58 = vpop.f32.mrb[83].mxu0 }
 0x48d   :  { %v3342_v29 = vpop.f32.mrb[45].mxu1  ;;  %v5301_v56 = vadd.f32 %v3419_v58, %v3418_v63 }
 0x48e   :  { %v3343_v25 = vadd.f32 %v3342_v29, %v3341_v24  ;;  %3765 = vmatmul.mubr.msk.f32.gmra.mrb[68].mxu1 %vm1125_vm2, %v1812_v28 }
 0x48f   :  { %v3421_v59 = vpop.f32.mrb[84].mxu0 }
 0x490   :  { %v1813_v4 = vsub.f32 0.0, %v3343_v25  ;;  %v3344_v31 = vpop.f32.mrb[46].mxu1  ;;  %v3422_v11 = vpop.f32.mrb[85].mxu0 }
 0x491   :  { %v3345_v36 = vpop.f32.mrb[47].mxu1  ;;  %v5304_v61 = vadd.f32 %v3422_v11, %v3421_v59 }
 0x492   :  { %v3346_v26 = vadd.f32 %v3345_v36, %v3344_v31  ;;  %3767 = vmatprep.mubr.msk.f32.mxu1 %vm1125_vm2, %v1813_v4 }
 0x493   :  { %v3424_v38 = vpop.f32.mrb[86].mxu0 }
 0x494   :  { %v1814_v43 = vsub.f32 0.0, %v3346_v26  ;;  %v3347_v7 = vpop.f32.mrb[48].mxu1  ;;  %v3425_v50 = vpop.f32.mrb[87].mxu0 }
 0x495   :  { %v3348_v40 = vpop.f32.mrb[49].mxu1  ;;  %v5307_v49 = vadd.f32 %v3425_v50, %v3424_v38 }
 0x496   :  { %v3349_v15 = vadd.f32 %v3348_v40, %v3347_v7  ;;  %3768 = vmatmul.mubr.msk.f32.gmra.mrb[70].mxu1 %vm1125_vm2, %v1814_v43  ;;  %v4106_v40 = vld [vmem:[%s5553_s2] sm:$0xff] }
 0x497   :  { %v3427_v2 = vpop.f32.mrb[88].mxu0 }
 0x498   :  { %v1815_v39 = vsub.f32 0.0, %v3349_v15  ;;  %v3350_v46 = vpop.f32.mrb[50].mxu1  ;;  %v3428_v55 = vpop.f32.mrb[89].mxu0  ;;  %v4107_v15 = vld [vmem:[%s5553_s2 + $0x8] sm:$0xff] }
 0x499   :  { %v3351_v0 = vpop.f32.mrb[51].mxu1  ;;  %v5310_v60 = vadd.f32 %v3428_v55, %v3427_v2  ;;  %v4108_v2 = vld [vmem:[%s5553_s2 + $0x10] sm:$0xff]  ;;  %v4111_v55 = vld [vmem:[%s5553_s2 + $0x28] sm:$0xff] }
 0x49a   :  { %v3352_v48 = vadd.f32 %v3351_v0, %v3350_v46  ;;  %3770 = vmatprep.mubr.msk.f32.mxu1 %vm1125_vm2, %v1815_v39  ;;  %v4109_v39 = vld [vmem:[%s5553_s2 + $0x18] sm:$0xff]  ;;  %v4110_v46 = vld [vmem:[%s5553_s2 + $0x20] sm:$0xff] }
 0x49b   :  { %v3430_v1 = vpop.f32.mrb[90].mxu0  ;;  %v4113_v0 = vld [vmem:[%s5553_s2 + $0x38] sm:$0xff] }
 0x49c   :  { %v1816_v35 = vsub.f32 0.0, %v3352_v48  ;;  %v3353_v5 = vpop.f32.mrb[52].mxu1  ;;  %v3431_v45 = vpop.f32.mrb[91].mxu0  ;;  %v4114_v48 = vld [vmem:[%s5553_s2 + $0x40] sm:$0xff] }
 0x49d   :  { %v3354_v54 = vpop.f32.mrb[53].mxu1  ;;  %v5313_v62 = vadd.f32 %v3431_v45, %v3430_v1  ;;  %v4115_v1 = vld [vmem:[%s5553_s2 + $0x48] sm:$0xff]  ;;  %v4118_v45 = vld [vmem:[%s5553_s2 + $0x60] sm:$0xff] }
 0x49e   :  { %v3355_v21 = vadd.f32 %v3354_v54, %v3353_v5  ;;  %3771 = vmatmul.mubr.msk.f32.gmra.mrb[72].mxu1 %vm1125_vm2, %v1816_v35  ;;  %v4116_v35 = vld [vmem:[%s5553_s2 + $0x50] sm:$0xff]  ;;  %v4117_v5 = vld [vmem:[%s5553_s2 + $0x58] sm:$0xff]  ;;  %v4119_v54 = vld [vmem:[%s5553_s2 + $0x68] sm:$0xff] }
 0x49f   :  { %v3433_v47 = vpop.f32.mrb[92].mxu0 }
 0x4a0   :  { %v1817_v8 = vsub.f32 0.0, %v3355_v21  ;;  %v3356_v6 = vpop.f32.mrb[54].mxu1  ;;  %v3434_v19 = vpop.f32.mrb[93].mxu0  ;;  %v4120_v21 = vld [vmem:[%s5553_s2 + $0x70] sm:$0xff] }
 0x4a1   :  { %v3357_v37 = vpop.f32.mrb[55].mxu1  ;;  %v5316_v27 = vadd.f32 %v3434_v19, %v3433_v47  ;;  %v1984_v47 = vsub.f32 0.0, %v5276_v22  ;;  %v1986_v19 = vsub.f32 0.0, %v5292_v42  ;;  %v1988_v22 = vsub.f32 0.0, %v5298_v18 }
 0x4a2   :  { %v3358_v14 = vadd.f32 %v3357_v37, %v3356_v6  ;;  %3773 = vmatprep.mubr.msk.f32.mxu1 %vm1125_vm2, %v1817_v8  ;;  %v4121_v8 = vld [vmem:[%s5553_s2 + $0x78] sm:$0xff]  ;;  %v1985_v6 = vsub.f32 0.0, %v5287_v41  ;;  %v1987_v37 = vsub.f32 0.0, %v5295_v3  ;;  %v1991_v41 = vsub.f32 0.0, %v5307_v49 }
 0x4a3   :  { %v3436_v53 = vpop.f32.mrb[94].mxu0  ;;  %v1992_v42 = vsub.f32 0.0, %v5310_v60  ;;  %v1993_v3 = vsub.f32 0.0, %v5313_v62  ;;  %v1994_v18 = vsub.f32 0.0, %v5316_v27  ;;  %v5434_v27 = vld [vmem:[%s5566_s12] ss:$0 sm:$0xff] }
 0x4a4   :  { %v1818_v34 = vsub.f32 0.0, %v3358_v14  ;;  %v3359_v16 = vpop.f32.mrb[56].mxu1  ;;  %v3437_v57 = vpop.f32.mrb[95].mxu0  ;;  %v1989_v14 = vsub.f32 0.0, %v5301_v56 }
 0x4a5   :  { %v3360_v32 = vpop.f32.mrb[57].mxu1  ;;  %v5319_v10 = vadd.f32 %v3437_v57, %v3436_v53  ;;  %v1990_v53 = vsub.f32 0.0, %v5304_v61 }
 0x4a6   :  { %v3361_v23 = vadd.f32 %v3360_v32, %v3359_v16  ;;  %3774 = vmatmul.mubr.msk.f32.gmra.mrb[74].mxu1 %vm1125_vm2, %v1818_v34 }
 0x4a7   :  { %v3439_v33 = vpop.f32.mrb[96].mxu0  ;;  %v1995_v56 = vsub.f32 0.0, %v5319_v10 }
 0x4a8   :  { %v1819_v51 = vsub.f32 0.0, %v3361_v23  ;;  %v3362_v12 = vpop.f32.mrb[58].mxu1  ;;  %v3440_v9 = vpop.f32.mrb[97].mxu0 }
 0x4a9   :  { %v3363_v17 = vpop.f32.mrb[59].mxu1  ;;  %v5322_v13 = vadd.f32 %v3440_v9, %v3439_v33 }
 0x4aa   :  { %v3364_v20 = vadd.f32 %v3363_v17, %v3362_v12  ;;  %3776 = vmatprep.mubr.msk.f32.mxu1 %vm1125_vm2, %v1819_v51 }
 0x4ab   :  { %v3442_v30 = vpop.f32.mrb[98].mxu0  ;;  %v1996_v61 = vsub.f32 0.0, %v5322_v13 }
 0x4ac   :  { %v1820_v52 = vsub.f32 0.0, %v3364_v20  ;;  %v3365_v63 = vpop.f32.mrb[60].mxu1  ;;  %v3443_v28 = vpop.f32.mrb[99].mxu0 }
 0x4ad   :  { %v3366_v24 = vpop.f32.mrb[61].mxu1  ;;  %v5325_v58 = vadd.f32 %v3443_v28, %v3442_v30 }
 0x4ae   :  { %v3367_v29 = vadd.f32 %v3366_v24, %v3365_v63  ;;  %3777 = vmatmul.mubr.msk.f32.gmra.mrb[76].mxu1 %vm1125_vm2, %v1820_v52 }
 0x4af   :  { %v3445_v25 = vpop.f32.mrb[100].mxu0  ;;  %v1997_v49 = vsub.f32 0.0, %v5325_v58 }
 0x4b0   :  { %v1821_v59 = vsub.f32 0.0, %v3367_v29  ;;  %v3368_v4 = vpop.f32.mrb[62].mxu1  ;;  %v3446_v31 = vpop.f32.mrb[101].mxu0 }
 0x4b1   :  { %v3369_v11 = vpop.f32.mrb[63].mxu1  ;;  %v5328_v36 = vadd.f32 %v3446_v31, %v3445_v25 }
 0x4b2   :  { %v3370_v26 = vadd.f32 %v3369_v11, %v3368_v4  ;;  %3779 = vmatprep.mubr.msk.f32.mxu1 %vm1125_vm2, %v1821_v59 }
 0x4b3   :  { %v3448_v38 = vpop.f32.mrb[102].mxu0  ;;  %v1998_v60 = vsub.f32 0.0, %v5328_v36 }
 0x4b4   :  { %v1822_v43 = vsub.f32 0.0, %v3370_v26  ;;  %v3449_v7 = vpop.f32.mrb[103].mxu0 }
 0x4b5   :  { %v5331_v50 = vadd.f32 %v3449_v7, %v3448_v38 }
 0x4b6   :  { %3780 = vmatmul.mubr.msk.f32.gmra.mrb[78].mxu1 %vm1125_vm2, %v1822_v43 }
 0x4b7   :  { %3784 = vmatprep.mubr.msk.f32.mxu1 %vm354_vm1, %v4106_v40  ;;  %v1999_v62 = vsub.f32 0.0, %v5331_v50 }
 0x4ba   :  { %3785 = vmatmul.mubr.msk.f32.vlgmr.msra.gmra.mrb[64].mxu1 %vm354_vm1, %v4107_v15 }
 0x4bb   :  { %3787 = vmatprep.mubr.msk.f32.mxu1 %vm354_vm1, %v4108_v2  ;;  %3971 = vmatpush3.bf16.msra.mxu1 %v5285_v44  ;;  %v4112_v44 = vld [vmem:[%s5553_s2 + $0x30] sm:$0xff] }
 0x4be   :  { %3788 = vmatmul.mubr.msk.f32.gmra.mrb[66].mxu1 %vm354_vm1, %v4109_v39 }
 0x4bf   :  { %3790 = vmatprep.mubr.msk.f32.mxu1 %vm354_vm1, %v4110_v46 }
 0x4c2   :  { %3791 = vmatmul.mubr.msk.f32.gmra.mrb[68].mxu1 %vm354_vm1, %v4111_v55 }
 0x4c3   :  { %3793 = vmatprep.mubr.msk.f32.mxu1 %vm354_vm1, %v4112_v44 }
 0x4c6   :  { %3794 = vmatmul.mubr.msk.f32.gmra.mrb[70].mxu1 %vm354_vm1, %v4113_v0 }
 0x4c7   :  { %3796 = vmatprep.mubr.msk.f32.mxu1 %vm354_vm1, %v4114_v48 }
 0x4ca   :  { %3797 = vmatmul.mubr.msk.f32.gmra.mrb[72].mxu1 %vm354_vm1, %v4115_v1 }
 0x4cb   :  { %3799 = vmatprep.mubr.msk.f32.mxu1 %vm354_vm1, %v4116_v35 }
 0x4ce   :  { %3800 = vmatmul.mubr.msk.f32.gmra.mrb[74].mxu1 %vm354_vm1, %v4117_v5 }
 0x4cf   :  { %3802 = vmatprep.mubr.msk.f32.mxu1 %vm354_vm1, %v4118_v45 }
 0x4d2   :  { %3803 = vmatmul.mubr.msk.f32.gmra.mrb[76].mxu1 %vm354_vm1, %v4119_v54 }
 0x4d3   :  { %3805 = vmatprep.mubr.msk.f32.mxu1 %vm354_vm1, %v4120_v21 }
 0x4d6   :  { %3806 = vmatmul.mubr.msk.f32.gmra.mrb[78].mxu1 %vm354_vm1, %v4121_v8 }
 0x4d7   :  { %3812 = vmatprep.mubr.msk.f32.mxu1 %vm1125_vm2, %v1984_v47 }
 0x4da   :  { %3813 = vmatmul.mubr.msk.f32.vlgmr.msra.gmra.mrb[64].mxu1 %vm1125_vm2, %v1985_v6 }
 0x4db   :  { %3815 = vmatprep.mubr.msk.f32.mxu1 %vm1125_vm2, %v1986_v19 }
 0x4de   :  { %3816 = vmatmul.mubr.msk.f32.gmra.mrb[66].mxu1 %vm1125_vm2, %v1987_v37 }
 0x4df   :  { %3818 = vmatprep.mubr.msk.f32.mxu1 %vm1125_vm2, %v1988_v22 }
 0x4e2   :  { %3819 = vmatmul.mubr.msk.f32.gmra.mrb[68].mxu1 %vm1125_vm2, %v1989_v14 }
 0x4e3   :  { %3821 = vmatprep.mubr.msk.f32.mxu1 %vm1125_vm2, %v1990_v53 }
 0x4e6   :  { %3822 = vmatmul.mubr.msk.f32.gmra.mrb[70].mxu1 %vm1125_vm2, %v1991_v41 }
 0x4e7   :  { %3824 = vmatprep.mubr.msk.f32.mxu1 %vm1125_vm2, %v1992_v42 }
 0x4ea   :  { %3825 = vmatmul.mubr.msk.f32.gmra.mrb[72].mxu1 %vm1125_vm2, %v1993_v3 }
 0x4eb   :  { %3827 = vmatprep.mubr.msk.f32.mxu1 %vm1125_vm2, %v1994_v18 }
 0x4ee   :  { %3828 = vmatmul.mubr.msk.f32.gmra.mrb[74].mxu1 %vm1125_vm2, %v1995_v56 }
 0x4ef   :  { %3830 = vmatprep.mubr.msk.f32.mxu1 %vm1125_vm2, %v1996_v61 }
 0x4f2   :  { %3831 = vmatmul.mubr.msk.f32.gmra.mrb[76].mxu1 %vm1125_vm2, %v1997_v49 }
 0x4f3   :  { %3833 = vmatprep.mubr.msk.f32.mxu1 %vm1125_vm2, %v1998_v60 }
 0x4f6   :  { %3834 = vmatmul.mubr.msk.f32.gmra.mrb[78].mxu1 %vm1125_vm2, %v1999_v62 }
 0x5ad   :  { %v3814_v34 = vpop.f32.mrb[64].mxu1 }
 0x5ae   :  { %v2611_v16 = vadd.f32 %v3814_v34, %v5434_v27  ;;  %v2508_v57 = vpop.f32.mrb[65].mxu1 }
 0x5af   :  { %v2610_v32 = vadd.f32 %v5434_v27, %v2508_v57 }
 0x5b0   :  { %v2643_v10 = vmul.f32 0.2, %v2611_v16  ;;  %vm2627_vm0 = vcmp.gt.f32.partialorder %v2611_v16, 0.0 }
 0x5b1   :  { %vm2626_vm1 = vcmp.gt.f32.partialorder %v2610_v32, 0.0  ;;  %v2642_v23 = vmul.f32 0.2, %v2610_v32  ;;  %v3817_v33 = vpop.f32.mrb[66].mxu1 }
 0x5b2   :  { %v2613_v51 = vadd.f32 %v3817_v33, %v5434_v27  ;;  %v2518_v12 = vpop.f32.mrb[67].mxu1  ;;  %v2659_v13 = vsel %vm2627_vm0, %v2611_v16, %v2643_v10 }
 0x5b3   :  { %v2612_v9 = vadd.f32 %v5434_v27, %v2518_v12  ;;  %v2658_v17 = vsel %vm2626_vm1, %v2610_v32, %v2642_v23 }
 0x5b4   :  { %v2645_v20 = vmul.f32 0.2, %v2613_v51  ;;  %3840 = vmatprep.mubr.msk.f32.mxu0 %vm1125_vm2, %v2658_v17  ;;  %vm2629_vm9 = vcmp.gt.f32.partialorder %v2613_v51, 0.0 }
 0x5b5   :  { %vm2628_vm10 = vcmp.gt.f32.partialorder %v2612_v9, 0.0  ;;  %v2644_v30 = vmul.f32 0.2, %v2612_v9  ;;  %v3820_v52 = vpop.f32.mrb[68].mxu1  ;;  %3841 = vmatmul.mubr.msk.f32.vlgmr.msra.gmra.mrb[104].mxu0 %vm1125_vm2, %v2659_v13 }
 0x5b6   :  { %v2615_v63 = vadd.f32 %v3820_v52, %v5434_v27  ;;  %v2528_v28 = vpop.f32.mrb[69].mxu1  ;;  %v2661_v25 = vsel %vm2629_vm9, %v2613_v51, %v2645_v20 }
 0x5b7   :  { %v2614_v24 = vadd.f32 %v5434_v27, %v2528_v28  ;;  %v2660_v58 = vsel %vm2628_vm10, %v2612_v9, %v2644_v30 }
 0x5b8   :  { %v2647_v29 = vmul.f32 0.2, %v2615_v63  ;;  %3843 = vmatprep.mubr.msk.f32.mxu0 %vm1125_vm2, %v2660_v58  ;;  %vm2631_vm11 = vcmp.gt.f32.partialorder %v2615_v63, 0.0 }
 0x5b9   :  { %vm2630_vm12 = vcmp.gt.f32.partialorder %v2614_v24, 0.0  ;;  %v2646_v59 = vmul.f32 0.2, %v2614_v24  ;;  %v3823_v4 = vpop.f32.mrb[70].mxu1  ;;  %3844 = vmatmul.mubr.msk.f32.gmra.mrb[106].mxu0 %vm1125_vm2, %v2661_v25 }
 0x5ba   :  { %v2617_v31 = vadd.f32 %v3823_v4, %v5434_v27  ;;  %v2538_v11 = vpop.f32.mrb[71].mxu1  ;;  %v2663_v43 = vsel %vm2631_vm11, %v2615_v63, %v2647_v29 }
 0x5bb   :  { %v2616_v36 = vadd.f32 %v5434_v27, %v2538_v11  ;;  %v2662_v26 = vsel %vm2630_vm12, %v2614_v24, %v2646_v59 }
 0x5bc   :  { %v2649_v38 = vmul.f32 0.2, %v2617_v31  ;;  %3846 = vmatprep.mubr.msk.f32.mxu0 %vm1125_vm2, %v2662_v26  ;;  %vm2633_vm13 = vcmp.gt.f32.partialorder %v2617_v31, 0.0 }
 0x5bd   :  { %vm2632_vm14 = vcmp.gt.f32.partialorder %v2616_v36, 0.0  ;;  %v2648_v7 = vmul.f32 0.2, %v2616_v36  ;;  %v3826_v50 = vpop.f32.mrb[72].mxu1  ;;  %3847 = vmatmul.mubr.msk.f32.gmra.mrb[108].mxu0 %vm1125_vm2, %v2663_v43 }
 0x5be   :  { %v2619_v40 = vadd.f32 %v3826_v50, %v5434_v27  ;;  %v2548_v15 = vpop.f32.mrb[73].mxu1  ;;  %v2665_v55 = vsel %vm2633_vm13, %v2617_v31, %v2649_v38 }
 0x5bf   :  { %v2618_v2 = vadd.f32 %v5434_v27, %v2548_v15  ;;  %v2664_v39 = vsel %vm2632_vm14, %v2616_v36, %v2648_v7 }
 0x5c0   :  { %v2651_v46 = vmul.f32 0.2, %v2619_v40  ;;  %3849 = vmatprep.mubr.msk.f32.mxu0 %vm1125_vm2, %v2664_v39  ;;  %vm2635_vm15 = vcmp.gt.f32.partialorder %v2619_v40, 0.0 }
 0x5c1   :  { %vm2634_vm3 = vcmp.gt.f32.partialorder %v2618_v2, 0.0  ;;  %v2650_v44 = vmul.f32 0.2, %v2618_v2  ;;  %v3829_v0 = vpop.f32.mrb[74].mxu1  ;;  %3850 = vmatmul.mubr.msk.f32.gmra.mrb[110].mxu0 %vm1125_vm2, %v2665_v55 }
 0x5c2   :  { %v2621_v48 = vadd.f32 %v3829_v0, %v5434_v27  ;;  %v2558_v1 = vpop.f32.mrb[75].mxu1  ;;  %v2667_v54 = vsel %vm2635_vm15, %v2619_v40, %v2651_v46 }
 0x5c3   :  { %v2620_v35 = vadd.f32 %v5434_v27, %v2558_v1  ;;  %v2666_v5 = vsel %vm2634_vm3, %v2618_v2, %v2650_v44 }
 0x5c4   :  { %v2653_v45 = vmul.f32 0.2, %v2621_v48  ;;  %3852 = vmatprep.mubr.msk.f32.mxu0 %vm1125_vm2, %v2666_v5  ;;  %vm2637_vm4 = vcmp.gt.f32.partialorder %v2621_v48, 0.0 }
 0x5c5   :  { %vm2636_vm5 = vcmp.gt.f32.partialorder %v2620_v35, 0.0  ;;  %v2652_v21 = vmul.f32 0.2, %v2620_v35  ;;  %v3832_v47 = vpop.f32.mrb[76].mxu1  ;;  %3853 = vmatmul.mubr.msk.f32.gmra.mrb[112].mxu0 %vm1125_vm2, %v2667_v54 }
 0x5c6   :  { %v2623_v8 = vadd.f32 %v3832_v47, %v5434_v27  ;;  %v2568_v6 = vpop.f32.mrb[77].mxu1  ;;  %v2669_v14 = vsel %vm2637_vm4, %v2621_v48, %v2653_v45 }
 0x5c7   :  { %v2622_v19 = vadd.f32 %v5434_v27, %v2568_v6  ;;  %v2668_v37 = vsel %vm2636_vm5, %v2620_v35, %v2652_v21 }
 0x5c8   :  { %v2655_v22 = vmul.f32 0.2, %v2623_v8  ;;  %3855 = vmatprep.mubr.msk.f32.mxu0 %vm1125_vm2, %v2668_v37  ;;  %vm2639_vm6 = vcmp.gt.f32.partialorder %v2623_v8, 0.0 }
 0x5c9   :  { %vm2638_vm7 = vcmp.gt.f32.partialorder %v2622_v19, 0.0  ;;  %v2654_v53 = vmul.f32 0.2, %v2622_v19  ;;  %v3835_v41 = vpop.f32.mrb[78].mxu1  ;;  %3856 = vmatmul.mubr.msk.f32.gmra.mrb[114].mxu0 %vm1125_vm2, %v2669_v14 }
 0x5ca   :  { %v2625_v42 = vadd.f32 %v3835_v41, %v5434_v27  ;;  %v2578_v3 = vpop.f32.mrb[79].mxu1  ;;  %v2671_v49 = vsel %vm2639_vm6, %v2623_v8, %v2655_v22 }
 0x5cb   :  { %v2624_v18 = vadd.f32 %v5434_v27, %v2578_v3  ;;  %v2670_v56 = vsel %vm2638_vm7, %v2622_v19, %v2654_v53  ;;  %v5471_v27 = vld [vmem:[%s5567_s13] ss:$0 sm:$0xff] }
 0x5cc   :  { %v2657_v61 = vmul.f32 0.2, %v2625_v42  ;;  %3858 = vmatprep.mubr.msk.f32.mxu0 %vm1125_vm2, %v2670_v56  ;;  %vm2641_vm8 = vcmp.gt.f32.partialorder %v2625_v42, 0.0 }
 0x5cd   :  { %vm2640_vm0 = vcmp.gt.f32.partialorder %v2624_v18, 0.0  ;;  %v2656_v60 = vmul.f32 0.2, %v2624_v18  ;;  %3859 = vmatmul.mubr.msk.f32.gmra.mrb[116].mxu0 %vm1125_vm2, %v2671_v49 }
 0x5ce   :  { %v2673_v34 = vsel %vm2641_vm8, %v2625_v42, %v2657_v61 }
 0x5cf   :  { %v2672_v62 = vsel %vm2640_vm0, %v2624_v18, %v2656_v60 }
 0x5d0   :  { %3861 = vmatprep.mubr.msk.f32.mxu0 %vm1125_vm2, %v2672_v62 }
 0x5d1   :  { %3862 = vmatmul.mubr.msk.f32.gmra.mrb[118].mxu0 %vm1125_vm2, %v2673_v34 }
 0x688   :  { %v3842_v16 = vpop.f32.mrb[104].mxu0 }
 0x689   :  { %v2803_v57 = vadd.f32 %v3842_v16, %v5471_v27  ;;  %v2797_v32 = vpop.f32.mrb[105].mxu0 }
 0x68a   :  { %v2798_v10 = vadd.f32 %v5471_v27, %v2797_v32 }
 0x68b   :  { %vm2877_vm1 = vcmp.gt.f32.partialorder %v2803_v57, 0.0  ;;  %v2893_v23 = vmul.f32 0.2, %v2803_v57 }
 0x68c   :  { %vm2876_vm9 = vcmp.gt.f32.partialorder %v2798_v10, 0.0  ;;  %v2892_v33 = vmul.f32 0.2, %v2798_v10  ;;  %v3845_v51 = vpop.f32.mrb[106].mxu0 }
 0x68d   :  { %v2909_v12 = vsel %vm2877_vm1, %v2803_v57, %v2893_v23  ;;  %v2813_v9 = vadd.f32 %v3845_v51, %v5471_v27  ;;  %v2807_v17 = vpop.f32.mrb[107].mxu0 }
 0x68e   :  { %2925 = vst.msk [vmem:[%s5561_s14 + $0x8] sm:$0xff] %vm1125_vm2, %v2909_v12  ;;  %v2908_v13 = vsel %vm2876_vm9, %v2798_v10, %v2892_v33  ;;  %v2808_v20 = vadd.f32 %v5471_v27, %v2807_v17 }
 0x68f   :  { %2924 = vst.msk [vmem:[%s5561_s14] sm:$0xff] %vm1125_vm2, %v2908_v13  ;;  %vm2879_vm10 = vcmp.gt.f32.partialorder %v2813_v9, 0.0  ;;  %v2895_v30 = vmul.f32 0.2, %v2813_v9 }
 0x690   :  { %vm2878_vm11 = vcmp.gt.f32.partialorder %v2808_v20, 0.0  ;;  %v2894_v52 = vmul.f32 0.2, %v2808_v20  ;;  %v3848_v63 = vpop.f32.mrb[108].mxu0 }
 0x691   :  { %v2911_v28 = vsel %vm2879_vm10, %v2813_v9, %v2895_v30  ;;  %v2823_v24 = vadd.f32 %v3848_v63, %v5471_v27  ;;  %v2817_v58 = vpop.f32.mrb[109].mxu0 }
 0x692   :  { %2927 = vst.msk [vmem:[%s5561_s14 + $0x18] sm:$0xff] %vm1125_vm2, %v2911_v28  ;;  %v2910_v29 = vsel %vm2878_vm11, %v2808_v20, %v2894_v52  ;;  %v2818_v25 = vadd.f32 %v5471_v27, %v2817_v58 }
 0x693   :  { %2926 = vst.msk [vmem:[%s5561_s14 + $0x10] sm:$0xff] %vm1125_vm2, %v2910_v29  ;;  %vm2881_vm12 = vcmp.gt.f32.partialorder %v2823_v24, 0.0  ;;  %v2897_v59 = vmul.f32 0.2, %v2823_v24 }
 0x694   :  { %vm2880_vm13 = vcmp.gt.f32.partialorder %v2818_v25, 0.0  ;;  %v2896_v4 = vmul.f32 0.2, %v2818_v25  ;;  %v3851_v31 = vpop.f32.mrb[110].mxu0 }
 0x695   :  { %v2913_v11 = vsel %vm2881_vm12, %v2823_v24, %v2897_v59  ;;  %v2833_v36 = vadd.f32 %v3851_v31, %v5471_v27  ;;  %v2827_v26 = vpop.f32.mrb[111].mxu0 }
 0x696   :  { %2929 = vst.msk [vmem:[%s5561_s14 + $0x28] sm:$0xff] %vm1125_vm2, %v2913_v11  ;;  %v2912_v38 = vsel %vm2880_vm13, %v2818_v25, %v2896_v4  ;;  %v2828_v43 = vadd.f32 %v5471_v27, %v2827_v26 }
 0x697   :  { %2928 = vst.msk [vmem:[%s5561_s14 + $0x20] sm:$0xff] %vm1125_vm2, %v2912_v38  ;;  %vm2883_vm14 = vcmp.gt.f32.partialorder %v2833_v36, 0.0  ;;  %v2899_v7 = vmul.f32 0.2, %v2833_v36 }
 0x698   :  { %vm2882_vm15 = vcmp.gt.f32.partialorder %v2828_v43, 0.0  ;;  %v2898_v50 = vmul.f32 0.2, %v2828_v43  ;;  %v3854_v40 = vpop.f32.mrb[112].mxu0 }
 0x699   :  { %v2915_v15 = vsel %vm2883_vm14, %v2833_v36, %v2899_v7  ;;  %v2843_v2 = vadd.f32 %v3854_v40, %v5471_v27  ;;  %v2837_v39 = vpop.f32.mrb[113].mxu0 }
 0x69a   :  { %2931 = vst.msk [vmem:[%s5561_s14 + $0x38] sm:$0xff] %vm1125_vm2, %v2915_v15  ;;  %v2914_v46 = vsel %vm2882_vm15, %v2828_v43, %v2898_v50  ;;  %v2838_v55 = vadd.f32 %v5471_v27, %v2837_v39 }
 0x69b   :  { %2930 = vst.msk [vmem:[%s5561_s14 + $0x30] sm:$0xff] %vm1125_vm2, %v2914_v46  ;;  %vm2885_vm3 = vcmp.gt.f32.partialorder %v2843_v2, 0.0  ;;  %v2901_v44 = vmul.f32 0.2, %v2843_v2 }
 0x69c   :  { %vm2884_vm4 = vcmp.gt.f32.partialorder %v2838_v55, 0.0  ;;  %v2900_v0 = vmul.f32 0.2, %v2838_v55  ;;  %v3857_v48 = vpop.f32.mrb[114].mxu0 }
 0x69d   :  { %v2917_v1 = vsel %vm2885_vm3, %v2843_v2, %v2901_v44  ;;  %v2853_v35 = vadd.f32 %v3857_v48, %v5471_v27  ;;  %v2847_v5 = vpop.f32.mrb[115].mxu0 }
 0x69e   :  { %2933 = vst.msk [vmem:[%s5561_s14 + $0x48] sm:$0xff] %vm1125_vm2, %v2917_v1  ;;  %v2916_v45 = vsel %vm2884_vm4, %v2838_v55, %v2900_v0  ;;  %v2848_v54 = vadd.f32 %v5471_v27, %v2847_v5 }
 0x69f   :  { %2932 = vst.msk [vmem:[%s5561_s14 + $0x40] sm:$0xff] %vm1125_vm2, %v2916_v45  ;;  %vm2887_vm5 = vcmp.gt.f32.partialorder %v2853_v35, 0.0  ;;  %v2903_v21 = vmul.f32 0.2, %v2853_v35 }
 0x6a0   :  { %vm2886_vm6 = vcmp.gt.f32.partialorder %v2848_v54, 0.0  ;;  %v2902_v47 = vmul.f32 0.2, %v2848_v54  ;;  %v3860_v8 = vpop.f32.mrb[116].mxu0 }
 0x6a1   :  { %v2919_v6 = vsel %vm2887_vm5, %v2853_v35, %v2903_v21  ;;  %v2863_v19 = vadd.f32 %v3860_v8, %v5471_v27  ;;  %v2857_v37 = vpop.f32.mrb[117].mxu0 }
 0x6a2   :  { %2935 = vst.msk [vmem:[%s5561_s14 + $0x58] sm:$0xff] %vm1125_vm2, %v2919_v6  ;;  %v2918_v22 = vsel %vm2886_vm6, %v2848_v54, %v2902_v47  ;;  %v2858_v14 = vadd.f32 %v5471_v27, %v2857_v37 }
 0x6a3   :  { %2934 = vst.msk [vmem:[%s5561_s14 + $0x50] sm:$0xff] %vm1125_vm2, %v2918_v22  ;;  %vm2889_vm7 = vcmp.gt.f32.partialorder %v2863_v19, 0.0  ;;  %v2905_v53 = vmul.f32 0.2, %v2863_v19 }
 0x6a4   :  { %vm2888_vm8 = vcmp.gt.f32.partialorder %v2858_v14, 0.0  ;;  %v2904_v41 = vmul.f32 0.2, %v2858_v14  ;;  %v3863_v42 = vpop.f32.mrb[118].mxu0 }
 0x6a5   :  { %v2921_v3 = vsel %vm2889_vm7, %v2863_v19, %v2905_v53  ;;  %v2873_v18 = vadd.f32 %v3863_v42, %v5471_v27  ;;  %v2867_v56 = vpop.f32.mrb[119].mxu0 }
 0x6a6   :  { %2937 = vst.msk [vmem:[%s5561_s14 + $0x68] sm:$0xff] %vm1125_vm2, %v2921_v3  ;;  %v2920_v61 = vsel %vm2888_vm8, %v2858_v14, %v2904_v41  ;;  %v2868_v49 = vadd.f32 %v5471_v27, %v2867_v56 }
 0x6a7   :  { %2936 = vst.msk [vmem:[%s5561_s14 + $0x60] sm:$0xff] %vm1125_vm2, %v2920_v61  ;;  %vm2891_vm0 = vcmp.gt.f32.partialorder %v2873_v18, 0.0  ;;  %v2907_v60 = vmul.f32 0.2, %v2873_v18 }
 0x6a8   :  { %vm2890_vm1 = vcmp.gt.f32.partialorder %v2868_v49, 0.0  ;;  %v2906_v62 = vmul.f32 0.2, %v2868_v49 }
 0x6a9   :  { %v2923_v34 = vsel %vm2891_vm0, %v2873_v18, %v2907_v60 }
 0x6aa   :  { %2939 = vst.msk [vmem:[%s5561_s14 + $0x78] sm:$0xff] %vm1125_vm2, %v2923_v34  ;;  %v2922_v16 = vsel %vm2890_vm1, %v2868_v49, %v2906_v62 }
 0x6ab   :  { %2938 = vst.msk [vmem:[%s5561_s14 + $0x70] sm:$0xff] %vm1125_vm2, %v2922_v16 }

// kernel: deltanet_segmentation.5
= control target key start
LH: loop header
LB: loop body
LE: loop exit
PB: predicated region body
PF: predicated region fallthrough
CT: control target
= control target key end

     0   :  { %vm388_vm0 = vcmask 130048   ;;  %vm1250_vm1 = vcmask 261120   ;;  %s5849_s2 = inlined_call_operand.vmem [shape: f32[384,16], index: 2, kind: input, shape index: {}]   ;;  %s5850_s0 = inlined_call_operand.vmem [shape: f32[256,128], index: 0, kind: input, shape index: {}]   ;;  %s5851_s4 = inlined_call_operand.vmem [shape: f32[16,32], index: 4, kind: input, shape index: {}]   ;;  %s5852_s3 = inlined_call_operand.vmem [shape: f32[16,32], index: 3, kind: input, shape index: {}]   ;;  %s5853_s5 = inlined_call_operand.vmem [shape: f32[32,32], index: 5, kind: input, shape index: {}]   ;;  %s5854_s6 = inlined_call_operand.vmem [shape: f32[1,32], index: 6, kind: input, shape index: {}]   ;;  %s5855_s1 = inlined_call_operand.vmem [shape: f32[128,256], index: 1, kind: input, shape index: {}]   ;;  %s5856_s7 = inlined_call_operand.vmem [shape: f32[1,32], index: 7, kind: input, shape index: {}]   ;;  %s5857_s14 = inlined_call_operand.vmem [shape: f32[384,32], index: 14, kind: output, shape index: {}]   ;;  %s5858_s9 = inlined_call_operand.vmem [shape: f32[32,32], index: 9, kind: input, shape index: {}]   ;;  %s5859_s8 = inlined_call_operand.vmem [shape: f32[16,32], index: 8, kind: input, shape index: {}]   ;;  %s5860_s10 = inlined_call_operand.vmem [shape: f32[32,32], index: 10, kind: input, shape index: {}]   ;;  %s5861_s11 = inlined_call_operand.vmem [shape: f32[32,32], index: 11, kind: input, shape index: {}]   ;;  %s5862_s12 = inlined_call_operand.vmem [shape: f32[1,32], index: 12, kind: input, shape index: {}]   ;;  %s5863_s13 = inlined_call_operand.vmem [shape: f32[1,32], index: 13, kind: input, shape index: {}]  }
   0x1   :  { %v47_v0 = vld [vmem:[%s5849_s2] sm:$0xff]  ;;  %v48_v1 = vld [vmem:[%s5849_s2 + $0x8] sm:$0xff]  ;;  %v49_v2 = vld [vmem:[%s5849_s2 + $0x10] sm:$0xff] }
   0x2   :  { %v4023_v3 = vpack.c.bf16 %v48_v1, %v47_v0  ;;  %v50_v4 = vld [vmem:[%s5849_s2 + $0x18] sm:$0xff]  ;;  %v51_v6 = vld [vmem:[%s5849_s2 + $0x20] sm:$0xff]  ;;  %v52_v7 = vld [vmem:[%s5849_s2 + $0x28] sm:$0xff] }
   0x3   :  { %v4027_v5 = vpack.c.bf16 %v50_v4, %v49_v2  ;;  %v4031_v8 = vpack.c.bf16 %v52_v7, %v51_v6  ;;  %v95_v9 = vld [vmem:[%s5850_s0] sm:$0xff]  ;;  %v53_v10 = vld [vmem:[%s5849_s2 + $0x30] sm:$0xff]  ;;  %v54_v11 = vld [vmem:[%s5849_s2 + $0x38] sm:$0xff] }
   0x4   :  { %4024 = vmatprep.subr.bf16.mxu0 %v4023_v3  ;;  %3691 = vmatprep.mubr.f32.mxu0 %v95_v9  ;;  %v4035_v12 = vpack.c.bf16 %v54_v11, %v53_v10  ;;  %v55_v13 = vld [vmem:[%s5849_s2 + $0x40] sm:$0xff]  ;;  %v56_v14 = vld [vmem:[%s5849_s2 + $0x48] sm:$0xff]  ;;  %v57_v16 = vld [vmem:[%s5849_s2 + $0x50] sm:$0xff] }
   0x5   :  { %4026 = vmatpush3.bf16.msra.mxu0 %v4023_v3  ;;  %v4039_v15 = vpack.c.bf16 %v56_v14, %v55_v13  ;;  %v58_v17 = vld [vmem:[%s5849_s2 + $0x58] sm:$0xff]  ;;  %v386_v18 = vld [vmem:[%s5851_s4] sm:$0xff]  ;;  %v387_v19 = vld [vmem:[%s5851_s4 + $0x8] sm:$0xff] }
   0x6   :  { %4028 = vmatprep.subr.bf16.mxu0 %v4027_v5  ;;  %v4043_v20 = vpack.c.bf16 %v58_v17, %v57_v16  ;;  %v4055_v21 = vpack.c.bf16 %v387_v19, %v386_v18  ;;  %v59_v22 = vld [vmem:[%s5849_s2 + $0x60] sm:$0xff]  ;;  %v60_v23 = vld [vmem:[%s5849_s2 + $0x68] sm:$0xff]  ;;  %v61_v25 = vld [vmem:[%s5849_s2 + $0x70] sm:$0xff] }
   0x7   :  { %v4047_v24 = vpack.c.bf16 %v60_v23, %v59_v22  ;;  %v62_v26 = vld [vmem:[%s5849_s2 + $0x78] sm:$0xff]  ;;  %v96_v28 = vld [vmem:[%s5850_s0 + $0x8] sm:$0xff]  ;;  %v97_v29 = vld [vmem:[%s5850_s0 + $0x10] sm:$0xff] }
   0x8   :  { %4163 = vmatprep.subr.bf16.mxu1 %v4055_v21  ;;  %v4051_v27 = vpack.c.bf16 %v62_v26, %v61_v25  ;;  %v98_v30 = vld [vmem:[%s5850_s0 + $0x18] sm:$0xff]  ;;  %v99_v31 = vld [vmem:[%s5850_s0 + $0x20] sm:$0xff]  ;;  %v100_v32 = vld [vmem:[%s5850_s0 + $0x28] sm:$0xff] }
   0x9   :  { %4030 = vmatpush3.bf16.msra.mxu0 %v4027_v5  ;;  %4164 = vmatpush3.bf16.msra.mxu1 %v4055_v21  ;;  %v101_v33 = vld [vmem:[%s5850_s0 + $0x30] sm:$0xff]  ;;  %v102_v34 = vld [vmem:[%s5850_s0 + $0x38] sm:$0xff]  ;;  %v103_v35 = vld [vmem:[%s5850_s0 + $0x40] sm:$0xff] }
   0xa   :  { %4032 = vmatprep.subr.bf16.mxu0 %v4031_v8  ;;  %v104_v36 = vld [vmem:[%s5850_s0 + $0x48] sm:$0xff]  ;;  %v105_v37 = vld [vmem:[%s5850_s0 + $0x50] sm:$0xff]  ;;  %v106_v38 = vld [vmem:[%s5850_s0 + $0x58] sm:$0xff] }
   0xb   :  { %v107_v39 = vld [vmem:[%s5850_s0 + $0x60] sm:$0xff]  ;;  %v108_v40 = vld [vmem:[%s5850_s0 + $0x68] sm:$0xff]  ;;  %v109_v41 = vld [vmem:[%s5850_s0 + $0x70] sm:$0xff] }
   0xc   :  { %v110_v42 = vld [vmem:[%s5850_s0 + $0x78] sm:$0xff]  ;;  %v111_v43 = vld [vmem:[%s5850_s0 + $0x80] sm:$0xff]  ;;  %v112_v44 = vld [vmem:[%s5850_s0 + $0x88] sm:$0xff] }
   0xd   :  { %4034 = vmatpush3.bf16.msra.mxu0 %v4031_v8  ;;  %v113_v45 = vld [vmem:[%s5850_s0 + $0x90] sm:$0xff]  ;;  %v114_v46 = vld [vmem:[%s5850_s0 + $0x98] sm:$0xff]  ;;  %v115_v47 = vld [vmem:[%s5850_s0 + $0xa0] sm:$0xff] }
   0xe   :  { %4036 = vmatprep.subr.bf16.mxu0 %v4035_v12  ;;  %v116_v48 = vld [vmem:[%s5850_s0 + $0xa8] sm:$0xff]  ;;  %v117_v49 = vld [vmem:[%s5850_s0 + $0xb0] sm:$0xff]  ;;  %v118_v50 = vld [vmem:[%s5850_s0 + $0xb8] sm:$0xff] }
   0xf   :  { %v119_v51 = vld [vmem:[%s5850_s0 + $0xc0] sm:$0xff]  ;;  %v120_v52 = vld [vmem:[%s5850_s0 + $0xc8] sm:$0xff]  ;;  %v121_v53 = vld [vmem:[%s5850_s0 + $0xd0] sm:$0xff] }
  0x10   :  { %v122_v54 = vld [vmem:[%s5850_s0 + $0xd8] sm:$0xff]  ;;  %v123_v55 = vld [vmem:[%s5850_s0 + $0xe0] sm:$0xff]  ;;  %v124_v56 = vld [vmem:[%s5850_s0 + $0xe8] sm:$0xff] }
  0x11   :  { %4038 = vmatpush3.bf16.msra.mxu0 %v4035_v12  ;;  %v125_v57 = vld [vmem:[%s5850_s0 + $0xf0] sm:$0xff]  ;;  %v126_v58 = vld [vmem:[%s5850_s0 + $0xf8] sm:$0xff]  ;;  %v384_v59 = vld [vmem:[%s5852_s3] sm:$0xff] }
  0x12   :  { %4040 = vmatprep.subr.bf16.mxu0 %v4039_v15  ;;  %v385_v60 = vld [vmem:[%s5852_s3 + $0x8] sm:$0xff] }
  0x13   :  { %v4059_v61 = vpack.c.bf16 %v385_v60, %v384_v59  ;;  %v92_v59 = vld [vmem:[%s5849_s2 + $0x168] sm:$0xff]  ;;  %v93_v60 = vld [vmem:[%s5849_s2 + $0x170] sm:$0xff] }
  0x15   :  { %4042 = vmatpush3.bf16.msra.mxu0 %v4039_v15  ;;  %4060 = vmatprep.subr.bf16.mxu1 %v4059_v61 }
  0x16   :  { %4044 = vmatprep.subr.bf16.mxu0 %v4043_v20 }
  0x19   :  { %4046 = vmatpush3.bf16.msra.mxu0 %v4043_v20 }
  0x1a   :  { %4048 = vmatprep.subr.bf16.mxu0 %v4047_v24 }
  0x1d   :  { %4050 = vmatpush3.bf16.msra.mxu0 %v4047_v24 }
  0x1e   :  { %4052 = vmatprep.subr.bf16.mxu0 %v4051_v27 }
  0x21   :  { %4054 = vmatpush3.bf16.msra.mxu0 %v4051_v27 }
  0x22   :  { %4056 = vmatprep.subr.bf16.mxu0 %v4055_v21 }
  0x24   :  { %3692 = vmatmul.mubr.f32.vlgmr.msra.gmra.mrb[0].mxu0 %v96_v28 }
  0x25   :  { %3694 = vmatprep.mubr.f32.mxu0 %v97_v29  ;;  %4058 = vmatpush3.bf16.msra.mxu0 %v4055_v21 }
  0x28   :  { %3695 = vmatmul.mubr.f32.gmra.mrb[2].mxu0 %v98_v30  ;;  %v63_v30 = vld [vmem:[%s5849_s2 + $0x80] sm:$0xff] }
  0x29   :  { %3697 = vmatprep.mubr.f32.mxu0 %v99_v31  ;;  %v64_v31 = vld [vmem:[%s5849_s2 + $0x88] sm:$0xff] }
  0x2c   :  { %3698 = vmatmul.mubr.f32.gmra.mrb[4].mxu0 %v100_v32  ;;  %v65_v32 = vld [vmem:[%s5849_s2 + $0x90] sm:$0xff] }
  0x2d   :  { %3700 = vmatprep.mubr.f32.mxu0 %v101_v33  ;;  %v66_v33 = vld [vmem:[%s5849_s2 + $0x98] sm:$0xff] }
  0x30   :  { %3701 = vmatmul.mubr.f32.gmra.mrb[6].mxu0 %v102_v34  ;;  %v67_v34 = vld [vmem:[%s5849_s2 + $0xa0] sm:$0xff] }
  0x31   :  { %3703 = vmatprep.mubr.f32.mxu0 %v103_v35  ;;  %v68_v35 = vld [vmem:[%s5849_s2 + $0xa8] sm:$0xff] }
  0x34   :  { %3704 = vmatmul.mubr.f32.gmra.mrb[8].mxu0 %v104_v36  ;;  %v69_v36 = vld [vmem:[%s5849_s2 + $0xb0] sm:$0xff] }
  0x35   :  { %3706 = vmatprep.mubr.f32.mxu0 %v105_v37  ;;  %v70_v37 = vld [vmem:[%s5849_s2 + $0xb8] sm:$0xff] }
  0x38   :  { %3707 = vmatmul.mubr.f32.gmra.mrb[10].mxu0 %v106_v38  ;;  %v71_v38 = vld [vmem:[%s5849_s2 + $0xc0] sm:$0xff] }
  0x39   :  { %3709 = vmatprep.mubr.f32.mxu0 %v107_v39  ;;  %v72_v39 = vld [vmem:[%s5849_s2 + $0xc8] sm:$0xff] }
  0x3c   :  { %3710 = vmatmul.mubr.f32.gmra.mrb[12].mxu0 %v108_v40  ;;  %v73_v40 = vld [vmem:[%s5849_s2 + $0xd0] sm:$0xff] }
  0x3d   :  { %3712 = vmatprep.mubr.f32.mxu0 %v109_v41  ;;  %v74_v41 = vld [vmem:[%s5849_s2 + $0xd8] sm:$0xff] }
  0x40   :  { %3713 = vmatmul.mubr.f32.gmra.mrb[14].mxu0 %v110_v42  ;;  %v75_v42 = vld [vmem:[%s5849_s2 + $0xe0] sm:$0xff] }
  0x41   :  { %3715 = vmatprep.mubr.f32.mxu0 %v111_v43  ;;  %v76_v43 = vld [vmem:[%s5849_s2 + $0xe8] sm:$0xff] }
  0x44   :  { %3716 = vmatmul.mubr.f32.gmra.mrb[16].mxu0 %v112_v44  ;;  %v77_v44 = vld [vmem:[%s5849_s2 + $0xf0] sm:$0xff] }
  0x45   :  { %3718 = vmatprep.mubr.f32.mxu0 %v113_v45  ;;  %v78_v45 = vld [vmem:[%s5849_s2 + $0xf8] sm:$0xff] }
  0x48   :  { %3719 = vmatmul.mubr.f32.gmra.mrb[18].mxu0 %v114_v46  ;;  %v79_v46 = vld [vmem:[%s5849_s2 + $0x100] sm:$0xff] }
  0x49   :  { %3721 = vmatprep.mubr.f32.mxu0 %v115_v47  ;;  %v80_v47 = vld [vmem:[%s5849_s2 + $0x108] sm:$0xff] }
  0x4c   :  { %3722 = vmatmul.mubr.f32.gmra.mrb[20].mxu0 %v116_v48  ;;  %v81_v48 = vld [vmem:[%s5849_s2 + $0x110] sm:$0xff] }
  0x4d   :  { %3724 = vmatprep.mubr.f32.mxu0 %v117_v49  ;;  %v82_v49 = vld [vmem:[%s5849_s2 + $0x118] sm:$0xff] }
  0x50   :  { %3725 = vmatmul.mubr.f32.gmra.mrb[22].mxu0 %v118_v50  ;;  %v83_v50 = vld [vmem:[%s5849_s2 + $0x120] sm:$0xff] }
  0x51   :  { %3727 = vmatprep.mubr.f32.mxu0 %v119_v51  ;;  %v84_v51 = vld [vmem:[%s5849_s2 + $0x128] sm:$0xff] }
  0x54   :  { %3728 = vmatmul.mubr.f32.gmra.mrb[24].mxu0 %v120_v52  ;;  %v85_v52 = vld [vmem:[%s5849_s2 + $0x130] sm:$0xff] }
  0x55   :  { %3730 = vmatprep.mubr.f32.mxu0 %v121_v53  ;;  %v86_v53 = vld [vmem:[%s5849_s2 + $0x138] sm:$0xff] }
  0x58   :  { %3731 = vmatmul.mubr.f32.gmra.mrb[26].mxu0 %v122_v54  ;;  %v87_v54 = vld [vmem:[%s5849_s2 + $0x140] sm:$0xff] }
  0x59   :  { %3733 = vmatprep.mubr.f32.mxu0 %v123_v55  ;;  %v88_v55 = vld [vmem:[%s5849_s2 + $0x148] sm:$0xff] }
  0x5c   :  { %3734 = vmatmul.mubr.f32.gmra.mrb[28].mxu0 %v124_v56  ;;  %v89_v56 = vld [vmem:[%s5849_s2 + $0x150] sm:$0xff] }
  0x5d   :  { %3736 = vmatprep.mubr.f32.mxu0 %v125_v57  ;;  %v90_v57 = vld [vmem:[%s5849_s2 + $0x158] sm:$0xff] }
  0x60   :  { %3737 = vmatmul.mubr.f32.gmra.mrb[30].mxu0 %v126_v58  ;;  %v91_v58 = vld [vmem:[%s5849_s2 + $0x160] sm:$0xff] }
  0xf7   :  { %v3693_v62 = vpop.f32.mrb[0].mxu0 }
  0xf8   :  { %v225_v63 = vpop.f32.mrb[1].mxu0 }
  0xf9   :  { %3743 = vmatprep.mubr.msk.f32.mxu0 %vm388_vm0, %v225_v63 }
  0xfa   :  { %3744 = vmatmul.mubr.msk.f32.vlgmr.msra.gmra.mrb[32].mxu0 %vm388_vm0, %v3693_v62 }
  0xfb   :  { %v3696_v0 = vpop.f32.mrb[2].mxu0 }
  0xfc   :  { %v235_v1 = vpop.f32.mrb[3].mxu0 }
  0xfd   :  { %3746 = vmatprep.mubr.msk.f32.mxu0 %vm388_vm0, %v235_v1  ;;  %v1247_v1 = vld [vmem:[%s5853_s5 + $0x8] sm:$0xff] }
  0xfe   :  { %3747 = vmatmul.mubr.msk.f32.gmra.mrb[34].mxu0 %vm388_vm0, %v3696_v0  ;;  %v1246_v0 = vld [vmem:[%s5853_s5] sm:$0xff] }
  0xff   :  { %v3699_v2 = vpop.f32.mrb[4].mxu0 }
 0x100   :  { %v245_v3 = vpop.f32.mrb[5].mxu0 }
 0x101   :  { %3749 = vmatprep.mubr.msk.f32.mxu0 %vm388_vm0, %v245_v3 }
 0x102   :  { %3750 = vmatmul.mubr.msk.f32.gmra.mrb[36].mxu0 %vm388_vm0, %v3699_v2  ;;  %v4063_v2 = vpack.c.bf16 %v1247_v1, %v1246_v0 }
 0x103   :  { %v3702_v4 = vpop.f32.mrb[6].mxu0 }
 0x104   :  { %v255_v5 = vpop.f32.mrb[7].mxu0  ;;  %4064 = vmatprep.subr.bf16.mxu0 %v4063_v2 }
 0x105   :  { %3752 = vmatprep.mubr.msk.f32.mxu0 %vm388_vm0, %v255_v5  ;;  %4066 = vmatpush3.bf16.msra.mxu0 %v4063_v2 }
 0x106   :  { %3753 = vmatmul.mubr.msk.f32.gmra.mrb[38].mxu0 %vm388_vm0, %v3702_v4 }
 0x107   :  { %v3705_v6 = vpop.f32.mrb[8].mxu0 }
 0x108   :  { %v265_v7 = vpop.f32.mrb[9].mxu0 }
 0x109   :  { %3755 = vmatprep.mubr.msk.f32.mxu1 %vm388_vm0, %v265_v7  ;;  %v1249_v7 = vld [vmem:[%s5853_s5 + $0x18] sm:$0xff] }
 0x10a   :  { %3756 = vmatmul.mubr.msk.f32.vlgmr.msra.gmra.mrb[0].mxu1 %vm388_vm0, %v3705_v6  ;;  %v1248_v6 = vld [vmem:[%s5853_s5 + $0x10] sm:$0xff] }
 0x10b   :  { %v3708_v8 = vpop.f32.mrb[10].mxu0  ;;  %4062 = vmatpush3.bf16.msra.mxu1 %v4059_v61  ;;  %v94_v61 = vld [vmem:[%s5849_s2 + $0x178] sm:$0xff] }
 0x10c   :  { %v275_v9 = vpop.f32.mrb[11].mxu0 }
 0x10d   :  { %3758 = vmatprep.mubr.msk.f32.mxu1 %vm388_vm0, %v275_v9  ;;  %v4067_v9 = vpack.c.bf16 %v1249_v7, %v1248_v6 }
 0x10e   :  { %3759 = vmatmul.mubr.msk.f32.gmra.mrb[2].mxu1 %vm388_vm0, %v3708_v8 }
 0x10f   :  { %v3711_v10 = vpop.f32.mrb[12].mxu0  ;;  %4068 = vmatprep.subr.bf16.mxu0 %v4067_v9 }
 0x110   :  { %v285_v11 = vpop.f32.mrb[13].mxu0  ;;  %4070 = vmatpush3.bf16.msra.mxu0 %v4067_v9 }
 0x111   :  { %3761 = vmatprep.mubr.msk.f32.mxu1 %vm388_vm0, %v285_v11 }
 0x112   :  { %3762 = vmatmul.mubr.msk.f32.gmra.mrb[4].mxu1 %vm388_vm0, %v3711_v10 }
 0x113   :  { %v3714_v12 = vpop.f32.mrb[14].mxu0 }
 0x114   :  { %v295_v13 = vpop.f32.mrb[15].mxu0 }
 0x115   :  { %3764 = vmatprep.mubr.msk.f32.mxu1 %vm388_vm0, %v295_v13 }
 0x116   :  { %3765 = vmatmul.mubr.msk.f32.gmra.mrb[6].mxu1 %vm388_vm0, %v3714_v12 }
 0x117   :  { %v3717_v14 = vpop.f32.mrb[16].mxu0 }
 0x118   :  { %v305_v15 = vpop.f32.mrb[17].mxu0 }
 0x119   :  { %3767 = vmatprep.mubr.msk.f32.mxu1 %vm388_vm0, %v305_v15 }
 0x11a   :  { %3768 = vmatmul.mubr.msk.f32.gmra.mrb[8].mxu1 %vm388_vm0, %v3717_v14 }
 0x11b   :  { %v3720_v16 = vpop.f32.mrb[18].mxu0 }
 0x11c   :  { %v315_v17 = vpop.f32.mrb[19].mxu0 }
 0x11d   :  { %3770 = vmatprep.mubr.msk.f32.mxu1 %vm388_vm0, %v315_v17 }
 0x11e   :  { %3771 = vmatmul.mubr.msk.f32.gmra.mrb[10].mxu1 %vm388_vm0, %v3720_v16 }
 0x11f   :  { %v3723_v18 = vpop.f32.mrb[20].mxu0 }
 0x120   :  { %v325_v19 = vpop.f32.mrb[21].mxu0 }
 0x121   :  { %3773 = vmatprep.mubr.msk.f32.mxu1 %vm388_vm0, %v325_v19 }
 0x122   :  { %3774 = vmatmul.mubr.msk.f32.gmra.mrb[12].mxu1 %vm388_vm0, %v3723_v18 }
 0x123   :  { %v3726_v20 = vpop.f32.mrb[22].mxu0 }
 0x124   :  { %v335_v21 = vpop.f32.mrb[23].mxu0 }
 0x125   :  { %3776 = vmatprep.mubr.msk.f32.mxu1 %vm388_vm0, %v335_v21 }
 0x126   :  { %3777 = vmatmul.mubr.msk.f32.gmra.mrb[14].mxu1 %vm388_vm0, %v3726_v20 }
 0x127   :  { %v3729_v22 = vpop.f32.mrb[24].mxu0 }
 0x128   :  { %v345_v23 = vpop.f32.mrb[25].mxu0 }
 0x129   :  { %3779 = vmatprep.mubr.msk.f32.mxu1 %vm388_vm0, %v345_v23 }
 0x12a   :  { %3780 = vmatmul.mubr.msk.f32.gmra.mrb[16].mxu1 %vm388_vm0, %v3729_v22 }
 0x12b   :  { %v3732_v24 = vpop.f32.mrb[26].mxu0 }
 0x12c   :  { %v355_v25 = vpop.f32.mrb[27].mxu0 }
 0x12d   :  { %3782 = vmatprep.mubr.msk.f32.mxu1 %vm388_vm0, %v355_v25 }
 0x12e   :  { %3783 = vmatmul.mubr.msk.f32.gmra.mrb[18].mxu1 %vm388_vm0, %v3732_v24 }
 0x12f   :  { %v3735_v26 = vpop.f32.mrb[28].mxu0 }
 0x130   :  { %v365_v27 = vpop.f32.mrb[29].mxu0 }
 0x131   :  { %3785 = vmatprep.mubr.msk.f32.mxu1 %vm388_vm0, %v365_v27 }
 0x132   :  { %3786 = vmatmul.mubr.msk.f32.gmra.mrb[20].mxu1 %vm388_vm0, %v3735_v26 }
 0x133   :  { %v3738_v28 = vpop.f32.mrb[30].mxu0 }
 0x134   :  { %v375_v29 = vpop.f32.mrb[31].mxu0 }
 0x135   :  { %3788 = vmatprep.mubr.msk.f32.mxu1 %vm388_vm0, %v375_v29 }
 0x136   :  { %3789 = vmatmul.mubr.msk.f32.gmra.mrb[22].mxu1 %vm388_vm0, %v3738_v28 }
 0x137   :  { %3795 = vmatprep.mubr.msk.f32.mxu1 %vm388_vm0, %v63_v30 }
 0x13a   :  { %3796 = vmatmul.mubr.msk.f32.vlgmr.msra.gmra.mrb[24].mxu1 %vm388_vm0, %v64_v31 }
 0x13b   :  { %3798 = vmatprep.mubr.msk.f32.mxu1 %vm388_vm0, %v65_v32 }
 0x13e   :  { %3799 = vmatmul.mubr.msk.f32.gmra.mrb[26].mxu1 %vm388_vm0, %v66_v33 }
 0x13f   :  { %3801 = vmatprep.mubr.msk.f32.mxu1 %vm388_vm0, %v67_v34 }
 0x142   :  { %3802 = vmatmul.mubr.msk.f32.gmra.mrb[28].mxu1 %vm388_vm0, %v68_v35 }
 0x143   :  { %3804 = vmatprep.mubr.msk.f32.mxu1 %vm388_vm0, %v69_v36 }
 0x146   :  { %3805 = vmatmul.mubr.msk.f32.gmra.mrb[30].mxu1 %vm388_vm0, %v70_v37 }
 0x147   :  { %3807 = vmatprep.mubr.msk.f32.mxu1 %vm388_vm0, %v71_v38 }
 0x14a   :  { %3808 = vmatmul.mubr.msk.f32.gmra.mrb[0].mxu1 %vm388_vm0, %v72_v39 }
 0x14b   :  { %3810 = vmatprep.mubr.msk.f32.mxu1 %vm388_vm0, %v73_v40 }
 0x14e   :  { %3811 = vmatmul.mubr.msk.f32.gmra.mrb[2].mxu1 %vm388_vm0, %v74_v41 }
 0x14f   :  { %3813 = vmatprep.mubr.msk.f32.mxu1 %vm388_vm0, %v75_v42 }
 0x152   :  { %3814 = vmatmul.mubr.msk.f32.gmra.mrb[4].mxu1 %vm388_vm0, %v76_v43 }
 0x153   :  { %3816 = vmatprep.mubr.msk.f32.mxu1 %vm388_vm0, %v77_v44 }
 0x156   :  { %3817 = vmatmul.mubr.msk.f32.gmra.mrb[6].mxu1 %vm388_vm0, %v78_v45 }
 0x157   :  { %3819 = vmatprep.mubr.msk.f32.mxu1 %vm388_vm0, %v79_v46 }
 0x15a   :  { %3820 = vmatmul.mubr.msk.f32.gmra.mrb[8].mxu1 %vm388_vm0, %v80_v47 }
 0x15b   :  { %3822 = vmatprep.mubr.msk.f32.mxu1 %vm388_vm0, %v81_v48 }
 0x15e   :  { %3823 = vmatmul.mubr.msk.f32.gmra.mrb[10].mxu1 %vm388_vm0, %v82_v49 }
 0x15f   :  { %3825 = vmatprep.mubr.msk.f32.mxu1 %vm388_vm0, %v83_v50 }
 0x162   :  { %3826 = vmatmul.mubr.msk.f32.gmra.mrb[12].mxu1 %vm388_vm0, %v84_v51 }
 0x163   :  { %3828 = vmatprep.mubr.msk.f32.mxu1 %vm388_vm0, %v85_v52 }
 0x166   :  { %3829 = vmatmul.mubr.msk.f32.gmra.mrb[14].mxu1 %vm388_vm0, %v86_v53 }
 0x167   :  { %3831 = vmatprep.mubr.msk.f32.mxu1 %vm388_vm0, %v87_v54 }
 0x16a   :  { %3832 = vmatmul.mubr.msk.f32.gmra.mrb[16].mxu1 %vm388_vm0, %v88_v55 }
 0x16b   :  { %3834 = vmatprep.mubr.msk.f32.mxu1 %vm388_vm0, %v89_v56 }
 0x16e   :  { %3835 = vmatmul.mubr.msk.f32.gmra.mrb[18].mxu1 %vm388_vm0, %v90_v57 }
 0x16f   :  { %3837 = vmatprep.mubr.msk.f32.mxu1 %vm388_vm0, %v91_v58 }
 0x172   :  { %3838 = vmatmul.mubr.msk.f32.gmra.mrb[20].mxu1 %vm388_vm0, %v92_v59 }
 0x173   :  { %3840 = vmatprep.mubr.msk.f32.mxu1 %vm388_vm0, %v93_v60 }
 0x176   :  { %3841 = vmatmul.mubr.msk.f32.gmra.mrb[22].mxu1 %vm388_vm0, %v94_v61 }
 0x1cd   :  { %v3745_v62 = vpop.f32.mrb[32].mxu0 }
 0x1ce   :  { %v551_v63 = vpop.f32.mrb[33].mxu0 }
 0x1d1   :  { %v3748_v3 = vpop.f32.mrb[34].mxu0 }
 0x1d2   :  { %v561_v4 = vpop.f32.mrb[35].mxu0 }
 0x1d5   :  { %v3751_v5 = vpop.f32.mrb[36].mxu0 }
 0x1d6   :  { %v571_v8 = vpop.f32.mrb[37].mxu0 }
 0x1d9   :  { %v3754_v10 = vpop.f32.mrb[38].mxu0 }
 0x1da   :  { %v581_v11 = vpop.f32.mrb[39].mxu0 }
 0x20d   :  { %v3797_v12 = vpop.f32.mrb[24].mxu1 }
 0x20e   :  { %v4712_v13 = vadd.f32 %v3797_v12, %v3745_v62  ;;  %v872_v14 = vpop.f32.mrb[25].mxu1 }
 0x20f   :  { %v4714_v15 = vadd.f32 %v872_v14, %v551_v63 }
 0x210   :  { %v1033_v37 = vmul.f32 %v4712_v13, %v4712_v13 }
 0x211   :  { %v3800_v16 = vpop.f32.mrb[26].mxu1  ;;  %v1032_v40 = vmul.f32 %v4714_v15, %v4714_v15 }
 0x212   :  { %v4716_v17 = vadd.f32 %v3800_v16, %v3748_v3  ;;  %v882_v18 = vpop.f32.mrb[27].mxu1 }
 0x213   :  { %v4718_v19 = vadd.f32 %v882_v18, %v561_v4  ;;  %v4809_v18 = vld [vmem:[%s5854_s6] ss:$0 sm:$0xff] }
 0x214   :  { %v1035_v45 = vmul.f32 %v4716_v17, %v4716_v17 }
 0x215   :  { %v3803_v20 = vpop.f32.mrb[28].mxu1  ;;  %v1034_v49 = vmul.f32 %v4718_v19, %v4718_v19 }
 0x216   :  { %v4720_v21 = vadd.f32 %v3803_v20, %v3751_v5  ;;  %v892_v22 = vpop.f32.mrb[29].mxu1 }
 0x217   :  { %v4722_v23 = vadd.f32 %v892_v22, %v571_v8 }
 0x218   :  { %v1037_v55 = vmul.f32 %v4720_v21, %v4720_v21 }
 0x219   :  { %v3806_v24 = vpop.f32.mrb[30].mxu1  ;;  %v1036_v59 = vmul.f32 %v4722_v23, %v4722_v23 }
 0x21a   :  { %v4724_v25 = vadd.f32 %v3806_v24, %v3754_v10  ;;  %v902_v26 = vpop.f32.mrb[31].mxu1 }
 0x21b   :  { %v4726_v27 = vadd.f32 %v902_v26, %v581_v11 }
 0x21c   :  { %v1039_v1 = vmul.f32 %v4724_v25, %v4724_v25 }
 0x21d   :  { %v4728_v28 = vpop.f32.mrb[0].mxu1  ;;  %v1038_v5 = vmul.f32 %v4726_v27, %v4726_v27 }
 0x21e   :  { %v4730_v29 = vpop.f32.mrb[1].mxu1  ;;  %v1041_v9 = vmul.f32 %v4728_v28, %v4728_v28 }
 0x21f   :  { %v1040_v14 = vmul.f32 %v4730_v29, %v4730_v29 }
 0x221   :  { %v4732_v30 = vpop.f32.mrb[2].mxu1 }
 0x222   :  { %v4734_v31 = vpop.f32.mrb[3].mxu1  ;;  %v1043_v16 = vmul.f32 %v4732_v30, %v4732_v30 }
 0x225   :  { %v4736_v32 = vpop.f32.mrb[4].mxu1 }
 0x226   :  { %v4738_v33 = vpop.f32.mrb[5].mxu1 }
 0x229   :  { %v4740_v34 = vpop.f32.mrb[6].mxu1 }
 0x22a   :  { %v4742_v35 = vpop.f32.mrb[7].mxu1 }
 0x22d   :  { %v4744_v36 = vpop.f32.mrb[8].mxu1 }
 0x22e   :  { %v1049_v38 = vmul.f32 %v4744_v36, %v4744_v36  ;;  %v4750_v39 = vpop.f32.mrb[9].mxu1 }
 0x22f   :  { %v1048_v41 = vmul.f32 %v4750_v39, %v4750_v39 }
 0x230   :  { %v1065_v42 = vadd.f32 %v1049_v38, %v1033_v37  ;;  %v4819_v37 = vmul.f32 %v4734_v31, %v4734_v31 }
 0x231   :  { %v1064_v43 = vadd.f32 %v1048_v41, %v1032_v40  ;;  %v4756_v44 = vpop.f32.mrb[10].mxu1 }
 0x232   :  { %v1081_v46 = vadd.f32 1e-12, %v1065_v42  ;;  %v1051_v47 = vmul.f32 %v4756_v44, %v4756_v44  ;;  %v4762_v48 = vpop.f32.mrb[11].mxu1  ;;  %v4827_v42 = vmul.f32 %v4736_v32, %v4736_v32 }
 0x233   :  { %v1080_v50 = vadd.f32 1e-12, %v1064_v43  ;;  %v1050_v51 = vmul.f32 %v4762_v48, %v4762_v48 }
 0x234   :  { %4229 = vrsqrt.f32 %v1081_v46  ;;  %v1067_v52 = vadd.f32 %v1051_v47, %v1035_v45  ;;  %v4832_v47 = vmul.f32 %v4738_v33, %v4738_v33 }
 0x235   :  { %4231 = vrsqrt.f32 %v1080_v50  ;;  %v1066_v53 = vadd.f32 %v1050_v51, %v1034_v49  ;;  %v4768_v54 = vpop.f32.mrb[12].mxu1 }
 0x236   :  { %v1083_v56 = vadd.f32 1e-12, %v1067_v52  ;;  %v1053_v57 = vmul.f32 %v4768_v54, %v4768_v54  ;;  %v4774_v58 = vpop.f32.mrb[13].mxu1 }
 0x237   :  { %v1082_v60 = vadd.f32 1e-12, %v1066_v53  ;;  %v1052_v61 = vmul.f32 %v4774_v58, %v4774_v58  ;;  %v4840_v53 = vmul.f32 %v4740_v34, %v4740_v34 }
 0x238   :  { %4233 = vrsqrt.f32 %v1083_v56  ;;  %v1069_v62 = vadd.f32 %v1053_v57, %v1037_v55 }
 0x239   :  { %4235 = vrsqrt.f32 %v1082_v60  ;;  %v1068_v63 = vadd.f32 %v1052_v61, %v1036_v59  ;;  %v4780_v0 = vpop.f32.mrb[14].mxu1 }
 0x23a   :  { %v4784_v2 = vadd.f32 1e-12, %v1069_v62  ;;  %v1055_v3 = vmul.f32 %v4780_v0, %v4780_v0  ;;  %v4788_v4 = vpop.f32.mrb[15].mxu1 }
 0x23b   :  { %v4792_v6 = vadd.f32 1e-12, %v1068_v63  ;;  %v1054_v7 = vmul.f32 %v4788_v4, %v4788_v4 }
 0x23c   :  { %4237 = vrsqrt.f32 %v4784_v2  ;;  %v1071_v8 = vadd.f32 %v1055_v3, %v1039_v1 }
 0x23d   :  { %4239 = vrsqrt.f32 %v4792_v6  ;;  %v1070_v10 = vadd.f32 %v1054_v7, %v1038_v5  ;;  %v4800_v11 = vpop.f32.mrb[16].mxu1 }
 0x23e   :  { %v4230_v12 = vpop.eup %4229  ;;  %v4811_v20 = vadd.f32 1e-12, %v1071_v8  ;;  %v1057_v22 = vmul.f32 %v4800_v11, %v4800_v11  ;;  %v4815_v24 = vpop.f32.mrb[17].mxu1 }
 0x23f   :  { %v4232_v26 = vpop.eup %4231  ;;  %v1113_v38 = vmul.f32 %v4230_v12, %v1081_v46  ;;  %v4821_v40 = vadd.f32 1e-12, %v1070_v10  ;;  %v1056_v41 = vmul.f32 %v4815_v24, %v4815_v24 }
 0x240   :  { %v1112_v43 = vmul.f32 %v4232_v26, %v1080_v50  ;;  %4241 = vrsqrt.f32 %v4811_v20  ;;  %v1073_v45 = vadd.f32 %v1057_v22, %v1041_v9 }
 0x241   :  { %v1135_v46 = vadd.f32 %v4809_v18, %v1113_v38  ;;  %4243 = vrsqrt.f32 %v4821_v40  ;;  %v1072_v49 = vadd.f32 %v1056_v41, %v1040_v14  ;;  %v4836_v51 = vpop.f32.mrb[18].mxu1 }
 0x242   :  { %v4234_v52 = vpop.eup %4233  ;;  %v1134_v50 = vadd.f32 %v4809_v18, %v1112_v43  ;;  %v4843_v55 = vadd.f32 1e-12, %v1073_v45  ;;  %v1059_v57 = vmul.f32 %v4836_v51, %v4836_v51  ;;  %v4847_v59 = vpop.f32.mrb[19].mxu1 }
 0x243   :  { %v4236_v61 = vpop.eup %4235  ;;  %vm1151_vm2 = vcmp.gt.f32.partialorder %v1135_v46, 0.0  ;;  %v1167_v62 = vmul.f32 0.2, %v1135_v46  ;;  %v1115_v63 = vmul.f32 %v4234_v52, %v1083_v56  ;;  %v4849_v1 = vadd.f32 1e-12, %v1072_v49 }
 0x244   :  { %vm1150_vm3 = vcmp.gt.f32.partialorder %v1134_v50, 0.0  ;;  %v1166_v3 = vmul.f32 0.2, %v1134_v50  ;;  %v1114_v5 = vmul.f32 %v4236_v61, %v1082_v60  ;;  %4245 = vrsqrt.f32 %v4843_v55 }
 0x245   :  { %v1183_v7 = vsel %vm1151_vm2, %v1135_v46, %v1167_v62  ;;  %v1137_v8 = vadd.f32 %v4809_v18, %v1115_v63  ;;  %4247 = vrsqrt.f32 %v4849_v1  ;;  %v1075_v9 = vadd.f32 %v1059_v57, %v1043_v16  ;;  %v4854_v10 = vpop.f32.mrb[20].mxu1 }
 0x246   :  { %v4238_v14 = vpop.eup %4237  ;;  %v1199_v22 = vmul.f32 %v4230_v12, %v1183_v7  ;;  %v1182_v38 = vsel %vm1150_vm3, %v1134_v50, %v1166_v3  ;;  %v1136_v56 = vadd.f32 %v4809_v18, %v1114_v5  ;;  %v1058_v41 = vmul.f32 %v4847_v59, %v4847_v59  ;;  %v4859_v43 = vpop.f32.mrb[21].mxu1 }
 0x247   :  { %v4240_v60 = vpop.eup %4239  ;;  %v1198_v45 = vmul.f32 %v4232_v26, %v1182_v38  ;;  %vm1153_vm4 = vcmp.gt.f32.partialorder %v1137_v8, 0.0  ;;  %v1169_v46 = vmul.f32 0.2, %v1137_v8  ;;  %v1117_v49 = vmul.f32 %v4238_v14, %v4784_v2 }
 0x248   :  { %v1215_v16 = vmul.f32 %v1199_v22, %v4712_v13  ;;  %v4864_v57 = vmul.f32 %v4744_v36, %v1199_v22  ;;  %vm1152_vm5 = vcmp.gt.f32.partialorder %v1136_v56, 0.0  ;;  %v1168_v12 = vmul.f32 0.2, %v1136_v56 }
 0x249   :  { %v1214_v50 = vmul.f32 %v1198_v45, %v4714_v15  ;;  %v4868_v62 = vmul.f32 %v1198_v45, %v4750_v39  ;;  %v1185_v63 = vsel %vm1153_vm4, %v1137_v8, %v1169_v46  ;;  %v1139_v3 = vadd.f32 %v4809_v18, %v1117_v49  ;;  %v4871_v26 = vpop.f32.mrb[22].mxu1 }
 0x24a   :  { %5864 = vst [vmem:[#allocation2_spill] sm:$0xff] %v4864_v57  ;;  %v4242_v5 = vpop.eup %4241  ;;  %v1201_v7 = vmul.f32 %v4234_v52, %v1185_v63  ;;  %v1184_v2 = vsel %vm1152_vm5, %v1136_v56, %v1168_v12  ;;  %v1116_v13 = vmul.f32 %v4240_v60, %v4792_v6  ;;  %v4874_v38 = vadd.f32 1e-12, %v1075_v9  ;;  %v4876_v36 = vpop.f32.mrb[23].mxu1 }
 0x24b   :  { %v4244_v22 = vpop.eup %4243  ;;  %v1200_v57 = vmul.f32 %v4236_v61, %v1184_v2  ;;  %vm1155_vm6 = vcmp.gt.f32.partialorder %v1139_v3, 0.0  ;;  %v1171_v15 = vmul.f32 0.2, %v1139_v3  ;;  %v1119_v39 = vmul.f32 %v4242_v5, %v4811_v20  ;;  %3851 = vmatprep.mubr.msk.f32.mxu0 %vm1250_vm1, %v1214_v50 }
 0x24c   :  { %v1217_v8 = vmul.f32 %v1201_v7, %v4716_v17  ;;  %v4882_v45 = vmul.f32 %v4756_v44, %v1201_v7  ;;  %v1138_v52 = vadd.f32 %v4809_v18, %v1116_v13  ;;  %v1118_v6 = vmul.f32 %v4244_v22, %v4821_v40  ;;  %3852 = vmatmul.mubr.msk.f32.vlgmr.msra.gmra.mrb[40].mxu0 %vm1250_vm1, %v1215_v16 }
 0x24d   :  { %v1216_v9 = vmul.f32 %v1200_v57, %v4718_v19  ;;  %v4889_v61 = vmul.f32 %v1200_v57, %v4762_v48  ;;  %v1187_v56 = vsel %vm1155_vm6, %v1139_v3, %v1171_v15  ;;  %v1141_v20 = vadd.f32 %v4809_v18, %v1119_v39 }
 0x24e   :  { %v4246_v46 = vpop.eup %4245  ;;  %v1203_v49 = vmul.f32 %v4238_v14, %v1187_v56  ;;  %vm1154_vm7 = vcmp.gt.f32.partialorder %v1138_v52, 0.0  ;;  %v1170_v17 = vmul.f32 0.2, %v1138_v52  ;;  %v1140_v44 = vadd.f32 %v4809_v18, %v1118_v6 }
 0x24f   :  { %v4248_v12 = vpop.eup %4247  ;;  %vm1157_vm8 = vcmp.gt.f32.partialorder %v1141_v20, 0.0  ;;  %v1173_v50 = vmul.f32 0.2, %v1141_v20  ;;  %v1121_v40 = vmul.f32 %v4246_v46, %v4843_v55  ;;  %4249 = vrsqrt.f32 %v4874_v38  ;;  %3854 = vmatprep.mubr.msk.f32.mxu0 %vm1250_vm1, %v1216_v9 }
 0x250   :  { %v1219_v19 = vmul.f32 %v1203_v49, %v4720_v21  ;;  %v4898_v48 = vmul.f32 %v4768_v54, %v1203_v49  ;;  %v1186_v16 = vsel %vm1154_vm7, %v1138_v52, %v1170_v17  ;;  %vm1156_vm9 = vcmp.gt.f32.partialorder %v1140_v44, 0.0  ;;  %3855 = vmatmul.mubr.msk.f32.gmra.mrb[42].mxu0 %vm1250_vm1, %v1217_v8 }
 0x251   :  { %v1202_v14 = vmul.f32 %v4240_v60, %v1186_v16  ;;  %v1189_v57 = vsel %vm1157_vm8, %v1141_v20, %v1173_v50  ;;  %v1172_v63 = vmul.f32 0.2, %v1140_v44  ;;  %v1143_v3 = vadd.f32 %v4809_v18, %v1121_v40 }
 0x252   :  { %v1205_v7 = vmul.f32 %v4242_v5, %v1189_v57  ;;  %v1120_v55 = vmul.f32 %v4248_v12, %v4849_v1  ;;  %v1074_v2 = vadd.f32 %v1058_v41, %v4819_v37  ;;  %v1061_v21 = vmul.f32 %v4854_v10, %v4854_v10 }
 0x253   :  { %v1218_v54 = vmul.f32 %v1202_v14, %v4722_v23  ;;  %v4908_v13 = vmul.f32 %v1202_v14, %v4774_v58  ;;  %v1188_v15 = vsel %vm1156_vm9, %v1140_v44, %v1172_v63  ;;  %vm1159_vm10 = vcmp.gt.f32.partialorder %v1143_v3, 0.0 }
 0x254   :  { %v1221_v60 = vmul.f32 %v1205_v7, %v4724_v25  ;;  %v4912_v39 = vmul.f32 %v4780_v0, %v1205_v7  ;;  %v1204_v5 = vmul.f32 %v4244_v22, %v1188_v15  ;;  %v1175_v8 = vmul.f32 0.2, %v1143_v3 }
 0x255   :  { %v1142_v1 = vadd.f32 %v4809_v18, %v1120_v55  ;;  %v1090_v37 = vadd.f32 1e-12, %v1074_v2  ;;  %v1077_v41 = vadd.f32 %v1061_v21, %v4827_v42  ;;  %v1060_v23 = vmul.f32 %v4859_v43, %v4859_v43  ;;  %3857 = vmatprep.mubr.msk.f32.mxu0 %vm1250_vm1, %v1218_v54 }
 0x256   :  { %v1220_v58 = vmul.f32 %v1204_v5, %v4726_v27  ;;  %v4921_v52 = vmul.f32 %v1204_v5, %v4788_v4  ;;  %v1191_v25 = vsel %vm1159_vm10, %v1143_v3, %v1175_v8  ;;  %v1063_v0 = vmul.f32 %v4871_v26, %v4871_v26  ;;  %3858 = vmatmul.mubr.msk.f32.gmra.mrb[44].mxu0 %vm1250_vm1, %v1219_v19 }
 0x257   :  { %v1207_v22 = vmul.f32 %v4246_v46, %v1191_v25  ;;  %vm1158_vm11 = vcmp.gt.f32.partialorder %v1142_v1, 0.0  ;;  %v1174_v6 = vmul.f32 0.2, %v1142_v1  ;;  %4251 = vrsqrt.f32 %v1090_v37 }
 0x258   :  { %v1093_v42 = vadd.f32 1e-12, %v1077_v41  ;;  %v1076_v9 = vadd.f32 %v1060_v23, %v4832_v47  ;;  %v1079_v56 = vadd.f32 %v1063_v0, %v4840_v53  ;;  %v1062_v27 = vmul.f32 %v4876_v36, %v4876_v36  ;;  %3860 = vmatprep.mubr.msk.f32.mxu0 %vm1250_vm1, %v1220_v58 }
 0x259   :  { %v4250_v4 = vpop.eup %4249  ;;  %v1046_v20 = vmul.f32 %v4742_v35, %v4742_v35  ;;  %v1223_v49 = vmul.f32 %v4728_v28, %v1207_v22  ;;  %v4935_v46 = vmul.f32 %v4800_v11, %v1207_v22  ;;  %v1190_v17 = vsel %vm1158_vm11, %v1142_v1, %v1174_v6 }
 0x25a   :  { %v1206_v44 = vmul.f32 %v4248_v12, %v1190_v17  ;;  %v1123_v47 = vmul.f32 %v4250_v4, %v4874_v38  ;;  %4253 = vrsqrt.f32 %v1093_v42  ;;  %v1092_v53 = vadd.f32 1e-12, %v1076_v9  ;;  %3861 = vmatmul.mubr.msk.f32.gmra.mrb[46].mxu0 %vm1250_vm1, %v1221_v60 }
 0x25b   :  { %v1095_v50 = vadd.f32 1e-12, %v1079_v56  ;;  %v1078_v40 = vadd.f32 %v1062_v27, %v1046_v20 }
 0x25c   :  { %v1222_v19 = vmul.f32 %v1206_v44, %v4730_v29  ;;  %v4941_v16 = vmul.f32 %v1206_v44, %v4815_v24  ;;  %v1145_v28 = vadd.f32 %v4809_v18, %v1123_v47  ;;  %4255 = vrsqrt.f32 %v1092_v53 }
 0x25d   :  { %4257 = vrsqrt.f32 %v1095_v50  ;;  %v1094_v11 = vadd.f32 1e-12, %v1078_v40 }
 0x25e   :  { %vm1161_vm12 = vcmp.gt.f32.partialorder %v1145_v28, 0.0  ;;  %v1177_v12 = vmul.f32 0.2, %v1145_v28  ;;  %3863 = vmatprep.mubr.msk.f32.mxu0 %vm1250_vm1, %v1222_v19 }
 0x25f   :  { %4259 = vrsqrt.f32 %v1094_v11  ;;  %3864 = vmatmul.mubr.msk.f32.gmra.mrb[48].mxu0 %vm1250_vm1, %v1223_v49 }
 0x260   :  { %v1193_v38 = vsel %vm1161_vm12, %v1145_v28, %v1177_v12 }
 0x261   :  { %v4252_v14 = vpop.eup %4251  ;;  %v1209_v57 = vmul.f32 %v4250_v4, %v1193_v38 }
 0x262   :  { %v1122_v63 = vmul.f32 %v4252_v14, %v1090_v37 }
 0x263   :  { %v1225_v29 = vmul.f32 %v4732_v30, %v1209_v57  ;;  %v1241_v24 = vmul.f32 %v4836_v51, %v1209_v57 }
 0x264   :  { %v4254_v3 = vpop.eup %4253  ;;  %v1144_v7 = vadd.f32 %v4809_v18, %v1122_v63 }
 0x265   :  { %v1125_v55 = vmul.f32 %v4254_v3, %v1093_v42 }
 0x266   :  { %v4256_v2 = vpop.eup %4255  ;;  %vm1160_vm13 = vcmp.gt.f32.partialorder %v1144_v7, 0.0  ;;  %v1176_v21 = vmul.f32 0.2, %v1144_v7 }
 0x267   :  { %v4258_v54 = vpop.eup %4257  ;;  %v1147_v15 = vadd.f32 %v4809_v18, %v1125_v55  ;;  %v1124_v60 = vmul.f32 %v4256_v2, %v1092_v53 }
 0x268   :  { %v1192_v5 = vsel %vm1160_vm13, %v1144_v7, %v1176_v21  ;;  %v1127_v8 = vmul.f32 %v4258_v54, %v1095_v50 }
 0x269   :  { %v4260_v1 = vpop.eup %4259  ;;  %v1208_v41 = vmul.f32 %v4252_v14, %v1192_v5  ;;  %vm1163_vm14 = vcmp.gt.f32.partialorder %v1147_v15, 0.0  ;;  %v1179_v37 = vmul.f32 0.2, %v1147_v15  ;;  %v1146_v30 = vadd.f32 %v4809_v18, %v1124_v60 }
 0x26a   :  { %v1149_v51 = vadd.f32 %v4809_v18, %v1127_v8  ;;  %v1126_v23 = vmul.f32 %v4260_v1, %v1094_v11 }
 0x26b   :  { %v1224_v58 = vmul.f32 %v1208_v41, %v4734_v31  ;;  %v1240_v25 = vmul.f32 %v1208_v41, %v4847_v59  ;;  %v1195_v0 = vsel %vm1163_vm14, %v1147_v15, %v1179_v37  ;;  %vm1162_vm15 = vcmp.gt.f32.partialorder %v1146_v30, 0.0 }
 0x26c   :  { %v1211_v22 = vmul.f32 %v4254_v3, %v1195_v0  ;;  %v1178_v6 = vmul.f32 0.2, %v1146_v30  ;;  %vm1165_vm2 = vcmp.gt.f32.partialorder %v1149_v51, 0.0  ;;  %v1181_v42 = vmul.f32 0.2, %v1149_v51 }
 0x26d   :  { %v1148_v9 = vadd.f32 %v4809_v18, %v1126_v23  ;;  %3866 = vmatprep.mubr.msk.f32.mxu0 %vm1250_vm1, %v1224_v58 }
 0x26e   :  { %v1227_v56 = vmul.f32 %v4736_v32, %v1211_v22  ;;  %v1243_v27 = vmul.f32 %v4854_v10, %v1211_v22  ;;  %v1194_v4 = vsel %vm1162_vm15, %v1146_v30, %v1178_v6  ;;  %v1197_v20 = vsel %vm1165_vm2, %v1149_v51, %v1181_v42  ;;  %3867 = vmatmul.mubr.msk.f32.gmra.mrb[50].mxu0 %vm1250_vm1, %v1225_v29 }
 0x26f   :  { %v1210_v31 = vmul.f32 %v4256_v2, %v1194_v4  ;;  %v1213_v59 = vmul.f32 %v4258_v54, %v1197_v20  ;;  %vm1164_vm3 = vcmp.gt.f32.partialorder %v1148_v9, 0.0  ;;  %v1180_v49 = vmul.f32 0.2, %v1148_v9 }
 0x271   :  { %v1226_v17 = vmul.f32 %v1210_v31, %v4738_v33  ;;  %v1242_v44 = vmul.f32 %v1210_v31, %v4859_v43  ;;  %v1229_v18 = vmul.f32 %v4740_v34, %v1213_v59  ;;  %v1245_v47 = vmul.f32 %v4871_v26, %v1213_v59  ;;  %v5865_v33 = vld [vmem:[#allocation2_spill] sm:$0xff] }
 0x272   :  { %v1196_v53 = vsel %vm1164_vm3, %v1148_v9, %v1180_v49 }
 0x273   :  { %v1212_v32 = vmul.f32 %v4260_v1, %v1196_v53  ;;  %3869 = vmatprep.mubr.msk.f32.mxu0 %vm1250_vm1, %v1226_v17 }
 0x274   :  { %3870 = vmatmul.mubr.msk.f32.gmra.mrb[52].mxu0 %vm1250_vm1, %v1227_v56 }
 0x275   :  { %v1228_v10 = vmul.f32 %v1212_v32, %v4742_v35  ;;  %v1244_v50 = vmul.f32 %v1212_v32, %v4876_v36  ;;  %v128_v35 = vld [vmem:[%s5855_s1 + $0x8] sm:$0xff] }
 0x276   :  { %1851 = vmatprep.mubr.f32.mxu1 %v128_v35 }
 0x277   :  { %3872 = vmatprep.mubr.msk.f32.mxu0 %vm1250_vm1, %v1228_v10  ;;  %v5099_v10 = vld [vmem:[%s5856_s7] ss:$0 sm:$0xff] }
 0x278   :  { %3873 = vmatmul.mubr.msk.f32.gmra.mrb[54].mxu0 %vm1250_vm1, %v1229_v18 }
 0x279   :  { %3875 = vmatprep.mubr.msk.f32.mxu0 %vm1250_vm1, %v4868_v62 }
 0x27c   :  { %3876 = vmatmul.mubr.msk.f32.gmra.mrb[56].mxu0 %vm1250_vm1, %v5865_v33 }
 0x27d   :  { %3878 = vmatprep.mubr.msk.f32.mxu0 %vm1250_vm1, %v4889_v61 }
 0x280   :  { %3879 = vmatmul.mubr.msk.f32.gmra.mrb[58].mxu0 %vm1250_vm1, %v4882_v45 }
 0x281   :  { %3881 = vmatprep.mubr.msk.f32.mxu0 %vm1250_vm1, %v4908_v13 }
 0x284   :  { %3882 = vmatmul.mubr.msk.f32.gmra.mrb[60].mxu0 %vm1250_vm1, %v4898_v48 }
 0x285   :  { %3884 = vmatprep.mubr.msk.f32.mxu0 %vm1250_vm1, %v4921_v52 }
 0x288   :  { %3885 = vmatmul.mubr.msk.f32.gmra.mrb[62].mxu0 %vm1250_vm1, %v4912_v39 }
 0x289   :  { %3887 = vmatprep.mubr.msk.f32.mxu0 %vm1250_vm1, %v4941_v16 }
 0x28c   :  { %3888 = vmatmul.mubr.msk.f32.gmra.mrb[64].mxu0 %vm1250_vm1, %v4935_v46 }
 0x28d   :  { %3890 = vmatprep.mubr.msk.f32.mxu0 %vm1250_vm1, %v1240_v25 }
 0x290   :  { %3891 = vmatmul.mubr.msk.f32.gmra.mrb[66].mxu0 %vm1250_vm1, %v1241_v24 }
 0x291   :  { %3893 = vmatprep.mubr.msk.f32.mxu0 %vm1250_vm1, %v1242_v44 }
 0x294   :  { %3894 = vmatmul.mubr.msk.f32.gmra.mrb[68].mxu0 %vm1250_vm1, %v1243_v27 }
 0x295   :  { %3896 = vmatprep.mubr.msk.f32.mxu0 %vm1250_vm1, %v1244_v50 }
 0x298   :  { %3897 = vmatmul.mubr.msk.f32.gmra.mrb[70].mxu0 %vm1250_vm1, %v1245_v47 }
 0x299   :  { %2028 = vmatprep.mubr.f32.mxu0 %v128_v35 }
 0x31f   :  { %v4995_v34 = vpop.f32.mrb[40].mxu0 }
 0x320   :  { %v5000_v43 = vpop.f32.mrb[41].mxu0  ;;  %v1574_v12 = vmul.f32 %v4995_v34, %v4995_v34 }
 0x321   :  { %v1573_v57 = vmul.f32 %v5000_v43, %v5000_v43 }
 0x323   :  { %v5002_v62 = vpop.f32.mrb[42].mxu0 }
 0x324   :  { %v5004_v26 = vpop.f32.mrb[43].mxu0  ;;  %v1576_v7 = vmul.f32 %v5002_v62, %v5002_v62 }
 0x325   :  { %v1575_v54 = vmul.f32 %v5004_v26, %v5004_v26 }
 0x329   :  { %v5006_v36 = vpop.f32.mrb[44].mxu0 }
 0x32a   :  { %v5008_v45 = vpop.f32.mrb[45].mxu0  ;;  %v1578_v41 = vmul.f32 %v5006_v36, %v5006_v36 }
 0x32b   :  { %v1577_v23 = vmul.f32 %v5008_v45, %v5008_v45 }
 0x32d   :  { %v5010_v61 = vpop.f32.mrb[46].mxu0 }
 0x32e   :  { %v5012_v48 = vpop.f32.mrb[47].mxu0  ;;  %v1580_v42 = vmul.f32 %v5010_v61, %v5010_v61 }
 0x32f   :  { %v1579_v4 = vmul.f32 %v5012_v48, %v5012_v48 }
 0x332   :  { %v5014_v13 = vpop.f32.mrb[48].mxu0 }
 0x333   :  { %v5016_v39 = vpop.f32.mrb[49].mxu0  ;;  %v1582_v49 = vmul.f32 %v5014_v13, %v5014_v13 }
 0x334   :  { %v1581_v17 = vmul.f32 %v5016_v39, %v5016_v39 }
 0x341   :  { %v5018_v52 = vpop.f32.mrb[50].mxu0 }
 0x342   :  { %v5020_v46 = vpop.f32.mrb[51].mxu0  ;;  %v1584_v53 = vmul.f32 %v5018_v52, %v5018_v52 }
 0x343   :  { %v5094_v32 = vmul.f32 %v5020_v46, %v5020_v46 }
 0x347   :  { %v5022_v40 = vpop.f32.mrb[52].mxu0 }
 0x348   :  { %v5024_v19 = vpop.f32.mrb[53].mxu0 }
 0x34b   :  { %v5026_v16 = vpop.f32.mrb[54].mxu0 }
 0x34c   :  { %v5028_v28 = vpop.f32.mrb[55].mxu0 }
 0x34f   :  { %v5030_v11 = vpop.f32.mrb[56].mxu0 }
 0x350   :  { %v1590_v38 = vmul.f32 %v5030_v11, %v5030_v11  ;;  %v5036_v14 = vpop.f32.mrb[57].mxu0 }
 0x351   :  { %v1589_v63 = vmul.f32 %v5036_v14, %v5036_v14 }
 0x352   :  { %v1606_v29 = vadd.f32 %v1590_v38, %v1574_v12  ;;  %v5109_v38 = vmul.f32 %v5022_v40, %v5022_v40 }
 0x353   :  { %v1605_v24 = vadd.f32 %v1589_v63, %v1573_v57  ;;  %v5042_v3 = vpop.f32.mrb[58].mxu0 }
 0x354   :  { %v1622_v55 = vadd.f32 1e-12, %v1606_v29  ;;  %v1592_v2 = vmul.f32 %v5042_v3, %v5042_v3  ;;  %v5048_v21 = vpop.f32.mrb[59].mxu0 }
 0x355   :  { %v1621_v15 = vadd.f32 1e-12, %v1605_v24  ;;  %v1591_v60 = vmul.f32 %v5048_v21, %v5048_v21  ;;  %v5117_v24 = vmul.f32 %v5024_v19, %v5024_v19 }
 0x356   :  { %4261 = vrsqrt.f32 %v1622_v55  ;;  %v1608_v5 = vadd.f32 %v1592_v2, %v1576_v7 }
 0x357   :  { %4263 = vrsqrt.f32 %v1621_v15  ;;  %v1607_v8 = vadd.f32 %v1591_v60, %v1575_v54  ;;  %v5054_v1 = vpop.f32.mrb[60].mxu0  ;;  %v5122_v54 = vmul.f32 %v5026_v16, %v5026_v16 }
 0x358   :  { %v1624_v37 = vadd.f32 1e-12, %v1608_v5  ;;  %v1594_v30 = vmul.f32 %v5054_v1, %v5054_v1  ;;  %v5060_v51 = vpop.f32.mrb[61].mxu0 }
 0x359   :  { %v1623_v58 = vadd.f32 1e-12, %v1607_v8  ;;  %v1593_v25 = vmul.f32 %v5060_v51, %v5060_v51 }
 0x35a   :  { %4265 = vrsqrt.f32 %v1624_v37  ;;  %v1610_v0 = vadd.f32 %v1594_v30, %v1578_v41  ;;  %v5130_v41 = vmul.f32 %v5028_v28, %v5028_v28 }
 0x35b   :  { %4267 = vrsqrt.f32 %v1623_v58  ;;  %v1609_v22 = vadd.f32 %v1593_v25, %v1577_v23  ;;  %v5066_v6 = vpop.f32.mrb[62].mxu0 }
 0x35c   :  { %v5070_v9 = vadd.f32 1e-12, %v1610_v0  ;;  %v1596_v56 = vmul.f32 %v5066_v6, %v5066_v6  ;;  %v5074_v27 = vpop.f32.mrb[63].mxu0 }
 0x35d   :  { %v5078_v20 = vadd.f32 1e-12, %v1609_v22  ;;  %v1595_v31 = vmul.f32 %v5074_v27, %v5074_v27 }
 0x35e   :  { %4269 = vrsqrt.f32 %v5070_v9  ;;  %v1612_v59 = vadd.f32 %v1596_v56, %v1580_v42 }
 0x35f   :  { %4271 = vrsqrt.f32 %v5078_v20  ;;  %v1611_v44 = vadd.f32 %v1595_v31, %v1579_v4  ;;  %v5088_v18 = vpop.f32.mrb[64].mxu0 }
 0x360   :  { %v4262_v47 = vpop.eup %4261  ;;  %v5101_v50 = vadd.f32 1e-12, %v1612_v59  ;;  %v1598_v33 = vmul.f32 %v5088_v18, %v5088_v18  ;;  %v5105_v35 = vpop.f32.mrb[65].mxu0 }
 0x361   :  { %v4264_v12 = vpop.eup %4263  ;;  %v1654_v57 = vmul.f32 %v4262_v47, %v1622_v55  ;;  %v5111_v63 = vadd.f32 1e-12, %v1611_v44  ;;  %v1597_v29 = vmul.f32 %v5105_v35, %v5105_v35 }
 0x362   :  { %v1653_v7 = vmul.f32 %v4264_v12, %v1621_v15  ;;  %4273 = vrsqrt.f32 %v5101_v50  ;;  %v1614_v2 = vadd.f32 %v1598_v33, %v1582_v49 }
 0x363   :  { %v1676_v60 = vadd.f32 %v5099_v10, %v1654_v57  ;;  %4275 = vrsqrt.f32 %v5111_v63  ;;  %v1613_v55 = vadd.f32 %v1597_v29, %v1581_v17  ;;  %v5126_v5 = vpop.f32.mrb[66].mxu0 }
 0x364   :  { %v4266_v8 = vpop.eup %4265  ;;  %v1675_v15 = vadd.f32 %v5099_v10, %v1653_v7  ;;  %v5133_v30 = vadd.f32 1e-12, %v1614_v2  ;;  %v1600_v23 = vmul.f32 %v5126_v5, %v5126_v5  ;;  %v5137_v25 = vpop.f32.mrb[67].mxu0 }
 0x365   :  { %v4268_v0 = vpop.eup %4267  ;;  %vm1692_vm4 = vcmp.gt.f32.partialorder %v1676_v60, 0.0  ;;  %v1708_v22 = vmul.f32 0.2, %v1676_v60  ;;  %v1656_v42 = vmul.f32 %v4266_v8, %v1624_v37  ;;  %v5139_v56 = vadd.f32 1e-12, %v1613_v55 }
 0x366   :  { %vm1691_vm5 = vcmp.gt.f32.partialorder %v1675_v15, 0.0  ;;  %v1707_v4 = vmul.f32 0.2, %v1675_v15  ;;  %v1655_v31 = vmul.f32 %v4268_v0, %v1623_v58  ;;  %4277 = vrsqrt.f32 %v5133_v30 }
 0x367   :  { %v1724_v59 = vsel %vm1692_vm4, %v1676_v60, %v1708_v22  ;;  %v1678_v49 = vadd.f32 %v5099_v10, %v1656_v42  ;;  %4279 = vrsqrt.f32 %v5139_v56  ;;  %v1616_v17 = vadd.f32 %v1600_v23, %v1584_v53  ;;  %v5144_v44 = vpop.f32.mrb[68].mxu0 }
 0x368   :  { %v4270_v33 = vpop.eup %4269  ;;  %v1740_v57 = vmul.f32 %v4262_v47, %v1724_v59  ;;  %v1723_v29 = vsel %vm1691_vm5, %v1675_v15, %v1707_v4  ;;  %v1677_v37 = vadd.f32 %v5099_v10, %v1655_v31  ;;  %v5149_v7 = vmul.f32 %v5137_v25, %v5137_v25  ;;  %v5151_v58 = vpop.f32.mrb[69].mxu0 }
 0x369   :  { %v4272_v2 = vpop.eup %4271  ;;  %v1739_v60 = vmul.f32 %v4264_v12, %v1723_v29  ;;  %vm1694_vm6 = vcmp.gt.f32.partialorder %v1678_v49, 0.0  ;;  %v1710_v55 = vmul.f32 0.2, %v1678_v49  ;;  %v1658_v22 = vmul.f32 %v4270_v33, %v5070_v9 }
 0x36a   :  { %v5155_v53 = vmul.f32 %v4995_v34, %v1740_v57  ;;  %v1772_v47 = vmul.f32 %v5030_v11, %v1740_v57  ;;  %vm1693_vm7 = vcmp.gt.f32.partialorder %v1677_v37, 0.0  ;;  %v1709_v15 = vmul.f32 0.2, %v1677_v37 }
 0x36b   :  { %v5159_v23 = vmul.f32 %v1739_v60, %v5000_v43  ;;  %v1771_v42 = vmul.f32 %v1739_v60, %v5036_v14  ;;  %v1726_v4 = vsel %vm1694_vm6, %v1678_v49, %v1710_v55  ;;  %v1680_v31 = vadd.f32 %v5099_v10, %v1658_v22  ;;  %v5163_v12 = vpop.f32.mrb[70].mxu0 }
 0x36c   :  { %v4274_v59 = vpop.eup %4273  ;;  %3070 = vst.msk [vmem:[%s5857_s14 + $0x88] sm:$0xff] %vm1250_vm1, %v5155_v53  ;;  %3086 = vst.msk [vmem:[%s5857_s14 + $0x108] sm:$0xff] %vm1250_vm1, %v1772_v47  ;;  %v1742_v34 = vmul.f32 %v4266_v8, %v1726_v4  ;;  %v1725_v43 = vsel %vm1693_vm7, %v1677_v37, %v1709_v15  ;;  %v1657_v11 = vmul.f32 %v4272_v2, %v5078_v20  ;;  %v5175_v14 = vadd.f32 1e-12, %v1616_v17  ;;  %v5177_v9 = vpop.f32.mrb[71].mxu0 }
 0x36d   :  { %v4276_v49 = vpop.eup %4275  ;;  %v5179_v57 = vpack.c.bf16 %v1772_v47, %v1771_v42  ;;  %3069 = vst.msk [vmem:[%s5857_s14 + $0x80] sm:$0xff] %vm1250_vm1, %v5159_v23  ;;  %3085 = vst.msk [vmem:[%s5857_s14 + $0x100] sm:$0xff] %vm1250_vm1, %v1771_v42  ;;  %v1741_v8 = vmul.f32 %v4268_v0, %v1725_v43  ;;  %vm1696_vm8 = vcmp.gt.f32.partialorder %v1680_v31, 0.0  ;;  %v1712_v20 = vmul.f32 0.2, %v1680_v31 }
 0x36e   :  { %v5191_v17 = vmul.f32 %v5002_v62, %v1742_v34  ;;  %v1774_v29 = vmul.f32 %v5042_v3, %v1742_v34  ;;  %v1679_v37 = vadd.f32 %v5099_v10, %v1657_v11  ;;  %v1660_v60 = vmul.f32 %v4274_v59, %v5101_v50 }
 0x36f   :  { %v5197_v55 = vmul.f32 %v1741_v8, %v5004_v26  ;;  %v1773_v22 = vmul.f32 %v1741_v8, %v5048_v21  ;;  %v1728_v47 = vsel %vm1696_vm8, %v1680_v31, %v1712_v20  ;;  %v1659_v15 = vmul.f32 %v4276_v49, %v5111_v63  ;;  %4072 = vmatprep.subr.bf16.mxu1 %v5179_v57 }
 0x370   :  { %v4278_v0 = vpop.eup %4277  ;;  %3072 = vst.msk [vmem:[%s5857_s14 + $0x98] sm:$0xff] %vm1250_vm1, %v5191_v17  ;;  %3088 = vst.msk [vmem:[%s5857_s14 + $0x118] sm:$0xff] %vm1250_vm1, %v1774_v29  ;;  %v1744_v62 = vmul.f32 %v4270_v33, %v1728_v47  ;;  %vm1695_vm9 = vcmp.gt.f32.partialorder %v1679_v37, 0.0  ;;  %v1711_v26 = vmul.f32 0.2, %v1679_v37  ;;  %v1682_v3 = vadd.f32 %v5099_v10, %v1660_v60 }
 0x371   :  { %v4280_v21 = vpop.eup %4279  ;;  %v5212_v50 = vpack.c.bf16 %v1774_v29, %v1773_v22  ;;  %3071 = vst.msk [vmem:[%s5857_s14 + $0x90] sm:$0xff] %vm1250_vm1, %v5197_v55  ;;  %3087 = vst.msk [vmem:[%s5857_s14 + $0x110] sm:$0xff] %vm1250_vm1, %v1773_v22  ;;  %v1681_v63 = vadd.f32 %v5099_v10, %v1659_v15  ;;  %v1662_v33 = vmul.f32 %v4278_v0, %v5133_v30  ;;  %4281 = vrsqrt.f32 %v5175_v14 }
 0x372   :  { %v5227_v42 = vmul.f32 %v5006_v36, %v1744_v62  ;;  %v1776_v4 = vmul.f32 %v5054_v1, %v1744_v62  ;;  %v1727_v31 = vsel %vm1695_vm9, %v1679_v37, %v1711_v26  ;;  %vm1698_vm10 = vcmp.gt.f32.partialorder %v1682_v3, 0.0 }
 0x373   :  { %v1743_v34 = vmul.f32 %v4272_v2, %v1727_v31  ;;  %v1714_v43 = vmul.f32 0.2, %v1682_v3  ;;  %vm1697_vm11 = vcmp.gt.f32.partialorder %v1681_v63, 0.0  ;;  %v1713_v11 = vmul.f32 0.2, %v1681_v63 }
 0x374   :  { %3074 = vst.msk [vmem:[%s5857_s14 + $0xa8] sm:$0xff] %vm1250_vm1, %v5227_v42  ;;  %3090 = vst.msk [vmem:[%s5857_s14 + $0x128] sm:$0xff] %vm1250_vm1, %v1776_v4  ;;  %v1684_v36 = vadd.f32 %v5099_v10, %v1662_v33  ;;  %v1661_v1 = vmul.f32 %v4280_v21, %v5139_v56  ;;  %v1615_v30 = vadd.f32 %v5149_v7, %v5094_v32 }
 0x375   :  { %v1602_v2 = vmul.f32 %v5144_v44, %v5144_v44  ;;  %v5246_v8 = vmul.f32 %v1743_v34, %v5008_v45  ;;  %v1775_v20 = vmul.f32 %v1743_v34, %v5060_v51  ;;  %v1730_v29 = vsel %vm1698_vm10, %v1682_v3, %v1714_v43 }
 0x376   :  { %v1729_v37 = vsel %vm1697_vm11, %v1681_v63, %v1713_v11  ;;  %v1746_v60 = vmul.f32 %v4274_v59, %v1730_v29  ;;  %vm1700_vm12 = vcmp.gt.f32.partialorder %v1684_v36, 0.0  ;;  %v1716_v47 = vmul.f32 0.2, %v1684_v36 }
 0x377   :  { %v1745_v22 = vmul.f32 %v4276_v49, %v1729_v37  ;;  %v5249_v15 = vpack.c.bf16 %v1776_v4, %v1775_v20  ;;  %3073 = vst.msk [vmem:[%s5857_s14 + $0xa0] sm:$0xff] %vm1250_vm1, %v5246_v8  ;;  %3089 = vst.msk [vmem:[%s5857_s14 + $0x120] sm:$0xff] %vm1250_vm1, %v1775_v20  ;;  %v1683_v45 = vadd.f32 %v5099_v10, %v1661_v1  ;;  %v5261_v51 = vadd.f32 1e-12, %v1615_v30 }
 0x378   :  { %v1618_v32 = vadd.f32 %v1602_v2, %v5109_v38  ;;  %v5265_v56 = vmul.f32 %v5010_v61, %v1746_v60  ;;  %v1778_v7 = vmul.f32 %v5066_v6, %v1746_v60  ;;  %v1732_v62 = vsel %vm1700_vm12, %v1684_v36, %v1716_v47 }
 0x379   :  { %v5269_v59 = vmul.f32 %v1745_v22, %v5012_v48  ;;  %v1777_v49 = vmul.f32 %v1745_v22, %v5074_v27  ;;  %vm1699_vm13 = vcmp.gt.f32.partialorder %v1683_v45, 0.0  ;;  %v1715_v26 = vmul.f32 0.2, %v1683_v45 }
 0x37a   :  { %4283 = vrsqrt.f32 %v5261_v51  ;;  %3076 = vst.msk [vmem:[%s5857_s14 + $0xb8] sm:$0xff] %vm1250_vm1, %v5265_v56  ;;  %3092 = vst.msk [vmem:[%s5857_s14 + $0x138] sm:$0xff] %vm1250_vm1, %v1778_v7  ;;  %v1748_v48 = vmul.f32 %v4278_v0, %v1732_v62  ;;  %v5293_v6 = vadd.f32 1e-12, %v1618_v32  ;;  %v1601_v27 = vmul.f32 %v5151_v58, %v5151_v58 }
 0x37b   :  { %v5282_v61 = vpack.c.bf16 %v1778_v7, %v1777_v49  ;;  %3075 = vst.msk [vmem:[%s5857_s14 + $0xb0] sm:$0xff] %vm1250_vm1, %v5269_v59  ;;  %3091 = vst.msk [vmem:[%s5857_s14 + $0x130] sm:$0xff] %vm1250_vm1, %v1777_v49  ;;  %v4282_v38 = vpop.eup %4281  ;;  %v1731_v3 = vsel %vm1699_vm13, %v1683_v45, %v1715_v26  ;;  %v1604_v63 = vmul.f32 %v5163_v12, %v5163_v12  ;;  %v1951_v20 = vsub.f32 0.0, %v5191_v17 }
 0x37c   :  { %v1603_v33 = vmul.f32 %v5177_v9, %v5177_v9  ;;  %v4073_v4 = vpack.c.bf16 %v5155_v53, %v5159_v23  ;;  %v5304_v31 = vmul.f32 %v5014_v13, %v1748_v48  ;;  %v1780_v0 = vmul.f32 %v5088_v18, %v1748_v48 }
 0x37d   :  { %v1747_v34 = vmul.f32 %v4280_v21, %v1731_v3  ;;  %v1664_v43 = vmul.f32 %v4282_v38, %v5175_v14  ;;  %4285 = vrsqrt.f32 %v5293_v6  ;;  %v1617_v11 = vadd.f32 %v1601_v27, %v5117_v24 }
 0x37e   :  { %v1620_v36 = vadd.f32 %v1604_v63, %v5122_v54  ;;  %v1619_v1 = vadd.f32 %v1603_v33, %v5130_v41  ;;  %4074 = vmatpush3.bf16.msra.mxu1 %v4073_v4  ;;  %3078 = vst.msk [vmem:[%s5857_s14 + $0xc8] sm:$0xff] %vm1250_vm1, %v5304_v31  ;;  %3094 = vst.msk [vmem:[%s5857_s14 + $0x148] sm:$0xff] %vm1250_vm1, %v1780_v0  ;;  %v1948_v54 = vsub.f32 0.0, %v5159_v23  ;;  %v1950_v23 = vsub.f32 0.0, %v5197_v55 }
 0x37f   :  { %v5322_v13 = vmul.f32 %v1747_v34, %v5016_v39  ;;  %v1779_v18 = vmul.f32 %v1747_v34, %v5105_v35  ;;  %v1686_v24 = vadd.f32 %v5099_v10, %v1664_v43  ;;  %4076 = vmatprep.subr.bf16.mxu1 %v5212_v50  ;;  %v1633_v41 = vadd.f32 1e-12, %v1617_v11 }
 0x380   :  { %v5328_v14 = vadd.f32 1e-12, %v1620_v36  ;;  %v5330_v21 = vadd.f32 1e-12, %v1619_v1  ;;  %v4077_v30 = vpack.c.bf16 %v5191_v17, %v5197_v55  ;;  %v1949_v35 = vsub.f32 0.0, %v5155_v53 }
 0x381   :  { %v5334_v2 = vpack.c.bf16 %v1780_v0, %v1779_v18  ;;  %3077 = vst.msk [vmem:[%s5857_s14 + $0xc0] sm:$0xff] %vm1250_vm1, %v5322_v13  ;;  %3093 = vst.msk [vmem:[%s5857_s14 + $0x140] sm:$0xff] %vm1250_vm1, %v1779_v18  ;;  %vm1702_vm14 = vcmp.gt.f32.partialorder %v1686_v24, 0.0  ;;  %v1718_v39 = vmul.f32 0.2, %v1686_v24  ;;  %4287 = vrsqrt.f32 %v1633_v41 }
 0x382   :  { %4078 = vmatpush3.bf16.msra.mxu1 %v4077_v30  ;;  %v4081_v29 = vpack.c.bf16 %v5227_v42, %v5246_v8  ;;  %4289 = vrsqrt.f32 %v5328_v14  ;;  %v4103_v60 = vpack.c.bf16 %v1949_v35, %v1948_v54  ;;  %v1952_v22 = vsub.f32 0.0, %v5246_v8 }
 0x383   :  { %v1734_v37 = vsel %vm1702_vm14, %v1686_v24, %v1718_v39  ;;  %4080 = vmatprep.subr.bf16.mxu1 %v5249_v15  ;;  %4291 = vrsqrt.f32 %v5330_v21  ;;  %v4107_v53 = vpack.c.bf16 %v1951_v20, %v1950_v23  ;;  %v1953_v55 = vsub.f32 0.0, %v5227_v42 }
 0x384   :  { %v4284_v47 = vpop.eup %4283  ;;  %v1750_v45 = vmul.f32 %v4282_v38, %v1734_v37  ;;  %4104 = vmatprep.subr.bf16.mxu0 %v4103_v60  ;;  %v4085_v32 = vpack.c.bf16 %v5265_v56, %v5269_v59  ;;  %v1954_v7 = vsub.f32 0.0, %v5269_v59  ;;  %v1955_v49 = vsub.f32 0.0, %v5265_v56 }
 0x385   :  { %v1663_v17 = vmul.f32 %v4284_v47, %v5261_v51  ;;  %4106 = vmatpush3.bf16.msra.mxu0 %v5179_v57  ;;  %v4111_v26 = vpack.c.bf16 %v1953_v55, %v1952_v22  ;;  %v1956_v42 = vsub.f32 0.0, %v5322_v13  ;;  %v4089_v56 = vpack.c.bf16 %v5304_v31, %v5322_v13 }
 0x386   :  { %v5361_v62 = vmul.f32 %v5018_v52, %v1750_v45  ;;  %v1782_v8 = vmul.f32 %v5126_v5, %v1750_v45  ;;  %4082 = vmatpush3.bf16.msra.mxu1 %v4081_v29  ;;  %4108 = vmatprep.subr.bf16.mxu0 %v4107_v53  ;;  %v4115_v48 = vpack.c.bf16 %v1955_v49, %v1954_v7  ;;  %v1957_v52 = vsub.f32 0.0, %v5304_v31  ;;  %v2127_v53 = vld [vmem:[%s5858_s9] sm:$0xff] }
 0x387   :  { %v1685_v51 = vadd.f32 %v5099_v10, %v1663_v17  ;;  %4084 = vmatprep.subr.bf16.mxu1 %v5282_v61  ;;  %v4286_v59 = vpop.eup %4285 }
 0x388   :  { %3080 = vst.msk [vmem:[%s5857_s14 + $0xd8] sm:$0xff] %vm1250_vm1, %v5361_v62  ;;  %3096 = vst.msk [vmem:[%s5857_s14 + $0x158] sm:$0xff] %vm1250_vm1, %v1782_v8  ;;  %v1666_v57 = vmul.f32 %v4286_v59, %v5293_v6  ;;  %v4119_v27 = vpack.c.bf16 %v1957_v52, %v1956_v42  ;;  %v1959_v13 = vsub.f32 0.0, %v5361_v62  ;;  %v132_v42 = vld [vmem:[%s5855_s1 + $0x28] sm:$0xff] }
 0x389   :  { %vm1701_vm15 = vcmp.gt.f32.partialorder %v1685_v51, 0.0  ;;  %v1717_v5 = vmul.f32 0.2, %v1685_v51  ;;  %4110 = vmatpush3.bf16.msra.mxu0 %v5212_v50  ;;  %v136_v52 = vld [vmem:[%s5855_s1 + $0x48] sm:$0xff] }
 0x38a   :  { %4086 = vmatpush3.bf16.msra.mxu1 %v4085_v32  ;;  %v1688_v3 = vadd.f32 %v5099_v10, %v1666_v57  ;;  %4112 = vmatprep.subr.bf16.mxu0 %v4111_v26  ;;  %v129_v26 = vld [vmem:[%s5855_s1 + $0x10] sm:$0xff] }
 0x38b   :  { %v1733_v38 = vsel %vm1701_vm15, %v1685_v51, %v1717_v5  ;;  %4088 = vmatprep.subr.bf16.mxu1 %v5334_v2  ;;  %v4288_v63 = vpop.eup %4287  ;;  %v131_v51 = vld [vmem:[%s5855_s1 + $0x20] sm:$0xff]  ;;  %v138_v5 = vld [vmem:[%s5855_s1 + $0x58] sm:$0xff]  ;;  %v137_v57 = vld [vmem:[%s5855_s1 + $0x50] sm:$0xff] }
 0x38c   :  { %v1749_v33 = vmul.f32 %v4284_v47, %v1733_v38  ;;  %v4290_v4 = vpop.eup %4289  ;;  %vm1704_vm2 = vcmp.gt.f32.partialorder %v1688_v3, 0.0  ;;  %v1720_v31 = vmul.f32 0.2, %v1688_v3  ;;  %v1665_v0 = vmul.f32 %v4288_v63, %v1633_v41  ;;  %v139_v38 = vld [vmem:[%s5855_s1 + $0x60] sm:$0xff] }
 0x38d   :  { %v4292_v34 = vpop.eup %4291  ;;  %v1668_v50 = vmul.f32 %v4290_v4, %v5328_v14  ;;  %4114 = vmatpush3.bf16.msra.mxu0 %v5249_v15 }
 0x38e   :  { %v1765_v43 = vmul.f32 %v1749_v33, %v5020_v46  ;;  %v1781_v6 = vmul.f32 %v1749_v33, %v5137_v25  ;;  %4090 = vmatpush3.bf16.msra.mxu1 %v4089_v56  ;;  %v1736_v11 = vsel %vm1704_vm2, %v1688_v3, %v1720_v31  ;;  %v1687_v36 = vadd.f32 %v5099_v10, %v1665_v0  ;;  %v133_v56 = vld [vmem:[%s5855_s1 + $0x30] sm:$0xff]  ;;  %v142_v3 = vld [vmem:[%s5855_s1 + $0x78] sm:$0xff]  ;;  %v144_v33 = vld [vmem:[%s5855_s1 + $0x88] sm:$0xff] }
 0x38f   :  { %v1667_v1 = vmul.f32 %v4292_v34, %v5330_v21  ;;  %4116 = vmatprep.subr.bf16.mxu0 %v4115_v48  ;;  %v1752_v46 = vmul.f32 %v4286_v59, %v1736_v11  ;;  %v1690_v25 = vadd.f32 %v5099_v10, %v1668_v50  ;;  %v134_v48 = vld [vmem:[%s5855_s1 + $0x38] sm:$0xff]  ;;  %v135_v59 = vld [vmem:[%s5855_s1 + $0x40] sm:$0xff]  ;;  %v145_v0 = vld [vmem:[%s5855_s1 + $0x90] sm:$0xff] }
 0x390   :  { %v4091_v18 = vpack.c.bf16 %v1782_v8, %v1781_v6  ;;  %3079 = vst.msk [vmem:[%s5857_s14 + $0xd0] sm:$0xff] %vm1250_vm1, %v1765_v43  ;;  %3095 = vst.msk [vmem:[%s5857_s14 + $0x150] sm:$0xff] %vm1250_vm1, %v1781_v6  ;;  %v4093_v15 = vpack.c.bf16 %v5361_v62, %v1765_v43  ;;  %vm1703_vm3 = vcmp.gt.f32.partialorder %v1687_v36, 0.0  ;;  %v1719_v24 = vmul.f32 0.2, %v1687_v36  ;;  %v127_v62 = vld [vmem:[%s5855_s1] sm:$0xff] }
 0x391   :  { %v1689_v54 = vadd.f32 %v5099_v10, %v1667_v1  ;;  %v1958_v41 = vsub.f32 0.0, %v1765_v43  ;;  %v1768_v14 = vmul.f32 %v5022_v40, %v1752_v46  ;;  %v1784_v21 = vmul.f32 %v5144_v44, %v1752_v46  ;;  %4118 = vmatpush3.bf16.msra.mxu0 %v5282_v61  ;;  %v130_v8 = vld [vmem:[%s5855_s1 + $0x18] sm:$0xff]  ;;  %v147_v43 = vld [vmem:[%s5855_s1 + $0xa0] sm:$0xff]  ;;  %v149_v50 = vld [vmem:[%s5855_s1 + $0xb0] sm:$0xff] }
 0x392   :  { %vm1706_vm4 = vcmp.gt.f32.partialorder %v1690_v25, 0.0  ;;  %v1722_v30 = vmul.f32 0.2, %v1690_v25  ;;  %4092 = vmatprep.subr.bf16.mxu1 %v4091_v18  ;;  %v1735_v39 = vsel %vm1703_vm3, %v1687_v36, %v1719_v24  ;;  %4120 = vmatprep.subr.bf16.mxu0 %v4119_v27  ;;  %v140_v27 = vld [vmem:[%s5855_s1 + $0x68] sm:$0xff]  ;;  %v146_v31 = vld [vmem:[%s5855_s1 + $0x98] sm:$0xff]  ;;  %v151_v36 = vld [vmem:[%s5855_s1 + $0xc0] sm:$0xff] }
 0x393   :  { %vm1705_vm5 = vcmp.gt.f32.partialorder %v1689_v54, 0.0  ;;  %v1721_v35 = vmul.f32 0.2, %v1689_v54  ;;  %4094 = vmatpush3.bf16.msra.mxu1 %v4093_v15  ;;  %v4123_v23 = vpack.c.bf16 %v1959_v13, %v1958_v41  ;;  %3082 = vst.msk [vmem:[%s5857_s14 + $0xe8] sm:$0xff] %vm1250_vm1, %v1768_v14  ;;  %3098 = vst.msk [vmem:[%s5857_s14 + $0x168] sm:$0xff] %vm1250_vm1, %v1784_v21  ;;  %v1751_v40 = vmul.f32 %v4288_v63, %v1735_v39  ;;  %v141_v63 = vld [vmem:[%s5855_s1 + $0x70] sm:$0xff] }
 0x394   :  { %v1738_v10 = vsel %vm1706_vm4, %v1690_v25, %v1722_v30  ;;  %v1961_v47 = vsub.f32 0.0, %v1768_v14  ;;  %v150_v6 = vld [vmem:[%s5855_s1 + $0xb8] sm:$0xff]  ;;  %v152_v11 = vld [vmem:[%s5855_s1 + $0xc8] sm:$0xff]  ;;  %v153_v13 = vld [vmem:[%s5855_s1 + $0xd0] sm:$0xff] }
 0x395   :  { %v1754_v44 = vmul.f32 %v4290_v4, %v1738_v10  ;;  %v1737_v61 = vsel %vm1705_vm5, %v1689_v54, %v1721_v35  ;;  %v1767_v20 = vmul.f32 %v1751_v40, %v5024_v19  ;;  %v1783_v29 = vmul.f32 %v1751_v40, %v5151_v58  ;;  %4122 = vmatpush3.bf16.msra.mxu0 %v5334_v2  ;;  %v143_v4 = vld [vmem:[%s5855_s1 + $0x80] sm:$0xff]  ;;  %v154_v1 = vld [vmem:[%s5855_s1 + $0xd8] sm:$0xff]  ;;  %v157_v15 = vld [vmem:[%s5855_s1 + $0xf0] sm:$0xff] }
 0x396   :  { %v1753_v37 = vmul.f32 %v4292_v34, %v1737_v61  ;;  %4124 = vmatprep.subr.bf16.mxu0 %v4123_v23  ;;  %v148_v34 = vld [vmem:[%s5855_s1 + $0xa8] sm:$0xff]  ;;  %v155_v46 = vld [vmem:[%s5855_s1 + $0xe0] sm:$0xff]  ;;  %v158_v25 = vld [vmem:[%s5855_s1 + $0xf8] sm:$0xff] }
 0x397   :  { %v1770_v60 = vmul.f32 %v5026_v16, %v1754_v44  ;;  %v1786_v22 = vmul.f32 %v5163_v12, %v1754_v44  ;;  %v4095_v45 = vpack.c.bf16 %v1784_v21, %v1783_v29  ;;  %3081 = vst.msk [vmem:[%s5857_s14 + $0xe0] sm:$0xff] %vm1250_vm1, %v1767_v20  ;;  %3097 = vst.msk [vmem:[%s5857_s14 + $0x160] sm:$0xff] %vm1250_vm1, %v1783_v29  ;;  %v1960_v12 = vsub.f32 0.0, %v1767_v20  ;;  %v2129_v24 = vld [vmem:[%s5858_s9 + $0x10] sm:$0xff]  ;;  %v2130_v54 = vld [vmem:[%s5858_s9 + $0x18] sm:$0xff] }
 0x398   :  { %v1769_v19 = vmul.f32 %v1753_v37, %v5028_v28  ;;  %v1785_v58 = vmul.f32 %v1753_v37, %v5177_v9  ;;  %v4097_v16 = vpack.c.bf16 %v1768_v14, %v1767_v20  ;;  %v2128_v28 = vld [vmem:[%s5858_s9 + $0x8] sm:$0xff]  ;;  %v4139_v41 = vpack.c.bf16 %v2130_v54, %v2129_v24  ;;  %v2125_v14 = vld [vmem:[%s5859_s8] sm:$0xff] }
 0x399   :  { %3084 = vst.msk [vmem:[%s5857_s14 + $0xf8] sm:$0xff] %vm1250_vm1, %v1770_v60  ;;  %3100 = vst.msk [vmem:[%s5857_s14 + $0x178] sm:$0xff] %vm1250_vm1, %v1786_v22  ;;  %v1963_v2 = vsub.f32 0.0, %v1770_v60  ;;  %4126 = vmatpush3.bf16.msra.mxu0 %v4091_v18  ;;  %4096 = vmatprep.subr.bf16.mxu1 %v4095_v45  ;;  %v4127_v32 = vpack.c.bf16 %v1961_v47, %v1960_v12  ;;  %v4135_v49 = vpack.c.bf16 %v2128_v28, %v2127_v53  ;;  %v156_v18 = vld [vmem:[%s5855_s1 + $0xe8] sm:$0xff]  ;;  %v2801_v10 = vld [vmem:[%s5861_s11] sm:$0xff] }
 0x39a   :  { %v4099_v9 = vpack.c.bf16 %v1786_v22, %v1785_v58  ;;  %3083 = vst.msk [vmem:[%s5857_s14 + $0xf0] sm:$0xff] %vm1250_vm1, %v1769_v19  ;;  %3099 = vst.msk [vmem:[%s5857_s14 + $0x170] sm:$0xff] %vm1250_vm1, %v1785_v58  ;;  %v4101_v55 = vpack.c.bf16 %v1770_v60, %v1769_v19  ;;  %v1962_v17 = vsub.f32 0.0, %v1769_v19  ;;  %4098 = vmatpush3.bf16.msra.mxu1 %v4097_v16  ;;  %v2126_v21 = vld [vmem:[%s5859_s8 + $0x8] sm:$0xff]  ;;  %v2517_v22 = vld [vmem:[%s5860_s10] sm:$0xff] }
 0x39b   :  { %4128 = vmatprep.subr.bf16.mxu0 %v4127_v32  ;;  %v4143_v30 = vpack.c.bf16 %v2126_v21, %v2125_v14  ;;  %v2802_v44 = vld [vmem:[%s5861_s11 + $0x8] sm:$0xff] }
 0x39c   :  { %4100 = vmatprep.subr.bf16.mxu1 %v4099_v9  ;;  %v4131_v7 = vpack.c.bf16 %v1963_v2, %v1962_v17  ;;  %v4155_v37 = vpack.c.bf16 %v2802_v44, %v2801_v10  ;;  %v2518_v47 = vld [vmem:[%s5860_s10 + $0x8] sm:$0xff] }
 0x39d   :  { %4130 = vmatpush3.bf16.msra.mxu0 %v4095_v45  ;;  %v5570_v2 = vpack.c.bf16 %v2518_v47, %v2517_v22 }
 0x39e   :  { %4102 = vmatpush3.bf16.msra.mxu1 %v4101_v55  ;;  %4132 = vmatprep.subr.bf16.mxu0 %v4131_v7 }
 0x39f   :  { %4136 = vmatprep.subr.bf16.mxu1 %v4135_v49 }
 0x3a1   :  { %4134 = vmatpush3.bf16.msra.mxu0 %v4099_v9  ;;  %1852 = vmatmul.mubr.f32.vlgmr.msra.gmra.mrb[32].mxu1 %v127_v62 }
 0x3a2   :  { %1856 = vmatprep.mubr.f32.mxu1 %v130_v8  ;;  %4138 = vmatpush3.bf16.msra.mxu1 %v4135_v49 }
 0x3a3   :  { %4140 = vmatprep.subr.bf16.mxu1 %v4139_v41  ;;  %4156 = vmatprep.subr.bf16.mxu0 %v4155_v37 }
 0x3a4   :  { %2029 = vmatmul.mubr.f32.vlgmr.msra.gmra.mrb[72].mxu0 %v127_v62 }
 0x3a5   :  { %1857 = vmatmul.mubr.f32.gmra.mrb[34].mxu1 %v129_v26  ;;  %2033 = vmatprep.mubr.f32.mxu0 %v130_v8 }
 0x3a6   :  { %1861 = vmatprep.mubr.f32.mxu1 %v132_v42  ;;  %4142 = vmatpush3.bf16.msra.mxu1 %v4139_v41 }
 0x3a7   :  { %4144 = vmatprep.subr.bf16.mxu1 %v4143_v30  ;;  %4158 = vmatpush3.bf16.msra.mxu0 %v4155_v37 }
 0x3a8   :  { %2034 = vmatmul.mubr.f32.gmra.mrb[74].mxu0 %v129_v26 }
 0x3a9   :  { %1862 = vmatmul.mubr.f32.gmra.mrb[36].mxu1 %v131_v51  ;;  %2038 = vmatprep.mubr.f32.mxu0 %v132_v42 }
 0x3aa   :  { %1866 = vmatprep.mubr.f32.mxu1 %v134_v48 }
 0x3ac   :  { %2039 = vmatmul.mubr.f32.gmra.mrb[76].mxu0 %v131_v51 }
 0x3ad   :  { %1867 = vmatmul.mubr.f32.gmra.mrb[38].mxu1 %v133_v56  ;;  %2043 = vmatprep.mubr.f32.mxu0 %v134_v48 }
 0x3ae   :  { %1871 = vmatprep.mubr.f32.mxu1 %v136_v52 }
 0x3b0   :  { %2044 = vmatmul.mubr.f32.gmra.mrb[78].mxu0 %v133_v56 }
 0x3b1   :  { %1872 = vmatmul.mubr.f32.gmra.mrb[40].mxu1 %v135_v59  ;;  %2048 = vmatprep.mubr.f32.mxu0 %v136_v52 }
 0x3b2   :  { %1876 = vmatprep.mubr.f32.mxu1 %v138_v5 }
 0x3b4   :  { %2049 = vmatmul.mubr.f32.gmra.mrb[80].mxu0 %v135_v59 }
 0x3b5   :  { %1877 = vmatmul.mubr.f32.gmra.mrb[42].mxu1 %v137_v57  ;;  %2053 = vmatprep.mubr.f32.mxu0 %v138_v5 }
 0x3b6   :  { %1881 = vmatprep.mubr.f32.mxu1 %v140_v27 }
 0x3b8   :  { %2054 = vmatmul.mubr.f32.gmra.mrb[82].mxu0 %v137_v57 }
 0x3b9   :  { %1882 = vmatmul.mubr.f32.gmra.mrb[44].mxu1 %v139_v38  ;;  %2058 = vmatprep.mubr.f32.mxu0 %v140_v27 }
 0x3ba   :  { %1886 = vmatprep.mubr.f32.mxu1 %v142_v3 }
 0x3bc   :  { %2059 = vmatmul.mubr.f32.gmra.mrb[84].mxu0 %v139_v38 }
 0x3bd   :  { %1887 = vmatmul.mubr.f32.gmra.mrb[46].mxu1 %v141_v63  ;;  %2063 = vmatprep.mubr.f32.mxu0 %v142_v3 }
 0x3be   :  { %1891 = vmatprep.mubr.f32.mxu1 %v144_v33 }
 0x3c0   :  { %2064 = vmatmul.mubr.f32.gmra.mrb[86].mxu0 %v141_v63 }
 0x3c1   :  { %1892 = vmatmul.mubr.f32.gmra.mrb[48].mxu1 %v143_v4  ;;  %2068 = vmatprep.mubr.f32.mxu0 %v144_v33 }
 0x3c2   :  { %1896 = vmatprep.mubr.f32.mxu1 %v146_v31 }
 0x3c4   :  { %2069 = vmatmul.mubr.f32.gmra.mrb[88].mxu0 %v143_v4 }
 0x3c5   :  { %1897 = vmatmul.mubr.f32.gmra.mrb[50].mxu1 %v145_v0  ;;  %2073 = vmatprep.mubr.f32.mxu0 %v146_v31 }
 0x3c6   :  { %1901 = vmatprep.mubr.f32.mxu1 %v148_v34 }
 0x3c8   :  { %2074 = vmatmul.mubr.f32.gmra.mrb[90].mxu0 %v145_v0 }
 0x3c9   :  { %1902 = vmatmul.mubr.f32.gmra.mrb[52].mxu1 %v147_v43  ;;  %2078 = vmatprep.mubr.f32.mxu0 %v148_v34 }
 0x3ca   :  { %1906 = vmatprep.mubr.f32.mxu1 %v150_v6 }
 0x3cc   :  { %2079 = vmatmul.mubr.f32.gmra.mrb[92].mxu0 %v147_v43 }
 0x3cd   :  { %1907 = vmatmul.mubr.f32.gmra.mrb[54].mxu1 %v149_v50  ;;  %2083 = vmatprep.mubr.f32.mxu0 %v150_v6 }
 0x3ce   :  { %1911 = vmatprep.mubr.f32.mxu1 %v152_v11 }
 0x3d0   :  { %2084 = vmatmul.mubr.f32.gmra.mrb[94].mxu0 %v149_v50 }
 0x3d1   :  { %1912 = vmatmul.mubr.f32.gmra.mrb[56].mxu1 %v151_v36  ;;  %2088 = vmatprep.mubr.f32.mxu0 %v152_v11 }
 0x3d2   :  { %1916 = vmatprep.mubr.f32.mxu1 %v154_v1 }
 0x3d4   :  { %2089 = vmatmul.mubr.f32.gmra.mrb[96].mxu0 %v151_v36 }
 0x3d5   :  { %1917 = vmatmul.mubr.f32.gmra.mrb[58].mxu1 %v153_v13  ;;  %2093 = vmatprep.mubr.f32.mxu0 %v154_v1 }
 0x3d6   :  { %1921 = vmatprep.mubr.f32.mxu1 %v156_v18 }
 0x3d8   :  { %2094 = vmatmul.mubr.f32.gmra.mrb[98].mxu0 %v153_v13 }
 0x3d9   :  { %1922 = vmatmul.mubr.f32.gmra.mrb[60].mxu1 %v155_v46  ;;  %2098 = vmatprep.mubr.f32.mxu0 %v156_v18 }
 0x3da   :  { %1926 = vmatprep.mubr.f32.mxu1 %v158_v25 }
 0x3dc   :  { %2099 = vmatmul.mubr.f32.gmra.mrb[100].mxu0 %v155_v46 }
 0x3dd   :  { %1927 = vmatmul.mubr.f32.gmra.mrb[62].mxu1 %v157_v15  ;;  %2103 = vmatprep.mubr.f32.mxu0 %v158_v25 }
 0x3e0   :  { %2104 = vmatmul.mubr.f32.gmra.mrb[102].mxu0 %v157_v15 }
 0x474   :  { %v3453_v39 = vpop.f32.mrb[32].mxu1 }
 0x475   :  { %v3454_v35 = vpop.f32.mrb[33].mxu1 }
 0x476   :  { %v3455_v23 = vadd.f32 %v3454_v35, %v3453_v39 }
 0x477   :  { %v3533_v40 = vpop.f32.mrb[72].mxu0 }
 0x478   :  { %v1932_v61 = vsub.f32 0.0, %v3455_v23  ;;  %v3456_v20 = vpop.f32.mrb[34].mxu1  ;;  %v3534_v29 = vpop.f32.mrb[73].mxu0 }
 0x479   :  { %v3457_v60 = vpop.f32.mrb[35].mxu1  ;;  %v5567_v45 = vadd.f32 %v3534_v29, %v3533_v40 }
 0x47a   :  { %v3458_v19 = vadd.f32 %v3457_v60, %v3456_v20  ;;  %3907 = vmatprep.mubr.msk.f32.mxu1 %vm1250_vm1, %v1932_v61 }
 0x47b   :  { %v3536_v58 = vpop.f32.mrb[74].mxu0 }
 0x47c   :  { %v1933_v16 = vsub.f32 0.0, %v3458_v19  ;;  %v3459_v12 = vpop.f32.mrb[36].mxu1  ;;  %v3537_v53 = vpop.f32.mrb[75].mxu0 }
 0x47d   :  { %v3460_v28 = vpop.f32.mrb[37].mxu1  ;;  %v5572_v9 = vadd.f32 %v3537_v53, %v3536_v58 }
 0x47e   :  { %v3461_v55 = vadd.f32 %v3460_v28, %v3459_v12  ;;  %3908 = vmatmul.mubr.msk.f32.vlgmr.msra.gmra.mrb[64].mxu1 %vm1250_vm1, %v1933_v16 }
 0x47f   :  { %4146 = vmatpush3.bf16.msra.mxu1 %v4143_v30  ;;  %v3539_v17 = vpop.f32.mrb[76].mxu0 }
 0x480   :  { %v1934_v32 = vsub.f32 0.0, %v3461_v55  ;;  %v3462_v7 = vpop.f32.mrb[38].mxu1  ;;  %4148 = vmatprep.subr.bf16.mxu1 %v5570_v2  ;;  %v3540_v49 = vpop.f32.mrb[77].mxu0 }
 0x481   :  { %v3463_v62 = vpop.f32.mrb[39].mxu1  ;;  %v5576_v8 = vadd.f32 %v3540_v49, %v3539_v17 }
 0x482   :  { %v3464_v26 = vadd.f32 %v3463_v62, %v3462_v7  ;;  %3910 = vmatprep.mubr.msk.f32.mxu1 %vm1250_vm1, %v1934_v32 }
 0x483   :  { %v3542_v42 = vpop.f32.mrb[78].mxu0 }
 0x484   :  { %v1935_v51 = vsub.f32 0.0, %v3464_v26  ;;  %v3465_v48 = vpop.f32.mrb[40].mxu1  ;;  %v3543_v56 = vpop.f32.mrb[79].mxu0 }
 0x485   :  { %v3466_v52 = vpop.f32.mrb[41].mxu1  ;;  %v5579_v59 = vadd.f32 %v3543_v56, %v3542_v42 }
 0x486   :  { %v3467_v5 = vadd.f32 %v3466_v52, %v3465_v48  ;;  %3911 = vmatmul.mubr.msk.f32.gmra.mrb[66].mxu1 %vm1250_vm1, %v1935_v51 }
 0x487   :  { %v3545_v57 = vpop.f32.mrb[80].mxu0 }
 0x488   :  { %v1936_v27 = vsub.f32 0.0, %v3467_v5  ;;  %v3468_v38 = vpop.f32.mrb[42].mxu1  ;;  %v3546_v3 = vpop.f32.mrb[81].mxu0 }
 0x489   :  { %v3469_v63 = vpop.f32.mrb[43].mxu1  ;;  %v5582_v33 = vadd.f32 %v3546_v3, %v3545_v57 }
 0x48a   :  { %v3470_v4 = vadd.f32 %v3469_v63, %v3468_v38  ;;  %3913 = vmatprep.mubr.msk.f32.mxu1 %vm1250_vm1, %v1936_v27 }
 0x48b   :  { %v3548_v31 = vpop.f32.mrb[82].mxu0 }
 0x48c   :  { %v1937_v0 = vsub.f32 0.0, %v3470_v4  ;;  %v3471_v34 = vpop.f32.mrb[44].mxu1  ;;  %v3549_v43 = vpop.f32.mrb[83].mxu0 }
 0x48d   :  { %v3472_v6 = vpop.f32.mrb[45].mxu1  ;;  %v5585_v50 = vadd.f32 %v3549_v43, %v3548_v31 }
 0x48e   :  { %v3473_v11 = vadd.f32 %v3472_v6, %v3471_v34  ;;  %3914 = vmatmul.mubr.msk.f32.gmra.mrb[68].mxu1 %vm1250_vm1, %v1937_v0 }
 0x48f   :  { %v3551_v36 = vpop.f32.mrb[84].mxu0 }
 0x490   :  { %v1938_v1 = vsub.f32 0.0, %v3473_v11  ;;  %v3474_v13 = vpop.f32.mrb[46].mxu1  ;;  %v3552_v18 = vpop.f32.mrb[85].mxu0 }
 0x491   :  { %v3475_v46 = vpop.f32.mrb[47].mxu1  ;;  %v5588_v25 = vadd.f32 %v3552_v18, %v3551_v36 }
 0x492   :  { %v3476_v15 = vadd.f32 %v3475_v46, %v3474_v13  ;;  %3916 = vmatprep.mubr.msk.f32.mxu1 %vm1250_vm1, %v1938_v1 }
 0x493   :  { %v3554_v24 = vpop.f32.mrb[86].mxu0 }
 0x494   :  { %v1939_v54 = vsub.f32 0.0, %v3476_v15  ;;  %v3477_v41 = vpop.f32.mrb[48].mxu1  ;;  %v3555_v14 = vpop.f32.mrb[87].mxu0 }
 0x495   :  { %v3478_v21 = vpop.f32.mrb[49].mxu1  ;;  %v5591_v30 = vadd.f32 %v3555_v14, %v3554_v24  ;;  %v2519_v14 = vld [vmem:[%s5860_s10 + $0x10] sm:$0xff] }
 0x496   :  { %v3479_v39 = vadd.f32 %v3478_v21, %v3477_v41  ;;  %3917 = vmatmul.mubr.msk.f32.gmra.mrb[70].mxu1 %vm1250_vm1, %v1939_v54  ;;  %v2520_v21 = vld [vmem:[%s5860_s10 + $0x18] sm:$0xff] }
 0x497   :  { %v3557_v35 = vpop.f32.mrb[88].mxu0 }
 0x498   :  { %v1940_v23 = vsub.f32 0.0, %v3479_v39  ;;  %v3480_v40 = vpop.f32.mrb[50].mxu1  ;;  %v3558_v10 = vpop.f32.mrb[89].mxu0 }
 0x499   :  { %v3481_v44 = vpop.f32.mrb[51].mxu1  ;;  %v5594_v61 = vadd.f32 %v3558_v10, %v3557_v35  ;;  %v4293_v35 = vld [vmem:[%s5849_s2] sm:$0xff]  ;;  %v4295_v10 = vld [vmem:[%s5849_s2 + $0x10] sm:$0xff] }
 0x49a   :  { %v3482_v20 = vadd.f32 %v3481_v44, %v3480_v40  ;;  %3919 = vmatprep.mubr.msk.f32.mxu1 %vm1250_vm1, %v1940_v23  ;;  %v4151_v23 = vpack.c.bf16 %v2520_v21, %v2519_v14  ;;  %v4294_v40 = vld [vmem:[%s5849_s2 + $0x8] sm:$0xff]  ;;  %v4296_v44 = vld [vmem:[%s5849_s2 + $0x18] sm:$0xff] }
 0x49b   :  { %v3560_v29 = vpop.f32.mrb[90].mxu0 }
 0x49c   :  { %v1941_v37 = vsub.f32 0.0, %v3482_v20  ;;  %v3483_v60 = vpop.f32.mrb[52].mxu1  ;;  %v3561_v22 = vpop.f32.mrb[91].mxu0  ;;  %v4297_v20 = vld [vmem:[%s5849_s2 + $0x20] sm:$0xff] }
 0x49d   :  { %v3484_v47 = vpop.f32.mrb[53].mxu1  ;;  %v5597_v19 = vadd.f32 %v3561_v22, %v3560_v29  ;;  %v4298_v29 = vld [vmem:[%s5849_s2 + $0x28] sm:$0xff] }
 0x49e   :  { %v3485_v58 = vadd.f32 %v3484_v47, %v3483_v60  ;;  %3920 = vmatmul.mubr.msk.f32.gmra.mrb[72].mxu1 %vm1250_vm1, %v1941_v37  ;;  %v4300_v37 = vld [vmem:[%s5849_s2 + $0x38] sm:$0xff]  ;;  %v4301_v60 = vld [vmem:[%s5849_s2 + $0x40] sm:$0xff]  ;;  %v4302_v22 = vld [vmem:[%s5849_s2 + $0x48] sm:$0xff] }
 0x49f   :  { %v3563_v16 = vpop.f32.mrb[92].mxu0  ;;  %v4303_v47 = vld [vmem:[%s5849_s2 + $0x50] sm:$0xff] }
 0x4a0   :  { %v1942_v12 = vsub.f32 0.0, %v3485_v58  ;;  %v3486_v53 = vpop.f32.mrb[54].mxu1  ;;  %v3564_v28 = vpop.f32.mrb[93].mxu0  ;;  %v4304_v58 = vld [vmem:[%s5849_s2 + $0x58] sm:$0xff] }
 0x4a1   :  { %v3487_v55 = vpop.f32.mrb[55].mxu1  ;;  %v5600_v17 = vadd.f32 %v3564_v28, %v3563_v16  ;;  %v4305_v16 = vld [vmem:[%s5849_s2 + $0x60] sm:$0xff]  ;;  %v2109_v28 = vsub.f32 0.0, %v5567_v45  ;;  %v2113_v45 = vsub.f32 0.0, %v5582_v33 }
 0x4a2   :  { %v3488_v32 = vadd.f32 %v3487_v55, %v3486_v53  ;;  %3922 = vmatprep.mubr.msk.f32.mxu1 %vm1250_vm1, %v1942_v12  ;;  %v4306_v12 = vld [vmem:[%s5849_s2 + $0x68] sm:$0xff]  ;;  %v4307_v53 = vld [vmem:[%s5849_s2 + $0x70] sm:$0xff]  ;;  %v4308_v55 = vld [vmem:[%s5849_s2 + $0x78] sm:$0xff] }
 0x4a3   :  { %v3566_v7 = vpop.f32.mrb[94].mxu0  ;;  %v2119_v33 = vsub.f32 0.0, %v5600_v17  ;;  %v2803_v17 = vld [vmem:[%s5861_s11 + $0x10] sm:$0xff] }
 0x4a4   :  { %v1943_v49 = vsub.f32 0.0, %v3488_v32  ;;  %v3489_v62 = vpop.f32.mrb[56].mxu1  ;;  %v3567_v26 = vpop.f32.mrb[95].mxu0  ;;  %v2110_v32 = vsub.f32 0.0, %v5572_v9  ;;  %v2116_v9 = vsub.f32 0.0, %v5591_v30 }
 0x4a5   :  { %v3490_v42 = vpop.f32.mrb[57].mxu1  ;;  %v5603_v51 = vadd.f32 %v3567_v26, %v3566_v7  ;;  %v2111_v7 = vsub.f32 0.0, %v5576_v8  ;;  %v2115_v26 = vsub.f32 0.0, %v5588_v25  ;;  %v2117_v8 = vsub.f32 0.0, %v5594_v61 }
 0x4a6   :  { %v3491_v48 = vadd.f32 %v3490_v42, %v3489_v62  ;;  %3923 = vmatmul.mubr.msk.f32.gmra.mrb[74].mxu1 %vm1250_vm1, %v1943_v49  ;;  %v2112_v49 = vsub.f32 0.0, %v5579_v59  ;;  %v2114_v62 = vsub.f32 0.0, %v5585_v50  ;;  %v2118_v59 = vsub.f32 0.0, %v5597_v19  ;;  %v2804_v42 = vld [vmem:[%s5861_s11 + $0x18] sm:$0xff] }
 0x4a7   :  { %v3569_v56 = vpop.f32.mrb[96].mxu0  ;;  %v2120_v50 = vsub.f32 0.0, %v5603_v51  ;;  %v4159_v51 = vpack.c.bf16 %v2804_v42, %v2803_v17 }
 0x4a8   :  { %v1944_v52 = vsub.f32 0.0, %v3491_v48  ;;  %v3492_v5 = vpop.f32.mrb[58].mxu1  ;;  %v3570_v57 = vpop.f32.mrb[97].mxu0  ;;  %v5730_v48 = vld [vmem:[%s5862_s12] ss:$0 sm:$0xff] }
 0x4a9   :  { %v3493_v27 = vpop.f32.mrb[59].mxu1  ;;  %v5606_v38 = vadd.f32 %v3570_v57, %v3569_v56  ;;  %4160 = vmatprep.subr.bf16.mxu0 %v4159_v51 }
 0x4aa   :  { %v3494_v3 = vadd.f32 %v3493_v27, %v3492_v5  ;;  %3925 = vmatprep.mubr.msk.f32.mxu1 %vm1250_vm1, %v1944_v52  ;;  %4162 = vmatpush3.bf16.msra.mxu0 %v4159_v51 }
 0x4ab   :  { %v3572_v63 = vpop.f32.mrb[98].mxu0  ;;  %v2121_v25 = vsub.f32 0.0, %v5606_v38 }
 0x4ac   :  { %v1945_v4 = vsub.f32 0.0, %v3494_v3  ;;  %v3495_v31 = vpop.f32.mrb[60].mxu1  ;;  %v3573_v0 = vpop.f32.mrb[99].mxu0 }
 0x4ad   :  { %v3496_v34 = vpop.f32.mrb[61].mxu1  ;;  %v5609_v43 = vadd.f32 %v3573_v0, %v3572_v63 }
 0x4ae   :  { %v3497_v6 = vadd.f32 %v3496_v34, %v3495_v31  ;;  %3926 = vmatmul.mubr.msk.f32.gmra.mrb[76].mxu1 %vm1250_vm1, %v1945_v4 }
 0x4af   :  { %v3575_v11 = vpop.f32.mrb[100].mxu0  ;;  %v2122_v30 = vsub.f32 0.0, %v5609_v43 }
 0x4b0   :  { %v1946_v36 = vsub.f32 0.0, %v3497_v6  ;;  %v3498_v1 = vpop.f32.mrb[62].mxu1  ;;  %v3576_v13 = vpop.f32.mrb[101].mxu0 }
 0x4b1   :  { %v3499_v18 = vpop.f32.mrb[63].mxu1  ;;  %v5612_v46 = vadd.f32 %v3576_v13, %v3575_v11 }
 0x4b2   :  { %v3500_v15 = vadd.f32 %v3499_v18, %v3498_v1  ;;  %3928 = vmatprep.mubr.msk.f32.mxu1 %vm1250_vm1, %v1946_v36 }
 0x4b3   :  { %v3578_v24 = vpop.f32.mrb[102].mxu0  ;;  %v2123_v61 = vsub.f32 0.0, %v5612_v46 }
 0x4b4   :  { %v1947_v54 = vsub.f32 0.0, %v3500_v15  ;;  %v3579_v41 = vpop.f32.mrb[103].mxu0 }
 0x4b5   :  { %v5621_v39 = vadd.f32 %v3579_v41, %v3578_v24 }
 0x4b6   :  { %3929 = vmatmul.mubr.msk.f32.gmra.mrb[78].mxu1 %vm1250_vm1, %v1947_v54 }
 0x4b7   :  { %3935 = vmatprep.mubr.msk.f32.mxu1 %vm388_vm0, %v4293_v35  ;;  %v2124_v19 = vsub.f32 0.0, %v5621_v39 }
 0x4ba   :  { %3936 = vmatmul.mubr.msk.f32.vlgmr.msra.gmra.mrb[64].mxu1 %vm388_vm0, %v4294_v40 }
 0x4bb   :  { %3938 = vmatprep.mubr.msk.f32.mxu1 %vm388_vm0, %v4295_v10  ;;  %4150 = vmatpush3.bf16.msra.mxu1 %v5570_v2  ;;  %v4299_v2 = vld [vmem:[%s5849_s2 + $0x30] sm:$0xff] }
 0x4bc   :  { %4152 = vmatprep.subr.bf16.mxu1 %v4151_v23 }
 0x4be   :  { %3939 = vmatmul.mubr.msk.f32.gmra.mrb[66].mxu1 %vm388_vm0, %v4296_v44 }
 0x4bf   :  { %3941 = vmatprep.mubr.msk.f32.mxu1 %vm388_vm0, %v4297_v20  ;;  %4154 = vmatpush3.bf16.msra.mxu1 %v4151_v23 }
 0x4c2   :  { %3942 = vmatmul.mubr.msk.f32.gmra.mrb[68].mxu1 %vm388_vm0, %v4298_v29 }
 0x4c3   :  { %3944 = vmatprep.mubr.msk.f32.mxu1 %vm388_vm0, %v4299_v2 }
 0x4c6   :  { %3945 = vmatmul.mubr.msk.f32.gmra.mrb[70].mxu1 %vm388_vm0, %v4300_v37 }
 0x4c7   :  { %3947 = vmatprep.mubr.msk.f32.mxu1 %vm388_vm0, %v4301_v60 }
 0x4ca   :  { %3948 = vmatmul.mubr.msk.f32.gmra.mrb[72].mxu1 %vm388_vm0, %v4302_v22 }
 0x4cb   :  { %3950 = vmatprep.mubr.msk.f32.mxu1 %vm388_vm0, %v4303_v47 }
 0x4ce   :  { %3951 = vmatmul.mubr.msk.f32.gmra.mrb[74].mxu1 %vm388_vm0, %v4304_v58 }
 0x4cf   :  { %3953 = vmatprep.mubr.msk.f32.mxu1 %vm388_vm0, %v4305_v16 }
 0x4d2   :  { %3954 = vmatmul.mubr.msk.f32.gmra.mrb[76].mxu1 %vm388_vm0, %v4306_v12 }
 0x4d3   :  { %3956 = vmatprep.mubr.msk.f32.mxu1 %vm388_vm0, %v4307_v53 }
 0x4d6   :  { %3957 = vmatmul.mubr.msk.f32.gmra.mrb[78].mxu1 %vm388_vm0, %v4308_v55 }
 0x4d7   :  { %3967 = vmatprep.mubr.msk.f32.mxu1 %vm1250_vm1, %v2109_v28 }
 0x4da   :  { %3968 = vmatmul.mubr.msk.f32.vlgmr.msra.gmra.mrb[64].mxu1 %vm1250_vm1, %v2110_v32 }
 0x4db   :  { %3970 = vmatprep.mubr.msk.f32.mxu1 %vm1250_vm1, %v2111_v7 }
 0x4de   :  { %3971 = vmatmul.mubr.msk.f32.gmra.mrb[66].mxu1 %vm1250_vm1, %v2112_v49 }
 0x4df   :  { %3973 = vmatprep.mubr.msk.f32.mxu1 %vm1250_vm1, %v2113_v45 }
 0x4e2   :  { %3974 = vmatmul.mubr.msk.f32.gmra.mrb[68].mxu1 %vm1250_vm1, %v2114_v62 }
 0x4e3   :  { %3976 = vmatprep.mubr.msk.f32.mxu1 %vm1250_vm1, %v2115_v26 }
 0x4e6   :  { %3977 = vmatmul.mubr.msk.f32.gmra.mrb[70].mxu1 %vm1250_vm1, %v2116_v9 }
 0x4e7   :  { %3979 = vmatprep.mubr.msk.f32.mxu1 %vm1250_vm1, %v2117_v8 }
 0x4ea   :  { %3980 = vmatmul.mubr.msk.f32.gmra.mrb[72].mxu1 %vm1250_vm1, %v2118_v59 }
 0x4eb   :  { %3982 = vmatprep.mubr.msk.f32.mxu1 %vm1250_vm1, %v2119_v33 }
 0x4ee   :  { %3983 = vmatmul.mubr.msk.f32.gmra.mrb[74].mxu1 %vm1250_vm1, %v2120_v50 }
 0x4ef   :  { %3985 = vmatprep.mubr.msk.f32.mxu1 %vm1250_vm1, %v2121_v25 }
 0x4f2   :  { %3986 = vmatmul.mubr.msk.f32.gmra.mrb[76].mxu1 %vm1250_vm1, %v2122_v30 }
 0x4f3   :  { %3988 = vmatprep.mubr.msk.f32.mxu1 %vm1250_vm1, %v2123_v61 }
 0x4f6   :  { %3989 = vmatmul.mubr.msk.f32.gmra.mrb[78].mxu1 %vm1250_vm1, %v2124_v19 }
 0x5ad   :  { %v3969_v56 = vpop.f32.mrb[64].mxu1 }
 0x5ae   :  { %v2738_v52 = vadd.f32 %v3969_v56, %v5730_v48  ;;  %v2635_v5 = vpop.f32.mrb[65].mxu1 }
 0x5af   :  { %v2737_v57 = vadd.f32 %v5730_v48, %v2635_v5 }
 0x5b0   :  { %v2770_v27 = vmul.f32 0.2, %v2738_v52  ;;  %vm2754_vm0 = vcmp.gt.f32.partialorder %v2738_v52, 0.0 }
 0x5b1   :  { %vm2753_vm6 = vcmp.gt.f32.partialorder %v2737_v57, 0.0  ;;  %v2769_v38 = vmul.f32 0.2, %v2737_v57  ;;  %v3972_v3 = vpop.f32.mrb[66].mxu1 }
 0x5b2   :  { %v2740_v63 = vadd.f32 %v3972_v3, %v5730_v48  ;;  %v2645_v4 = vpop.f32.mrb[67].mxu1  ;;  %v2786_v34 = vsel %vm2754_vm0, %v2738_v52, %v2770_v27 }
 0x5b3   :  { %v2739_v31 = vadd.f32 %v5730_v48, %v2645_v4  ;;  %v2785_v0 = vsel %vm2753_vm6, %v2737_v57, %v2769_v38 }
 0x5b4   :  { %v2772_v43 = vmul.f32 0.2, %v2740_v63  ;;  %3999 = vmatprep.mubr.msk.f32.mxu0 %vm1250_vm1, %v2785_v0  ;;  %vm2756_vm7 = vcmp.gt.f32.partialorder %v2740_v63, 0.0 }
 0x5b5   :  { %vm2755_vm8 = vcmp.gt.f32.partialorder %v2739_v31, 0.0  ;;  %v2771_v6 = vmul.f32 0.2, %v2739_v31  ;;  %v3975_v11 = vpop.f32.mrb[68].mxu1  ;;  %4000 = vmatmul.mubr.msk.f32.vlgmr.msra.gmra.mrb[104].mxu0 %vm1250_vm1, %v2786_v34 }
 0x5b6   :  { %v2742_v36 = vadd.f32 %v3975_v11, %v5730_v48  ;;  %v2655_v1 = vpop.f32.mrb[69].mxu1  ;;  %v2788_v15 = vsel %vm2756_vm7, %v2740_v63, %v2772_v43 }
 0x5b7   :  { %v2741_v13 = vadd.f32 %v5730_v48, %v2655_v1  ;;  %v2787_v18 = vsel %vm2755_vm8, %v2739_v31, %v2771_v6 }
 0x5b8   :  { %v2774_v46 = vmul.f32 0.2, %v2742_v36  ;;  %4002 = vmatprep.mubr.msk.f32.mxu0 %vm1250_vm1, %v2787_v18  ;;  %vm2758_vm9 = vcmp.gt.f32.partialorder %v2742_v36, 0.0 }
 0x5b9   :  { %vm2757_vm10 = vcmp.gt.f32.partialorder %v2741_v13, 0.0  ;;  %v2773_v24 = vmul.f32 0.2, %v2741_v13  ;;  %v3978_v54 = vpop.f32.mrb[70].mxu1  ;;  %4003 = vmatmul.mubr.msk.f32.gmra.mrb[106].mxu0 %vm1250_vm1, %v2788_v15 }
 0x5ba   :  { %v2744_v41 = vadd.f32 %v3978_v54, %v5730_v48  ;;  %v2665_v14 = vpop.f32.mrb[71].mxu1  ;;  %v2790_v23 = vsel %vm2758_vm9, %v2742_v36, %v2774_v46 }
 0x5bb   :  { %v2743_v21 = vadd.f32 %v5730_v48, %v2665_v14  ;;  %v2789_v39 = vsel %vm2757_vm10, %v2741_v13, %v2773_v24 }
 0x5bc   :  { %v2776_v35 = vmul.f32 0.2, %v2744_v41  ;;  %4005 = vmatprep.mubr.msk.f32.mxu0 %vm1250_vm1, %v2789_v39  ;;  %vm2760_vm11 = vcmp.gt.f32.partialorder %v2744_v41, 0.0 }
 0x5bd   :  { %vm2759_vm12 = vcmp.gt.f32.partialorder %v2743_v21, 0.0  ;;  %v2775_v40 = vmul.f32 0.2, %v2743_v21  ;;  %v3981_v10 = vpop.f32.mrb[72].mxu1  ;;  %4006 = vmatmul.mubr.msk.f32.gmra.mrb[108].mxu0 %vm1250_vm1, %v2790_v23 }
 0x5be   :  { %v2746_v44 = vadd.f32 %v3981_v10, %v5730_v48  ;;  %v2675_v20 = vpop.f32.mrb[73].mxu1  ;;  %v2792_v60 = vsel %vm2760_vm11, %v2744_v41, %v2776_v35 }
 0x5bf   :  { %v2745_v29 = vadd.f32 %v5730_v48, %v2675_v20  ;;  %v2791_v2 = vsel %vm2759_vm12, %v2743_v21, %v2775_v40 }
 0x5c0   :  { %v2778_v37 = vmul.f32 0.2, %v2746_v44  ;;  %4008 = vmatprep.mubr.msk.f32.mxu0 %vm1250_vm1, %v2791_v2  ;;  %vm2762_vm13 = vcmp.gt.f32.partialorder %v2746_v44, 0.0 }
 0x5c1   :  { %vm2761_vm14 = vcmp.gt.f32.partialorder %v2745_v29, 0.0  ;;  %v2777_v22 = vmul.f32 0.2, %v2745_v29  ;;  %v3984_v47 = vpop.f32.mrb[74].mxu1  ;;  %4009 = vmatmul.mubr.msk.f32.gmra.mrb[110].mxu0 %vm1250_vm1, %v2792_v60 }
 0x5c2   :  { %v2748_v58 = vadd.f32 %v3984_v47, %v5730_v48  ;;  %v2685_v16 = vpop.f32.mrb[75].mxu1  ;;  %v2794_v55 = vsel %vm2762_vm13, %v2746_v44, %v2778_v37 }
 0x5c3   :  { %v2747_v12 = vadd.f32 %v5730_v48, %v2685_v16  ;;  %v2793_v53 = vsel %vm2761_vm14, %v2745_v29, %v2777_v22 }
 0x5c4   :  { %v2780_v28 = vmul.f32 0.2, %v2748_v58  ;;  %4011 = vmatprep.mubr.msk.f32.mxu0 %vm1250_vm1, %v2793_v53  ;;  %vm2764_vm15 = vcmp.gt.f32.partialorder %v2748_v58, 0.0 }
 0x5c5   :  { %vm2763_vm2 = vcmp.gt.f32.partialorder %v2747_v12, 0.0  ;;  %v2779_v32 = vmul.f32 0.2, %v2747_v12  ;;  %v3987_v7 = vpop.f32.mrb[76].mxu1  ;;  %4012 = vmatmul.mubr.msk.f32.gmra.mrb[112].mxu0 %vm1250_vm1, %v2794_v55 }
 0x5c6   :  { %v2750_v49 = vadd.f32 %v3987_v7, %v5730_v48  ;;  %v2695_v45 = vpop.f32.mrb[77].mxu1  ;;  %v2796_v8 = vsel %vm2764_vm15, %v2748_v58, %v2780_v28 }
 0x5c7   :  { %v2749_v62 = vadd.f32 %v5730_v48, %v2695_v45  ;;  %v2795_v26 = vsel %vm2763_vm2, %v2747_v12, %v2779_v32 }
 0x5c8   :  { %v2782_v9 = vmul.f32 0.2, %v2750_v49  ;;  %4014 = vmatprep.mubr.msk.f32.mxu0 %vm1250_vm1, %v2795_v26  ;;  %vm2766_vm3 = vcmp.gt.f32.partialorder %v2750_v49, 0.0 }
 0x5c9   :  { %vm2765_vm4 = vcmp.gt.f32.partialorder %v2749_v62, 0.0  ;;  %v2781_v59 = vmul.f32 0.2, %v2749_v62  ;;  %v3990_v33 = vpop.f32.mrb[78].mxu1  ;;  %4015 = vmatmul.mubr.msk.f32.gmra.mrb[114].mxu0 %vm1250_vm1, %v2796_v8 }
 0x5ca   :  { %v2752_v50 = vadd.f32 %v3990_v33, %v5730_v48  ;;  %v2705_v25 = vpop.f32.mrb[79].mxu1  ;;  %v2798_v17 = vsel %vm2766_vm3, %v2750_v49, %v2782_v9 }
 0x5cb   :  { %v2751_v30 = vadd.f32 %v5730_v48, %v2705_v25  ;;  %v2797_v61 = vsel %vm2765_vm4, %v2749_v62, %v2781_v59  ;;  %v5767_v48 = vld [vmem:[%s5863_s13] ss:$0 sm:$0xff] }
 0x5cc   :  { %v2784_v19 = vmul.f32 0.2, %v2752_v50  ;;  %4017 = vmatprep.mubr.msk.f32.mxu0 %vm1250_vm1, %v2797_v61  ;;  %vm2768_vm5 = vcmp.gt.f32.partialorder %v2752_v50, 0.0 }
 0x5cd   :  { %vm2767_vm0 = vcmp.gt.f32.partialorder %v2751_v30, 0.0  ;;  %v2783_v42 = vmul.f32 0.2, %v2751_v30  ;;  %4018 = vmatmul.mubr.msk.f32.gmra.mrb[116].mxu0 %vm1250_vm1, %v2798_v17 }
 0x5ce   :  { %v2800_v56 = vsel %vm2768_vm5, %v2752_v50, %v2784_v19 }
 0x5cf   :  { %v2799_v51 = vsel %vm2767_vm0, %v2751_v30, %v2783_v42 }
 0x5d0   :  { %4020 = vmatprep.mubr.msk.f32.mxu0 %vm1250_vm1, %v2799_v51 }
 0x5d1   :  { %4021 = vmatmul.mubr.msk.f32.gmra.mrb[118].mxu0 %vm1250_vm1, %v2800_v56 }
 0x688   :  { %v4001_v52 = vpop.f32.mrb[104].mxu0 }
 0x689   :  { %v2932_v5 = vadd.f32 %v4001_v52, %v5767_v48  ;;  %v2926_v57 = vpop.f32.mrb[105].mxu0 }
 0x68a   :  { %v2927_v27 = vadd.f32 %v5767_v48, %v2926_v57 }
 0x68b   :  { %vm3006_vm6 = vcmp.gt.f32.partialorder %v2932_v5, 0.0  ;;  %v3022_v38 = vmul.f32 0.2, %v2932_v5 }
 0x68c   :  { %vm3005_vm7 = vcmp.gt.f32.partialorder %v2927_v27, 0.0  ;;  %v3021_v3 = vmul.f32 0.2, %v2927_v27  ;;  %v4004_v63 = vpop.f32.mrb[106].mxu0 }
 0x68d   :  { %v3038_v4 = vsel %vm3006_vm6, %v2932_v5, %v3022_v38  ;;  %v2942_v31 = vadd.f32 %v4004_v63, %v5767_v48  ;;  %v2936_v0 = vpop.f32.mrb[107].mxu0 }
 0x68e   :  { %3054 = vst.msk [vmem:[%s5857_s14 + $0x8] sm:$0xff] %vm1250_vm1, %v3038_v4  ;;  %v3037_v34 = vsel %vm3005_vm7, %v2927_v27, %v3021_v3  ;;  %v2937_v43 = vadd.f32 %v5767_v48, %v2936_v0 }
 0x68f   :  { %3053 = vst.msk [vmem:[%s5857_s14] sm:$0xff] %vm1250_vm1, %v3037_v34  ;;  %vm3008_vm8 = vcmp.gt.f32.partialorder %v2942_v31, 0.0  ;;  %v3024_v6 = vmul.f32 0.2, %v2942_v31 }
 0x690   :  { %vm3007_vm9 = vcmp.gt.f32.partialorder %v2937_v43, 0.0  ;;  %v3023_v11 = vmul.f32 0.2, %v2937_v43  ;;  %v4007_v36 = vpop.f32.mrb[108].mxu0 }
 0x691   :  { %v3040_v1 = vsel %vm3008_vm8, %v2942_v31, %v3024_v6  ;;  %v2952_v13 = vadd.f32 %v4007_v36, %v5767_v48  ;;  %v2946_v18 = vpop.f32.mrb[109].mxu0 }
 0x692   :  { %3056 = vst.msk [vmem:[%s5857_s14 + $0x18] sm:$0xff] %vm1250_vm1, %v3040_v1  ;;  %v3039_v46 = vsel %vm3007_vm9, %v2937_v43, %v3023_v11  ;;  %v2947_v15 = vadd.f32 %v5767_v48, %v2946_v18 }
 0x693   :  { %3055 = vst.msk [vmem:[%s5857_s14 + $0x10] sm:$0xff] %vm1250_vm1, %v3039_v46  ;;  %vm3010_vm10 = vcmp.gt.f32.partialorder %v2952_v13, 0.0  ;;  %v3026_v24 = vmul.f32 0.2, %v2952_v13 }
 0x694   :  { %vm3009_vm11 = vcmp.gt.f32.partialorder %v2947_v15, 0.0  ;;  %v3025_v54 = vmul.f32 0.2, %v2947_v15  ;;  %v4010_v41 = vpop.f32.mrb[110].mxu0 }
 0x695   :  { %v3042_v14 = vsel %vm3010_vm10, %v2952_v13, %v3026_v24  ;;  %v2962_v21 = vadd.f32 %v4010_v41, %v5767_v48  ;;  %v2956_v39 = vpop.f32.mrb[111].mxu0 }
 0x696   :  { %3058 = vst.msk [vmem:[%s5857_s14 + $0x28] sm:$0xff] %vm1250_vm1, %v3042_v14  ;;  %v3041_v35 = vsel %vm3009_vm11, %v2947_v15, %v3025_v54  ;;  %v2957_v23 = vadd.f32 %v5767_v48, %v2956_v39 }
 0x697   :  { %3057 = vst.msk [vmem:[%s5857_s14 + $0x20] sm:$0xff] %vm1250_vm1, %v3041_v35  ;;  %vm3012_vm12 = vcmp.gt.f32.partialorder %v2962_v21, 0.0  ;;  %v3028_v40 = vmul.f32 0.2, %v2962_v21 }
 0x698   :  { %vm3011_vm13 = vcmp.gt.f32.partialorder %v2957_v23, 0.0  ;;  %v3027_v10 = vmul.f32 0.2, %v2957_v23  ;;  %v4013_v44 = vpop.f32.mrb[112].mxu0 }
 0x699   :  { %v3044_v20 = vsel %vm3012_vm12, %v2962_v21, %v3028_v40  ;;  %v2972_v29 = vadd.f32 %v4013_v44, %v5767_v48  ;;  %v2966_v2 = vpop.f32.mrb[113].mxu0 }
 0x69a   :  { %3060 = vst.msk [vmem:[%s5857_s14 + $0x38] sm:$0xff] %vm1250_vm1, %v3044_v20  ;;  %v3043_v37 = vsel %vm3011_vm13, %v2957_v23, %v3027_v10  ;;  %v2967_v60 = vadd.f32 %v5767_v48, %v2966_v2 }
 0x69b   :  { %3059 = vst.msk [vmem:[%s5857_s14 + $0x30] sm:$0xff] %vm1250_vm1, %v3043_v37  ;;  %vm3014_vm14 = vcmp.gt.f32.partialorder %v2972_v29, 0.0  ;;  %v3030_v22 = vmul.f32 0.2, %v2972_v29 }
 0x69c   :  { %vm3013_vm15 = vcmp.gt.f32.partialorder %v2967_v60, 0.0  ;;  %v3029_v47 = vmul.f32 0.2, %v2967_v60  ;;  %v4016_v58 = vpop.f32.mrb[114].mxu0 }
 0x69d   :  { %v3046_v16 = vsel %vm3014_vm14, %v2972_v29, %v3030_v22  ;;  %v2982_v12 = vadd.f32 %v4016_v58, %v5767_v48  ;;  %v2976_v53 = vpop.f32.mrb[115].mxu0 }
 0x69e   :  { %3062 = vst.msk [vmem:[%s5857_s14 + $0x48] sm:$0xff] %vm1250_vm1, %v3046_v16  ;;  %v3045_v28 = vsel %vm3013_vm15, %v2967_v60, %v3029_v47  ;;  %v2977_v55 = vadd.f32 %v5767_v48, %v2976_v53 }
 0x69f   :  { %3061 = vst.msk [vmem:[%s5857_s14 + $0x40] sm:$0xff] %vm1250_vm1, %v3045_v28  ;;  %vm3016_vm2 = vcmp.gt.f32.partialorder %v2982_v12, 0.0  ;;  %v3032_v32 = vmul.f32 0.2, %v2982_v12 }
 0x6a0   :  { %vm3015_vm3 = vcmp.gt.f32.partialorder %v2977_v55, 0.0  ;;  %v3031_v7 = vmul.f32 0.2, %v2977_v55  ;;  %v4019_v49 = vpop.f32.mrb[116].mxu0 }
 0x6a1   :  { %v3048_v45 = vsel %vm3016_vm2, %v2982_v12, %v3032_v32  ;;  %v2992_v62 = vadd.f32 %v4019_v49, %v5767_v48  ;;  %v2986_v26 = vpop.f32.mrb[117].mxu0 }
 0x6a2   :  { %3064 = vst.msk [vmem:[%s5857_s14 + $0x58] sm:$0xff] %vm1250_vm1, %v3048_v45  ;;  %v3047_v9 = vsel %vm3015_vm3, %v2977_v55, %v3031_v7  ;;  %v2987_v8 = vadd.f32 %v5767_v48, %v2986_v26 }
 0x6a3   :  { %3063 = vst.msk [vmem:[%s5857_s14 + $0x50] sm:$0xff] %vm1250_vm1, %v3047_v9  ;;  %vm3018_vm4 = vcmp.gt.f32.partialorder %v2992_v62, 0.0  ;;  %v3034_v59 = vmul.f32 0.2, %v2992_v62 }
 0x6a4   :  { %vm3017_vm5 = vcmp.gt.f32.partialorder %v2987_v8, 0.0  ;;  %v3033_v33 = vmul.f32 0.2, %v2987_v8  ;;  %v4022_v50 = vpop.f32.mrb[118].mxu0 }
 0x6a5   :  { %v3050_v25 = vsel %vm3018_vm4, %v2992_v62, %v3034_v59  ;;  %v3002_v30 = vadd.f32 %v4022_v50, %v5767_v48  ;;  %v2996_v61 = vpop.f32.mrb[119].mxu0 }
 0x6a6   :  { %3066 = vst.msk [vmem:[%s5857_s14 + $0x68] sm:$0xff] %vm1250_vm1, %v3050_v25  ;;  %v3049_v19 = vsel %vm3017_vm5, %v2987_v8, %v3033_v33  ;;  %v2997_v17 = vadd.f32 %v5767_v48, %v2996_v61 }
 0x6a7   :  { %3065 = vst.msk [vmem:[%s5857_s14 + $0x60] sm:$0xff] %vm1250_vm1, %v3049_v19  ;;  %vm3020_vm0 = vcmp.gt.f32.partialorder %v3002_v30, 0.0  ;;  %v3036_v42 = vmul.f32 0.2, %v3002_v30 }
 0x6a8   :  { %vm3019_vm6 = vcmp.gt.f32.partialorder %v2997_v17, 0.0  ;;  %v3035_v51 = vmul.f32 0.2, %v2997_v17 }
 0x6a9   :  { %v3052_v56 = vsel %vm3020_vm0, %v3002_v30, %v3036_v42 }
 0x6aa   :  { %3068 = vst.msk [vmem:[%s5857_s14 + $0x78] sm:$0xff] %vm1250_vm1, %v3052_v56  ;;  %v3051_v52 = vsel %vm3019_vm6, %v2997_v17, %v3035_v51 }
 0x6ab   :  { %3067 = vst.msk [vmem:[%s5857_s14 + $0x70] sm:$0xff] %vm1250_vm1, %v3051_v52 }

// kernel: deltanet_segmentation.7
= control target key start
LH: loop header
LB: loop body
LE: loop exit
PB: predicated region body
PF: predicated region fallthrough
CT: control target
= control target key end

     0   :  { %s5598_s0 = inlined_call_operand.vmem [shape: f32[384,16], index: 0, kind: input, shape index: {}]   ;;  %s5599_s1 = inlined_call_operand.vmem [shape: f32[384,32], index: 1, kind: input, shape index: {}]   ;;  %s5600_s2 = inlined_call_operand.vmem [shape: f32[384,64], index: 2, kind: input, shape index: {}]   ;;  %s5601_s3 = inlined_call_operand.vmem [shape: f32[128,2], index: 3, kind: input, shape index: {}]   ;;  %s5602_s4 = inlined_call_operand.vmem [shape: f32[16,128], index: 4, kind: input, shape index: {}]   ;;  %s5603_s5 = inlined_call_operand.vmem [shape: f32[32,128], index: 5, kind: input, shape index: {}]   ;;  %s5604_s6 = inlined_call_operand.vmem [shape: f32[64,128], index: 6, kind: input, shape index: {}]   ;;  %s5605_s7 = inlined_call_operand.vmem [shape: f32[1,128], index: 7, kind: input, shape index: {}]   ;;  %s5606_s8 = inlined_call_operand.vmem [shape: f32[128,256], index: 8, kind: input, shape index: {}]   ;;  %s5607_s9 = inlined_call_operand.vmem [shape: f32[16,256], index: 9, kind: input, shape index: {}]   ;;  %s5608_s10 = inlined_call_operand.vmem [shape: f32[32,256], index: 10, kind: input, shape index: {}]   ;;  %s5609_s11 = inlined_call_operand.vmem [shape: f32[64,256], index: 11, kind: input, shape index: {}]   ;;  %s5610_s12 = inlined_call_operand.vmem [shape: f32[1,256], index: 12, kind: input, shape index: {}]   ;;  %s5611_s13 = inlined_call_operand.vmem [shape: f32[256,256], index: 13, kind: input, shape index: {}]   ;;  %s5612_s14 = inlined_call_operand.vmem [shape: f32[1,256], index: 14, kind: input, shape index: {}]   ;;  %s5613_s15 = inlined_call_operand.vmem [shape: f32[256,128], index: 15, kind: input, shape index: {}]   ;;  %s5614_s16 = inlined_call_operand.hbm [shape: f32[1,128], index: 16, kind: input, shape index: {}]   ;;  %s5615_s17 = inlined_call_operand.vmem [shape: f32[128,6], index: 17, kind: input, shape index: {}]   ;;  %s5616_s18 = inlined_call_operand.hbm [shape: f32[1,6], index: 18, kind: input, shape index: {}]   ;;  %s5617_s19 = inlined_call_operand.vmem [shape: f32[128,6], index: 19, kind: output, shape index: {}]  }
   0x1   :  { %5624 = sst [smem:[#allocation11_spill]] %s5598_s0 }
   0x2   :  { %5625 = sst [smem:[#allocation12_spill]] %s5599_s1 }
   0x3   :  { %5626 = sst [smem:[#allocation13_spill]] %s5600_s2 }
   0x4   :  { %5627 = sst [smem:[#allocation14_spill]] %s5601_s3 }
   0x5   :  { %24 = vsyncpa [#allocation3], 0 }
   0x6   :  { %25 = vsyncpa [#allocation5], 0  ;;  %s3854_s0 = smov [#allocation2]   ;;  %s3855_s20 = smov [#allocation4]  }
   0x7   :  { %s64_s30 = sshll.u32 %s3854_s0, 4  ;;  %s76_s21 = sshll.u32 %s3855_s20, 4  ;;  %s65_s30 = int_to_ptr.vmem [resolvable:$true] %s64_s30  ;;  %s77_s21 = int_to_ptr.vmem [resolvable:$true] %s76_s21 }
   0x8   :  { %s3806_s2 = scalar_lea.hbm %s5614_s16, 16 }
   0x9   :  { %p3807_p0 = scmp.ne.s32.totalorder %s5614_s16, %s3806_s2  ;;  %p3810_p1 = scmp.lt.u32.totalorder %s3806_s2, %s5614_s16 }
   0xb   :  { %p3812_p2 = pnand %p3810_p1, %p3807_p0 }
   0xd   :  { %3815 = shalt.err (!%p3812_p2)
}
   0xe   :  { %s3816_s26 = scalar_lea.vmem %s65_s30, 16  ;;  %s3820_s27 = scalar_lea.vmem %s65_s30, 32 }
   0xf   :  { %p3817_p3 = scmp.ne.s32.totalorder %s65_s30, %s3816_s26  ;;  %p3821_p4 = scmp.lt.s32.totalorder %s65_s30, %s65_s30 }
  0x10   :  { %p3822_p5 = scmp.lt.s32.totalorder %s3820_s27, %s3816_s26 }
  0x12   :  { %p3823_p6 = por %p3822_p5, %p3821_p4 }
  0x14   :  { %p3824_p7 = pnand %p3823_p6, %p3817_p3 }
  0x16   :  { %3827 = shalt.err (!%p3824_p7)
}
  0x17   :  { %67 = dma.hbm_to_vmem [thread:$0]  %s5614_s16, 16, %s65_s30, [#allocation3]  }
  0x18   :  { %s3828_s1 = scalar_lea.hbm %s5616_s18, 16 }
  0x19   :  { %p3829_p8 = scmp.ne.s32.totalorder %s5616_s18, %s3828_s1  ;;  %p3832_p9 = scmp.lt.u32.totalorder %s3828_s1, %s5616_s18 }
  0x1b   :  { %p3834_p10 = pnand %p3832_p9, %p3829_p8 }
  0x1d   :  { %3837 = shalt.err (!%p3834_p10)
}
  0x1e   :  { %s3838_s25 = scalar_lea.vmem %s77_s21, 16  ;;  %s3842_s3 = scalar_lea.vmem %s77_s21, 32 }
  0x1f   :  { %p3839_p11 = scmp.ne.s32.totalorder %s77_s21, %s3838_s25  ;;  %p3843_p12 = scmp.lt.s32.totalorder %s77_s21, %s77_s21 }
  0x20   :  { %p3844_p13 = scmp.lt.s32.totalorder %s3842_s3, %s3838_s25 }
  0x22   :  { %p3845_p0 = por %p3844_p13, %p3843_p12 }
  0x24   :  { %p3846_p1 = pnand %p3845_p0, %p3839_p11 }
  0x26   :  { %3849 = shalt.err (!%p3846_p1)
}
  0x27   :  { %79 = dma.hbm_to_vmem [thread:$0]  %s5616_s18, 16, %s77_s21, [#allocation5]  }
  0x28   :  { %3850 = dma.done.wait [#allocation3], 16  }
  0x29   :  { %3851 = vsyncadd [#allocation3], 4294967280 }
  0x2a   :  { %3852 = dma.done.wait [#allocation5], 16  }
  0x2b   :  { %3853 = vsyncadd [#allocation5], 4294967280  ;;  %v3856_v0 = vmov 0   ;;  %vm156_vm0 = vcmask 261120   ;;  %v152_v1 = vld [vmem:[%s5603_s5] sm:$0xff]  ;;  %v153_v2 = vld [vmem:[%s5603_s5 + $0x8] sm:$0xff] }
  0x2c   :  { %3765 = vset.pattern.permute.xlu0 %v3856_v0  ;;  %3766 = vset.pattern.permute.xlu1 %v3856_v0  ;;  %v154_v3 = vld [vmem:[%s5603_s5 + $0x10] sm:$0xff]  ;;  %v3400_v4 = vpack.c.bf16 %v153_v2, %v152_v1  ;;  %v155_v5 = vld [vmem:[%s5603_s5 + $0x18] sm:$0xff]  ;;  %s5628_s2 = sld [smem:[#allocation12_spill]]  ;;  %v150_v8 = vld [vmem:[%s5602_s4] sm:$0xff]  ;;  %s5629_s21 = sld [smem:[#allocation14_spill]]  ;;  %vm350_vm1 = vcmask 130048  }
  0x2d   :  { %v3404_v7 = vpack.c.bf16 %v155_v5, %v154_v3  ;;  %v151_v9 = vld [vmem:[%s5602_s4 + $0x8] sm:$0xff]  ;;  %v544_v12 = vld [vmem:[%s5604_s6] sm:$0xff]  ;;  %s5630_s28 = sld [smem:[#allocation11_spill]]  ;;  %v546_v60 = vld [vmem:[%s5604_s6 + $0x10] sm:$0xff]  ;;  %v3857_v62 = vmov 1   ;;  %s5631_s20 = sld [smem:[#allocation13_spill]] }
  0x2e   :  { %3401 = vmatprep.subr.bf16.mxu0 %v3400_v4  ;;  %v3408_v10 = vpack.c.bf16 %v151_v9, %v150_v8  ;;  %v545_v13 = vld [vmem:[%s5604_s6 + $0x8] sm:$0xff]  ;;  %v547_v61 = vld [vmem:[%s5604_s6 + $0x18] sm:$0xff]  ;;  %v548_v3 = vld [vmem:[%s5604_s6 + $0x20] sm:$0xff]  ;;  %vm552_vm2 = vcmask 523264  }
  0x2f   :  { %3403 = vmatpush3.bf16.msra.mxu0 %v3400_v4  ;;  %v4019_v15 = vpack.c.bf16 %v545_v13, %v544_v12  ;;  %v3416_v2 = vpack.c.bf16 %v547_v61, %v546_v60  ;;  %v549_v4 = vld [vmem:[%s5604_s6 + $0x28] sm:$0xff]  ;;  %v550_v9 = vld [vmem:[%s5604_s6 + $0x30] sm:$0xff] }
  0x30   :  { %3405 = vmatprep.subr.bf16.mxu0 %v3404_v7  ;;  %v3420_v8 = vpack.c.bf16 %v549_v4, %v548_v3 }
  0x32   :  { %v102_v6 = vld [vmem:[%s5628_s2] sm:$0xff]  ;;  %v103_v11 = vld [vmem:[%s5628_s2 + $0x8] sm:$0xff]  ;;  %v104_v14 = vld [vmem:[%s5628_s2 + $0x10] sm:$0xff] }
  0x33   :  { %3252 = vmatprep.mubr.msk.f32.mxu0 %vm156_vm0, %v102_v6  ;;  %3407 = vmatpush3.bf16.msra.mxu0 %v3404_v7  ;;  %v4024_v16 = vld [vmem:[%s5629_s21] sm:$0xff]  ;;  %v4031_v18 = vld [vmem:[%s5629_s21 + $0x8] sm:$0xff]  ;;  %v105_v19 = vld [vmem:[%s5628_s2 + $0x18] sm:$0xff] }
  0x34   :  { %3409 = vmatprep.subr.bf16.mxu0 %v3408_v10  ;;  %v3004_v17 = vadd.f32 -1.0, %v4024_v16  ;;  %v3005_v21 = vadd.f32 -1.0, %v4031_v18  ;;  %v4043_v22 = vld [vmem:[%s5629_s21 + $0x20] sm:$0xff]  ;;  %v4057_v26 = vld [vmem:[%s5629_s21 + $0x30] sm:$0xff]  ;;  %v107_v27 = vld [vmem:[%s5628_s2 + $0x28] sm:$0xff] }
  0x35   :  { %v106_v23 = vld [vmem:[%s5628_s2 + $0x20] sm:$0xff]  ;;  %v3008_v25 = vadd.f32 -1.0, %v4043_v22  ;;  %v108_v28 = vld [vmem:[%s5628_s2 + $0x30] sm:$0xff]  ;;  %v3010_v31 = vadd.f32 -1.0, %v4057_v26  ;;  %v4079_v33 = vld [vmem:[%s5629_s21 + $0x18] sm:$0xff] }
  0x36   :  { %3253 = vmatmul.mubr.msk.f32.vlgmr.msra.gmra.mrb[0].mxu0 %vm156_vm0, %v103_v11  ;;  %v4037_v20 = vmul.f32 1e+30, %v3004_v17  ;;  %v4050_v24 = vmul.f32 1e+30, %v3005_v21  ;;  %v4069_v29 = vld [vmem:[%s5629_s21 + $0x10] sm:$0xff]  ;;  %v4085_v34 = vld [vmem:[%s5629_s21 + $0x48] sm:$0xff] }
  0x37   :  { %3411 = vmatpush3.bf16.msra.mxu0 %v3408_v10  ;;  %3255 = vmatprep.mubr.msk.f32.mxu0 %vm156_vm0, %v104_v14  ;;  %v4072_v30 = vmul.f32 1e+30, %v3008_v25  ;;  %v3006_v32 = vadd.f32 -1.0, %v4069_v29  ;;  %v109_v35 = vld [vmem:[%s5628_s2 + $0x38] sm:$0xff]  ;;  %v3007_v37 = vadd.f32 -1.0, %v4079_v33  ;;  %v110_v38 = vld [vmem:[%s5628_s2 + $0x40] sm:$0xff] }
  0x38   :  { %3413 = vmatprep.subr.bf16.mxu0 %v4019_v15  ;;  %867 = vperm.xlu0 %3765, %v4037_v20   ;;  %v4100_v39 = vld [vmem:[%s5629_s21 + $0x28] sm:$0xff]  ;;  %v4103_v40 = vmul.f32 1e+30, %v3010_v31  ;;  %v3013_v41 = vadd.f32 -1.0, %v4085_v34  ;;  %v112_v46 = vld [vmem:[%s5628_s2 + $0x50] sm:$0xff]  ;;  %v4124_v47 = vld [vmem:[%s5629_s21 + $0x38] sm:$0xff] }
  0x39   :  { %v4091_v36 = vmul.f32 1e+30, %v3006_v32  ;;  %v4111_v42 = vld [vmem:[%s5629_s21 + $0x68] sm:$0xff]  ;;  %v852_v44 = vmul.f32 1e+30, %v3007_v37  ;;  %v3009_v45 = vadd.f32 -1.0, %v4100_v39 }
  0x3a   :  { %3256 = vmatmul.mubr.msk.f32.gmra.mrb[2].mxu0 %vm156_vm0, %v105_v19  ;;  %v111_v43 = vld [vmem:[%s5628_s2 + $0x48] sm:$0xff]  ;;  %v4127_v48 = vmul.f32 1e+30, %v3013_v41  ;;  %v3017_v49 = vadd.f32 -1.0, %v4111_v42  ;;  %v113_v50 = vld [vmem:[%s5628_s2 + $0x58] sm:$0xff]  ;;  %v3011_v52 = vadd.f32 -1.0, %v4124_v47 }
  0x3b   :  { %3258 = vmatprep.mubr.msk.f32.mxu0 %vm156_vm0, %v106_v23  ;;  %877 = vperm.xlu1 %3766, %v4091_v36   ;;  %v854_v51 = vmul.f32 1e+30, %v3009_v45  ;;  %v114_v53 = vld [vmem:[%s5628_s2 + $0x60] sm:$0xff]  ;;  %v115_v55 = vld [vmem:[%s5628_s2 + $0x68] sm:$0xff]  ;;  %v116_v57 = vld [vmem:[%s5628_s2 + $0x70] sm:$0xff] }
  0x3c   :  { %872 = vperm.xlu0 %3765, %v4050_v24   ;;  %v4140_v54 = vmul.f32 1e+30, %v3017_v49  ;;  %v856_v56 = vmul.f32 1e+30, %v3011_v52  ;;  %v117_v58 = vld [vmem:[%s5628_s2 + $0x78] sm:$0xff]  ;;  %v4159_v59 = vld [vmem:[%s5630_s28] sm:$0xff] }
  0x3d   :  { %v4176_v63 = vld [vmem:[%s5630_s28 + $0x8] sm:$0xff]  ;;  %v4182_v1 = vld [vmem:[%s5630_s28 + $0x10] sm:$0xff]  ;;  %v4198_v5 = vld [vmem:[%s5630_s28 + $0x18] sm:$0xff] }
  0x3e   :  { %3259 = vmatmul.mubr.msk.f32.gmra.mrb[4].mxu0 %vm156_vm0, %v107_v27  ;;  %v4203_v6 = vld [vmem:[%s5629_s21 + $0x40] sm:$0xff]  ;;  %v551_v10 = vld [vmem:[%s5604_s6 + $0x38] sm:$0xff]  ;;  %v4225_v12 = vld [vmem:[%s5630_s28 + $0x28] sm:$0xff] }
  0x3f   :  { %3261 = vmatprep.mubr.msk.f32.mxu0 %vm156_vm0, %v108_v28  ;;  %882 = vperm.xlu1 %3766, %v852_v44   ;;  %v4208_v7 = vld [vmem:[%s5630_s28 + $0x20] sm:$0xff]  ;;  %v3012_v11 = vadd.f32 -1.0, %v4203_v6  ;;  %v4230_v13 = vld [vmem:[%s5629_s21 + $0x58] sm:$0xff]  ;;  %v4235_v14 = vld [vmem:[%s5630_s28 + $0x30] sm:$0xff] }
  0x40   :  { %887 = vperm.xlu0 %3765, %v4072_v30   ;;  %v3015_v19 = vadd.f32 -1.0, %v4230_v13  ;;  %v4251_v21 = vld [vmem:[%s5630_s28 + $0x38] sm:$0xff]  ;;  %v4256_v23 = vld [vmem:[%s5629_s21 + $0x60] sm:$0xff]  ;;  %v4283_v32 = vld [vmem:[%s5630_s28 + $0x50] sm:$0xff] }
  0x41   :  { %v857_v17 = vmul.f32 1e+30, %v3012_v11  ;;  %v3016_v28 = vadd.f32 -1.0, %v4256_v23  ;;  %v4278_v31 = vld [vmem:[%s5629_s21 + $0x78] sm:$0xff]  ;;  %v119_v49 = vld [vmem:[%s5631_s20 + $0x8] sm:$0xff]  ;;  %v126_v60 = vld [vmem:[%s5631_s20 + $0x40] sm:$0xff] }
  0x42   :  { %3262 = vmatmul.mubr.msk.f32.gmra.mrb[6].mxu0 %vm156_vm0, %v109_v35  ;;  %v860_v27 = vmul.f32 1e+30, %v3015_v19  ;;  %v3019_v37 = vadd.f32 -1.0, %v4278_v31  ;;  %v4322_v45 = vld [vmem:[%s5630_s28 + $0x78] sm:$0xff]  ;;  %v127_v61 = vld [vmem:[%s5631_s20 + $0x48] sm:$0xff]  ;;  %v130_v4 = vld [vmem:[%s5631_s20 + $0x60] sm:$0xff] }
  0x43   :  { %3264 = vmatprep.mubr.msk.f32.mxu0 %vm156_vm0, %v110_v38  ;;  %892 = vperm.xlu1 %3766, %v854_v51   ;;  %v4294_v38 = vld [vmem:[%s5630_s28 + $0x58] sm:$0xff]  ;;  %v1292_v11 = vld [vmem:[%s5606_s8 + $0x8] sm:$0xff] }
  0x44   :  { %897 = vperm.xlu0 %3765, %v4103_v40   ;;  %v864_v41 = vmul.f32 1e+30, %v3019_v37  ;;  %v121_v52 = vld [vmem:[%s5631_s20 + $0x18] sm:$0xff] }
  0x45   :  { %v129_v3 = vld [vmem:[%s5631_s20 + $0x58] sm:$0xff] }
  0x46   :  { %3265 = vmatmul.mubr.msk.f32.gmra.mrb[8].mxu0 %vm156_vm0, %v111_v43  ;;  %v4308_v43 = vld [vmem:[%s5630_s28 + $0x68] sm:$0xff] }
  0x47   :  { %3267 = vmatprep.mubr.msk.f32.mxu0 %vm156_vm0, %v112_v46  ;;  %902 = vperm.xlu1 %3766, %v856_v56   ;;  %v118_v46 = vld [vmem:[%s5631_s20] sm:$0xff] }
  0x48   :  { %912 = vperm.xlu0 %3765, %v4127_v48  }
  0x4a   :  { %3268 = vmatmul.mubr.msk.f32.gmra.mrb[10].mxu0 %vm156_vm0, %v113_v50  ;;  %v120_v50 = vld [vmem:[%s5631_s20 + $0x10] sm:$0xff] }
  0x4b   :  { %3270 = vmatprep.mubr.msk.f32.mxu0 %vm156_vm0, %v114_v53  ;;  %3767 = vset.pattern.permute.xlu1 %v3857_v62 }
  0x4c   :  { %932 = vperm.xlu0 %3765, %v4140_v54   ;;  %1099 = vperm.xlu1 %3767, %v4050_v24   ;;  %v4261_v24 = vld [vmem:[%s5630_s28 + $0x40] sm:$0xff] }
  0x4e   :  { %3271 = vmatmul.mubr.msk.f32.gmra.mrb[12].mxu0 %vm156_vm0, %v115_v55  ;;  %v123_v55 = vld [vmem:[%s5631_s20 + $0x28] sm:$0xff] }
  0x4f   :  { %3273 = vmatprep.mubr.msk.f32.mxu0 %vm156_vm0, %v116_v57 }
  0x50   :  { %3771 = vset.pattern.permute.xlu0 %v3857_v62  ;;  %1103 = vperm.xlu1 %3767, %v4091_v36   ;;  %v861_v36 = vmul.f32 1e+30, %v3016_v28 }
  0x51   :  { %1095 = vperm.xlu0 %3771, %v4037_v20   ;;  %v4244_v20 = vld [vmem:[%s5629_s21 + $0x50] sm:$0xff] }
  0x52   :  { %3274 = vmatmul.mubr.msk.f32.gmra.mrb[14].mxu0 %vm156_vm0, %v117_v58  ;;  %v3014_v25 = vadd.f32 -1.0, %v4244_v20  ;;  %v125_v58 = vld [vmem:[%s5631_s20 + $0x38] sm:$0xff] }
  0x53   :  { %3280 = vmatprep.mubr.msk.f32.mxu0 %vm350_vm1, %v4159_v59 }
  0x54   :  { %1111 = vperm.xlu1 %3767, %v4072_v30   ;;  %v4273_v30 = vld [vmem:[%s5630_s28 + $0x48] sm:$0xff]  ;;  %v859_v35 = vmul.f32 1e+30, %v3014_v25  ;;  %v1291_v25 = vld [vmem:[%s5606_s8] sm:$0xff] }
  0x55   :  { %1107 = vperm.xlu0 %3771, %v852_v44   ;;  %v4313_v44 = vld [vmem:[%s5630_s28 + $0x70] sm:$0xff] }
  0x56   :  { %3281 = vmatmul.mubr.msk.f32.vlgmr.msra.gmra.mrb[0].mxu0 %vm350_vm1, %v4176_v63 }
  0x57   :  { %3415 = vmatpush3.bf16.msra.mxu0 %v4019_v15  ;;  %3283 = vmatprep.mubr.msk.f32.mxu0 %vm350_vm1, %v4182_v1  ;;  %v3424_v15 = vpack.c.bf16 %v551_v10, %v550_v9  ;;  %v132_v9 = vld [vmem:[%s5631_s20 + $0x70] sm:$0xff]  ;;  %v1326_v10 = vld [vmem:[%s5607_s9 + $0x18] sm:$0xff] }
  0x58   :  { %3417 = vmatprep.subr.bf16.mxu0 %v3416_v2  ;;  %1119 = vperm.xlu1 %3767, %v4103_v40   ;;  %v4299_v40 = vld [vmem:[%s5630_s28 + $0x60] sm:$0xff] }
  0x59   :  { %1115 = vperm.xlu0 %3771, %v854_v51   ;;  %v4342_v51 = vld [vmem:[%s5629_s21 + $0x70] sm:$0xff] }
  0x5a   :  { %3284 = vmatmul.mubr.msk.f32.gmra.mrb[2].mxu0 %vm350_vm1, %v4198_v5  ;;  %v3018_v53 = vadd.f32 -1.0, %v4342_v51 }
  0x5b   :  { %3286 = vmatprep.mubr.msk.f32.mxu0 %vm350_vm1, %v4208_v7  ;;  %3419 = vmatpush3.bf16.msra.mxu0 %v3416_v2  ;;  %v128_v2 = vld [vmem:[%s5631_s20 + $0x50] sm:$0xff] }
  0x5c   :  { %3421 = vmatprep.subr.bf16.mxu0 %v3420_v8  ;;  %3768 = vset.pattern.permute.xlu1 %v3856_v0  ;;  %v863_v57 = vmul.f32 1e+30, %v3018_v53 }
  0x5d   :  { %1123 = vperm.xlu0 %3771, %v856_v56   ;;  %907 = vperm.xlu1 %3768, %v857_v17   ;;  %v124_v56 = vld [vmem:[%s5631_s20 + $0x30] sm:$0xff] }
  0x5e   :  { %3287 = vmatmul.mubr.msk.f32.gmra.mrb[4].mxu0 %vm350_vm1, %v4225_v12 }
  0x5f   :  { %3289 = vmatprep.mubr.msk.f32.mxu0 %vm350_vm1, %v4235_v14  ;;  %3423 = vmatpush3.bf16.msra.mxu0 %v3420_v8  ;;  %v131_v8 = vld [vmem:[%s5631_s20 + $0x68] sm:$0xff] }
  0x60   :  { %3425 = vmatprep.subr.bf16.mxu0 %v3424_v15 }
  0x61   :  { %1127 = vperm.xlu0 %3771, %v857_v17   ;;  %917 = vperm.xlu1 %3768, %v859_v35   ;;  %v5622_v17 = vmov 0.0  }
  0x62   :  { %3290 = vmatmul.mubr.msk.f32.gmra.mrb[6].mxu0 %vm350_vm1, %v4251_v21  ;;  %1391 = vmatprep.mubr.f32.mxu1 %v5622_v17 }
  0x63   :  { %3292 = vmatprep.mubr.msk.f32.mxu0 %vm350_vm1, %v4261_v24  ;;  %3427 = vmatpush3.bf16.msra.mxu0 %v3424_v15 }
  0x65   :  { %1139 = vperm.xlu0 %3771, %v860_v27   ;;  %922 = vperm.xlu1 %3768, %v860_v27   ;;  %v1293_v27 = vld [vmem:[%s5606_s8 + $0x10] sm:$0xff] }
  0x66   :  { %3293 = vmatmul.mubr.msk.f32.gmra.mrb[8].mxu0 %vm350_vm1, %v4273_v30  ;;  %v3434_v28 = vpack.c.bf16 %v1293_v27, %v1291_v25  ;;  %v1321_v25 = vld [vmem:[%s5606_s8 + $0xf0] sm:$0xff] }
  0x67   :  { %3295 = vmatprep.mubr.msk.f32.mxu0 %vm350_vm1, %v4283_v32 }
  0x69   :  { %1143 = vperm.xlu0 %3771, %v861_v36   ;;  %3769 = vset.pattern.permute.xlu1 %v3857_v62 }
  0x6a   :  { %3296 = vmatmul.mubr.msk.f32.gmra.mrb[10].mxu0 %vm350_vm1, %v4294_v38  ;;  %1131 = vperm.xlu1 %3769, %v4127_v48   ;;  %v122_v48 = vld [vmem:[%s5631_s20 + $0x20] sm:$0xff] }
  0x6b   :  { %3298 = vmatprep.mubr.msk.f32.mxu0 %vm350_vm1, %v4299_v40 }
  0x6d   :  { %1155 = vperm.xlu0 %3771, %v864_v41  }
  0x6e   :  { %3299 = vmatmul.mubr.msk.f32.gmra.mrb[12].mxu0 %vm350_vm1, %v4308_v43  ;;  %1135 = vperm.xlu1 %3769, %v859_v35   ;;  %v1306_v35 = vld [vmem:[%s5606_s8 + $0x78] sm:$0xff] }
  0x6f   :  { %3301 = vmatprep.mubr.msk.f32.mxu0 %vm350_vm1, %v4313_v44 }
  0x71   :  { %1196 = vperm.xlu0 %3771, %v4024_v16  }
  0x72   :  { %3302 = vmatmul.mubr.msk.f32.gmra.mrb[14].mxu0 %vm350_vm1, %v4322_v45  ;;  %3770 = vset.pattern.permute.xlu1 %v3856_v0 }
  0x73   :  { %3320 = vmatprep.mubr.msk.f32.mxu0 %vm552_vm2, %v118_v46  ;;  %927 = vperm.xlu1 %3770, %v861_v36   ;;  %v1310_v46 = vld [vmem:[%s5606_s8 + $0x98] sm:$0xff] }
  0x75   :  { %1200 = vperm.xlu0 %3771, %v4031_v18  }
  0x76   :  { %3321 = vmatmul.mubr.msk.f32.vlgmr.msra.gmra.mrb[0].mxu0 %vm552_vm2, %v119_v49 }
  0x77   :  { %3323 = vmatprep.mubr.msk.f32.mxu0 %vm552_vm2, %v120_v50  ;;  %937 = vperm.xlu1 %3770, %v863_v57  }
  0x79   :  { %1204 = vperm.xlu0 %3771, %v4069_v29  }
  0x7a   :  { %3324 = vmatmul.mubr.msk.f32.gmra.mrb[2].mxu0 %vm552_vm2, %v121_v52  ;;  %v1309_v52 = vld [vmem:[%s5606_s8 + $0x90] sm:$0xff] }
  0x7b   :  { %3326 = vmatprep.mubr.msk.f32.mxu0 %vm552_vm2, %v122_v48  ;;  %942 = vperm.xlu1 %3770, %v864_v41  }
  0x7d   :  { %1208 = vperm.xlu0 %3771, %v4079_v33  }
  0x7e   :  { %3327 = vmatmul.mubr.msk.f32.gmra.mrb[4].mxu0 %vm552_vm2, %v123_v55 }
  0x7f   :  { %3329 = vmatprep.mubr.msk.f32.mxu0 %vm552_vm2, %v124_v56  ;;  %3772 = vset.pattern.permute.xlu1 %v3857_v62  ;;  %v1324_v62 = vld [vmem:[%s5607_s9 + $0x8] sm:$0xff] }
  0x80   :  { %1147 = vperm.xlu1 %3772, %v4140_v54   ;;  %v133_v54 = vld [vmem:[%s5631_s20 + $0x78] sm:$0xff]  ;;  %v1312_v56 = vld [vmem:[%s5606_s8 + $0xa8] sm:$0xff] }
  0x81   :  { %1212 = vperm.xlu0 %3771, %v4043_v22  }
  0x82   :  { %3330 = vmatmul.mubr.msk.f32.gmra.mrb[6].mxu0 %vm552_vm2, %v125_v58 }
  0x83   :  { %3332 = vmatprep.mubr.msk.f32.mxu0 %vm552_vm2, %v126_v60  ;;  %v1311_v60 = vld [vmem:[%s5606_s8 + $0xa0] sm:$0xff] }
  0x84   :  { %1151 = vperm.xlu1 %3772, %v863_v57   ;;  %v1314_v57 = vld [vmem:[%s5606_s8 + $0xb8] sm:$0xff] }
  0x85   :  { %1216 = vperm.xlu0 %3771, %v4100_v39   ;;  %v3452_v58 = vpack.c.bf16 %v1314_v57, %v1312_v56 }
  0x86   :  { %3333 = vmatmul.mubr.msk.f32.gmra.mrb[8].mxu0 %vm552_vm2, %v127_v61  ;;  %v1313_v61 = vld [vmem:[%s5606_s8 + $0xb0] sm:$0xff] }
  0x87   :  { %3335 = vmatprep.mubr.msk.f32.mxu0 %vm552_vm2, %v128_v2 }
  0x88   :  { %3773 = vset.pattern.permute.xlu1 %v3856_v0  ;;  %v3428_v0 = vpack.c.bf16 %v1326_v10, %v1324_v62  ;;  %v1315_v62 = vld [vmem:[%s5606_s8 + $0xc0] sm:$0xff]  ;;  %v1317_v10 = vld [vmem:[%s5606_s8 + $0xd0] sm:$0xff] }
  0x89   :  { %1220 = vperm.xlu0 %3771, %v4057_v26   ;;  %984 = vperm.xlu1 %3773, %v4024_v16   ;;  %v1323_v16 = vld [vmem:[%s5607_s9] sm:$0xff] }
  0x8a   :  { %3336 = vmatmul.mubr.msk.f32.gmra.mrb[10].mxu0 %vm552_vm2, %v129_v3  ;;  %3429 = vmatprep.subr.bf16.mxu1 %v3428_v0  ;;  %v3454_v3 = vpack.c.bf16 %v1313_v61, %v1311_v60  ;;  %v3458_v0 = vpack.c.bf16 %v1317_v10, %v1315_v62 }
  0x8b   :  { %3338 = vmatprep.mubr.msk.f32.mxu0 %vm552_vm2, %v130_v4 }
  0x8d   :  { %1224 = vperm.xlu0 %3771, %v4124_v47   ;;  %989 = vperm.xlu1 %3773, %v4031_v18   ;;  %v1325_v18 = vld [vmem:[%s5607_s9 + $0x10] sm:$0xff] }
  0x8e   :  { %3339 = vmatmul.mubr.msk.f32.gmra.mrb[12].mxu0 %vm552_vm2, %v131_v8  ;;  %v3430_v15 = vpack.c.bf16 %v1325_v18, %v1323_v16  ;;  %v1316_v8 = vld [vmem:[%s5606_s8 + $0xc8] sm:$0xff] }
  0x8f   :  { %3341 = vmatprep.mubr.msk.f32.mxu0 %vm552_vm2, %v132_v9  ;;  %v1318_v9 = vld [vmem:[%s5606_s8 + $0xd8] sm:$0xff] }
  0x90   :  { %3431 = vmatpush1.bf16.msra.mxu1 %v3430_v15  ;;  %v1322_v15 = vld [vmem:[%s5606_s8 + $0xf8] sm:$0xff] }
  0x91   :  { %1228 = vperm.xlu0 %3771, %v4203_v6   ;;  %994 = vperm.xlu1 %3773, %v4069_v29   ;;  %v1294_v29 = vld [vmem:[%s5606_s8 + $0x18] sm:$0xff] }
  0x92   :  { %3342 = vmatmul.mubr.msk.f32.gmra.mrb[14].mxu0 %vm552_vm2, %v133_v54  ;;  %v3432_v19 = vpack.c.bf16 %v1294_v29, %v1292_v11  ;;  %v3456_v54 = vpack.c.bf16 %v1318_v9, %v1316_v8  ;;  %v1320_v11 = vld [vmem:[%s5606_s8 + $0xe8] sm:$0xff] }
  0x93   :  { %3020 = vmatmul.mubr.msk.f32.vlgmr.msra.gmra.mrb[0].mxu1 %vm350_vm1, %v4159_v59  ;;  %v3460_v29 = vpack.c.bf16 %v1322_v15, %v1320_v11 }
  0x94   :  { %3433 = vmatprep.subr.bf16.mxu1 %v3432_v19  ;;  %1397 = vmatprep.mubr.f32.mxu1 %v5622_v17  ;;  %v1319_v19 = vld [vmem:[%s5606_s8 + $0xe0] sm:$0xff] }
  0x95   :  { %1232 = vperm.xlu0 %3771, %v4085_v34   ;;  %999 = vperm.xlu1 %3773, %v4079_v33   ;;  %v3462_v27 = vpack.c.bf16 %v1321_v25, %v1319_v19 }
  0x96   :  { %3435 = vmatpush1.bf16.msra.mxu1 %v3434_v28 }
  0x97   :  { %3021 = vmatmul.mubr.msk.f32.gmra.mrb[2].mxu1 %vm350_vm1, %v4176_v63  ;;  %v1295_v63 = vld [vmem:[%s5606_s8 + $0x20] sm:$0xff] }
  0x98   :  { %1403 = vmatprep.mubr.f32.mxu1 %v5622_v17 }
  0x99   :  { %1236 = vperm.xlu0 %3771, %v4244_v20   ;;  %1004 = vperm.xlu1 %3773, %v4043_v22  }
  0x9b   :  { %3022 = vmatmul.mubr.msk.f32.gmra.mrb[4].mxu1 %vm350_vm1, %v4182_v1  ;;  %v1297_v1 = vld [vmem:[%s5606_s8 + $0x30] sm:$0xff] }
  0x9c   :  { %1409 = vmatprep.mubr.f32.mxu1 %v5622_v17 }
  0x9d   :  { %1240 = vperm.xlu0 %3771, %v4230_v13   ;;  %1009 = vperm.xlu1 %3773, %v4100_v39   ;;  %v1296_v39 = vld [vmem:[%s5606_s8 + $0x28] sm:$0xff] }
  0x9f   :  { %3023 = vmatmul.mubr.msk.f32.gmra.mrb[6].mxu1 %vm350_vm1, %v4198_v5  ;;  %v3438_v5 = vpack.c.bf16 %v1297_v1, %v1295_v63  ;;  %v1652_v63 = vld [vmem:[%s5608_s10 + $0x18] sm:$0xff] }
  0xa0   :  { %1415 = vmatprep.mubr.f32.mxu1 %v5622_v17 }
  0xa1   :  { %1244 = vperm.xlu0 %3771, %v4256_v23   ;;  %1014 = vperm.xlu1 %3773, %v4057_v26  }
  0xa3   :  { %3024 = vmatmul.mubr.msk.f32.gmra.mrb[8].mxu1 %vm350_vm1, %v4208_v7 }
  0xa4   :  { %1421 = vmatprep.mubr.f32.mxu1 %v5622_v17 }
  0xa5   :  { %1248 = vperm.xlu0 %3771, %v4111_v42   ;;  %1019 = vperm.xlu1 %3773, %v4124_v47  }
  0xa7   :  { %3025 = vmatmul.mubr.msk.f32.gmra.mrb[10].mxu1 %vm350_vm1, %v4225_v12  ;;  %v1300_v12 = vld [vmem:[%s5606_s8 + $0x48] sm:$0xff] }
  0xa8   :  { %1427 = vmatprep.mubr.f32.mxu1 %v5622_v17 }
  0xa9   :  { %1252 = vperm.xlu0 %3771, %v4342_v51   ;;  %1024 = vperm.xlu1 %3773, %v4203_v6  }
  0xab   :  { %3026 = vmatmul.mubr.msk.f32.gmra.mrb[12].mxu1 %vm350_vm1, %v4235_v14 }
  0xac   :  { %1433 = vmatprep.mubr.f32.mxu1 %v5622_v17 }
  0xad   :  { %1256 = vperm.xlu0 %3771, %v4278_v31   ;;  %1029 = vperm.xlu1 %3773, %v4085_v34  }
  0xaf   :  { %3027 = vmatmul.mubr.msk.f32.gmra.mrb[14].mxu1 %vm350_vm1, %v4251_v21  ;;  %v1299_v21 = vld [vmem:[%s5606_s8 + $0x40] sm:$0xff] }
  0xb0   :  { %1439 = vmatprep.mubr.f32.mxu1 %v5622_v17 }
  0xb1   :  { %1034 = vperm.xlu1 %3773, %v4244_v20  }
  0xb3   :  { %3028 = vmatmul.mubr.msk.f32.gmra.mrb[16].mxu1 %vm350_vm1, %v4261_v24 }
  0xb4   :  { %1445 = vmatprep.mubr.f32.mxu1 %v5622_v17 }
  0xb5   :  { %1039 = vperm.xlu1 %3773, %v4230_v13   ;;  %v1302_v13 = vld [vmem:[%s5606_s8 + $0x58] sm:$0xff] }
  0xb6   :  { %v3440_v20 = vpack.c.bf16 %v1302_v13, %v1300_v12 }
  0xb7   :  { %3029 = vmatmul.mubr.msk.f32.gmra.mrb[18].mxu1 %vm350_vm1, %v4273_v30  ;;  %v4520_v6 = vpop.permute.xlu0 %867 }
  0xb8   :  { %1451 = vmatprep.mubr.f32.mxu1 %v5622_v17 }
  0xb9   :  { %1044 = vperm.xlu1 %3773, %v4256_v23   ;;  %v1301_v23 = vld [vmem:[%s5606_s8 + $0x50] sm:$0xff] }
  0xba   :  { %v4478_v22 = vpop.permute.xlu1 %877  ;;  %v3442_v24 = vpack.c.bf16 %v1301_v23, %v1299_v21 }
  0xbb   :  { %3030 = vmatmul.mubr.msk.f32.gmra.mrb[20].mxu1 %vm350_vm1, %v4283_v32  ;;  %v4533_v14 = vpop.permute.xlu0 %872  ;;  %v1304_v32 = vld [vmem:[%s5606_s8 + $0x68] sm:$0xff] }
  0xbc   :  { %1457 = vmatprep.mubr.f32.mxu1 %v5622_v17  ;;  %v3444_v36 = vpack.c.bf16 %v1306_v35, %v1304_v32 }
  0xbd   :  { %1049 = vperm.xlu1 %3773, %v4111_v42   ;;  %v1298_v42 = vld [vmem:[%s5606_s8 + $0x38] sm:$0xff] }
  0xbe   :  { %v4484_v26 = vpop.permute.xlu1 %882  ;;  %v3436_v47 = vpack.c.bf16 %v1298_v42, %v1296_v39 }
  0xbf   :  { %3031 = vmatmul.mubr.msk.f32.gmra.mrb[22].mxu1 %vm350_vm1, %v4294_v38  ;;  %v1303_v38 = vld [vmem:[%s5606_s8 + $0x60] sm:$0xff] }
  0xc0   :  { %1463 = vmatprep.mubr.f32.mxu1 %v5622_v17  ;;  %3437 = vmatprep.subr.bf16.mxu1 %v3436_v47  ;;  %v1650_v47 = vld [vmem:[%s5608_s10 + $0x8] sm:$0xff] }
  0xc1   :  { %1054 = vperm.xlu1 %3773, %v4342_v51   ;;  %3439 = vmatpush1.bf16.msra.mxu1 %v3438_v5  ;;  %v1307_v51 = vld [vmem:[%s5606_s8 + $0x80] sm:$0xff]  ;;  %v3464_v1 = vpack.c.bf16 %v1652_v63, %v1650_v47 }
  0xc2   :  { %v4490_v33 = vpop.permute.xlu1 %892  ;;  %3441 = vmatprep.subr.bf16.mxu1 %v3440_v20  ;;  %v3450_v48 = vpack.c.bf16 %v1309_v52, %v1307_v51 }
  0xc3   :  { %3032 = vmatmul.mubr.msk.f32.gmra.mrb[24].mxu1 %vm350_vm1, %v4299_v40  ;;  %v1305_v40 = vld [vmem:[%s5606_s8 + $0x70] sm:$0xff] }
  0xc4   :  { %1469 = vmatprep.mubr.f32.mxu1 %v5622_v17  ;;  %v3446_v41 = vpack.c.bf16 %v1305_v40, %v1303_v38 }
  0xc5   :  { %1059 = vperm.xlu1 %3773, %v4278_v31   ;;  %3443 = vmatpush1.bf16.msra.mxu1 %v3442_v24  ;;  %v4549_v31 = vpop.permute.xlu0 %887 }
  0xc6   :  { %v4497_v34 = vpop.permute.xlu1 %902  ;;  %3445 = vmatprep.subr.bf16.mxu1 %v3444_v36 }
  0xc7   :  { %3033 = vmatmul.mubr.msk.f32.gmra.mrb[26].mxu1 %vm350_vm1, %v4308_v43 }
  0xc8   :  { %1475 = vmatprep.mubr.f32.mxu1 %v5622_v17 }
  0xc9   :  { %v4565_v43 = vpop.permute.xlu0 %897  ;;  %3447 = vmatpush1.bf16.msra.mxu1 %v3446_v41 }
  0xcb   :  { %v4509_v59 = vpop.permute.xlu1 %1099  ;;  %3034 = vmatmul.mubr.msk.f32.gmra.mrb[28].mxu1 %vm350_vm1, %v4313_v44 }
  0xcc   :  { %1481 = vmatprep.mubr.f32.mxu1 %v5622_v17 }
  0xcd   :  { %v4575_v49 = vpop.permute.xlu0 %912 }
  0xcf   :  { %v4525_v7 = vpop.permute.xlu1 %1103  ;;  %3035 = vmatmul.mubr.msk.f32.gmra.mrb[30].mxu1 %vm350_vm1, %v4322_v45  ;;  %v1308_v45 = vld [vmem:[%s5606_s8 + $0x88] sm:$0xff] }
  0xd0   :  { %1552 = vmatprep.mubr.f32.mxu1 %v5622_v17  ;;  %v3448_v50 = vpack.c.bf16 %v1310_v46, %v1308_v45 }
  0xd1   :  { %v4585_v55 = vpop.permute.xlu0 %932 }
  0xd2   :  { %3449 = vmatprep.subr.bf16.mxu1 %v3448_v50 }
  0xd3   :  { %v4544_v30 = vpop.permute.xlu1 %1111  ;;  %3451 = vmatpush1.bf16.msra.mxu1 %v3450_v48 }
  0xd4   :  { %3453 = vmatprep.subr.bf16.mxu1 %v3452_v58  ;;  %v4688_v58 = vld [vmem:[%s5605_s7] ss:$0 sm:$0xff] }
  0xd5   :  { %v4601_v4 = vpop.permute.xlu0 %1095 }
  0xd7   :  { %v4557_v37 = vpop.permute.xlu1 %1119  ;;  %3455 = vmatpush1.bf16.msra.mxu1 %v3454_v3 }
  0xd8   :  { %3457 = vmatprep.subr.bf16.mxu1 %v3456_v54 }
  0xd9   :  { %v4617_v18 = vpop.permute.xlu0 %1107 }
  0xdb   :  { %3459 = vmatpush1.bf16.msra.mxu1 %v3458_v0 }
  0xdc   :  { %v4567_v44 = vpop.permute.xlu1 %907  ;;  %3461 = vmatprep.subr.bf16.mxu1 %v3460_v29 }
  0xdd   :  { %v4633_v39 = vpop.permute.xlu0 %1115 }
  0xdf   :  { %3463 = vmatpush1.bf16.msra.mxu1 %v3462_v27 }
  0xe0   :  { %v4583_v53 = vpop.permute.xlu1 %917  ;;  %3465 = vmatprep.subr.bf16.mxu1 %v3464_v1 }
  0xe1   :  { %v4643_v5 = vpop.permute.xlu0 %1123 }
  0xe4   :  { %v4599_v2 = vpop.permute.xlu1 %922 }
  0xe5   :  { %v4647_v13 = vpop.permute.xlu0 %1127 }
  0xe9   :  { %v4615_v16 = vpop.permute.xlu1 %1131  ;;  %v4651_v21 = vpop.permute.xlu0 %1139 }
  0xed   :  { %v4631_v28 = vpop.permute.xlu1 %1135  ;;  %v4655_v24 = vpop.permute.xlu0 %1143 }
  0xf1   :  { %v4659_v35 = vpop.permute.xlu0 %1155 }
  0xf2   :  { %v4635_v42 = vpop.permute.xlu1 %927 }
  0xf5   :  { %v4663_v38 = vpop.permute.xlu0 %1196 }
  0xf6   :  { %v4645_v12 = vpop.permute.xlu1 %937 }
  0xf9   :  { %v4667_v41 = vpop.permute.xlu0 %1200 }
  0xfa   :  { %v4649_v20 = vpop.permute.xlu1 %942 }
  0xfd   :  { %v4671_v46 = vpop.permute.xlu0 %1204 }
  0xff   :  { %v4653_v23 = vpop.permute.xlu1 %1147 }
 0x101   :  { %v4675_v51 = vpop.permute.xlu0 %1208 }
 0x103   :  { %v4657_v32 = vpop.permute.xlu1 %1151 }
 0x105   :  { %v4679_v48 = vpop.permute.xlu0 %1212 }
 0x108   :  { %v4661_v36 = vpop.permute.xlu1 %984 }
 0x109   :  { %v4683_v57 = vpop.permute.xlu0 %1216 }
 0x10c   :  { %v4665_v40 = vpop.permute.xlu1 %989 }
 0x10d   :  { %v4694_v62 = vpop.permute.xlu0 %1220 }
 0x10e   :  { %5632 = vst [vmem:[#allocation8_spill] sm:$0xff] %v4694_v62 }
 0x110   :  { %v4669_v45 = vpop.permute.xlu1 %994 }
 0x111   :  { %v4701_v62 = vpop.permute.xlu0 %1224 }
 0x112   :  { %5634 = vst [vmem:[#allocation10_spill] sm:$0xff] %v4701_v62 }
 0x114   :  { %v4673_v50 = vpop.permute.xlu1 %999 }
 0x118   :  { %v4677_v52 = vpop.permute.xlu1 %1004 }
 0x11c   :  { %v4681_v56 = vpop.permute.xlu1 %1009 }
 0x120   :  { %v4692_v9 = vpop.permute.xlu1 %1014 }
 0x124   :  { %v4698_v1 = vpop.permute.xlu1 %1019 }
 0x125   :  { %5633 = vst [vmem:[#allocation9_spill] sm:$0xff] %v4698_v1 }
 0x128   :  { %v4732_v62 = vpop.permute.xlu1 %1024 }
 0x149   :  { %v3322_v60 = vpop.f32.mrb[0].mxu0 }
 0x14a   :  { %v770_v61 = vadd.f32 %v3322_v60, %v4688_v58  ;;  %v667_v3 = vpop.f32.mrb[1].mxu0 }
 0x14b   :  { %v769_v8 = vadd.f32 %v4688_v58, %v667_v3 }
 0x14c   :  { %v802_v54 = vmul.f32 0.2, %v770_v61  ;;  %vm786_vm3 = vcmp.gt.f32.partialorder %v770_v61, 0.0 }
 0x14d   :  { %v801_v10 = vmul.f32 0.2, %v769_v8  ;;  %v3325_v0 = vpop.f32.mrb[2].mxu0  ;;  %vm785_vm4 = vcmp.gt.f32.partialorder %v769_v8, 0.0 }
 0x14e   :  { %v772_v11 = vadd.f32 %v3325_v0, %v4688_v58  ;;  %v677_v15 = vpop.f32.mrb[3].mxu0  ;;  %v818_v19 = vsel %vm786_vm3, %v770_v61, %v802_v54 }
 0x14f   :  { %v771_v29 = vadd.f32 %v4688_v58, %v677_v15  ;;  %v817_v27 = vsel %vm785_vm4, %v769_v8, %v801_v10  ;;  %v4704_v0 = vadd.f32 %v4533_v14, %v818_v19  ;;  %v4707_v15 = vadd.f32 %v4509_v59, %v818_v19 }
 0x150   :  { %vm788_vm5 = vcmp.gt.f32.partialorder %v772_v11, 0.0  ;;  %v804_v25 = vmul.f32 0.2, %v772_v11  ;;  %v4711_v54 = vadd.f32 %v4520_v6, %v817_v27 }
 0x151   :  { %vm787_vm6 = vcmp.gt.f32.partialorder %v771_v29, 0.0  ;;  %v803_v47 = vmul.f32 0.2, %v771_v29  ;;  %v3328_v63 = vpop.f32.mrb[4].mxu0 }
 0x152   :  { %v820_v60 = vsel %vm788_vm5, %v772_v11, %v804_v25  ;;  %v774_v3 = vadd.f32 %v3328_v63, %v4688_v58  ;;  %v687_v17 = vpop.f32.mrb[5].mxu0  ;;  %v4717_v25 = vadd.f32 %v4601_v4, %v817_v27 }
 0x153   :  { %v819_v61 = vsel %vm787_vm6, %v771_v29, %v803_v47  ;;  %v773_v8 = vadd.f32 %v4688_v58, %v687_v17  ;;  %v4720_v14 = vadd.f32 %v4484_v26, %v820_v60  ;;  %v4723_v29 = vadd.f32 %v4617_v18, %v820_v60  ;;  %v4736_v60 = vpop.permute.xlu0 %1228 }
 0x154   :  { %v4714_v10 = vadd.f32 %v4478_v22, %v819_v61  ;;  %vm790_vm7 = vcmp.gt.f32.partialorder %v774_v3, 0.0  ;;  %v806_v11 = vmul.f32 0.2, %v774_v3  ;;  %v4726_v17 = vadd.f32 %v4525_v7, %v819_v61 }
 0x155   :  { %vm789_vm8 = vcmp.gt.f32.partialorder %v773_v8, 0.0  ;;  %v805_v59 = vmul.f32 0.2, %v773_v8  ;;  %v3331_v19 = vpop.f32.mrb[6].mxu0 }
 0x156   :  { %v822_v6 = vsel %vm790_vm7, %v774_v3, %v806_v11  ;;  %v776_v22 = vadd.f32 %v3331_v19, %v4688_v58  ;;  %v697_v47 = vpop.f32.mrb[7].mxu0 }
 0x157   :  { %v950_v63 = vadd.f32 %v4490_v33, %v822_v6  ;;  %v1163_v4 = vadd.f32 %v4633_v39, %v822_v6  ;;  %v821_v27 = vsel %vm789_vm8, %v773_v8, %v805_v59  ;;  %v775_v26 = vadd.f32 %v4688_v58, %v697_v47 }
 0x158   :  { %v949_v1 = vadd.f32 %v4549_v31, %v821_v27  ;;  %v1162_v18 = vadd.f32 %v4544_v30, %v821_v27  ;;  %vm792_vm9 = vcmp.gt.f32.partialorder %v776_v22, 0.0  ;;  %v808_v7 = vmul.f32 0.2, %v776_v22  ;;  %v4750_v27 = vpop.permute.xlu1 %1029 }
 0x159   :  { %v962_v3 = vmax.f32 %v4704_v0, %v950_v63  ;;  %v1175_v61 = vmax.f32 %v4707_v15, %v1163_v4  ;;  %vm791_vm10 = vcmp.gt.f32.partialorder %v775_v26, 0.0  ;;  %v807_v33 = vmul.f32 0.2, %v775_v26  ;;  %v3334_v39 = vpop.f32.mrb[8].mxu0 }
 0x15a   :  { %v961_v8 = vmax.f32 %v4711_v54, %v949_v1  ;;  %v1174_v11 = vmax.f32 %v4717_v25, %v1162_v18  ;;  %v824_v59 = vsel %vm792_vm9, %v776_v22, %v808_v7  ;;  %v778_v31 = vadd.f32 %v3334_v39, %v4688_v58  ;;  %v707_v19 = vpop.f32.mrb[9].mxu0 }
 0x15b   :  { %v952_v30 = vadd.f32 %v4497_v34, %v824_v59  ;;  %v1165_v6 = vadd.f32 %v4643_v5, %v824_v59  ;;  %v823_v47 = vsel %vm791_vm10, %v775_v26, %v807_v33  ;;  %v777_v0 = vadd.f32 %v4688_v58, %v707_v19 }
 0x15c   :  { %v951_v15 = vadd.f32 %v4565_v43, %v823_v47  ;;  %v1164_v63 = vadd.f32 %v4557_v37, %v823_v47  ;;  %vm794_vm11 = vcmp.gt.f32.partialorder %v778_v31, 0.0  ;;  %v810_v4 = vmul.f32 0.2, %v778_v31  ;;  %v4755_v37 = vpop.permute.xlu0 %1232 }
 0x15d   :  { %v964_v1 = vmax.f32 %v4720_v14, %v952_v30  ;;  %v1177_v54 = vmax.f32 %v4723_v29, %v1165_v6  ;;  %vm793_vm12 = vcmp.gt.f32.partialorder %v777_v0, 0.0  ;;  %v809_v25 = vmul.f32 0.2, %v777_v0  ;;  %v3337_v22 = vpop.f32.mrb[10].mxu0 }
 0x15e   :  { %v963_v34 = vmax.f32 %v4714_v10, %v951_v15  ;;  %v1176_v5 = vmax.f32 %v4726_v17, %v1164_v63  ;;  %v826_v26 = vsel %vm794_vm11, %v778_v31, %v810_v4  ;;  %v780_v43 = vadd.f32 %v3337_v22, %v4688_v58  ;;  %v717_v18 = vpop.f32.mrb[11].mxu0  ;;  %v4766_v4 = vpop.permute.xlu1 %1034 }
 0x15f   :  { %v954_v7 = vadd.f32 %v4575_v49, %v826_v26  ;;  %v1167_v14 = vadd.f32 %v4615_v16, %v826_v26  ;;  %v825_v29 = vsel %vm793_vm12, %v777_v0, %v809_v25  ;;  %v779_v33 = vadd.f32 %v4688_v58, %v717_v18 }
 0x160   :  { %v953_v39 = vadd.f32 %v4567_v44, %v825_v29  ;;  %v1166_v59 = vadd.f32 %v4647_v13, %v825_v29  ;;  %vm796_vm13 = vcmp.gt.f32.partialorder %v780_v43, 0.0  ;;  %v812_v10 = vmul.f32 0.2, %v780_v43 }
 0x161   :  { %v966_v17 = vmax.f32 %v962_v3, %v954_v7  ;;  %v1179_v31 = vmax.f32 %v1175_v61, %v1167_v14  ;;  %vm795_vm14 = vcmp.gt.f32.partialorder %v779_v33, 0.0  ;;  %v811_v19 = vmul.f32 0.2, %v779_v33  ;;  %v3340_v30 = vpop.f32.mrb[12].mxu0 }
 0x162   :  { %v965_v6 = vmax.f32 %v961_v8, %v953_v39  ;;  %v1178_v47 = vmax.f32 %v1174_v11, %v1166_v59  ;;  %v828_v15 = vsel %vm796_vm13, %v780_v43, %v812_v10  ;;  %v782_v49 = vadd.f32 %v3340_v30, %v4688_v58  ;;  %v727_v16 = vpop.f32.mrb[13].mxu0  ;;  %v4770_v11 = vpop.permute.xlu0 %1236 }
 0x163   :  { %v956_v0 = vadd.f32 %v4599_v2, %v828_v15  ;;  %v1169_v63 = vadd.f32 %v4651_v21, %v828_v15  ;;  %v827_v44 = vsel %vm795_vm14, %v779_v33, %v811_v19  ;;  %v781_v13 = vadd.f32 %v4688_v58, %v727_v16  ;;  %v1040_v10 = vpop.permute.xlu1 %1039 }
 0x164   :  { %v955_v3 = vadd.f32 %v4583_v53, %v827_v44  ;;  %v1168_v61 = vadd.f32 %v4631_v28, %v827_v44  ;;  %vm798_vm15 = vcmp.gt.f32.partialorder %v782_v49, 0.0  ;;  %v814_v8 = vmul.f32 0.2, %v782_v49 }
 0x165   :  { %v968_v25 = vmax.f32 %v964_v1, %v956_v0  ;;  %v1181_v22 = vmax.f32 %v1177_v54, %v1169_v63  ;;  %vm797_vm1 = vcmp.gt.f32.partialorder %v781_v13, 0.0  ;;  %v813_v26 = vmul.f32 0.2, %v781_v13  ;;  %v3343_v2 = vpop.f32.mrb[14].mxu0 }
 0x166   :  { %v967_v43 = vmax.f32 %v963_v34, %v955_v3  ;;  %v1180_v21 = vmax.f32 %v1176_v5, %v1168_v61  ;;  %v830_v18 = vsel %vm798_vm15, %v782_v49, %v814_v8  ;;  %v784_v7 = vadd.f32 %v3343_v2, %v4688_v58  ;;  %v737_v14 = vpop.f32.mrb[15].mxu0 }
 0x167   :  { %v958_v29 = vadd.f32 %v4585_v55, %v830_v18  ;;  %v1171_v53 = vadd.f32 %v4653_v23, %v830_v18  ;;  %v829_v28 = vsel %vm797_vm1, %v781_v13, %v813_v26  ;;  %v783_v33 = vadd.f32 %v4688_v58, %v737_v14  ;;  %v1241_v55 = vpop.permute.xlu0 %1240  ;;  %v1045_v13 = vpop.permute.xlu1 %1044 }
 0x168   :  { %v957_v39 = vadd.f32 %v4635_v42, %v829_v28  ;;  %v1170_v1 = vadd.f32 %v4655_v24, %v829_v28  ;;  %vm800_vm3 = vcmp.gt.f32.partialorder %v784_v7, 0.0  ;;  %v816_v54 = vmul.f32 0.2, %v784_v7 }
 0x169   :  { %v970_v59 = vmax.f32 %v966_v17, %v958_v29  ;;  %v1183_v34 = vmax.f32 %v1179_v31, %v1171_v53  ;;  %vm799_vm4 = vcmp.gt.f32.partialorder %v783_v33, 0.0  ;;  %v815_v5 = vmul.f32 0.2, %v783_v33 }
 0x16a   :  { %v969_v19 = vmax.f32 %v965_v6, %v957_v39  ;;  %v1182_v30 = vmax.f32 %v1178_v47, %v1170_v1  ;;  %v832_v15 = vsel %vm800_vm3, %v784_v7, %v816_v54  ;;  %v4799_v39 = vld [vmem:[%s5608_s10 + $0x20] sm:$0xff]  ;;  %v4804_v1 = vld [vmem:[%s5608_s10 + $0x30] sm:$0xff] }
 0x16b   :  { %v960_v23 = vadd.f32 %v4649_v20, %v832_v15  ;;  %v1173_v49 = vadd.f32 %v4659_v35, %v832_v15  ;;  %v831_v58 = vsel %vm799_vm4, %v783_v33, %v815_v5  ;;  %v1245_v3 = vpop.permute.xlu0 %1244  ;;  %v1050_v35 = vpop.permute.xlu1 %1049  ;;  %v1656_v33 = vld [vmem:[%s5608_s10 + $0x38] sm:$0xff] }
 0x16c   :  { %v973_v16 = vmax.f32 %v969_v19, %v970_v59  ;;  %v1186_v42 = vmax.f32 %v1182_v30, %v1183_v34  ;;  %v959_v24 = vadd.f32 %v4645_v12, %v831_v58  ;;  %v1172_v0 = vadd.f32 %v4657_v32, %v831_v58 }
 0x16d   :  { %v972_v17 = vmax.f32 %v968_v25, %v960_v23  ;;  %v1185_v31 = vmax.f32 %v1181_v22, %v1173_v49  ;;  %v1649_v22 = vld [vmem:[%s5608_s10] sm:$0xff]  ;;  %v3470_v30 = vpack.c.bf16 %v4804_v1, %v4799_v39 }
 0x16e   :  { %v971_v63 = vmax.f32 %v967_v43, %v959_v24  ;;  %v1184_v44 = vmax.f32 %v1180_v21, %v1172_v0  ;;  %v1651_v43 = vld [vmem:[%s5608_s10 + $0x10] sm:$0xff]  ;;  %v4791_v21 = vld [vmem:[%s5608_s10 + $0x28] sm:$0xff] }
 0x16f   :  { %v1249_v7 = vpop.permute.xlu0 %1248  ;;  %v1055_v25 = vpop.permute.xlu1 %1054  ;;  %v3466_v5 = vpack.c.bf16 %v1651_v43, %v1649_v22  ;;  %v3468_v19 = vpack.c.bf16 %v1656_v33, %v4791_v21  ;;  %v5636_v22 = vld [vmem:[#allocation9_spill] sm:$0xff]  ;;  %v5638_v21 = vld [vmem:[#allocation10_spill] sm:$0xff] }
 0x170   :  { %v974_v6 = vmax.f32 %v971_v63, %v972_v17  ;;  %v1187_v47 = vmax.f32 %v1184_v44, %v1185_v31 }
 0x172   :  { %v975_v61 = vmax.f32 %v973_v16, %v974_v6  ;;  %v1188_v8 = vmax.f32 %v1186_v42, %v1187_v47 }
 0x173   :  { %v1253_v54 = vpop.permute.xlu0 %1252  ;;  %v1060_v17 = vpop.permute.xlu1 %1059 }
 0x174   :  { %v976_v20 = vrot.slane %v975_v61, 4  ;;  %v1189_v26 = vrot.slane %v1188_v8, 4 }
 0x176   :  { %v977_v2 = vmax.f32 %v975_v61, %v976_v20  ;;  %v1190_v18 = vmax.f32 %v1188_v8, %v1189_v26 }
 0x177   :  { %v1257_v47 = vpop.permute.xlu0 %1256 }
 0x178   :  { %v978_v14 = vrot.slane %v977_v2, 2  ;;  %v1191_v12 = vrot.slane %v1190_v18, 2 }
 0x17a   :  { %v979_v29 = vmax.f32 %v977_v2, %v978_v14  ;;  %v1192_v32 = vmax.f32 %v1190_v18, %v1191_v12 }
 0x17c   :  { %v980_v53 = vrot.slane %v979_v29, 1  ;;  %v1193_v28 = vrot.slane %v1192_v32, 1 }
 0x17e   :  { %v981_v59 = vmax.f32 %v979_v29, %v980_v53  ;;  %v1194_v34 = vmax.f32 %v1192_v32, %v1193_v28 }
 0x180   :  { %v1071_v15 = vmul.f32 %v4750_v27, %v981_v59  ;;  %v1268_v23 = vmul.f32 %v4755_v37, %v1194_v34  ;;  %v1072_v49 = vmul.f32 %v4766_v4, %v981_v59  ;;  %v1269_v58 = vmul.f32 %v4770_v11, %v1194_v34 }
 0x181   :  { %v1073_v16 = vmul.f32 %v1040_v10, %v981_v59  ;;  %v1270_v42 = vmul.f32 %v1241_v55, %v1194_v34  ;;  %v1074_v24 = vmul.f32 %v1045_v13, %v981_v59  ;;  %v1271_v0 = vmul.f32 %v1245_v3, %v1194_v34 }
 0x182   :  { %v4813_v31 = vadd.f32 %v1268_v23, %v1071_v15  ;;  %v4815_v63 = vadd.f32 %v1269_v58, %v1072_v49  ;;  %v1075_v44 = vmul.f32 %v1050_v35, %v981_v59  ;;  %v1272_v6 = vmul.f32 %v1249_v7, %v1194_v34  ;;  %v2202_v15 = vld [vmem:[%s5611_s13 + $0x18] sm:$0xff]  ;;  %v2199_v23 = vld [vmem:[%s5611_s13] sm:$0xff] }
 0x183   :  { %v4817_v61 = vadd.f32 %v1270_v42, %v1073_v16  ;;  %v4819_v27 = vadd.f32 %v1271_v0, %v1074_v24  ;;  %v1076_v37 = vmul.f32 %v1055_v25, %v981_v59  ;;  %v1273_v4 = vmul.f32 %v1253_v54, %v1194_v34  ;;  %v2201_v16 = vld [vmem:[%s5611_s13 + $0x10] sm:$0xff]  ;;  %v2204_v42 = vld [vmem:[%s5611_s13 + $0x28] sm:$0xff]  ;;  %v2206_v24 = vld [vmem:[%s5611_s13 + $0x38] sm:$0xff] }
 0x184   :  { %v4821_v8 = vadd.f32 %v1272_v6, %v1075_v44  ;;  %v1077_v11 = vmul.f32 %v1060_v17, %v981_v59  ;;  %v1274_v10 = vmul.f32 %v1257_v47, %v1194_v34  ;;  %v1062_v55 = vmul.f32 %v4661_v36, %v981_v59  ;;  %v1859_v17 = vld [vmem:[%s5609_s11 + $0x48] sm:$0xff]  ;;  %v2203_v44 = vld [vmem:[%s5611_s13 + $0x20] sm:$0xff]  ;;  %v2205_v6 = vld [vmem:[%s5611_s13 + $0x30] sm:$0xff] }
 0x185   :  { %v1289_v13 = vadd.f32 %v1273_v4, %v1076_v37  ;;  %v1259_v3 = vmul.f32 %v4663_v38, %v1194_v34  ;;  %v1063_v20 = vmul.f32 %v4665_v40, %v981_v59  ;;  %v1260_v26 = vmul.f32 %v4667_v41, %v1194_v34  ;;  %v1861_v47 = vld [vmem:[%s5609_s11 + $0x58] sm:$0xff]  ;;  %v3774_v37 = vld [vmem:[%s5628_s2] sm:$0xff] }
 0x186   :  { %v4827_v35 = vadd.f32 %v1274_v10, %v1077_v11  ;;  %v1064_v2 = vmul.f32 %v4669_v45, %v981_v59  ;;  %v1261_v18 = vmul.f32 %v4671_v46, %v1194_v34  ;;  %v1065_v7 = vmul.f32 %v4673_v50, %v981_v59  ;;  %v1851_v45 = vld [vmem:[%s5609_s11 + $0x8] sm:$0xff]  ;;  %v1853_v46 = vld [vmem:[%s5609_s11 + $0x18] sm:$0xff]  ;;  %v2207_v11 = vld [vmem:[%s5611_s13 + $0x40] sm:$0xff] }
 0x187   :  { %v1275_v14 = vadd.f32 %v1259_v3, %v1062_v55  ;;  %v1276_v12 = vadd.f32 %v1260_v26, %v1063_v20  ;;  %v1262_v29 = vmul.f32 %v4675_v51, %v1194_v34  ;;  %v1066_v36 = vmul.f32 %v4677_v52, %v981_v59  ;;  %v5635_v52 = vld [vmem:[#allocation8_spill] sm:$0xff]  ;;  %v2209_v10 = vld [vmem:[%s5611_s13 + $0x50] sm:$0xff] }
 0x188   :  { %v1277_v32 = vadd.f32 %v1261_v18, %v1064_v2  ;;  %v1263_v38 = vmul.f32 %v4679_v48, %v1194_v34  ;;  %v1067_v40 = vmul.f32 %v4681_v56, %v981_v59  ;;  %v1264_v41 = vmul.f32 %v4683_v57, %v1194_v34  ;;  %v1860_v3 = vld [vmem:[%s5609_s11 + $0x50] sm:$0xff]  ;;  %v1863_v20 = vld [vmem:[%s5609_s11 + $0x68] sm:$0xff]  ;;  %v2214_v18 = vld [vmem:[%s5611_s13 + $0x78] sm:$0xff] }
 0x189   :  { %1553 = vmatmul.mubr.f32.vlgmr.msra.gmra.mrb[0].mxu1 %v1275_v14  ;;  %v1278_v50 = vadd.f32 %v1262_v29, %v1065_v7  ;;  %v1068_v51 = vmul.f32 %v4692_v9, %v981_v59  ;;  %v1265_v25 = vmul.f32 %v5635_v52, %v1194_v34  ;;  %v1069_v48 = vmul.f32 %v5636_v22, %v981_v59  ;;  %v2212_v2 = vld [vmem:[%s5611_s13 + $0x68] sm:$0xff]  ;;  %v2211_v29 = vld [vmem:[%s5611_s13 + $0x60] sm:$0xff]  ;;  %v2217_v22 = vld [vmem:[%s5611_s13 + $0x90] sm:$0xff] }
 0x18a   :  { %3467 = vmatpush1.bf16.msra.mxu1 %v3466_v5  ;;  %v5637_v56 = vmov 0.0   ;;  %v1279_v57 = vadd.f32 %v1263_v38, %v1066_v36  ;;  %v1280_v43 = vadd.f32 %v1264_v41, %v1067_v40  ;;  %v1266_v53 = vmul.f32 %v5638_v21, %v1194_v34  ;;  %v1854_v5 = vld [vmem:[%s5609_s11 + $0x20] sm:$0xff]  ;;  %v3775_v7 = vld [vmem:[%s5628_s2 + $0x8] sm:$0xff]  ;;  %v2213_v36 = vld [vmem:[%s5611_s13 + $0x70] sm:$0xff] }
 0x18b   :  { %1558 = vmatprep.mubr.f32.mxu1 %v5637_v56  ;;  %v1281_v28 = vadd.f32 %v1265_v25, %v1068_v51  ;;  %v1070_v33 = vmul.f32 %v4732_v62, %v981_v59  ;;  %v1267_v39 = vmul.f32 %v4736_v60, %v1194_v34  ;;  %3469 = vmatprep.subr.bf16.mxu1 %v3468_v19  ;;  %v1850_v62 = vld [vmem:[%s5609_s11] sm:$0xff]  ;;  %v1852_v60 = vld [vmem:[%s5609_s11 + $0x10] sm:$0xff]  ;;  %v1855_v59 = vld [vmem:[%s5609_s11 + $0x28] sm:$0xff] }
 0x18c   :  { %v3472_v1 = vpack.c.bf16 %v1853_v46, %v1851_v45  ;;  %v1282_v54 = vadd.f32 %v1266_v53, %v1069_v48  ;;  %v1857_v34 = vld [vmem:[%s5609_s11 + $0x38] sm:$0xff]  ;;  %v1856_v19 = vld [vmem:[%s5609_s11 + $0x30] sm:$0xff]  ;;  %v3474_v49 = vpack.c.bf16 %v1852_v60, %v1850_v62  ;;  %v3494_v4 = vpack.c.bf16 %v2205_v6, %v2203_v44  ;;  %v1862_v38 = vld [vmem:[%s5609_s11 + $0x60] sm:$0xff] }
 0x18d   :  { %1559 = vmatmul.mubr.f32.gmra.mrb[2].mxu1 %v1276_v12  ;;  %v1283_v9 = vadd.f32 %v1267_v39, %v1070_v33  ;;  %v3476_v0 = vpack.c.bf16 %v1857_v34, %v1855_v59  ;;  %v3480_v55 = vpack.c.bf16 %v1861_v47, %v1859_v17  ;;  %v3498_v14 = vpack.c.bf16 %v2209_v10, %v2207_v11  ;;  %v1864_v40 = vld [vmem:[%s5609_s11 + $0x70] sm:$0xff]  ;;  %v2216_v45 = vld [vmem:[%s5611_s13 + $0x88] sm:$0xff]  ;;  %v2218_v46 = vld [vmem:[%s5611_s13 + $0x98] sm:$0xff] }
 0x18e   :  { %1564 = vmatprep.mubr.f32.mxu1 %v5637_v56  ;;  %3471 = vmatpush1.bf16.msra.mxu1 %v3470_v30  ;;  %v2200_v30 = vld [vmem:[%s5611_s13 + $0x8] sm:$0xff]  ;;  %v3500_v41 = vpack.c.bf16 %v2214_v18, %v2212_v2  ;;  %v3502_v51 = vpack.c.bf16 %v2213_v36, %v2211_v29  ;;  %v3486_v52 = vpack.c.bf16 %v1864_v40, %v1862_v38  ;;  %v2215_v25 = vld [vmem:[%s5611_s13 + $0x80] sm:$0xff]  ;;  %v3777_v21 = vld [vmem:[%s5628_s2 + $0x18] sm:$0xff] }
 0x18f   :  { %3473 = vmatprep.subr.bf16.mxu1 %v3472_v1  ;;  %v3488_v58 = vpack.c.bf16 %v2202_v15, %v2200_v30  ;;  %v3504_v48 = vpack.c.bf16 %v2218_v46, %v2216_v45  ;;  %v3506_v53 = vpack.c.bf16 %v2217_v22, %v2215_v25  ;;  %v2219_v33 = vld [vmem:[%s5611_s13 + $0xa0] sm:$0xff]  ;;  %v2221_v39 = vld [vmem:[%s5611_s13 + $0xb0] sm:$0xff]  ;;  %v2224_v1 = vld [vmem:[%s5611_s13 + $0xc8] sm:$0xff] }
 0x190   :  { %v3510_v62 = vpack.c.bf16 %v2221_v39, %v2219_v33  ;;  %v2223_v59 = vld [vmem:[%s5611_s13 + $0xc0] sm:$0xff]  ;;  %v2225_v34 = vld [vmem:[%s5611_s13 + $0xd0] sm:$0xff]  ;;  %v3779_v30 = vld [vmem:[%s5628_s2 + $0x28] sm:$0xff] }
 0x191   :  { %1565 = vmatmul.mubr.f32.gmra.mrb[4].mxu1 %v1277_v32  ;;  %3489 = vmatprep.subr.bf16.mxu0 %v3488_v58  ;;  %v3514_v15 = vpack.c.bf16 %v2225_v34, %v2223_v59  ;;  %v2229_v58 = vld [vmem:[%s5611_s13 + $0xf0] sm:$0xff]  ;;  %v2236_v44 = vld [vmem:[%s5611_s13 + $0x128] sm:$0xff]  ;;  %v2238_v6 = vld [vmem:[%s5611_s13 + $0x138] sm:$0xff] }
 0x192   :  { %1570 = vmatprep.mubr.f32.mxu1 %v5637_v56  ;;  %v3781_v47 = vld [vmem:[%s5628_s2 + $0x38] sm:$0xff]  ;;  %v3782_v10 = vld [vmem:[%s5628_s2 + $0x40] sm:$0xff]  ;;  %v3783_v2 = vld [vmem:[%s5628_s2 + $0x48] sm:$0xff] }
 0x193   :  { %v2242_v11 = vld [vmem:[%s5611_s13 + $0x158] sm:$0xff]  ;;  %v2248_v29 = vld [vmem:[%s5611_s13 + $0x188] sm:$0xff]  ;;  %v2249_v45 = vld [vmem:[%s5611_s13 + $0x190] sm:$0xff] }
 0x194   :  { %v2250_v36 = vld [vmem:[%s5611_s13 + $0x198] sm:$0xff]  ;;  %v2252_v46 = vld [vmem:[%s5611_s13 + $0x1a8] sm:$0xff]  ;;  %v2251_v22 = vld [vmem:[%s5611_s13 + $0x1a0] sm:$0xff] }
 0x195   :  { %1571 = vmatmul.mubr.f32.gmra.mrb[6].mxu1 %v1278_v50  ;;  %v3776_v50 = vld [vmem:[%s5628_s2 + $0x10] sm:$0xff]  ;;  %v3536_v40 = vpack.c.bf16 %v2250_v36, %v2248_v29  ;;  %v3790_v33 = vld [vmem:[%s5631_s20] sm:$0xff]  ;;  %v3791_v39 = vld [vmem:[%s5631_s20 + $0x8] sm:$0xff] }
 0x196   :  { %1576 = vmatprep.mubr.f32.mxu1 %v5637_v56  ;;  %v3797_v59 = vld [vmem:[%s5631_s20 + $0x38] sm:$0xff]  ;;  %v3798_v34 = vld [vmem:[%s5631_s20 + $0x40] sm:$0xff]  ;;  %v2550_v29 = vld [vmem:[%s5613_s15 + $0x90] sm:$0xff] }
 0x197   :  { %v2551_v36 = vld [vmem:[%s5613_s15 + $0x98] sm:$0xff] }
 0x199   :  { %1577 = vmatmul.mubr.f32.gmra.mrb[8].mxu1 %v1279_v57  ;;  %v2220_v57 = vld [vmem:[%s5611_s13 + $0xa8] sm:$0xff] }
 0x19a   :  { %1582 = vmatprep.mubr.f32.mxu1 %v5637_v56 }
 0x19d   :  { %1583 = vmatmul.mubr.f32.gmra.mrb[10].mxu1 %v1280_v43  ;;  %v2222_v43 = vld [vmem:[%s5611_s13 + $0xb8] sm:$0xff] }
 0x19e   :  { %1588 = vmatprep.mubr.f32.mxu1 %v5637_v56 }
 0x1a1   :  { %1589 = vmatmul.mubr.f32.gmra.mrb[12].mxu1 %v1281_v28  ;;  %v3508_v28 = vpack.c.bf16 %v2222_v43, %v2220_v57  ;;  %v3786_v57 = vld [vmem:[%s5628_s2 + $0x60] sm:$0xff] }
 0x1a2   :  { %1594 = vmatprep.mubr.f32.mxu1 %v5637_v56 }
 0x1a5   :  { %1595 = vmatmul.mubr.f32.gmra.mrb[14].mxu1 %v1282_v54  ;;  %v2226_v54 = vld [vmem:[%s5611_s13 + $0xd8] sm:$0xff] }
 0x1a6   :  { %1600 = vmatprep.mubr.f32.mxu1 %v5637_v56  ;;  %v3512_v60 = vpack.c.bf16 %v2226_v54, %v2224_v1  ;;  %v3792_v1 = vld [vmem:[%s5631_s20 + $0x10] sm:$0xff]  ;;  %v3793_v54 = vld [vmem:[%s5631_s20 + $0x18] sm:$0xff] }
 0x1a9   :  { %1601 = vmatmul.mubr.f32.gmra.mrb[16].mxu1 %v1283_v9  ;;  %v3778_v9 = vld [vmem:[%s5628_s2 + $0x20] sm:$0xff] }
 0x1aa   :  { %1606 = vmatprep.mubr.f32.mxu1 %v5637_v56 }
 0x1ad   :  { %1607 = vmatmul.mubr.f32.gmra.mrb[18].mxu1 %v4813_v31  ;;  %v3490_v31 = vpack.c.bf16 %v2201_v16, %v2199_v23  ;;  %v2232_v16 = vld [vmem:[%s5611_s13 + $0x108] sm:$0xff] }
 0x1ae   :  { %1612 = vmatprep.mubr.f32.mxu1 %v5637_v56 }
 0x1af   :  { %3491 = vmatpush1.bf16.msra.mxu0 %v3490_v31  ;;  %v2231_v31 = vld [vmem:[%s5611_s13 + $0x100] sm:$0xff] }
 0x1b1   :  { %1613 = vmatmul.mubr.f32.gmra.mrb[20].mxu1 %v4815_v63  ;;  %v3492_v63 = vpack.c.bf16 %v2206_v24, %v2204_v42  ;;  %v2234_v42 = vld [vmem:[%s5611_s13 + $0x118] sm:$0xff]  ;;  %v3780_v24 = vld [vmem:[%s5628_s2 + $0x30] sm:$0xff] }
 0x1b2   :  { %1618 = vmatprep.mubr.f32.mxu1 %v5637_v56  ;;  %v3520_v17 = vpack.c.bf16 %v2234_v42, %v2232_v16  ;;  %v2256_v16 = vld [vmem:[%s5611_s13 + $0x1c8] sm:$0xff]  ;;  %v2258_v42 = vld [vmem:[%s5611_s13 + $0x1d8] sm:$0xff] }
 0x1b3   :  { %3493 = vmatprep.subr.bf16.mxu0 %v3492_v63  ;;  %v2233_v63 = vld [vmem:[%s5611_s13 + $0x110] sm:$0xff] }
 0x1b4   :  { %3495 = vmatpush1.bf16.msra.mxu0 %v3494_v4  ;;  %v2237_v4 = vld [vmem:[%s5611_s13 + $0x130] sm:$0xff] }
 0x1b5   :  { %1619 = vmatmul.mubr.f32.gmra.mrb[22].mxu1 %v4817_v61  ;;  %v2208_v61 = vld [vmem:[%s5611_s13 + $0x48] sm:$0xff] }
 0x1b6   :  { %1624 = vmatprep.mubr.f32.mxu1 %v5637_v56 }
 0x1b9   :  { %1625 = vmatmul.mubr.f32.gmra.mrb[24].mxu1 %v4819_v27  ;;  %v2210_v27 = vld [vmem:[%s5611_s13 + $0x58] sm:$0xff] }
 0x1ba   :  { %1630 = vmatprep.mubr.f32.mxu1 %v5637_v56  ;;  %v3496_v26 = vpack.c.bf16 %v2210_v27, %v2208_v61  ;;  %v3522_v61 = vpack.c.bf16 %v2233_v63, %v2231_v31  ;;  %v3524_v27 = vpack.c.bf16 %v2238_v6, %v2236_v44  ;;  %v2260_v31 = vld [vmem:[%s5611_s13 + $0x1e8] sm:$0xff]  ;;  %v2262_v63 = vld [vmem:[%s5611_s13 + $0x1f8] sm:$0xff]  ;;  %v2259_v6 = vld [vmem:[%s5611_s13 + $0x1e0] sm:$0xff] }
 0x1bb   :  { %v3548_v44 = vpack.c.bf16 %v2262_v63, %v2260_v31  ;;  %v2556_v63 = vld [vmem:[%s5613_s15 + $0xc0] sm:$0xff] }
 0x1bc   :  { %3497 = vmatprep.subr.bf16.mxu0 %v3496_v26  ;;  %v2244_v26 = vld [vmem:[%s5611_s13 + $0x168] sm:$0xff] }
 0x1bd   :  { %1631 = vmatmul.mubr.f32.gmra.mrb[26].mxu1 %v4821_v8  ;;  %v3478_v8 = vpack.c.bf16 %v1856_v19, %v1854_v5  ;;  %3499 = vmatpush1.bf16.msra.mxu0 %v3498_v14  ;;  %v2228_v5 = vld [vmem:[%s5611_s13 + $0xe8] sm:$0xff]  ;;  %v2230_v19 = vld [vmem:[%s5611_s13 + $0xf8] sm:$0xff]  ;;  %v2243_v14 = vld [vmem:[%s5611_s13 + $0x160] sm:$0xff] }
 0x1be   :  { %1636 = vmatprep.mubr.f32.mxu1 %v5637_v56  ;;  %3501 = vmatprep.subr.bf16.mxu0 %v3500_v41  ;;  %v3516_v23 = vpack.c.bf16 %v2230_v19, %v2228_v5  ;;  %v2247_v41 = vld [vmem:[%s5611_s13 + $0x180] sm:$0xff]  ;;  %v3799_v5 = vld [vmem:[%s5631_s20 + $0x48] sm:$0xff]  ;;  %v3800_v19 = vld [vmem:[%s5631_s20 + $0x50] sm:$0xff] }
 0x1c1   :  { %1637 = vmatmul.mubr.f32.gmra.mrb[28].mxu1 %v1289_v13  ;;  %v1858_v13 = vld [vmem:[%s5609_s11 + $0x40] sm:$0xff]  ;;  %3503 = vmatpush1.bf16.msra.mxu0 %v3502_v51  ;;  %v3785_v51 = vld [vmem:[%s5628_s2 + $0x58] sm:$0xff] }
 0x1c2   :  { %1642 = vmatprep.mubr.f32.mxu1 %v5637_v56  ;;  %v3482_v12 = vpack.c.bf16 %v1860_v3, %v1858_v13  ;;  %3505 = vmatprep.subr.bf16.mxu0 %v3504_v48  ;;  %v2239_v3 = vld [vmem:[%s5611_s13 + $0x140] sm:$0xff]  ;;  %v2253_v48 = vld [vmem:[%s5611_s13 + $0x1b0] sm:$0xff] }
 0x1c3   :  { %v3542_v43 = vpack.c.bf16 %v2253_v48, %v2251_v22 }
 0x1c5   :  { %1643 = vmatmul.mubr.f32.gmra.mrb[30].mxu1 %v4827_v35  ;;  %v1865_v35 = vld [vmem:[%s5609_s11 + $0x78] sm:$0xff]  ;;  %3507 = vmatpush1.bf16.msra.mxu0 %v3506_v53  ;;  %v3788_v53 = vld [vmem:[%s5628_s2 + $0x70] sm:$0xff] }
 0x1c6   :  { %1721 = vmatprep.mubr.f32.mxu1 %v5637_v56  ;;  %v3484_v32 = vpack.c.bf16 %v1865_v35, %v1863_v20  ;;  %3509 = vmatprep.subr.bf16.mxu0 %v3508_v28  ;;  %v2241_v20 = vld [vmem:[%s5611_s13 + $0x150] sm:$0xff]  ;;  %v2246_v35 = vld [vmem:[%s5611_s13 + $0x178] sm:$0xff] }
 0x1c7   :  { %v3530_v18 = vpack.c.bf16 %v2241_v20, %v2239_v3  ;;  %v3789_v28 = vld [vmem:[%s5628_s2 + $0x78] sm:$0xff] }
 0x1c9   :  { %3036 = vmatmul.mubr.msk.f32.vlgmr.msra.gmra.mrb[0].mxu1 %vm156_vm0, %v3774_v37  ;;  %3511 = vmatpush1.bf16.msra.mxu0 %v3510_v62  ;;  %v2235_v37 = vld [vmem:[%s5611_s13 + $0x120] sm:$0xff]  ;;  %v3795_v62 = vld [vmem:[%s5631_s20 + $0x28] sm:$0xff] }
 0x1ca   :  { %3475 = vmatpush1.bf16.msra.mxu1 %v3474_v49  ;;  %1727 = vmatprep.mubr.f32.mxu1 %v5637_v56  ;;  %v2227_v49 = vld [vmem:[%s5611_s13 + $0xe0] sm:$0xff] }
 0x1cb   :  { %3477 = vmatprep.subr.bf16.mxu1 %v3476_v0  ;;  %3513 = vmatprep.subr.bf16.mxu0 %v3512_v60  ;;  %v3518_v0 = vpack.c.bf16 %v2229_v58, %v2227_v49  ;;  %v3796_v60 = vld [vmem:[%s5631_s20 + $0x30] sm:$0xff]  ;;  %v3805_v58 = vld [vmem:[%s5631_s20 + $0x78] sm:$0xff] }
 0x1cc   :  { %v3804_v49 = vld [vmem:[%s5631_s20 + $0x70] sm:$0xff] }
 0x1cd   :  { %3037 = vmatmul.mubr.msk.f32.gmra.mrb[2].mxu1 %vm156_vm0, %v3775_v7  ;;  %3515 = vmatpush1.bf16.msra.mxu0 %v3514_v15  ;;  %v3532_v7 = vpack.c.bf16 %v2246_v35, %v2244_v26  ;;  %v3802_v15 = vld [vmem:[%s5631_s20 + $0x60] sm:$0xff] }
 0x1ce   :  { %1733 = vmatprep.mubr.f32.mxu1 %v5637_v56  ;;  %3479 = vmatpush1.bf16.msra.mxu1 %v3478_v8  ;;  %v2240_v8 = vld [vmem:[%s5611_s13 + $0x148] sm:$0xff] }
 0x1cf   :  { %3481 = vmatprep.subr.bf16.mxu1 %v3480_v55  ;;  %3517 = vmatprep.subr.bf16.mxu0 %v3516_v23  ;;  %v3526_v55 = vpack.c.bf16 %v2237_v4, %v2235_v37  ;;  %v3528_v13 = vpack.c.bf16 %v2242_v11, %v2240_v8  ;;  %v3803_v23 = vld [vmem:[%s5631_s20 + $0x68] sm:$0xff]  ;;  %v2061_v8 = vlaneseq }
 0x1d0   :  { %v2549_v37 = vld [vmem:[%s5613_s15 + $0x88] sm:$0xff] }
 0x1d1   :  { %3038 = vmatmul.mubr.msk.f32.gmra.mrb[4].mxu1 %vm156_vm0, %v3776_v50  ;;  %3519 = vmatpush1.bf16.msra.mxu0 %v3518_v0  ;;  %v2254_v50 = vld [vmem:[%s5611_s13 + $0x1b8] sm:$0xff]  ;;  %v2255_v0 = vld [vmem:[%s5611_s13 + $0x1c0] sm:$0xff]  ;;  %v5270_v11 = vshrl.u32 %v2061_v8, 7 }
 0x1d2   :  { %1739 = vmatprep.mubr.f32.mxu1 %v5637_v56  ;;  %3483 = vmatpush1.bf16.msra.mxu1 %v3482_v12  ;;  %v2245_v12 = vld [vmem:[%s5611_s13 + $0x170] sm:$0xff]  ;;  %v3540_v25 = vpack.c.bf16 %v2254_v50, %v2252_v46 }
 0x1d3   :  { %3485 = vmatprep.subr.bf16.mxu1 %v3484_v32  ;;  %3521 = vmatprep.subr.bf16.mxu0 %v3520_v17  ;;  %v3784_v32 = vld [vmem:[%s5628_s2 + $0x50] sm:$0xff]  ;;  %v3534_v38 = vpack.c.bf16 %v2245_v12, %v2243_v14  ;;  %v2533_v14 = vld [vmem:[%s5613_s15 + $0x8] sm:$0xff] }
 0x1d5   :  { %3039 = vmatmul.mubr.msk.f32.gmra.mrb[6].mxu1 %vm156_vm0, %v3777_v21  ;;  %3523 = vmatpush1.bf16.msra.mxu0 %v3522_v61  ;;  %v3787_v21 = vld [vmem:[%s5628_s2 + $0x68] sm:$0xff] }
 0x1d6   :  { %1745 = vmatprep.mubr.f32.mxu1 %v5637_v56  ;;  %3487 = vmatpush1.bf16.msra.mxu1 %v3486_v52  ;;  %v3538_v52 = vpack.c.bf16 %v2249_v45, %v2247_v41 }
 0x1d7   :  { %3525 = vmatprep.subr.bf16.mxu0 %v3524_v27  ;;  %v2548_v27 = vld [vmem:[%s5613_s15 + $0x80] sm:$0xff] }
 0x1d8   :  { %v3552_v4 = vpack.c.bf16 %v2549_v37, %v2548_v27 }
 0x1d9   :  { %3040 = vmatmul.mubr.msk.f32.gmra.mrb[8].mxu1 %vm156_vm0, %v3778_v9  ;;  %3527 = vmatpush1.bf16.msra.mxu0 %v3526_v55  ;;  %v3794_v9 = vld [vmem:[%s5631_s20 + $0x20] sm:$0xff] }
 0x1da   :  { %1751 = vmatprep.mubr.f32.mxu1 %v5637_v56  ;;  %3529 = vmatprep.subr.bf16.mxu0 %v3528_v13  ;;  %v2059_v55 = vld [vmem:[%s5610_s12] sm:$0x3]  ;;  %v2067_v13 = vsub.s32 1, %v5270_v11 }
 0x1dc   :  { %v5283_v20 = vrot.slane %v2059_v55, %v2067_v13 }
 0x1dd   :  { %3041 = vmatmul.mubr.msk.f32.gmra.mrb[10].mxu1 %vm156_vm0, %v3779_v30  ;;  %3531 = vmatpush1.bf16.msra.mxu0 %v3530_v18  ;;  %v3801_v30 = vld [vmem:[%s5631_s20 + $0x58] sm:$0xff] }
 0x1de   :  { %1757 = vmatprep.mubr.f32.mxu1 %v5637_v56  ;;  %3533 = vmatprep.subr.bf16.mxu0 %v3532_v7  ;;  %v2532_v7 = vld [vmem:[%s5613_s15] sm:$0xff] }
 0x1df   :  { %v3554_v45 = vpack.c.bf16 %v2533_v14, %v2532_v7  ;;  %v2558_v7 = vld [vmem:[%s5613_s15 + $0xd0] sm:$0xff]  ;;  %v2559_v14 = vld [vmem:[%s5613_s15 + $0xd8] sm:$0xff] }
 0x1e1   :  { %3042 = vmatmul.mubr.msk.f32.gmra.mrb[12].mxu1 %vm156_vm0, %v3780_v24  ;;  %3535 = vmatpush1.bf16.msra.mxu0 %v3534_v38  ;;  %v3544_v24 = vpack.c.bf16 %v2258_v42, %v2256_v16 }
 0x1e2   :  { %1763 = vmatprep.mubr.f32.mxu1 %v5637_v56  ;;  %3537 = vmatprep.subr.bf16.mxu0 %v3536_v40 }
 0x1e5   :  { %3043 = vmatmul.mubr.msk.f32.gmra.mrb[14].mxu1 %vm156_vm0, %v3781_v47  ;;  %3539 = vmatpush1.bf16.msra.mxu0 %v3538_v52  ;;  %v2261_v47 = vld [vmem:[%s5611_s13 + $0x1f0] sm:$0xff] }
 0x1e6   :  { %1769 = vmatprep.mubr.f32.mxu1 %v5637_v56  ;;  %3541 = vmatprep.subr.bf16.mxu0 %v3540_v25  ;;  %v3550_v61 = vpack.c.bf16 %v2261_v47, %v2259_v6  ;;  %v2534_v52 = vld [vmem:[%s5613_s15 + $0x10] sm:$0xff]  ;;  %v2535_v25 = vld [vmem:[%s5613_s15 + $0x18] sm:$0xff] }
 0x1e9   :  { %3044 = vmatmul.mubr.msk.f32.gmra.mrb[16].mxu1 %vm156_vm0, %v3782_v10  ;;  %3543 = vmatpush1.bf16.msra.mxu0 %v3542_v43  ;;  %v2063_v10 = vsub.s32 0, %v5270_v11  ;;  %v2553_v43 = vld [vmem:[%s5613_s15 + $0xa8] sm:$0xff] }
 0x1ea   :  { %1775 = vmatprep.mubr.f32.mxu1 %v5637_v56  ;;  %3545 = vmatprep.subr.bf16.mxu0 %v3544_v24 }
 0x1eb   :  { %v5279_v3 = vrot.slane %v2059_v55, %v2063_v10 }
 0x1ed   :  { %3045 = vmatmul.mubr.msk.f32.gmra.mrb[18].mxu1 %vm156_vm0, %v3783_v2 }
 0x1ee   :  { %1781 = vmatprep.mubr.f32.mxu1 %v5637_v56 }
 0x1f1   :  { %3046 = vmatmul.mubr.msk.f32.gmra.mrb[20].mxu1 %vm156_vm0, %v3784_v32 }
 0x1f2   :  { %1787 = vmatprep.mubr.f32.mxu1 %v5637_v56 }
 0x1f5   :  { %3047 = vmatmul.mubr.msk.f32.gmra.mrb[22].mxu1 %vm156_vm0, %v3785_v51  ;;  %v3556_v51 = vpack.c.bf16 %v2551_v36, %v2550_v29 }
 0x1f6   :  { %1793 = vmatprep.mubr.f32.mxu1 %v5637_v56 }
 0x1f9   :  { %3048 = vmatmul.mubr.msk.f32.gmra.mrb[24].mxu1 %vm156_vm0, %v3786_v57  ;;  %v2552_v57 = vld [vmem:[%s5613_s15 + $0xa0] sm:$0xff] }
 0x1fa   :  { %1799 = vmatprep.mubr.f32.mxu1 %v5637_v56 }
 0x1fd   :  { %3049 = vmatmul.mubr.msk.f32.gmra.mrb[26].mxu1 %vm156_vm0, %v3787_v21 }
 0x1fe   :  { %1805 = vmatprep.mubr.f32.mxu1 %v5637_v56 }
 0x201   :  { %3050 = vmatmul.mubr.msk.f32.gmra.mrb[28].mxu1 %vm156_vm0, %v3788_v53 }
 0x202   :  { %1811 = vmatprep.mubr.f32.mxu1 %v5637_v56 }
 0x205   :  { %3051 = vmatmul.mubr.msk.f32.gmra.mrb[30].mxu1 %vm156_vm0, %v3789_v28 }
 0x206   :  { %1930 = vmatprep.mubr.f32.mxu1 %v5637_v56 }
 0x209   :  { %3052 = vmatmul.mubr.msk.f32.vlgmr.msra.gmra.mrb[0].mxu1 %vm552_vm2, %v3790_v33 }
 0x20a   :  { %1936 = vmatprep.mubr.f32.mxu1 %v5637_v56 }
 0x20d   :  { %3053 = vmatmul.mubr.msk.f32.gmra.mrb[2].mxu1 %vm552_vm2, %v3791_v39  ;;  %v3558_v39 = vpack.c.bf16 %v2535_v25, %v2534_v52  ;;  %v2560_v25 = vld [vmem:[%s5613_s15 + $0xe0] sm:$0xff] }
 0x20e   :  { %1942 = vmatprep.mubr.f32.mxu1 %v5637_v56 }
 0x211   :  { %3054 = vmatmul.mubr.msk.f32.gmra.mrb[4].mxu1 %vm552_vm2, %v3792_v1 }
 0x212   :  { %1948 = vmatprep.mubr.f32.mxu1 %v5637_v56 }
 0x215   :  { %3055 = vmatmul.mubr.msk.f32.gmra.mrb[6].mxu1 %vm552_vm2, %v3793_v54 }
 0x216   :  { %1954 = vmatprep.mubr.f32.mxu1 %v5637_v56 }
 0x219   :  { %3056 = vmatmul.mubr.msk.f32.gmra.mrb[8].mxu1 %vm552_vm2, %v3794_v9  ;;  %v3560_v9 = vpack.c.bf16 %v2553_v43, %v2552_v57 }
 0x21a   :  { %1960 = vmatprep.mubr.f32.mxu1 %v5637_v56 }
 0x21d   :  { %3057 = vmatmul.mubr.msk.f32.gmra.mrb[10].mxu1 %vm552_vm2, %v3795_v62  ;;  %v2536_v62 = vld [vmem:[%s5613_s15 + $0x20] sm:$0xff] }
 0x21e   :  { %1966 = vmatprep.mubr.f32.mxu1 %v5637_v56 }
 0x221   :  { %3058 = vmatmul.mubr.msk.f32.gmra.mrb[12].mxu1 %vm552_vm2, %v3796_v60  ;;  %v2537_v60 = vld [vmem:[%s5613_s15 + $0x28] sm:$0xff] }
 0x222   :  { %1972 = vmatprep.mubr.f32.mxu1 %v5637_v56 }
 0x225   :  { %3059 = vmatmul.mubr.msk.f32.gmra.mrb[14].mxu1 %vm552_vm2, %v3797_v59 }
 0x226   :  { %1978 = vmatprep.mubr.f32.mxu1 %v5637_v56 }
 0x229   :  { %3060 = vmatmul.mubr.msk.f32.gmra.mrb[16].mxu1 %vm552_vm2, %v3798_v34 }
 0x22a   :  { %1984 = vmatprep.mubr.f32.mxu1 %v5637_v56 }
 0x22d   :  { %3061 = vmatmul.mubr.msk.f32.gmra.mrb[18].mxu1 %vm552_vm2, %v3799_v5  ;;  %v2554_v5 = vld [vmem:[%s5613_s15 + $0xb0] sm:$0xff] }
 0x22e   :  { %1990 = vmatprep.mubr.f32.mxu1 %v5637_v56 }
 0x231   :  { %3062 = vmatmul.mubr.msk.f32.gmra.mrb[20].mxu1 %vm552_vm2, %v3800_v19  ;;  %v2555_v19 = vld [vmem:[%s5613_s15 + $0xb8] sm:$0xff] }
 0x232   :  { %1996 = vmatprep.mubr.f32.mxu1 %v5637_v56  ;;  %v3564_v24 = vpack.c.bf16 %v2555_v19, %v2554_v5 }
 0x235   :  { %3063 = vmatmul.mubr.msk.f32.gmra.mrb[22].mxu1 %vm552_vm2, %v3801_v30 }
 0x236   :  { %2002 = vmatprep.mubr.f32.mxu1 %v5637_v56 }
 0x239   :  { %3064 = vmatmul.mubr.msk.f32.gmra.mrb[24].mxu1 %vm552_vm2, %v3802_v15 }
 0x23a   :  { %2008 = vmatprep.mubr.f32.mxu1 %v5637_v56 }
 0x23d   :  { %3065 = vmatmul.mubr.msk.f32.gmra.mrb[26].mxu1 %vm552_vm2, %v3803_v23 }
 0x23e   :  { %2014 = vmatprep.mubr.f32.mxu1 %v5637_v56 }
 0x241   :  { %3066 = vmatmul.mubr.msk.f32.gmra.mrb[28].mxu1 %vm552_vm2, %v3804_v49 }
 0x242   :  { %2020 = vmatprep.mubr.f32.mxu1 %v5637_v56  ;;  %v2257_v56 = vld [vmem:[%s5611_s13 + $0x1d0] sm:$0xff] }
 0x243   :  { %v3546_v17 = vpack.c.bf16 %v2257_v56, %v2255_v0  ;;  %v2538_v0 = vld [vmem:[%s5613_s15 + $0x30] sm:$0xff]  ;;  %v2539_v56 = vld [vmem:[%s5613_s15 + $0x38] sm:$0xff] }
 0x244   :  { %v3566_v37 = vpack.c.bf16 %v2539_v56, %v2538_v0 }
 0x245   :  { %3067 = vmatmul.mubr.msk.f32.gmra.mrb[30].mxu1 %vm552_vm2, %v3805_v58  ;;  %3547 = vmatpush1.bf16.msra.mxu0 %v3546_v17  ;;  %v3562_v58 = vpack.c.bf16 %v2537_v60, %v2536_v62 }
 0x246   :  { %3549 = vmatprep.subr.bf16.mxu0 %v3548_v44  ;;  %v2557_v44 = vld [vmem:[%s5613_s15 + $0xc8] sm:$0xff] }
 0x247   :  { %v3568_v55 = vpack.c.bf16 %v2557_v44, %v2556_v63 }
 0x249   :  { %3551 = vmatpush1.bf16.msra.mxu0 %v3550_v61 }
 0x24a   :  { %3553 = vmatprep.subr.bf16.mxu0 %v3552_v4 }
 0x2dc   :  { %v1932_v26 = vpop.f32.mrb[0].mxu1 }
 0x2dd   :  { %v2071_v35 = vadd.f32 %v5279_v3, %v1932_v26  ;;  %v1934_v2 = vpop.f32.mrb[1].mxu1  ;;  %v2540_v26 = vld [vmem:[%s5613_s15 + $0x40] sm:$0xff] }
 0x2de   :  { %v2072_v18 = vadd.f32 %v5283_v20, %v1934_v2 }
 0x2df   :  { %v2135_v12 = vmul.f32 0.2, %v2071_v35  ;;  %vm2103_vm0 = vcmp.gt.f32.partialorder %v2071_v35, 0.0 }
 0x2e0   :  { %v2136_v32 = vmul.f32 0.2, %v2072_v18  ;;  %v1938_v38 = vpop.f32.mrb[2].mxu1  ;;  %vm2104_vm2 = vcmp.gt.f32.partialorder %v2072_v18, 0.0 }
 0x2e1   :  { %v2073_v40 = vadd.f32 %v5279_v3, %v1938_v38  ;;  %v1940_v41 = vpop.f32.mrb[3].mxu1  ;;  %v2167_v22 = vsel %vm2103_vm0, %v2071_v35, %v2135_v12  ;;  %v2541_v35 = vld [vmem:[%s5613_s15 + $0x48] sm:$0xff] }
 0x2e2   :  { %v2074_v46 = vadd.f32 %v5283_v20, %v1940_v41  ;;  %v2168_v50 = vsel %vm2104_vm2, %v2072_v18, %v2136_v32  ;;  %v3570_v38 = vpack.c.bf16 %v2541_v35, %v2540_v26 }
 0x2e3   :  { %v2137_v48 = vmul.f32 0.2, %v2073_v40  ;;  %2339 = vmatprep.mubr.f32.mxu0 %v2168_v50  ;;  %vm2105_vm6 = vcmp.gt.f32.partialorder %v2073_v40, 0.0  ;;  %v2543_v50 = vld [vmem:[%s5613_s15 + $0x58] sm:$0xff] }
 0x2e4   :  { %v2138_v21 = vmul.f32 0.2, %v2074_v46  ;;  %v1944_v53 = vpop.f32.mrb[4].mxu1  ;;  %2340 = vmatmul.mubr.f32.vlgmr.msra.gmra.mrb[16].mxu0 %v2167_v22  ;;  %vm2106_vm5 = vcmp.gt.f32.partialorder %v2074_v46, 0.0  ;;  %v2561_v22 = vld [vmem:[%s5613_s15 + $0xe8] sm:$0xff] }
 0x2e5   :  { %v2075_v28 = vadd.f32 %v5279_v3, %v1944_v53  ;;  %v1946_v33 = vpop.f32.mrb[5].mxu1  ;;  %3555 = vmatpush3.bf16.msra.mxu0 %v3554_v45  ;;  %v2169_v34 = vsel %vm2105_vm6, %v2073_v40, %v2137_v48  ;;  %v3572_v45 = vpack.c.bf16 %v2559_v14, %v2558_v7 }
 0x2e6   :  { %v2076_v1 = vadd.f32 %v5283_v20, %v1946_v33  ;;  %v2170_v54 = vsel %vm2106_vm5, %v2074_v46, %v2138_v21  ;;  %3557 = vmatprep.subr.bf16.mxu0 %v3556_v51  ;;  %v2542_v46 = vld [vmem:[%s5613_s15 + $0x50] sm:$0xff] }
 0x2e7   :  { %v2139_v59 = vmul.f32 0.2, %v2075_v28  ;;  %2345 = vmatprep.mubr.f32.mxu0 %v2170_v54  ;;  %vm2107_vm8 = vcmp.gt.f32.partialorder %v2075_v28, 0.0  ;;  %v3574_v53 = vpack.c.bf16 %v2543_v50, %v2542_v46  ;;  %v2545_v54 = vld [vmem:[%s5613_s15 + $0x68] sm:$0xff] }
 0x2e8   :  { %v2140_v30 = vmul.f32 0.2, %v2076_v1  ;;  %v1950_v15 = vpop.f32.mrb[6].mxu1  ;;  %2346 = vmatmul.mubr.f32.gmra.mrb[18].mxu0 %v2169_v34  ;;  %vm2108_vm7 = vcmp.gt.f32.partialorder %v2076_v1, 0.0 }
 0x2e9   :  { %v2077_v23 = vadd.f32 %v5279_v3, %v1950_v15  ;;  %v1952_v49 = vpop.f32.mrb[7].mxu1  ;;  %3559 = vmatpush3.bf16.msra.mxu0 %v3558_v39  ;;  %v2171_v31 = vsel %vm2107_vm8, %v2075_v28, %v2139_v59  ;;  %v3576_v39 = vpack.c.bf16 %v2561_v22, %v2560_v25 }
 0x2ea   :  { %v2078_v16 = vadd.f32 %v5283_v20, %v1952_v49  ;;  %v2172_v42 = vsel %vm2108_vm7, %v2076_v1, %v2140_v30  ;;  %3561 = vmatprep.subr.bf16.mxu0 %v3560_v9  ;;  %v2544_v1 = vld [vmem:[%s5613_s15 + $0x60] sm:$0xff] }
 0x2eb   :  { %v2141_v17 = vmul.f32 0.2, %v2077_v23  ;;  %2351 = vmatprep.mubr.f32.mxu0 %v2172_v42  ;;  %vm2109_vm10 = vcmp.gt.f32.partialorder %v2077_v23, 0.0  ;;  %v3578_v19 = vpack.c.bf16 %v2545_v54, %v2544_v1 }
 0x2ec   :  { %v2142_v6 = vmul.f32 0.2, %v2078_v16  ;;  %v1956_v47 = vpop.f32.mrb[8].mxu1  ;;  %2352 = vmatmul.mubr.f32.gmra.mrb[20].mxu0 %v2171_v31  ;;  %vm2110_vm9 = vcmp.gt.f32.partialorder %v2078_v16, 0.0 }
 0x2ed   :  { %v2079_v61 = vadd.f32 %v5279_v3, %v1956_v47  ;;  %v1958_v27 = vpop.f32.mrb[9].mxu1  ;;  %3563 = vmatpush3.bf16.msra.mxu0 %v3562_v58  ;;  %v2173_v18 = vsel %vm2109_vm10, %v2077_v23, %v2141_v17 }
 0x2ee   :  { %v2080_v4 = vadd.f32 %v5283_v20, %v1958_v27  ;;  %v2174_v8 = vsel %vm2110_vm9, %v2078_v16, %v2142_v6  ;;  %3565 = vmatprep.subr.bf16.mxu0 %v3564_v24 }
 0x2ef   :  { %v2143_v2 = vmul.f32 0.2, %v2079_v61  ;;  %2357 = vmatprep.mubr.f32.mxu0 %v2174_v8  ;;  %vm2111_vm12 = vcmp.gt.f32.partialorder %v2079_v61, 0.0 }
 0x2f0   :  { %v2144_v12 = vmul.f32 0.2, %v2080_v4  ;;  %v1962_v29 = vpop.f32.mrb[10].mxu1  ;;  %2358 = vmatmul.mubr.f32.gmra.mrb[22].mxu0 %v2173_v18  ;;  %vm2112_vm11 = vcmp.gt.f32.partialorder %v2080_v4, 0.0 }
 0x2f1   :  { %v2081_v36 = vadd.f32 %v5279_v3, %v1962_v29  ;;  %v1964_v32 = vpop.f32.mrb[11].mxu1  ;;  %3567 = vmatpush3.bf16.msra.mxu0 %v3566_v37  ;;  %v2175_v52 = vsel %vm2111_vm12, %v2079_v61, %v2143_v2 }
 0x2f2   :  { %v2082_v40 = vadd.f32 %v5283_v20, %v1964_v32  ;;  %v2176_v41 = vsel %vm2112_vm11, %v2080_v4, %v2144_v12  ;;  %3569 = vmatprep.subr.bf16.mxu0 %v3568_v55 }
 0x2f3   :  { %v2145_v51 = vmul.f32 0.2, %v2081_v36  ;;  %2363 = vmatprep.mubr.f32.mxu0 %v2176_v41  ;;  %vm2113_vm14 = vcmp.gt.f32.partialorder %v2081_v36, 0.0 }
 0x2f4   :  { %v2146_v48 = vmul.f32 0.2, %v2082_v40  ;;  %v1968_v57 = vpop.f32.mrb[12].mxu1  ;;  %2364 = vmatmul.mubr.f32.gmra.mrb[24].mxu0 %v2175_v52  ;;  %vm2114_vm13 = vcmp.gt.f32.partialorder %v2082_v40, 0.0 }
 0x2f5   :  { %v2083_v43 = vadd.f32 %v5279_v3, %v1968_v57  ;;  %v1970_v21 = vpop.f32.mrb[13].mxu1  ;;  %3571 = vmatpush3.bf16.msra.mxu0 %v3570_v38  ;;  %v2177_v62 = vsel %vm2113_vm14, %v2081_v36, %v2145_v51 }
 0x2f6   :  { %v2084_v28 = vadd.f32 %v5283_v20, %v1970_v21  ;;  %v2178_v33 = vsel %vm2114_vm13, %v2082_v40, %v2146_v48  ;;  %3573 = vmatprep.subr.bf16.mxu0 %v3572_v45 }
 0x2f7   :  { %v2147_v9 = vmul.f32 0.2, %v2083_v43  ;;  %2369 = vmatprep.mubr.f32.mxu0 %v2178_v33  ;;  %vm2115_vm1 = vcmp.gt.f32.partialorder %v2083_v43, 0.0 }
 0x2f8   :  { %v2148_v60 = vmul.f32 0.2, %v2084_v28  ;;  %v1974_v59 = vpop.f32.mrb[14].mxu1  ;;  %2370 = vmatmul.mubr.f32.gmra.mrb[26].mxu0 %v2177_v62  ;;  %vm2116_vm15 = vcmp.gt.f32.partialorder %v2084_v28, 0.0 }
 0x2f9   :  { %v2085_v34 = vadd.f32 %v5279_v3, %v1974_v59  ;;  %v1976_v5 = vpop.f32.mrb[15].mxu1  ;;  %3575 = vmatpush3.bf16.msra.mxu0 %v3574_v53  ;;  %v2179_v49 = vsel %vm2115_vm1, %v2083_v43, %v2147_v9 }
 0x2fa   :  { %v2086_v30 = vadd.f32 %v5283_v20, %v1976_v5  ;;  %v2180_v15 = vsel %vm2116_vm15, %v2084_v28, %v2148_v60  ;;  %3577 = vmatprep.subr.bf16.mxu0 %v3576_v39 }
 0x2fb   :  { %v2149_v23 = vmul.f32 0.2, %v2085_v34  ;;  %2375 = vmatprep.mubr.f32.mxu0 %v2180_v15  ;;  %vm2117_vm4 = vcmp.gt.f32.partialorder %v2085_v34, 0.0 }
 0x2fc   :  { %v2150_v58 = vmul.f32 0.2, %v2086_v30  ;;  %v1980_v16 = vpop.f32.mrb[16].mxu1  ;;  %2376 = vmatmul.mubr.f32.gmra.mrb[28].mxu0 %v2179_v49  ;;  %vm2118_vm3 = vcmp.gt.f32.partialorder %v2086_v30, 0.0 }
 0x2fd   :  { %v2087_v42 = vadd.f32 %v5279_v3, %v1980_v16  ;;  %v1982_v24 = vpop.f32.mrb[17].mxu1  ;;  %3579 = vmatpush3.bf16.msra.mxu0 %v3578_v19  ;;  %v2181_v31 = vsel %vm2117_vm4, %v2085_v34, %v2149_v23 }
 0x2fe   :  { %v2088_v0 = vadd.f32 %v5283_v20, %v1982_v24  ;;  %v2182_v56 = vsel %vm2118_vm3, %v2086_v30, %v2150_v58 }
 0x2ff   :  { %v2151_v17 = vmul.f32 0.2, %v2087_v42  ;;  %2381 = vmatprep.mubr.f32.mxu0 %v2182_v56  ;;  %vm2119_vm2 = vcmp.gt.f32.partialorder %v2087_v42, 0.0 }
 0x300   :  { %v2152_v63 = vmul.f32 0.2, %v2088_v0  ;;  %v1986_v44 = vpop.f32.mrb[18].mxu1  ;;  %2382 = vmatmul.mubr.f32.gmra.mrb[30].mxu0 %v2181_v31  ;;  %vm2120_vm0 = vcmp.gt.f32.partialorder %v2088_v0, 0.0 }
 0x301   :  { %v2089_v6 = vadd.f32 %v5279_v3, %v1986_v44  ;;  %v1988_v47 = vpop.f32.mrb[19].mxu1  ;;  %v2183_v4 = vsel %vm2119_vm2, %v2087_v42, %v2151_v17 }
 0x302   :  { %v2090_v61 = vadd.f32 %v5283_v20, %v1988_v47  ;;  %v2184_v27 = vsel %vm2120_vm0, %v2088_v0, %v2152_v63  ;;  %v2562_v63 = vld [vmem:[%s5613_s15 + $0xf0] sm:$0xff] }
 0x303   :  { %v2153_v37 = vmul.f32 0.2, %v2089_v6  ;;  %2387 = vmatprep.mubr.f32.mxu0 %v2184_v27  ;;  %vm2121_vm6 = vcmp.gt.f32.partialorder %v2089_v6, 0.0  ;;  %v2765_v27 = vld [vmem:[%s5615_s17 + $0x8] sm:$0xff] }
 0x304   :  { %v2154_v8 = vmul.f32 0.2, %v2090_v61  ;;  %v1992_v55 = vpop.f32.mrb[20].mxu1  ;;  %2388 = vmatmul.mubr.f32.gmra.mrb[32].mxu0 %v2183_v4  ;;  %vm2122_vm5 = vcmp.gt.f32.partialorder %v2090_v61, 0.0 }
 0x305   :  { %v2091_v26 = vadd.f32 %v5279_v3, %v1992_v55  ;;  %v1994_v35 = vpop.f32.mrb[21].mxu1  ;;  %v2185_v14 = vsel %vm2121_vm6, %v2089_v6, %v2153_v37  ;;  %v2547_v6 = vld [vmem:[%s5613_s15 + $0x78] sm:$0xff]  ;;  %v2766_v37 = vld [vmem:[%s5615_s17 + $0x10] sm:$0xff] }
 0x306   :  { %v2092_v2 = vadd.f32 %v5283_v20, %v1994_v35  ;;  %v2186_v18 = vsel %vm2122_vm5, %v2090_v61, %v2154_v8  ;;  %v2764_v61 = vld [vmem:[%s5615_s17] sm:$0xff]  ;;  %v2767_v8 = vld [vmem:[%s5615_s17 + $0x18] sm:$0xff]  ;;  %v2769_v35 = vld [vmem:[%s5615_s17 + $0x28] sm:$0xff] }
 0x307   :  { %v2155_v7 = vmul.f32 0.2, %v2091_v26  ;;  %2393 = vmatprep.mubr.f32.mxu0 %v2186_v18  ;;  %vm2123_vm8 = vcmp.gt.f32.partialorder %v2091_v26, 0.0  ;;  %v3584_v4 = vpack.c.bf16 %v2765_v27, %v2764_v61  ;;  %v3588_v55 = vpack.c.bf16 %v2767_v8, %v2766_v37  ;;  %v2770_v18 = vld [vmem:[%s5615_s17 + $0x30] sm:$0xff] }
 0x308   :  { %v2156_v12 = vmul.f32 0.2, %v2092_v2  ;;  %v1998_v29 = vpop.f32.mrb[22].mxu1  ;;  %2394 = vmatmul.mubr.f32.gmra.mrb[34].mxu0 %v2185_v14  ;;  %vm2124_vm7 = vcmp.gt.f32.partialorder %v2092_v2, 0.0 }
 0x309   :  { %v2093_v36 = vadd.f32 %v5279_v3, %v1998_v29  ;;  %v2000_v32 = vpop.f32.mrb[23].mxu1  ;;  %v2187_v45 = vsel %vm2123_vm8, %v2091_v26, %v2155_v7  ;;  %3616 = vmatprep.subr.bf16.mxu1 %v3584_v4  ;;  %v2768_v26 = vld [vmem:[%s5615_s17 + $0x20] sm:$0xff]  ;;  %v2771_v7 = vld [vmem:[%s5615_s17 + $0x38] sm:$0xff]  ;;  %v2773_v29 = vld [vmem:[%s5615_s17 + $0x48] sm:$0xff] }
 0x30a   :  { %v2094_v38 = vadd.f32 %v5283_v20, %v2000_v32  ;;  %v2188_v40 = vsel %vm2124_vm7, %v2092_v2, %v2156_v12  ;;  %3624 = vmatpush3.bf16.msra.mxu1 %v3584_v4  ;;  %v5425_v2 = vpack.c.bf16 %v2769_v35, %v2768_v26  ;;  %v5434_v14 = vpack.c.bf16 %v2771_v7, %v2770_v18  ;;  %v2772_v12 = vld [vmem:[%s5615_s17 + $0x40] sm:$0xff] }
 0x30b   :  { %v2157_v41 = vmul.f32 0.2, %v2093_v36  ;;  %2399 = vmatprep.mubr.f32.mxu0 %v2188_v40  ;;  %vm2125_vm10 = vcmp.gt.f32.partialorder %v2093_v36, 0.0  ;;  %3617 = vmatprep.subr.bf16.mxu1 %v3588_v55  ;;  %v2263_v32 = vld [vmem:[%s5612_s14] sm:$0x3] }
 0x30c   :  { %v2158_v46 = vmul.f32 0.2, %v2094_v38  ;;  %v2004_v50 = vpop.f32.mrb[24].mxu1  ;;  %2400 = vmatmul.mubr.f32.gmra.mrb[36].mxu0 %v2187_v45  ;;  %vm2126_vm9 = vcmp.gt.f32.partialorder %v2094_v38, 0.0  ;;  %v5458_v40 = vrot.slane %v2263_v32, %v2067_v13 }
 0x30d   :  { %v2095_v51 = vadd.f32 %v5279_v3, %v2004_v50  ;;  %v2006_v52 = vpop.f32.mrb[25].mxu1  ;;  %v2189_v57 = vsel %vm2125_vm10, %v2093_v36, %v2157_v41  ;;  %v5444_v36 = vpack.c.bf16 %v2773_v29, %v2772_v12 }
 0x30e   :  { %v2096_v25 = vadd.f32 %v5283_v20, %v2006_v52  ;;  %v2190_v22 = vsel %vm2126_vm9, %v2094_v38, %v2158_v46  ;;  %3625 = vmatpush3.bf16.msra.mxu1 %v3588_v55  ;;  %v5454_v38 = vrot.slane %v2263_v32, %v2063_v10 }
 0x30f   :  { %v2159_v48 = vmul.f32 0.2, %v2095_v51  ;;  %2405 = vmatprep.mubr.f32.mxu0 %v2190_v22  ;;  %vm2127_vm12 = vcmp.gt.f32.partialorder %v2095_v51, 0.0  ;;  %3618 = vmatprep.subr.bf16.mxu1 %v5425_v2 }
 0x310   :  { %v2160_v43 = vmul.f32 0.2, %v2096_v25  ;;  %v2010_v21 = vpop.f32.mrb[26].mxu1  ;;  %2406 = vmatmul.mubr.f32.gmra.mrb[38].mxu0 %v2189_v57  ;;  %vm2128_vm11 = vcmp.gt.f32.partialorder %v2096_v25, 0.0 }
 0x311   :  { %v2097_v53 = vadd.f32 %v5279_v3, %v2010_v21  ;;  %v2012_v28 = vpop.f32.mrb[27].mxu1  ;;  %v2191_v54 = vsel %vm2127_vm12, %v2095_v51, %v2159_v48 }
 0x312   :  { %v2098_v33 = vadd.f32 %v5283_v20, %v2012_v28  ;;  %v2192_v39 = vsel %vm2128_vm11, %v2096_v25, %v2160_v43  ;;  %3626 = vmatpush3.bf16.msra.mxu1 %v5425_v2 }
 0x313   :  { %v2161_v1 = vmul.f32 0.2, %v2097_v53  ;;  %2411 = vmatprep.mubr.f32.mxu0 %v2192_v39  ;;  %vm2129_vm14 = vcmp.gt.f32.partialorder %v2097_v53, 0.0  ;;  %3619 = vmatprep.subr.bf16.mxu1 %v5434_v14 }
 0x314   :  { %v2162_v9 = vmul.f32 0.2, %v2098_v33  ;;  %v2016_v62 = vpop.f32.mrb[28].mxu1  ;;  %2412 = vmatmul.mubr.f32.gmra.mrb[40].mxu0 %v2191_v54  ;;  %vm2130_vm13 = vcmp.gt.f32.partialorder %v2098_v33, 0.0 }
 0x315   :  { %v2099_v60 = vadd.f32 %v5279_v3, %v2016_v62  ;;  %v2018_v59 = vpop.f32.mrb[29].mxu1  ;;  %v2193_v30 = vsel %vm2129_vm14, %v2097_v53, %v2161_v1 }
 0x316   :  { %v2100_v34 = vadd.f32 %v5283_v20, %v2018_v59  ;;  %v2194_v5 = vsel %vm2130_vm13, %v2098_v33, %v2162_v9  ;;  %3627 = vmatpush3.bf16.msra.mxu1 %v5434_v14 }
 0x317   :  { %v2163_v19 = vmul.f32 0.2, %v2099_v60  ;;  %2417 = vmatprep.mubr.f32.mxu0 %v2194_v5  ;;  %vm2131_vm1 = vcmp.gt.f32.partialorder %v2099_v60, 0.0  ;;  %3620 = vmatprep.subr.bf16.mxu1 %v5444_v36 }
 0x318   :  { %v2164_v15 = vmul.f32 0.2, %v2100_v34  ;;  %v2022_v23 = vpop.f32.mrb[30].mxu1  ;;  %2418 = vmatmul.mubr.f32.gmra.mrb[42].mxu0 %v2193_v30  ;;  %vm2132_vm15 = vcmp.gt.f32.partialorder %v2100_v34, 0.0 }
 0x319   :  { %v2101_v49 = vadd.f32 %v5279_v3, %v2022_v23  ;;  %v2024_v58 = vpop.f32.mrb[31].mxu1  ;;  %v2195_v0 = vsel %vm2131_vm1, %v2099_v60, %v2163_v19  ;;  %v2563_v3 = vld [vmem:[%s5613_s15 + $0xf8] sm:$0xff] }
 0x31a   :  { %v2102_v16 = vadd.f32 %v5283_v20, %v2024_v58  ;;  %v2196_v42 = vsel %vm2132_vm15, %v2100_v34, %v2164_v15  ;;  %v2546_v20 = vld [vmem:[%s5613_s15 + $0x70] sm:$0xff]  ;;  %v3580_v44 = vpack.c.bf16 %v2563_v3, %v2562_v63  ;;  %3628 = vmatpush3.bf16.msra.mxu1 %v5444_v36 }
 0x31b   :  { %v2165_v24 = vmul.f32 0.2, %v2101_v49  ;;  %2423 = vmatprep.mubr.f32.mxu0 %v2196_v42  ;;  %vm2133_vm4 = vcmp.gt.f32.partialorder %v2101_v49, 0.0  ;;  %v3582_v47 = vpack.c.bf16 %v2547_v6, %v2546_v20 }
 0x31c   :  { %v2166_v56 = vmul.f32 0.2, %v2102_v16  ;;  %2424 = vmatmul.mubr.f32.gmra.mrb[44].mxu0 %v2195_v0  ;;  %vm2134_vm3 = vcmp.gt.f32.partialorder %v2102_v16, 0.0  ;;  %3581 = vmatprep.subr.bf16.mxu0 %v3580_v44 }
 0x31d   :  { %v2197_v31 = vsel %vm2133_vm4, %v2101_v49, %v2165_v24  ;;  %3583 = vmatpush3.bf16.msra.mxu0 %v3582_v47 }
 0x31e   :  { %v2198_v17 = vsel %vm2134_vm3, %v2102_v16, %v2166_v56  ;;  %3585 = vmatprep.subr.bf16.mxu0 %v3584_v4 }
 0x31f   :  { %2429 = vmatprep.mubr.f32.mxu0 %v2198_v17 }
 0x320   :  { %2430 = vmatmul.mubr.f32.gmra.mrb[46].mxu0 %v2197_v31 }
 0x3b7   :  { %v2341_v41 = vpop.f32.mrb[16].mxu0 }
 0x3b8   :  { %v2342_v45 = vadd.f32 %v2341_v41, %v5454_v38  ;;  %v2343_v46 = vpop.f32.mrb[17].mxu0 }
 0x3b9   :  { %v2344_v50 = vadd.f32 %v2343_v46, %v5458_v40 }
 0x3ba   :  { %v2468_v51 = vmul.f32 0.2, %v2342_v45  ;;  %vm2436_vm0 = vcmp.gt.f32.partialorder %v2342_v45, 0.0 }
 0x3bb   :  { %v2469_v52 = vmul.f32 0.2, %v2344_v50  ;;  %v2347_v25 = vpop.f32.mrb[18].mxu0  ;;  %vm2437_vm2 = vcmp.gt.f32.partialorder %v2344_v50, 0.0 }
 0x3bc   :  { %v2348_v22 = vadd.f32 %v2347_v25, %v5454_v38  ;;  %v2349_v48 = vpop.f32.mrb[19].mxu0  ;;  %v2500_v11 = vsel %vm2436_vm0, %v2342_v45, %v2468_v51 }
 0x3bd   :  { %v2350_v10 = vadd.f32 %v2349_v48, %v5458_v40  ;;  %v2501_v57 = vsel %vm2437_vm2, %v2344_v50, %v2469_v52 }
 0x3be   :  { %v2470_v13 = vmul.f32 0.2, %v2348_v22  ;;  %2635 = vmatprep.mubr.f32.mxu0 %v2501_v57  ;;  %vm2438_vm6 = vcmp.gt.f32.partialorder %v2348_v22, 0.0 }
 0x3bf   :  { %v2471_v43 = vmul.f32 0.2, %v2350_v10  ;;  %v2353_v21 = vpop.f32.mrb[20].mxu0  ;;  %2636 = vmatmul.mubr.f32.vlgmr.msra.gmra.mrb[48].mxu0 %v2500_v11  ;;  %vm2439_vm5 = vcmp.gt.f32.partialorder %v2350_v10, 0.0 }
 0x3c0   :  { %v2354_v53 = vadd.f32 %v2353_v21, %v5454_v38  ;;  %v2355_v28 = vpop.f32.mrb[21].mxu0  ;;  %3587 = vmatpush3.bf16.msra.mxu0 %v3584_v4  ;;  %v2502_v54 = vsel %vm2438_vm6, %v2348_v22, %v2470_v13 }
 0x3c1   :  { %v2356_v33 = vadd.f32 %v2355_v28, %v5458_v40  ;;  %v2503_v39 = vsel %vm2439_vm5, %v2350_v10, %v2471_v43  ;;  %3589 = vmatprep.subr.bf16.mxu0 %v3588_v55 }
 0x3c2   :  { %v2472_v1 = vmul.f32 0.2, %v2354_v53  ;;  %2640 = vmatprep.mubr.f32.mxu0 %v2503_v39  ;;  %vm2440_vm8 = vcmp.gt.f32.partialorder %v2354_v53, 0.0 }
 0x3c3   :  { %v2473_v9 = vmul.f32 0.2, %v2356_v33  ;;  %v2359_v62 = vpop.f32.mrb[22].mxu0  ;;  %2641 = vmatmul.mubr.f32.gmra.mrb[50].mxu0 %v2502_v54  ;;  %vm2441_vm7 = vcmp.gt.f32.partialorder %v2356_v33, 0.0 }
 0x3c4   :  { %v2360_v60 = vadd.f32 %v2359_v62, %v5454_v38  ;;  %v2361_v59 = vpop.f32.mrb[23].mxu0  ;;  %3591 = vmatpush3.bf16.msra.mxu0 %v3588_v55  ;;  %v2504_v30 = vsel %vm2440_vm8, %v2354_v53, %v2472_v1 }
 0x3c5   :  { %v2362_v34 = vadd.f32 %v2361_v59, %v5458_v40  ;;  %v2505_v5 = vsel %vm2441_vm7, %v2356_v33, %v2473_v9  ;;  %3593 = vmatprep.subr.bf16.mxu0 %v5425_v2 }
 0x3c6   :  { %v2474_v19 = vmul.f32 0.2, %v2360_v60  ;;  %2645 = vmatprep.mubr.f32.mxu0 %v2505_v5  ;;  %vm2442_vm10 = vcmp.gt.f32.partialorder %v2360_v60, 0.0 }
 0x3c7   :  { %v2475_v15 = vmul.f32 0.2, %v2362_v34  ;;  %v2365_v23 = vpop.f32.mrb[24].mxu0  ;;  %2646 = vmatmul.mubr.f32.gmra.mrb[52].mxu0 %v2504_v30  ;;  %vm2443_vm9 = vcmp.gt.f32.partialorder %v2362_v34, 0.0 }
 0x3c8   :  { %v2366_v49 = vadd.f32 %v2365_v23, %v5454_v38  ;;  %v2367_v58 = vpop.f32.mrb[25].mxu0  ;;  %3595 = vmatpush3.bf16.msra.mxu0 %v5425_v2  ;;  %v2506_v0 = vsel %vm2442_vm10, %v2360_v60, %v2474_v19 }
 0x3c9   :  { %v2368_v16 = vadd.f32 %v2367_v58, %v5458_v40  ;;  %v2507_v42 = vsel %vm2443_vm9, %v2362_v34, %v2475_v15  ;;  %3597 = vmatprep.subr.bf16.mxu0 %v5434_v14 }
 0x3ca   :  { %v2476_v24 = vmul.f32 0.2, %v2366_v49  ;;  %2650 = vmatprep.mubr.f32.mxu0 %v2507_v42  ;;  %vm2444_vm12 = vcmp.gt.f32.partialorder %v2366_v49, 0.0 }
 0x3cb   :  { %v2477_v56 = vmul.f32 0.2, %v2368_v16  ;;  %v2371_v17 = vpop.f32.mrb[26].mxu0  ;;  %2651 = vmatmul.mubr.f32.gmra.mrb[54].mxu0 %v2506_v0  ;;  %vm2445_vm11 = vcmp.gt.f32.partialorder %v2368_v16, 0.0 }
 0x3cc   :  { %v2372_v31 = vadd.f32 %v2371_v17, %v5454_v38  ;;  %v2373_v63 = vpop.f32.mrb[27].mxu0  ;;  %3599 = vmatpush3.bf16.msra.mxu0 %v5434_v14  ;;  %v2508_v6 = vsel %vm2444_vm12, %v2366_v49, %v2476_v24 }
 0x3cd   :  { %v2374_v3 = vadd.f32 %v2373_v63, %v5458_v40  ;;  %v2509_v20 = vsel %vm2445_vm11, %v2368_v16, %v2477_v56  ;;  %3601 = vmatprep.subr.bf16.mxu0 %v5444_v36 }
 0x3ce   :  { %v2478_v44 = vmul.f32 0.2, %v2372_v31  ;;  %2655 = vmatprep.mubr.f32.mxu0 %v2509_v20  ;;  %vm2446_vm14 = vcmp.gt.f32.partialorder %v2372_v31, 0.0 }
 0x3cf   :  { %v2479_v47 = vmul.f32 0.2, %v2374_v3  ;;  %v2377_v61 = vpop.f32.mrb[28].mxu0  ;;  %2656 = vmatmul.mubr.f32.gmra.mrb[56].mxu0 %v2508_v6  ;;  %vm2447_vm13 = vcmp.gt.f32.partialorder %v2374_v3, 0.0 }
 0x3d0   :  { %v2378_v27 = vadd.f32 %v2377_v61, %v5454_v38  ;;  %v2379_v37 = vpop.f32.mrb[29].mxu0  ;;  %3603 = vmatpush3.bf16.msra.mxu0 %v5444_v36  ;;  %v2510_v26 = vsel %vm2446_vm14, %v2372_v31, %v2478_v44 }
 0x3d1   :  { %v2380_v4 = vadd.f32 %v2379_v37, %v5458_v40  ;;  %v2511_v8 = vsel %vm2447_vm13, %v2374_v3, %v2479_v47 }
 0x3d2   :  { %v2480_v55 = vmul.f32 0.2, %v2378_v27  ;;  %2660 = vmatprep.mubr.f32.mxu0 %v2511_v8  ;;  %vm2448_vm1 = vcmp.gt.f32.partialorder %v2378_v27, 0.0 }
 0x3d3   :  { %v2481_v35 = vmul.f32 0.2, %v2380_v4  ;;  %v2383_v2 = vpop.f32.mrb[30].mxu0  ;;  %2661 = vmatmul.mubr.f32.gmra.mrb[58].mxu0 %v2510_v26  ;;  %vm2449_vm15 = vcmp.gt.f32.partialorder %v2380_v4, 0.0 }
 0x3d4   :  { %v2384_v18 = vadd.f32 %v2383_v2, %v5454_v38  ;;  %v2385_v7 = vpop.f32.mrb[31].mxu0  ;;  %v2512_v36 = vsel %vm2448_vm1, %v2378_v27, %v2480_v55 }
 0x3d5   :  { %v2386_v14 = vadd.f32 %v2385_v7, %v5458_v40  ;;  %v2513_v12 = vsel %vm2449_vm15, %v2380_v4, %v2481_v35 }
 0x3d6   :  { %v2482_v29 = vmul.f32 0.2, %v2384_v18  ;;  %2665 = vmatprep.mubr.f32.mxu0 %v2513_v12  ;;  %vm2450_vm4 = vcmp.gt.f32.partialorder %v2384_v18, 0.0 }
 0x3d7   :  { %v2483_v32 = vmul.f32 0.2, %v2386_v14  ;;  %v2389_v41 = vpop.f32.mrb[32].mxu0  ;;  %2666 = vmatmul.mubr.f32.gmra.mrb[60].mxu0 %v2512_v36  ;;  %vm2451_vm3 = vcmp.gt.f32.partialorder %v2386_v14, 0.0 }
 0x3d8   :  { %v2390_v45 = vadd.f32 %v2389_v41, %v5454_v38  ;;  %v2391_v46 = vpop.f32.mrb[33].mxu0  ;;  %v2514_v25 = vsel %vm2450_vm4, %v2384_v18, %v2482_v29 }
 0x3d9   :  { %v2392_v50 = vadd.f32 %v2391_v46, %v5458_v40  ;;  %v2515_v51 = vsel %vm2451_vm3, %v2386_v14, %v2483_v32 }
 0x3da   :  { %v2484_v52 = vmul.f32 0.2, %v2390_v45  ;;  %2670 = vmatprep.mubr.f32.mxu0 %v2515_v51  ;;  %vm2452_vm2 = vcmp.gt.f32.partialorder %v2390_v45, 0.0  ;;  %v2774_v51 = vld [vmem:[%s5615_s17 + $0x50] sm:$0xff] }
 0x3db   :  { %v2485_v22 = vmul.f32 0.2, %v2392_v50  ;;  %v2395_v48 = vpop.f32.mrb[34].mxu0  ;;  %2671 = vmatmul.mubr.f32.gmra.mrb[62].mxu0 %v2514_v25  ;;  %vm2453_vm0 = vcmp.gt.f32.partialorder %v2392_v50, 0.0  ;;  %v2777_v25 = vld [vmem:[%s5615_s17 + $0x68] sm:$0xff] }
 0x3dc   :  { %v2396_v10 = vadd.f32 %v2395_v48, %v5454_v38  ;;  %v2397_v57 = vpop.f32.mrb[35].mxu0  ;;  %v2516_v21 = vsel %vm2452_vm2, %v2390_v45, %v2484_v52  ;;  %v2776_v52 = vld [vmem:[%s5615_s17 + $0x60] sm:$0xff]  ;;  %v2778_v48 = vld [vmem:[%s5615_s17 + $0x70] sm:$0xff] }
 0x3dd   :  { %v2398_v11 = vadd.f32 %v2397_v57, %v5458_v40  ;;  %v2517_v13 = vsel %vm2453_vm0, %v2392_v50, %v2485_v22  ;;  %v3608_v22 = vpack.c.bf16 %v2777_v25, %v2776_v52 }
 0x3de   :  { %v2486_v43 = vmul.f32 0.2, %v2396_v10  ;;  %2675 = vmatprep.mubr.f32.mxu0 %v2517_v13  ;;  %vm2454_vm6 = vcmp.gt.f32.partialorder %v2396_v10, 0.0  ;;  %v5516_v13 = vld [vmem:[#allocation2] ss:$0 sm:$0xff] }
 0x3df   :  { %v2487_v53 = vmul.f32 0.2, %v2398_v11  ;;  %v2401_v28 = vpop.f32.mrb[36].mxu0  ;;  %2676 = vmatmul.mubr.f32.gmra.mrb[64].mxu0 %v2516_v21  ;;  %vm2455_vm5 = vcmp.gt.f32.partialorder %v2398_v11, 0.0 }
 0x3e0   :  { %v2402_v33 = vadd.f32 %v2401_v28, %v5454_v38  ;;  %v2403_v39 = vpop.f32.mrb[37].mxu0  ;;  %v2518_v62 = vsel %vm2454_vm6, %v2396_v10, %v2486_v43  ;;  %v2779_v10 = vld [vmem:[%s5615_s17 + $0x78] sm:$0xff] }
 0x3e1   :  { %v2404_v1 = vadd.f32 %v2403_v39, %v5458_v40  ;;  %v2519_v54 = vsel %vm2455_vm5, %v2398_v11, %v2487_v53  ;;  %v3612_v57 = vpack.c.bf16 %v2779_v10, %v2778_v48 }
 0x3e2   :  { %v2488_v9 = vmul.f32 0.2, %v2402_v33  ;;  %2680 = vmatprep.mubr.f32.mxu0 %v2519_v54  ;;  %vm2456_vm8 = vcmp.gt.f32.partialorder %v2402_v33, 0.0 }
 0x3e3   :  { %v2489_v60 = vmul.f32 0.2, %v2404_v1  ;;  %v2407_v59 = vpop.f32.mrb[38].mxu0  ;;  %2681 = vmatmul.mubr.f32.gmra.mrb[66].mxu0 %v2518_v62  ;;  %vm2457_vm7 = vcmp.gt.f32.partialorder %v2404_v1, 0.0 }
 0x3e4   :  { %v2408_v34 = vadd.f32 %v2407_v59, %v5454_v38  ;;  %v2409_v5 = vpop.f32.mrb[39].mxu0  ;;  %v2520_v23 = vsel %vm2456_vm8, %v2402_v33, %v2488_v9 }
 0x3e5   :  { %v2410_v19 = vadd.f32 %v2409_v5, %v5458_v40  ;;  %v2521_v30 = vsel %vm2457_vm7, %v2404_v1, %v2489_v60 }
 0x3e6   :  { %v2490_v15 = vmul.f32 0.2, %v2408_v34  ;;  %2685 = vmatprep.mubr.f32.mxu0 %v2521_v30  ;;  %vm2458_vm10 = vcmp.gt.f32.partialorder %v2408_v34, 0.0 }
 0x3e7   :  { %v2491_v49 = vmul.f32 0.2, %v2410_v19  ;;  %v2413_v58 = vpop.f32.mrb[40].mxu0  ;;  %2686 = vmatmul.mubr.f32.gmra.mrb[68].mxu0 %v2520_v23  ;;  %vm2459_vm9 = vcmp.gt.f32.partialorder %v2410_v19, 0.0 }
 0x3e8   :  { %v2414_v16 = vadd.f32 %v2413_v58, %v5454_v38  ;;  %v2415_v42 = vpop.f32.mrb[41].mxu0  ;;  %v2522_v17 = vsel %vm2458_vm10, %v2408_v34, %v2490_v15 }
 0x3e9   :  { %v2416_v24 = vadd.f32 %v2415_v42, %v5458_v40  ;;  %v2523_v0 = vsel %vm2459_vm9, %v2410_v19, %v2491_v49 }
 0x3ea   :  { %v2492_v56 = vmul.f32 0.2, %v2414_v16  ;;  %2690 = vmatprep.mubr.f32.mxu0 %v2523_v0  ;;  %vm2460_vm12 = vcmp.gt.f32.partialorder %v2414_v16, 0.0 }
 0x3eb   :  { %v2493_v31 = vmul.f32 0.2, %v2416_v24  ;;  %v2419_v63 = vpop.f32.mrb[42].mxu0  ;;  %2691 = vmatmul.mubr.f32.gmra.mrb[70].mxu0 %v2522_v17  ;;  %vm2461_vm11 = vcmp.gt.f32.partialorder %v2416_v24, 0.0 }
 0x3ec   :  { %v2420_v3 = vadd.f32 %v2419_v63, %v5454_v38  ;;  %v2421_v20 = vpop.f32.mrb[43].mxu0  ;;  %v2524_v61 = vsel %vm2460_vm12, %v2414_v16, %v2492_v56 }
 0x3ed   :  { %v2422_v44 = vadd.f32 %v2421_v20, %v5458_v40  ;;  %v2525_v6 = vsel %vm2461_vm11, %v2416_v24, %v2493_v31 }
 0x3ee   :  { %v2494_v47 = vmul.f32 0.2, %v2420_v3  ;;  %2695 = vmatprep.mubr.f32.mxu0 %v2525_v6  ;;  %vm2462_vm14 = vcmp.gt.f32.partialorder %v2420_v3, 0.0 }
 0x3ef   :  { %v2495_v27 = vmul.f32 0.2, %v2422_v44  ;;  %v2425_v37 = vpop.f32.mrb[44].mxu0  ;;  %2696 = vmatmul.mubr.f32.gmra.mrb[72].mxu0 %v2524_v61  ;;  %vm2463_vm13 = vcmp.gt.f32.partialorder %v2422_v44, 0.0 }
 0x3f0   :  { %v2426_v4 = vadd.f32 %v2425_v37, %v5454_v38  ;;  %v2427_v8 = vpop.f32.mrb[45].mxu0  ;;  %v2526_v2 = vsel %vm2462_vm14, %v2420_v3, %v2494_v47 }
 0x3f1   :  { %v2428_v55 = vadd.f32 %v2427_v8, %v5458_v40  ;;  %v2527_v26 = vsel %vm2463_vm13, %v2422_v44, %v2495_v27 }
 0x3f2   :  { %v2496_v35 = vmul.f32 0.2, %v2426_v4  ;;  %2700 = vmatprep.mubr.f32.mxu0 %v2527_v26  ;;  %vm2464_vm1 = vcmp.gt.f32.partialorder %v2426_v4, 0.0 }
 0x3f3   :  { %v2497_v18 = vmul.f32 0.2, %v2428_v55  ;;  %v2431_v7 = vpop.f32.mrb[46].mxu0  ;;  %2701 = vmatmul.mubr.f32.gmra.mrb[74].mxu0 %v2526_v2  ;;  %vm2465_vm15 = vcmp.gt.f32.partialorder %v2428_v55, 0.0 }
 0x3f4   :  { %v2432_v14 = vadd.f32 %v2431_v7, %v5454_v38  ;;  %v2433_v12 = vpop.f32.mrb[47].mxu0  ;;  %v2528_v41 = vsel %vm2464_vm1, %v2426_v4, %v2496_v35  ;;  %v2775_v38 = vld [vmem:[%s5615_s17 + $0x58] sm:$0xff] }
 0x3f5   :  { %v2434_v29 = vadd.f32 %v2433_v12, %v5458_v40  ;;  %v2529_v36 = vsel %vm2465_vm15, %v2428_v55, %v2497_v18  ;;  %v3604_v40 = vpack.c.bf16 %v2775_v38, %v2774_v51 }
 0x3f6   :  { %v2498_v32 = vmul.f32 0.2, %v2432_v14  ;;  %2705 = vmatprep.mubr.f32.mxu0 %v2529_v36  ;;  %vm2466_vm4 = vcmp.gt.f32.partialorder %v2432_v14, 0.0 }
 0x3f7   :  { %v2499_v45 = vmul.f32 0.2, %v2434_v29  ;;  %2706 = vmatmul.mubr.f32.gmra.mrb[76].mxu0 %v2528_v41  ;;  %vm2467_vm3 = vcmp.gt.f32.partialorder %v2434_v29, 0.0  ;;  %3605 = vmatprep.subr.bf16.mxu0 %v3604_v40 }
 0x3f8   :  { %v2530_v50 = vsel %vm2466_vm4, %v2432_v14, %v2498_v32  ;;  %3621 = vmatprep.subr.bf16.mxu1 %v3604_v40  ;;  %3607 = vmatpush3.bf16.msra.mxu0 %v3604_v40 }
 0x3f9   :  { %v2531_v46 = vsel %vm2467_vm3, %v2434_v29, %v2499_v45  ;;  %3629 = vmatpush3.bf16.msra.mxu1 %v3604_v40  ;;  %3609 = vmatprep.subr.bf16.mxu0 %v3608_v22 }
 0x3fa   :  { %2710 = vmatprep.mubr.f32.mxu0 %v2531_v46  ;;  %3622 = vmatprep.subr.bf16.mxu1 %v3608_v22 }
 0x3fb   :  { %2711 = vmatmul.mubr.f32.gmra.mrb[78].mxu0 %v2530_v50 }
 0x3fc   :  { %3611 = vmatpush3.bf16.msra.mxu0 %v3608_v22 }
 0x3fd   :  { %3630 = vmatpush3.bf16.msra.mxu1 %v3608_v22  ;;  %3613 = vmatprep.subr.bf16.mxu0 %v3612_v57 }
 0x3fe   :  { %3623 = vmatprep.subr.bf16.mxu1 %v3612_v57 }
 0x400   :  { %3615 = vmatpush3.bf16.msra.mxu0 %v3612_v57 }
 0x401   :  { %3631 = vmatpush3.bf16.msra.mxu1 %v3612_v57 }
 0x492   :  { %v3164_v11 = vpop.f32.mrb[48].mxu0 }
 0x493   :  { %v3165_v43 = vpop.f32.mrb[49].mxu0 }
 0x494   :  { %v3166_v21 = vadd.f32 %v3165_v43, %v3164_v11 }
 0x496   :  { %v2638_v53 = vadd.f32 %v3166_v21, %v5516_v13  ;;  %v3167_v28 = vpop.f32.mrb[50].mxu0 }
 0x497   :  { %v3168_v33 = vpop.f32.mrb[51].mxu0 }
 0x498   :  { %v3169_v39 = vadd.f32 %v3168_v33, %v3167_v28  ;;  %vm2716_vm0 = vcmp.gt.f32.partialorder %v2638_v53, 0.0  ;;  %v2732_v1 = vmul.f32 0.2, %v2638_v53 }
 0x49a   :  { %v2643_v54 = vadd.f32 %v3169_v39, %v5516_v13  ;;  %v3170_v9 = vpop.f32.mrb[52].mxu0  ;;  %v2748_v62 = vsel %vm2716_vm0, %v2638_v53, %v2732_v1  ;;  %vm2932_vm0 = vcmask 48128  }
 0x49b   :  { %v3171_v60 = vpop.f32.mrb[53].mxu0  ;;  %3376 = vmatprep.mubr.f32.mxu0 %v2748_v62 }
 0x49c   :  { %vm2717_vm2 = vcmp.gt.f32.partialorder %v2643_v54, 0.0  ;;  %v2733_v59 = vmul.f32 0.2, %v2643_v54  ;;  %v3172_v34 = vadd.f32 %v3171_v60, %v3170_v9 }
 0x49e   :  { %v2648_v5 = vadd.f32 %v3172_v34, %v5516_v13  ;;  %v3173_v19 = vpop.f32.mrb[54].mxu0  ;;  %v2749_v30 = vsel %vm2717_vm2, %v2643_v54, %v2733_v59 }
 0x49f   :  { %v3174_v15 = vpop.f32.mrb[55].mxu0  ;;  %3377 = vmatmul.mubr.f32.vlgmr.msra.gmra.mrb[80].mxu0 %v2749_v30 }
 0x4a0   :  { %v3175_v23 = vadd.f32 %v3174_v15, %v3173_v19  ;;  %vm2718_vm5 = vcmp.gt.f32.partialorder %v2648_v5, 0.0  ;;  %v2734_v49 = vmul.f32 0.2, %v2648_v5 }
 0x4a2   :  { %v2653_v58 = vadd.f32 %v3175_v23, %v5516_v13  ;;  %v3176_v16 = vpop.f32.mrb[56].mxu0  ;;  %v2750_v42 = vsel %vm2718_vm5, %v2648_v5, %v2734_v49 }
 0x4a3   :  { %v3177_v24 = vpop.f32.mrb[57].mxu0  ;;  %3379 = vmatprep.mubr.f32.mxu0 %v2750_v42 }
 0x4a4   :  { %v3178_v0 = vadd.f32 %v3177_v24, %v3176_v16  ;;  %vm2719_vm6 = vcmp.gt.f32.partialorder %v2653_v58, 0.0  ;;  %v2735_v56 = vmul.f32 0.2, %v2653_v58 }
 0x4a6   :  { %v2658_v17 = vadd.f32 %v3178_v0, %v5516_v13  ;;  %v3179_v31 = vpop.f32.mrb[58].mxu0  ;;  %v2751_v63 = vsel %vm2719_vm6, %v2653_v58, %v2735_v56 }
 0x4a7   :  { %v3180_v3 = vpop.f32.mrb[59].mxu0  ;;  %3380 = vmatmul.mubr.f32.gmra.mrb[82].mxu0 %v2751_v63 }
 0x4a8   :  { %v3181_v20 = vadd.f32 %v3180_v3, %v3179_v31  ;;  %vm2720_vm7 = vcmp.gt.f32.partialorder %v2658_v17, 0.0  ;;  %v2736_v44 = vmul.f32 0.2, %v2658_v17 }
 0x4aa   :  { %v2663_v6 = vadd.f32 %v3181_v20, %v5516_v13  ;;  %v3182_v47 = vpop.f32.mrb[60].mxu0  ;;  %v2752_v61 = vsel %vm2720_vm7, %v2658_v17, %v2736_v44 }
 0x4ab   :  { %v3183_v27 = vpop.f32.mrb[61].mxu0  ;;  %3382 = vmatprep.mubr.f32.mxu0 %v2752_v61 }
 0x4ac   :  { %v3184_v37 = vadd.f32 %v3183_v27, %v3182_v47  ;;  %vm2721_vm8 = vcmp.gt.f32.partialorder %v2663_v6, 0.0  ;;  %v2737_v4 = vmul.f32 0.2, %v2663_v6  ;;  %v3069_v47 = vld [vmem:[#allocation4] ss:$0 sm:$0xff] }
 0x4ae   :  { %v2668_v8 = vadd.f32 %v3184_v37, %v5516_v13  ;;  %v3185_v55 = vpop.f32.mrb[62].mxu0  ;;  %v2753_v26 = vsel %vm2721_vm8, %v2663_v6, %v2737_v4 }
 0x4af   :  { %v3186_v35 = vpop.f32.mrb[63].mxu0  ;;  %3383 = vmatmul.mubr.f32.gmra.mrb[84].mxu0 %v2753_v26 }
 0x4b0   :  { %v3187_v2 = vadd.f32 %v3186_v35, %v3185_v55  ;;  %vm2722_vm9 = vcmp.gt.f32.partialorder %v2668_v8, 0.0  ;;  %v2738_v18 = vmul.f32 0.2, %v2668_v8 }
 0x4b2   :  { %v2673_v7 = vadd.f32 %v3187_v2, %v5516_v13  ;;  %v3188_v14 = vpop.f32.mrb[64].mxu0  ;;  %v2754_v12 = vsel %vm2722_vm9, %v2668_v8, %v2738_v18 }
 0x4b3   :  { %v3189_v29 = vpop.f32.mrb[65].mxu0  ;;  %3385 = vmatprep.mubr.f32.mxu1 %v2754_v12 }
 0x4b4   :  { %vm2723_vm10 = vcmp.gt.f32.partialorder %v2673_v7, 0.0  ;;  %v2739_v36 = vmul.f32 0.2, %v2673_v7  ;;  %v3190_v32 = vadd.f32 %v3189_v29, %v3188_v14 }
 0x4b6   :  { %v2678_v41 = vadd.f32 %v3190_v32, %v5516_v13  ;;  %v3191_v45 = vpop.f32.mrb[66].mxu0  ;;  %v2755_v46 = vsel %vm2723_vm10, %v2673_v7, %v2739_v36 }
 0x4b7   :  { %v3192_v50 = vpop.f32.mrb[67].mxu0  ;;  %3386 = vmatmul.mubr.f32.vlgmr.msra.gmra.mrb[32].mxu1 %v2755_v46 }
 0x4b8   :  { %v3193_v51 = vadd.f32 %v3192_v50, %v3191_v45  ;;  %vm2724_vm11 = vcmp.gt.f32.partialorder %v2678_v41, 0.0  ;;  %v2740_v38 = vmul.f32 0.2, %v2678_v41 }
 0x4ba   :  { %v2683_v40 = vadd.f32 %v3193_v51, %v5516_v13  ;;  %v3194_v52 = vpop.f32.mrb[68].mxu0  ;;  %v2756_v25 = vsel %vm2724_vm11, %v2678_v41, %v2740_v38 }
 0x4bb   :  { %v3195_v22 = vpop.f32.mrb[69].mxu0  ;;  %3388 = vmatprep.mubr.f32.mxu1 %v2756_v25 }
 0x4bc   :  { %v3196_v48 = vadd.f32 %v3195_v22, %v3194_v52  ;;  %vm2725_vm12 = vcmp.gt.f32.partialorder %v2683_v40, 0.0  ;;  %v2741_v10 = vmul.f32 0.2, %v2683_v40 }
 0x4be   :  { %v2688_v57 = vadd.f32 %v3196_v48, %v5516_v13  ;;  %v3197_v11 = vpop.f32.mrb[70].mxu0  ;;  %v2757_v43 = vsel %vm2725_vm12, %v2683_v40, %v2741_v10 }
 0x4bf   :  { %v3198_v21 = vpop.f32.mrb[71].mxu0  ;;  %3389 = vmatmul.mubr.f32.gmra.mrb[34].mxu1 %v2757_v43 }
 0x4c0   :  { %v3199_v53 = vadd.f32 %v3198_v21, %v3197_v11  ;;  %vm2726_vm13 = vcmp.gt.f32.partialorder %v2688_v57, 0.0  ;;  %v2742_v28 = vmul.f32 0.2, %v2688_v57 }
 0x4c2   :  { %v2693_v33 = vadd.f32 %v3199_v53, %v5516_v13  ;;  %v3200_v39 = vpop.f32.mrb[72].mxu0  ;;  %v2758_v1 = vsel %vm2726_vm13, %v2688_v57, %v2742_v28 }
 0x4c3   :  { %v3201_v54 = vpop.f32.mrb[73].mxu0  ;;  %3391 = vmatprep.mubr.f32.mxu1 %v2758_v1 }
 0x4c4   :  { %v3202_v9 = vadd.f32 %v3201_v54, %v3200_v39  ;;  %vm2727_vm14 = vcmp.gt.f32.partialorder %v2693_v33, 0.0  ;;  %v2743_v62 = vmul.f32 0.2, %v2693_v33 }
 0x4c6   :  { %v2698_v60 = vadd.f32 %v3202_v9, %v5516_v13  ;;  %v3203_v59 = vpop.f32.mrb[74].mxu0  ;;  %v2759_v34 = vsel %vm2727_vm14, %v2693_v33, %v2743_v62 }
 0x4c7   :  { %v3204_v5 = vpop.f32.mrb[75].mxu0  ;;  %3392 = vmatmul.mubr.f32.gmra.mrb[36].mxu1 %v2759_v34 }
 0x4c8   :  { %v3205_v19 = vadd.f32 %v3204_v5, %v3203_v59  ;;  %vm2728_vm15 = vcmp.gt.f32.partialorder %v2698_v60, 0.0  ;;  %v2744_v30 = vmul.f32 0.2, %v2698_v60 }
 0x4ca   :  { %v2703_v15 = vadd.f32 %v3205_v19, %v5516_v13  ;;  %v3206_v23 = vpop.f32.mrb[76].mxu0  ;;  %v2760_v49 = vsel %vm2728_vm15, %v2698_v60, %v2744_v30 }
 0x4cb   :  { %v3207_v58 = vpop.f32.mrb[77].mxu0  ;;  %3394 = vmatprep.mubr.f32.mxu1 %v2760_v49 }
 0x4cc   :  { %v3208_v16 = vadd.f32 %v3207_v58, %v3206_v23  ;;  %vm2729_vm1 = vcmp.gt.f32.partialorder %v2703_v15, 0.0  ;;  %v2745_v42 = vmul.f32 0.2, %v2703_v15 }
 0x4ce   :  { %v2708_v24 = vadd.f32 %v3208_v16, %v5516_v13  ;;  %v3209_v0 = vpop.f32.mrb[78].mxu0  ;;  %v2761_v56 = vsel %vm2729_vm1, %v2703_v15, %v2745_v42 }
 0x4cf   :  { %v3210_v17 = vpop.f32.mrb[79].mxu0  ;;  %3395 = vmatmul.mubr.f32.gmra.mrb[38].mxu1 %v2761_v56 }
 0x4d0   :  { %v3211_v31 = vadd.f32 %v3210_v17, %v3209_v0  ;;  %vm2730_vm3 = vcmp.gt.f32.partialorder %v2708_v24, 0.0  ;;  %v2746_v63 = vmul.f32 0.2, %v2708_v24 }
 0x4d2   :  { %v2713_v3 = vadd.f32 %v3211_v31, %v5516_v13  ;;  %v2762_v20 = vsel %vm2730_vm3, %v2708_v24, %v2746_v63 }
 0x4d3   :  { %3397 = vmatprep.mubr.f32.mxu1 %v2762_v20 }
 0x4d4   :  { %vm2731_vm4 = vcmp.gt.f32.partialorder %v2713_v3, 0.0  ;;  %v2747_v44 = vmul.f32 0.2, %v2713_v3 }
 0x4d6   :  { %v2763_v6 = vsel %vm2731_vm4, %v2713_v3, %v2747_v44 }
 0x4d7   :  { %3398 = vmatmul.mubr.f32.gmra.mrb[40].mxu1 %v2763_v6 }
 0x572   :  { %v3378_v61 = vpop.f32.mrb[80].mxu0 }
 0x573   :  { %v2859_v27 = vadd.f32 %v3378_v61, %v3069_v47  ;;  %v2853_v37 = vpop.f32.mrb[81].mxu0 }
 0x574   :  { %v2854_v4 = vadd.f32 %v3069_v47, %v2853_v37 }
 0x575   :  { %2934 = vst.msk [vmem:[%s5617_s19 + $0x8] sm:$0xff] %vm2932_vm0, %v2859_v27 }
 0x576   :  { %2933 = vst.msk [vmem:[%s5617_s19] sm:$0xff] %vm2932_vm0, %v2854_v4 }
 0x57a   :  { %v3381_v13 = vpop.f32.mrb[82].mxu0 }
 0x57b   :  { %v2869_v8 = vadd.f32 %v3381_v13, %v3069_v47  ;;  %v2863_v55 = vpop.f32.mrb[83].mxu0 }
 0x57c   :  { %v2864_v26 = vadd.f32 %v3069_v47, %v2863_v55 }
 0x57d   :  { %2936 = vst.msk [vmem:[%s5617_s19 + $0x18] sm:$0xff] %vm2932_vm0, %v2869_v8 }
 0x57e   :  { %2935 = vst.msk [vmem:[%s5617_s19 + $0x10] sm:$0xff] %vm2932_vm0, %v2864_v26 }
 0x582   :  { %v3384_v35 = vpop.f32.mrb[84].mxu0 }
 0x583   :  { %v2879_v2 = vadd.f32 %v3384_v35, %v3069_v47  ;;  %v2873_v18 = vpop.f32.mrb[85].mxu0 }
 0x584   :  { %v2874_v7 = vadd.f32 %v3069_v47, %v2873_v18 }
 0x585   :  { %2938 = vst.msk [vmem:[%s5617_s19 + $0x28] sm:$0xff] %vm2932_vm0, %v2879_v2 }
 0x586   :  { %2937 = vst.msk [vmem:[%s5617_s19 + $0x20] sm:$0xff] %vm2932_vm0, %v2874_v7 }
 0x58a   :  { %v3387_v14 = vpop.f32.mrb[32].mxu1 }
 0x58b   :  { %v2889_v12 = vadd.f32 %v3387_v14, %v3069_v47  ;;  %v2883_v29 = vpop.f32.mrb[33].mxu1 }
 0x58c   :  { %v2884_v36 = vadd.f32 %v3069_v47, %v2883_v29 }
 0x58d   :  { %2940 = vst.msk [vmem:[%s5617_s19 + $0x38] sm:$0xff] %vm2932_vm0, %v2889_v12 }
 0x58e   :  { %2939 = vst.msk [vmem:[%s5617_s19 + $0x30] sm:$0xff] %vm2932_vm0, %v2884_v36 }
 0x592   :  { %v3390_v32 = vpop.f32.mrb[34].mxu1 }
 0x593   :  { %v2899_v41 = vadd.f32 %v3390_v32, %v3069_v47  ;;  %v2893_v45 = vpop.f32.mrb[35].mxu1 }
 0x594   :  { %v2894_v46 = vadd.f32 %v3069_v47, %v2893_v45 }
 0x595   :  { %2942 = vst.msk [vmem:[%s5617_s19 + $0x48] sm:$0xff] %vm2932_vm0, %v2899_v41 }
 0x596   :  { %2941 = vst.msk [vmem:[%s5617_s19 + $0x40] sm:$0xff] %vm2932_vm0, %v2894_v46 }
 0x59a   :  { %v3393_v50 = vpop.f32.mrb[36].mxu1 }
 0x59b   :  { %v2909_v51 = vadd.f32 %v3393_v50, %v3069_v47  ;;  %v2903_v38 = vpop.f32.mrb[37].mxu1 }
 0x59c   :  { %v2904_v40 = vadd.f32 %v3069_v47, %v2903_v38 }
 0x59d   :  { %2944 = vst.msk [vmem:[%s5617_s19 + $0x58] sm:$0xff] %vm2932_vm0, %v2909_v51 }
 0x59e   :  { %2943 = vst.msk [vmem:[%s5617_s19 + $0x50] sm:$0xff] %vm2932_vm0, %v2904_v40 }
 0x5a2   :  { %v3396_v52 = vpop.f32.mrb[38].mxu1 }
 0x5a3   :  { %v2919_v25 = vadd.f32 %v3396_v52, %v3069_v47  ;;  %v2913_v22 = vpop.f32.mrb[39].mxu1 }
 0x5a4   :  { %v2914_v48 = vadd.f32 %v3069_v47, %v2913_v22 }
 0x5a5   :  { %2946 = vst.msk [vmem:[%s5617_s19 + $0x68] sm:$0xff] %vm2932_vm0, %v2919_v25 }
 0x5a6   :  { %2945 = vst.msk [vmem:[%s5617_s19 + $0x60] sm:$0xff] %vm2932_vm0, %v2914_v48 }
 0x5aa   :  { %v3399_v10 = vpop.f32.mrb[40].mxu1 }
 0x5ab   :  { %v2929_v57 = vadd.f32 %v3399_v10, %v3069_v47  ;;  %v2923_v11 = vpop.f32.mrb[41].mxu1 }
 0x5ac   :  { %v2924_v43 = vadd.f32 %v3069_v47, %v2923_v11 }
 0x5ad   :  { %2948 = vst.msk [vmem:[%s5617_s19 + $0x78] sm:$0xff] %vm2932_vm0, %v2929_v57 }
 0x5ae   :  { %2947 = vst.msk [vmem:[%s5617_s19 + $0x70] sm:$0xff] %vm2932_vm0, %v2924_v43 }
 0x5af   :  { %2953 = vsyncpa [#allocation3], 1 }
 0x5b0   :  { %2954 = vsyncpa [#allocation5], 1 }

</bundles_post_ra>
